<compile_context>
chip_gen: v6e
topology: v6e:2x2x1
jax: 0.10.0
libtpu: 0.0.40
codegen_flags: <defaults>
</compile_context>

<pallas_src>
import jax
import jax.numpy as jnp
from jax import lax
from jax.experimental import pallas as pl
from jax.experimental.pallas import tpu as pltpu

# ---------------- config (shapes consistent with CAPE's MLP_projection) ----------------
INP_DIM = 128          # inp_dim (d_model = 2 * word_embed_dim = 128)
FFN_DIM = 4096         # layers=[4096] in cape.__init__
OUT_DIM = 128          # out_dim (feature_dim)
ROWS    = 256          # number of input rows in the example (32x the old P=8)
TM      = 128          # rows per grid step (lane-dense output, 8|TM, fits VMEM on v7x)
LN_EPS  = 1e-5         # layer_norm_eps


def _layernorm(x, g, b, eps=LN_EPS):
    mu = jnp.mean(x, axis=-1, keepdims=True)
    xc = x - mu
    var = jnp.mean(xc * xc, axis=-1, keepdims=True)
    return xc * lax.rsqrt(var + eps) * g + b


# ------------------------------------ kernel --------------------------------------------
def mlp_projection_kernel(x_ref, w1_ref, b1_ref, w2_ref, b2_ref,
                          ln3g_ref, ln3b_ref, wp_ref, bp_ref, out_ref):
    x = x_ref[...]                                                      # (TM, D) f32

    # linear1 -> ReLU   (self.dropout is identity in eval)
    h1 = jnp.dot(x.astype(jnp.bfloat16), w1_ref[...],
                 preferred_element_type=jnp.float32) + b1_ref[...]      # (TM, FFN)
    h1 = jnp.maximum(h1, 0.0)

    # linear2           (self.dropout3 is identity in eval)
    q2 = jnp.dot(h1.astype(jnp.bfloat16), w2_ref[...],
                 preferred_element_type=jnp.float32) + b2_ref[...]      # (TM, D)

    # residual + norm3  (self.dropout_proj is identity in eval)
    z = _layernorm(x + q2, ln3g_ref[...], ln3b_ref[...])

    # projection -> ReLU
    proj = jnp.dot(z, wp_ref[...], preferred_element_type=jnp.float32) + bp_ref[...]
    out_ref[...] = jnp.maximum(proj, 0.0)                               # (TM, OUT)


# --------------------------------- pallas wrapper ----------------------------------------
def mlp_projection_call(x, p, *, tm=TM):
    n, d = x.shape
    assert d == INP_DIM
    nblk = pl.cdiv(n, tm)
    n_pad = nblk * tm
    if n_pad != n:
        x = jnp.pad(x, ((0, n_pad - n), (0, 0)))

    row_spec   = lambda shape: pl.BlockSpec(shape, lambda i: (i, 0))   # per-block rows
    const_spec = lambda shape: pl.BlockSpec(shape, lambda i: (0, 0))   # resident weights

    out = pl.pallas_call(
        mlp_projection_kernel,
        out_shape=jax.ShapeDtypeStruct((n_pad, OUT_DIM), jnp.float32),
        grid=(nblk,),
        in_specs=[
            row_spec((tm, INP_DIM)),            # x
            const_spec((INP_DIM, FFN_DIM)),     # w1 (bf16) — DMA'd once, stays resident
            const_spec((1, FFN_DIM)),           # b1
            const_spec((FFN_DIM, INP_DIM)),     # w2 (bf16) — DMA'd once, stays resident
            const_spec((1, INP_DIM)),           # b2
            const_spec((1, INP_DIM)),           # norm3 gamma
            const_spec((1, INP_DIM)),           # norm3 beta
            const_spec((INP_DIM, OUT_DIM)),     # projection weight
            const_spec((1, OUT_DIM)),           # projection bias
        ],
        out_specs=row_spec((tm, OUT_DIM)),
        compiler_params=pltpu.CompilerParams(
            # "parallel" only pays off on v7x when each TC gets >=2 blocks
            # (otherwise it just duplicates the resident-weight DMA per core).
            dimension_semantics=(("parallel",) if nblk >= 4 else ("arbitrary",)),
            vmem_limit_bytes=32 << 20,
        ),
    )(x, p["w1"], p["b1"], p["w2"], p["b2"],
      p["ln3_g"], p["ln3_b"], p["wp"], p["bp"])
    return out[:n]


# ------------------------------ pure-JAX reference ---------------------------------------
def mlp_projection_ref(x, p):
    h1 = jnp.maximum(x @ p["w1"].astype(jnp.float32) + p["b1"], 0.0)
    q2 = h1 @ p["w2"].astype(jnp.float32) + p["b2"]
    z = _layernorm(x + q2, p["ln3_g"], p["ln3_b"])
    return jnp.maximum(z @ p["wp"] + p["bp"], 0.0)


# --------------------------------- parameter setup ---------------------------------------
def init_params(key):
    ks = jax.random.split(key, 4)
    s = 0.02
    f32 = jnp.float32
    return {
        # w1/w2 stored bf16: halves the dominant HBM traffic; MXU accumulates in f32.
        "w1": (s * jax.random.normal(ks[0], (INP_DIM, FFN_DIM), f32)).astype(jnp.bfloat16),
        "b1": jnp.zeros((1, FFN_DIM), f32),
        "w2": (s * jax.random.normal(ks[1], (FFN_DIM, INP_DIM), f32)).astype(jnp.bfloat16),
        "b2": jnp.zeros((1, INP_DIM), f32),
        "ln3_g": jnp.ones((1, INP_DIM), f32), "ln3_b": jnp.zeros((1, INP_DIM), f32),
        "wp": s * jax.random.normal(ks[2], (INP_DIM, OUT_DIM), f32),
        "bp": jnp.zeros((1, OUT_DIM), f32),
        # NOTE: norm1, norm2, linear_inter, dropout1/2 exist on the module but are never
        # used in forward(); they are intentionally not materialized here.
    }


if __name__ == "__main__":
    key = jax.random.PRNGKey(0)
    k_x, k_p = jax.random.split(key, 2)

    x = jax.random.normal(k_x, (ROWS, INP_DIM), jnp.float32)
    params = init_params(k_p)

    out = jax.jit(mlp_projection_call)(x, params)
    jax.block_until_ready(out)

    assert out.shape == (ROWS, OUT_DIM)
    assert bool(jnp.all(jnp.isfinite(out)))

    # sanity vs. f32 reference (kernel uses bf16 weight storage + bf16 MXU inputs,
    # f32 accumulation -> loose tolerance expected).
    ref = mlp_projection_ref(x, params)
    assert bool(jnp.allclose(out, ref, rtol=5e-2, atol=5e-2))

    print("KERNEL_OK")
</pallas_src>

<mosaic_0001>
module attributes {stable_mosaic.version = 11 : i64} {
  func.func @mlp_projection_kernel(%arg0: i32, %arg1: memref<128x128xf32, #tpu.memory_space<vmem>>, %arg2: memref<128x4096xbf16, #tpu.memory_space<vmem>>, %arg3: memref<1x4096xf32, #tpu.memory_space<vmem>>, %arg4: memref<4096x128xbf16, #tpu.memory_space<vmem>>, %arg5: memref<1x128xf32, #tpu.memory_space<vmem>>, %arg6: memref<1x128xf32, #tpu.memory_space<vmem>>, %arg7: memref<1x128xf32, #tpu.memory_space<vmem>>, %arg8: memref<128x128xf32, #tpu.memory_space<vmem>>, %arg9: memref<1x128xf32, #tpu.memory_space<vmem>>, %arg10: memref<128x128xf32, #tpu.memory_space<vmem>>) attributes {dimension_semantics = [#tpu.dimension_semantics<arbitrary>], iteration_bounds = array<i64: 2>, scalar_prefetch = 0 : i64, scratch_operands = 0 : i64, tpu.core_type = #tpu.core_type<tc>, window_params = [{transform_indices = @transform_0, window_bounds = array<i64: 128, 128>}, {pipeline_mode = #tpu.pipeline_mode<synchronous>, transform_indices = @transform_1, window_bounds = array<i64: 128, 4096>}, {pipeline_mode = #tpu.pipeline_mode<synchronous>, transform_indices = @transform_2, window_bounds = array<i64: 1, 4096>}, {pipeline_mode = #tpu.pipeline_mode<synchronous>, transform_indices = @transform_3, window_bounds = array<i64: 4096, 128>}, {pipeline_mode = #tpu.pipeline_mode<synchronous>, transform_indices = @transform_4, window_bounds = array<i64: 1, 128>}, {pipeline_mode = #tpu.pipeline_mode<synchronous>, transform_indices = @transform_5, window_bounds = array<i64: 1, 128>}, {pipeline_mode = #tpu.pipeline_mode<synchronous>, transform_indices = @transform_6, window_bounds = array<i64: 1, 128>}, {pipeline_mode = #tpu.pipeline_mode<synchronous>, transform_indices = @transform_7, window_bounds = array<i64: 128, 128>}, {pipeline_mode = #tpu.pipeline_mode<synchronous>, transform_indices = @transform_8, window_bounds = array<i64: 1, 128>}, {transform_indices = @transform_9, window_bounds = array<i64: 128, 128>}]} {
    %c0 = arith.constant 0 : index
    %c0_0 = arith.constant 0 : index
    %0 = vector.load %arg1[%c0, %c0_0] : memref<128x128xf32, #tpu.memory_space<vmem>>, vector<128x128xf32>
    %1 = arith.truncf %0 : vector<128x128xf32> to vector<128x128xbf16>
    %c0_1 = arith.constant 0 : index
    %c0_2 = arith.constant 0 : index
    %2 = vector.load %arg2[%c0_1, %c0_2] : memref<128x4096xbf16, #tpu.memory_space<vmem>>, vector<128x4096xbf16>
    %cst = arith.constant dense<0.000000e+00> : vector<128x4096xf32>
    %3 = tpu.matmul %1, %2, %cst {dimension_numbers = #tpu.dot_dimension_numbers<[1], [0], [0], [1], [0, 0, 1, 1], [], []>} : vector<128x128xbf16>, vector<128x4096xbf16>, vector<128x4096xf32> -> vector<128x4096xf32>
    %c0_3 = arith.constant 0 : index
    %c0_4 = arith.constant 0 : index
    %4 = vector.load %arg3[%c0_3, %c0_4] : memref<1x4096xf32, #tpu.memory_space<vmem>>, vector<1x4096xf32>
    %5 = vector.broadcast %4 : vector<1x4096xf32> to vector<128x4096xf32>
    %6 = arith.addf %3, %5 : vector<128x4096xf32>
    %cst_5 = arith.constant 0.000000e+00 : f32
    %7 = vector.broadcast %cst_5 : f32 to vector<128x4096xf32>
    %8 = arith.maximumf %6, %7 : vector<128x4096xf32>
    %9 = arith.truncf %8 : vector<128x4096xf32> to vector<128x4096xbf16>
    %c0_6 = arith.constant 0 : index
    %c0_7 = arith.constant 0 : index
    %10 = vector.load %arg4[%c0_6, %c0_7] : memref<4096x128xbf16, #tpu.memory_space<vmem>>, vector<4096x128xbf16>
    %cst_8 = arith.constant dense<0.000000e+00> : vector<128x128xf32>
    %11 = tpu.matmul %9, %10, %cst_8 {dimension_numbers = #tpu.dot_dimension_numbers<[1], [0], [0], [1], [0, 0, 1, 1], [], []>} : vector<128x4096xbf16>, vector<4096x128xbf16>, vector<128x128xf32> -> vector<128x128xf32>
    %c0_9 = arith.constant 0 : index
    %c0_10 = arith.constant 0 : index
    %12 = vector.load %arg5[%c0_9, %c0_10] : memref<1x128xf32, #tpu.memory_space<vmem>>, vector<1x128xf32>
    %13 = vector.broadcast %12 : vector<1x128xf32> to vector<128x128xf32>
    %14 = arith.addf %11, %13 : vector<128x128xf32>
    %15 = arith.addf %0, %14 : vector<128x128xf32>
    %c0_11 = arith.constant 0 : index
    %c0_12 = arith.constant 0 : index
    %16 = vector.load %arg6[%c0_11, %c0_12] : memref<1x128xf32, #tpu.memory_space<vmem>>, vector<1x128xf32>
    %c0_13 = arith.constant 0 : index
    %c0_14 = arith.constant 0 : index
    %17 = vector.load %arg7[%c0_13, %c0_14] : memref<1x128xf32, #tpu.memory_space<vmem>>, vector<1x128xf32>
    %cst_15 = arith.constant dense<0.000000e+00> : vector<128xf32>
    %18 = vector.multi_reduction <add>, %15, %cst_15 [1] : vector<128x128xf32> to vector<128xf32>
    %19 = vector.shape_cast %18 : vector<128xf32> to vector<128x1xf32>
    %cst_16 = arith.constant 1.280000e+02 : f32
    %20 = vector.broadcast %cst_16 : f32 to vector<128x1xf32>
    %21 = arith.divf %19, %20 : vector<128x1xf32>
    %22 = vector.broadcast %21 : vector<128x1xf32> to vector<128x128xf32>
    %23 = arith.subf %15, %22 : vector<128x128xf32>
    %24 = arith.mulf %23, %23 : vector<128x128xf32>
    %cst_17 = arith.constant dense<0.000000e+00> : vector<128xf32>
    %25 = vector.multi_reduction <add>, %24, %cst_17 [1] : vector<128x128xf32> to vector<128xf32>
    %26 = vector.shape_cast %25 : vector<128xf32> to vector<128x1xf32>
    %cst_18 = arith.constant 1.280000e+02 : f32
    %27 = vector.broadcast %cst_18 : f32 to vector<128x1xf32>
    %28 = arith.divf %26, %27 : vector<128x1xf32>
    %cst_19 = arith.constant 9.99999974E-6 : f32
    %29 = vector.broadcast %cst_19 : f32 to vector<128x1xf32>
    %30 = arith.addf %28, %29 : vector<128x1xf32>
    %31 = math.rsqrt %30 : vector<128x1xf32>
    %32 = vector.broadcast %31 : vector<128x1xf32> to vector<128x128xf32>
    %33 = arith.mulf %23, %32 : vector<128x128xf32>
    %34 = vector.broadcast %16 : vector<1x128xf32> to vector<128x128xf32>
    %35 = arith.mulf %33, %34 : vector<128x128xf32>
    %36 = vector.broadcast %17 : vector<1x128xf32> to vector<128x128xf32>
    %37 = arith.addf %35, %36 : vector<128x128xf32>
    %c0_20 = arith.constant 0 : index
    %c0_21 = arith.constant 0 : index
    %38 = vector.load %arg8[%c0_20, %c0_21] : memref<128x128xf32, #tpu.memory_space<vmem>>, vector<128x128xf32>
    %cst_22 = arith.constant dense<0.000000e+00> : vector<128x128xf32>
    %39 = tpu.matmul %37, %38, %cst_22 {dimension_numbers = #tpu.dot_dimension_numbers<[1], [0], [0], [1], [0, 0, 1, 1], [], []>} : vector<128x128xf32>, vector<128x128xf32>, vector<128x128xf32> -> vector<128x128xf32>
    %c0_23 = arith.constant 0 : index
    %c0_24 = arith.constant 0 : index
    %40 = vector.load %arg9[%c0_23, %c0_24] : memref<1x128xf32, #tpu.memory_space<vmem>>, vector<1x128xf32>
    %41 = vector.broadcast %40 : vector<1x128xf32> to vector<128x128xf32>
    %42 = arith.addf %39, %41 : vector<128x128xf32>
    %cst_25 = arith.constant 0.000000e+00 : f32
    %43 = vector.broadcast %cst_25 : f32 to vector<128x128xf32>
    %44 = arith.maximumf %42, %43 : vector<128x128xf32>
    %c0_26 = arith.constant 0 : index
    %c0_27 = arith.constant 0 : index
    %45 = vector.load %arg10[%c0_26, %c0_27] : memref<128x128xf32, #tpu.memory_space<vmem>>, vector<128x128xf32>
    tpu.vector_store %arg10[%c0_26, %c0_27], %44 {strides = array<i32>} : memref<128x128xf32, #tpu.memory_space<vmem>>, vector<128x128xf32>,
    return
  }
  func.func @transform_0(%arg0: i32) -> (i32, i32) {
    %c0_i32 = arith.constant 0 : i32
    %c0_i32_0 = arith.constant 0 : i32
    return %arg0, %c0_i32 : i32, i32
  }
  func.func @transform_1(%arg0: i32) -> (i32, i32) {
    %c0_i32 = arith.constant 0 : i32
    %c0_i32_0 = arith.constant 0 : i32
    %c0_i32_1 = arith.constant 0 : i32
    return %c0_i32, %c0_i32_0 : i32, i32
  }
  func.func @transform_2(%arg0: i32) -> (i32, i32) {
    %c0_i32 = arith.constant 0 : i32
    %c0_i32_0 = arith.constant 0 : i32
    %c0_i32_1 = arith.constant 0 : i32
    return %c0_i32, %c0_i32_0 : i32, i32
  }
  func.func @transform_3(%arg0: i32) -> (i32, i32) {
    %c0_i32 = arith.constant 0 : i32
    %c0_i32_0 = arith.constant 0 : i32
    %c0_i32_1 = arith.constant 0 : i32
    return %c0_i32, %c0_i32_0 : i32, i32
  }
  func.func @transform_4(%arg0: i32) -> (i32, i32) {
    %c0_i32 = arith.constant 0 : i32
    %c0_i32_0 = arith.constant 0 : i32
    %c0_i32_1 = arith.constant 0 : i32
    return %c0_i32, %c0_i32_0 : i32, i32
  }
  func.func @transform_5(%arg0: i32) -> (i32, i32) {
    %c0_i32 = arith.constant 0 : i32
    %c0_i32_0 = arith.constant 0 : i32
    %c0_i32_1 = arith.constant 0 : i32
    return %c0_i32, %c0_i32_0 : i32, i32
  }
  func.func @transform_6(%arg0: i32) -> (i32, i32) {
    %c0_i32 = arith.constant 0 : i32
    %c0_i32_0 = arith.constant 0 : i32
    %c0_i32_1 = arith.constant 0 : i32
    return %c0_i32, %c0_i32_0 : i32, i32
  }
  func.func @transform_7(%arg0: i32) -> (i32, i32) {
    %c0_i32 = arith.constant 0 : i32
    %c0_i32_0 = arith.constant 0 : i32
    %c0_i32_1 = arith.constant 0 : i32
    return %c0_i32, %c0_i32_0 : i32, i32
  }
  func.func @transform_8(%arg0: i32) -> (i32, i32) {
    %c0_i32 = arith.constant 0 : i32
    %c0_i32_0 = arith.constant 0 : i32
    %c0_i32_1 = arith.constant 0 : i32
    return %c0_i32, %c0_i32_0 : i32, i32
  }
  func.func @transform_9(%arg0: i32) -> (i32, i32) {
    %c0_i32 = arith.constant 0 : i32
    %c0_i32_0 = arith.constant 0 : i32
    return %arg0, %c0_i32 : i32, i32
  }
}

</mosaic_0001>

<bundles_post_ra>
// kernel: mlp_projection_call.1
= control target key start
LH: loop header
LB: loop body
LE: loop exit
PB: predicated region body
PF: predicated region fallthrough
CT: control target
= control target key end

     0   :  { %s14332_s0 = inlined_call_operand.hbm [shape: f32[256,128], index: 0, kind: input, shape index: {}]   ;;  %s14333_s1 = inlined_call_operand.hbm [shape: bf16[128,4096], index: 1, kind: input, shape index: {}]   ;;  %s14334_s2 = inlined_call_operand.hbm [shape: f32[1,4096], index: 2, kind: input, shape index: {}]   ;;  %s14335_s3 = inlined_call_operand.hbm [shape: bf16[4096,128], index: 3, kind: input, shape index: {}]   ;;  %s14336_s4 = inlined_call_operand.vmem [shape: f32[1,128], index: 4, kind: input, shape index: {}]   ;;  %s14337_s5 = inlined_call_operand.vmem [shape: f32[1,128], index: 5, kind: input, shape index: {}]   ;;  %s14338_s6 = inlined_call_operand.vmem [shape: f32[1,128], index: 6, kind: input, shape index: {}]   ;;  %s14339_s7 = inlined_call_operand.hbm [shape: f32[128,128], index: 7, kind: input, shape index: {}]   ;;  %s14340_s8 = inlined_call_operand.vmem [shape: f32[1,128], index: 8, kind: input, shape index: {}]   ;;  %s14341_s9 = inlined_call_operand.hbm [shape: f32[256,128], index: 9, kind: output, shape index: {}]  }
   0x1   :  { %14350 = sst [smem:[#allocation144_spill]] %s14333_s1 }
   0x2   :  { %14351 = sst [smem:[#allocation145_spill]] %s14334_s2 }
   0x3   :  { %14352 = sst [smem:[#allocation146_spill]] %s14335_s3 }
   0x4   :  { %14 = vsyncpa [#allocation3], 0 }
   0x5   :  { %16 = vsyncpa [#allocation3 + $0x1], 0 }
   0x6   :  { %17 = vsyncpa [#allocation6], 0 }
   0x7   :  { %18 = vsyncpa [#allocation9], 0 }
   0x8   :  { %19 = vsyncpa [#allocation4], 0 }
   0x9   :  { %21 = vsyncpa [#allocation4 + $0x1], 0  ;;  %s11238_s30 = smov 0   ;;  %s11240_s10 = smov 0  }
   0xa   :  { %s11242_s11 = smov 0   ;;  %s11244_s12 = smov 0  }
   0xb LB: > { %s11259_s13 = sadd.s32 4294967295, %s11172_s12   ;;  %s8885_s14 = sadd.s32 4294967294, %s11172_s12   ;;  %s11172_s12 = sphi %s11244_s12, %s14818_s12   ;;  %s11168_s11 = sphi %s11242_s11, %s14817_s11   ;;  %s11164_s10 = sphi %s11240_s10, %s14816_s10   ;;  %s11160_s30 = sphi %s11238_s30, %s14815_s30  }
   0xc   : > { %p47_p0 = scmp.ne.s32.totalorder %s11164_s10, %s11160_s30  ;;  %p14342_p1 = scmp.eq.s32.totalorder %s11259_s13, 0 }
   0xd   : > { %p245_p3 = scmp.eq.s32.totalorder %s8885_s14, 1  ;;  %p8886_p5 = scmp.ge.s32.totalorder %s11172_s12, 1 }
   0xe   : > { %p11268_p4 = por %p14342_p1, %p47_p0  ;;  %p252_p7 = scmp.lt.s32.totalorder %s11172_s12, 3 }
   0xf   : > { %p11273_p6 = por %p245_p3, %p47_p0  ;;  %s11174_s18 = smov [#allocation5]  }
  0x10   : > { %s14353_s15 = scalar_select %p11268_p4, 1, 0 }
  0x11   : > { %s14354_s16 = scalar_select %p11273_p6, 1, 0 }
  0x12   : > { %p11278_p8 = pnand %p8886_p5, %p252_p7  ;;  %s264_s19 = sshll.u32 %s11174_s18, 4  ;;  %s265_s19 = int_to_ptr.vmem [resolvable:$true] %s264_s19 }
  0x13   : > { %s11175_s21 = smov [#allocation8]   ;;  %s10979_s23 = scalar_lea.vmem %s265_s19, 32768 }
  0x14   : > { %s14355_s17 = scalar_select %p11278_p8, 1, 0 }
  0x15   : > { %p10589_p9 = pneg %p11278_p8  ;;  %s288_s22 = sshll.u32 %s11175_s21, 4  ;;  %s289_s22 = int_to_ptr.vmem [resolvable:$true] %s288_s22 }
  0x16   : > { %p10980_p13 = scmp.ne.s32.totalorder %s265_s19, %s10979_s23  ;;  %p10987_p5 = scmp.lt.s32.totalorder %s265_s19, %s265_s19 }
  0x17   : > { %p11287_p11 = pnand %p10589_p9, %p14342_p1  ;;  %p10988_p7 = scmp.lt.s32.totalorder %s10979_s23, %s10979_s23 }
  0x19   : > { %p10970_p12 = pneg %p11287_p11  ;;  %p10989_p10 = por %p10988_p7, %p10987_p5 }
  0x1b   : > { %p10982_p0 = pnand %p10980_p13, %p10970_p12 }
  0x1d   : > { %p10983_p3 = pneg %p10982_p0 }
  0x1f   : > { %p10990_p9 = pnand %p10989_p10, %p10983_p3 }
  0x21   : > { %10993 = shalt.err (!%p10990_p9)
}
  0x22   : > { %s11176_s24 = smov 2048   ;;  %s14345_s25 = smov 128  }
  0x23   : > { %s14357_s1 = sld [smem:[#allocation144_spill]]  ;;  %s11005_s28 = scalar_lea.vmem %s289_s22, 32768 }
  0x24   : > { %p11006_p1 = scmp.ne.s32.totalorder %s289_s22, %s11005_s28  ;;  %p11013_p2 = scmp.lt.s32.totalorder %s289_s22, %s289_s22 }
  0x25   : > { %p11014_p5 = scmp.lt.s32.totalorder %s11005_s28, %s11005_s28 }
  0x26   : > { %p11008_p13 = pnand %p11006_p1, %p10970_p12 }
  0x27   : > { %p11015_p10 = por %p11014_p5, %p11013_p2 }
  0x28   : > { %p11009_p0 = pneg %p11008_p13 }
  0x29   : > { %10592 = dma.hbm_to_vmem [thread:$0]  (!%p11287_p11), %s14357_s1, 32768, %s265_s19, [#allocation6], %s11176_s24, %s11176_s24, %s14345_s25  }
  0x2a   : > { %p11016_p3 = pnand %p11015_p10, %p11009_p0 }
  0x2c   : > { %11019 = shalt.err (!%p11016_p3)
}
  0x2d   : > { %s11178_s29 = smov 64   ;;  %s11179_s14 = smov 4  }
  0x2e   : > { %s14358_s3 = sld [smem:[#allocation146_spill]]  ;;  %s11180_s19 = smov [#allocation7]  }
  0x2f   : > { %s278_s23 = sshll.u32 %s11180_s19, 4  ;;  %s11181_s24 = smov [#allocation10]   ;;  %s279_s23 = int_to_ptr.vmem [resolvable:$true] %s278_s23 }
  0x30   : > { %s310_s26 = sshll.u32 %s11181_s24, 4  ;;  %s11031_s27 = scalar_lea.vmem %s279_s23, 512  ;;  %s311_s26 = int_to_ptr.vmem [resolvable:$true] %s310_s26 }
  0x31   : > { %p11032_p1 = scmp.ne.s32.totalorder %s279_s23, %s11031_s27  ;;  %p11039_p9 = scmp.lt.s32.totalorder %s279_s23, %s279_s23 }
  0x32   : > { %p11040_p13 = scmp.lt.s32.totalorder %s11031_s27, %s11031_s27 }
  0x33   : > { %p11034_p2 = pnand %p11032_p1, %p10970_p12 }
  0x34   : > { %10598 = dma.hbm_to_vmem [thread:$0]  (!%p11287_p11), %s14358_s3, 32768, %s289_s22, [#allocation9], %s11178_s29, %s11178_s29, %s11179_s14  }
  0x35   : > { %p11035_p7 = pneg %p11034_p2  ;;  %p11041_p0 = por %p11040_p13, %p11039_p9 }
  0x37   : > { %p11042_p5 = pnand %p11041_p0, %p11035_p7 }
  0x39   : > { %11045 = shalt.err (!%p11042_p5)
}
  0x3a   : > { %s14359_s2 = sld [smem:[#allocation145_spill]]  ;;  %s11057_s29 = scalar_lea.vmem %s311_s26, 2048 }
  0x3b   : > { %p11058_p10 = scmp.ne.s32.totalorder %s311_s26, %s11057_s29  ;;  %p11065_p1 = scmp.lt.s32.totalorder %s311_s26, %s311_s26 }
  0x3c   : > { %p11066_p2 = scmp.lt.s32.totalorder %s11057_s29, %s11057_s29 }
  0x3d   : > { %p11060_p3 = pnand %p11058_p10, %p10970_p12 }
  0x3e   : > { %p11067_p4 = por %p11066_p2, %p11065_p1 }
  0x3f   : > { %p11061_p6 = pneg %p11060_p3 }
  0x40   : > { %10595 = dma.hbm_to_vmem [thread:$0]  (!%p11287_p11), %s14359_s2, 512, %s279_s23, [#allocation6]  }
  0x41   : > { %p11068_p8 = pnand %p11067_p4, %p11061_p6 }
  0x43   : > { %11071 = shalt.err (!%p11068_p8)
}
  0x44   : > { %s14346_s14 = smov 8   ;;  %s11330_s19 = sadd.s32 1, %s11172_s12  }
  0x45   : > { %10601 = dma.hbm_to_vmem [thread:$0]  (!%p11287_p11), %s14339_s7, 2048, %s311_s26, [#allocation9], %s14345_s25, %s14345_s25, %s14346_s14  }
  0x46   : > { %s31_s20 = ssub.s32 %s11172_s12, %s11330_s19  ;;  %s34_s23 = sadd.s32 1, %s11168_s11 }
  0x47   : > { %p32_p4 = scmp.eq.s32.totalorder %s31_s20, 0  ;;  %p41_p6 = scmp.ne.s32.totalorder %s11168_s11, %s11164_s10 }
  0x48   : > { %p42_p8 = scmp.eq.s32.totalorder %s11172_s12, 0  ;;  %p10614_p12 = scmp.lt.s32.totalorder %s11172_s12, 2 }
  0x49   : > { %s11340_s24 = scalar_select %p32_p4, %s11168_s11, %s34_s23  }
  0x4a   : > { %p43_p7 = por %p42_p8, %p41_p6  ;;  %p14360_p9 = scmp.eq.s32.totalorder %s11259_s13, 1 }
  0x4b   : > { %s327_s22 = sand.u32 1, %s11168_s11   ;;  %s9423_s28 = sshll.u32 %s11172_s12, 11 }
  0x4c   : > { %p11344_p13 = por %p14360_p9, %p41_p6  ;;  %s8892_s26 = sshll.u32 %s327_s22, 7 }
  0x4d   : > { %s11353_s21 = scalar_lea.hbm %s14332_s0, %s9423_s28  ;;  %s331_s20 = scalar_lea.vmem [#allocation2], %s8892_s26 }
  0x4e   : > { %s14361_s27 = scalar_select %p11344_p13, 1, 0 }
  0x4f   : > { %s338_s23 = sshll.u32 %s331_s20, 4  ;;  %p11355_p11 = pnand %p10614_p12, %p43_p7  ;;  %s11359_s23 = int_to_ptr.vmem [resolvable:$true] %s338_s23 }
  0x50   : > { %s11361_s14 = scalar_lea.sflag [#allocation3], %s327_s22  ;;  %s11072_s1 = scalar_lea.hbm %s11353_s21, 2048 }
  0x51   : > { %p11073_p0 = scmp.ne.s32.totalorder %s11353_s21, %s11072_s1  ;;  %p11074_p5 = pneg %p11355_p11 }
  0x52   : > { %s11077_s26 = scalar_lea.hbm %s14332_s0, 4096  ;;  %p11078_p1 = scmp.lt.s32.totalorder %s11353_s21, %s14332_s0 }
  0x53   : > { %p11075_p10 = pnand %p11074_p5, %p11073_p0  ;;  %p11079_p2 = scmp.lt.s32.totalorder %s11077_s26, %s11072_s1 }
  0x55   : > { %p11076_p3 = pneg %p11075_p10  ;;  %p11080_p4 = por %p11079_p2, %p11078_p1 }
  0x57   : > { %p11081_p6 = pnand %p11080_p4, %p11076_p3 }
  0x59   : > { %11084 = shalt.err (!%p11081_p6)
}
  0x5a   : > { %s11085_s22 = scalar_lea.vmem %s11359_s23, 2048  ;;  %s11183_s2 = smov [#allocation2]  }
  0x5b   : > { %p11086_p8 = scmp.ne.s32.totalorder %s11359_s23, %s11085_s22  ;;  %s11090_s3 = sshll.u32 %s11183_s2, 4  ;;  %s11091_s3 = int_to_ptr.vmem [resolvable:$false] %s11090_s3 }
  0x5c   : > { %s11092_s28 = scalar_lea.vmem %s11091_s3, 4096  ;;  %p11093_p9 = scmp.lt.s32.totalorder %s11359_s23, %s11091_s3 }
  0x5d   : > { %p11088_p12 = pnand %p11086_p8, %p11074_p5  ;;  %p11094_p0 = scmp.lt.s32.totalorder %s11092_s28, %s11085_s22 }
  0x5f   : > { %p11089_p7 = pneg %p11088_p12  ;;  %p11095_p10 = por %p11094_p0, %p11093_p9 }
  0x61   : > { %p11096_p13 = pnand %p11095_p10, %p11089_p7 }
  0x63   : > { %11099 = shalt.err (!%p11096_p13)
}
  0x64   : > { %s14363_s1 = smov 8   ;;  %s14364_s29 = smov 128  }
  0x65   : > { %10605 = dma.hbm_to_vmem [thread:$0]  (!%p11355_p11), %s11353_s21, 2048, %s11359_s23, %s11361_s14, %s14364_s29, %s14364_s29, %s14363_s1  }
  0x66   : > { %p14365_p5 = scmp.ne.s32.totalorder %s14355_s17, 0 }
  0x68   : > { %350 = sbr.rel (%p14365_p5) target bundleno = 1898 (0x76a), region = 56 }
  0x6d   : > { %s11388_s2 = sand.u32 1, %s11164_s10   ;;  %p14366_p13 = scmp.ne.s32.totalorder %s14353_s15, 0 }
  0x6e   : > { %s8896_s3 = sshll.u32 %s11388_s2, 7  ;;  %s353_s26 = scalar_lea.sflag [#allocation3], %s11388_s2 }
  0x6f   : > { %s11394_s25 = scalar_lea.vmem [#allocation2], %s8896_s3 }
  0x70   : > { %11143 = dma.done.wait (%p14366_p13), %s353_s26, 2048  }
  0x71   : > { %11145 = vsyncadd (%p14366_p13), %s353_s26, 4294965248  ;;  %p14367_p11 = scmp.eq.s32.totalorder %s11259_s13, 0 }
  0x73   : > { %11147 = dma.done.wait (%p14367_p11), [#allocation6], 33280   ;;  %p14368_p3 = pmov %p14367_p11 }
  0x75   : > { %11149 = vsyncadd (%p14368_p3), [#allocation6], 4294934016  ;;  %p14369_p1 = pmov %p14368_p3 }
  0x77   : > { %11151 = dma.done.wait (%p14369_p1), [#allocation9], 34816   ;;  %p14370_p2 = pmov %p14369_p1 }
  0x78   : > { %v14348_v0 = vmov 0   ;;  %v658_v1 = vld [vmem:[#allocation5 + $0x700] sm:$0xff]  ;;  %v659_v3 = vld [vmem:[#allocation5 + $0x708] sm:$0xff]  ;;  %v660_v63 = vld [vmem:[#allocation5 + $0x710] sm:$0xff]  ;;  %s14250_s28 = scalar_lea.vmem [#allocation11], %s8896_s3  ;;  %s9424_s1 = sshll.u32 %s11259_s13, 11 }
  0x79   : > { %11153 = vsyncadd (%p14370_p2), [#allocation9], 4294932480  ;;  %2170 = vmatprep.mubr.bf16.mxu0 %v14348_v0  ;;  %2283 = vmatprep.mubr.bf16.mxu1 %v14348_v0  ;;  %v674_v2 = vld [vmem:[#allocation5 + $0x780] sm:$0xff]  ;;  %v675_v5 = vld [vmem:[#allocation5 + $0x788] sm:$0xff]  ;;  %s8774_s29 = sshll.u32 %s14250_s28, 4  ;;  %s8761_s15 = scalar_lea.sflag [#allocation4], %s11388_s2  ;;  %s14287_s29 = int_to_ptr.vmem [resolvable:$true] %s8774_s29 }
  0x7a   : > { %v9127_v4 = vcombine.high %v658_v1, %v674_v2  ;;  %v9126_v6 = vcombine.low %v658_v1, %v674_v2  ;;  %v626_v7 = vld [vmem:[#allocation5 + $0x600] sm:$0xff]  ;;  %v9129_v9 = vcombine.high %v659_v3, %v675_v5  ;;  %v9128_v10 = vcombine.low %v659_v3, %v675_v5  ;;  %v627_v12 = vld [vmem:[#allocation5 + $0x608] sm:$0xff]  ;;  %v676_v1 = vld [vmem:[#allocation5 + $0x790] sm:$0xff]  ;;  %s11100_s13 = scalar_lea.vmem %s14287_s29, 2048  ;;  %p14812_p6 = scmp.ne.s32.totalorder %s14361_s27, 0 }
  0x7b   : > { %v642_v8 = vld [vmem:[#allocation5 + $0x680] sm:$0xff]  ;;  %v643_v13 = vld [vmem:[#allocation5 + $0x688] sm:$0xff]  ;;  %v661_v2 = vld [vmem:[#allocation5 + $0x718] sm:$0xff]  ;;  %p11101_p4 = scmp.ne.s32.totalorder %s14287_s29, %s11100_s13  ;;  %s11185_s17 = smov [#allocation11]  }
  0x7c   : > { %v9095_v11 = vcombine.high %v626_v7, %v642_v8  ;;  %v594_v14 = vld [vmem:[#allocation5 + $0x500] sm:$0xff]  ;;  %2138 = vmatprep.subr.bf16.mxu0 %v9127_v4  ;;  %v9097_v15 = vcombine.high %v627_v12, %v643_v13  ;;  %v595_v17 = vld [vmem:[#allocation5 + $0x508] sm:$0xff]  ;;  %2251 = vmatprep.subr.bf16.mxu1 %v9129_v9  ;;  %v9094_v19 = vcombine.low %v626_v7, %v642_v8  ;;  %v677_v3 = vld [vmem:[#allocation5 + $0x798] sm:$0xff]  ;;  %s11104_s14 = sshll.u32 %s11185_s17, 4  ;;  %s11105_s14 = int_to_ptr.vmem [resolvable:$false] %s11104_s14 }
  0x7d   : > { %v610_v16 = vld [vmem:[#allocation5 + $0x580] sm:$0xff]  ;;  %v611_v18 = vld [vmem:[#allocation5 + $0x588] sm:$0xff]  ;;  %2139 = vmatpush1.bf16.msra.mxu0 %v9126_v6  ;;  %2252 = vmatpush1.bf16.msra.mxu1 %v9128_v10  ;;  %v9096_v20 = vcombine.low %v627_v12, %v643_v13  ;;  %v9131_v8 = vcombine.high %v660_v63, %v676_v1  ;;  %v9133_v9 = vcombine.high %v661_v2, %v677_v3  ;;  %v644_v12 = vld [vmem:[#allocation5 + $0x690] sm:$0xff]  ;;  %p11102_p8 = pnand %p11101_p4, %p14812_p6  ;;  %s11106_s21 = scalar_lea.vmem %s11105_s14, 4096 }
  0x7e   : > { %2140 = vmatprep.subr.bf16.mxu0 %v9095_v11  ;;  %v9063_v21 = vcombine.high %v594_v14, %v610_v16  ;;  %2253 = vmatprep.subr.bf16.mxu1 %v9097_v15  ;;  %v9065_v22 = vcombine.high %v595_v17, %v611_v18  ;;  %v562_v23 = vld [vmem:[#allocation5 + $0x400] sm:$0xff]  ;;  %v563_v25 = vld [vmem:[#allocation5 + $0x408] sm:$0xff]  ;;  %v9062_v27 = vcombine.low %v594_v14, %v610_v16  ;;  %v628_v11 = vld [vmem:[#allocation5 + $0x610] sm:$0xff]  ;;  %p11107_p7 = scmp.lt.s32.totalorder %s14287_s29, %s11105_s14  ;;  %p11108_p9 = scmp.lt.s32.totalorder %s11106_s21, %s11100_s13 }
  0x7f   : > { %v578_v24 = vld [vmem:[#allocation5 + $0x480] sm:$0xff]  ;;  %v579_v26 = vld [vmem:[#allocation5 + $0x488] sm:$0xff]  ;;  %v9064_v28 = vcombine.low %v595_v17, %v611_v18  ;;  %v9130_v13 = vcombine.low %v660_v63, %v676_v1  ;;  %v629_v14 = vld [vmem:[#allocation5 + $0x618] sm:$0xff]  ;;  %v9132_v16 = vcombine.low %v661_v2, %v677_v3  ;;  %v9099_v17 = vcombine.high %v628_v11, %v644_v12  ;;  %p11103_p12 = pneg %p11102_p8 }
  0x80   : > { %v9031_v29 = vcombine.high %v562_v23, %v578_v24  ;;  %v9033_v30 = vcombine.high %v563_v25, %v579_v26  ;;  %v530_v31 = vld [vmem:[#allocation5 + $0x300] sm:$0xff]  ;;  %v531_v33 = vld [vmem:[#allocation5 + $0x308] sm:$0xff]  ;;  %v9030_v35 = vcombine.low %v562_v23, %v578_v24  ;;  %v9032_v36 = vcombine.low %v563_v25, %v579_v26  ;;  %v645_v15 = vld [vmem:[#allocation5 + $0x698] sm:$0xff]  ;;  %p11109_p0 = por %p11108_p9, %p11107_p7 }
  0x81   : > { %2141 = vmatpush1.bf16.msra.mxu0 %v9094_v19  ;;  %2254 = vmatpush1.bf16.msra.mxu1 %v9096_v20  ;;  %v546_v32 = vld [vmem:[#allocation5 + $0x380] sm:$0xff]  ;;  %v547_v34 = vld [vmem:[#allocation5 + $0x388] sm:$0xff]  ;;  %v596_v18 = vld [vmem:[#allocation5 + $0x510] sm:$0xff]  ;;  %v9101_v20 = vcombine.high %v629_v14, %v645_v15  ;;  %v9098_v25 = vcombine.low %v628_v11, %v644_v12  ;;  %v9100_v26 = vcombine.low %v629_v14, %v645_v15 }
  0x82   : > { %2142 = vmatprep.subr.bf16.mxu0 %v9063_v21  ;;  %2255 = vmatprep.subr.bf16.mxu1 %v9065_v22  ;;  %v8999_v37 = vcombine.high %v530_v31, %v546_v32  ;;  %v9001_v38 = vcombine.high %v531_v33, %v547_v34  ;;  %v498_v39 = vld [vmem:[#allocation5 + $0x200] sm:$0xff]  ;;  %v499_v41 = vld [vmem:[#allocation5 + $0x208] sm:$0xff]  ;;  %v8998_v43 = vcombine.low %v530_v31, %v546_v32  ;;  %v612_v19 = vld [vmem:[#allocation5 + $0x590] sm:$0xff]  ;;  %p11110_p10 = pnand %p11109_p0, %p11103_p12 }
  0x83   : > { %v514_v40 = vld [vmem:[#allocation5 + $0x280] sm:$0xff]  ;;  %v515_v42 = vld [vmem:[#allocation5 + $0x288] sm:$0xff]  ;;  %v9000_v44 = vcombine.low %v531_v33, %v547_v34  ;;  %v597_v21 = vld [vmem:[#allocation5 + $0x518] sm:$0xff]  ;;  %v9066_v34 = vcombine.low %v596_v18, %v612_v19 }
  0x84   : > { %v8967_v45 = vcombine.high %v498_v39, %v514_v40  ;;  %v8969_v46 = vcombine.high %v499_v41, %v515_v42  ;;  %v466_v47 = vld [vmem:[#allocation5 + $0x100] sm:$0xff]  ;;  %v467_v49 = vld [vmem:[#allocation5 + $0x108] sm:$0xff]  ;;  %v8966_v51 = vcombine.low %v498_v39, %v514_v40  ;;  %v8968_v52 = vcombine.low %v499_v41, %v515_v42  ;;  %v613_v22 = vld [vmem:[#allocation5 + $0x598] sm:$0xff] }
  0x85   : > { %2143 = vmatpush1.bf16.msra.mxu0 %v9062_v27  ;;  %2256 = vmatpush1.bf16.msra.mxu1 %v9064_v28  ;;  %v482_v48 = vld [vmem:[#allocation5 + $0x180] sm:$0xff]  ;;  %v483_v50 = vld [vmem:[#allocation5 + $0x188] sm:$0xff]  ;;  %v412_v23 = vld [vmem:[%s11394_s25 + $0x10] sm:$0xff]  ;;  %v9067_v27 = vcombine.high %v596_v18, %v612_v19 }
  0x86   : > { %2144 = vmatprep.subr.bf16.mxu0 %v9031_v29  ;;  %2257 = vmatprep.subr.bf16.mxu1 %v9033_v30  ;;  %v8935_v53 = vcombine.high %v466_v47, %v482_v48  ;;  %v8937_v54 = vcombine.high %v467_v49, %v483_v50  ;;  %v434_v55 = vld [vmem:[#allocation5] sm:$0xff]  ;;  %v435_v57 = vld [vmem:[#allocation5 + $0x8] sm:$0xff]  ;;  %v8934_v59 = vcombine.low %v466_v47, %v482_v48  ;;  %v413_v24 = vld [vmem:[%s11394_s25 + $0x18] sm:$0xff] }
  0x87   : > { %v450_v56 = vld [vmem:[#allocation5 + $0x80] sm:$0xff]  ;;  %v451_v58 = vld [vmem:[#allocation5 + $0x88] sm:$0xff]  ;;  %v8936_v60 = vcombine.low %v467_v49, %v483_v50  ;;  %v564_v28 = vld [vmem:[#allocation5 + $0x410] sm:$0xff]  ;;  %v9069_v30 = vcombine.high %v597_v21, %v613_v22  ;;  %v11420_v33 = vpack.c.bf16 %v413_v24, %v412_v23 }
  0x88   : > { %v8903_v61 = vcombine.high %v434_v55, %v450_v56  ;;  %v8905_v62 = vcombine.high %v435_v57, %v451_v58  ;;  %v8902_v4 = vcombine.low %v434_v55, %v450_v56  ;;  %v410_v5 = vld [vmem:[%s11394_s25] sm:$0xff]  ;;  %v411_v6 = vld [vmem:[%s11394_s25 + $0x8] sm:$0xff]  ;;  %v8904_v7 = vcombine.low %v435_v57, %v451_v58  ;;  %v580_v29 = vld [vmem:[#allocation5 + $0x490] sm:$0xff] }
  0x89   : > { %2145 = vmatpush1.bf16.msra.mxu0 %v9030_v35  ;;  %2258 = vmatpush1.bf16.msra.mxu1 %v9032_v36  ;;  %v11412_v10 = vpack.c.bf16 %v411_v6, %v410_v5  ;;  %v565_v31 = vld [vmem:[#allocation5 + $0x418] sm:$0xff]  ;;  %v532_v35 = vld [vmem:[#allocation5 + $0x310] sm:$0xff]  ;;  %v9035_v39 = vcombine.high %v564_v28, %v580_v29  ;;  %v415_v41 = vld [vmem:[%s11394_s25 + $0x28] sm:$0xff] }
  0x8a   : > { %2146 = vmatprep.subr.bf16.mxu0 %v8999_v37  ;;  %2259 = vmatprep.subr.bf16.mxu1 %v9001_v38  ;;  %v581_v32 = vld [vmem:[#allocation5 + $0x498] sm:$0xff]  ;;  %v548_v36 = vld [vmem:[#allocation5 + $0x390] sm:$0xff]  ;;  %v414_v37 = vld [vmem:[%s11394_s25 + $0x20] sm:$0xff]  ;;  %v9068_v38 = vcombine.low %v597_v21, %v613_v22 }
  0x8b   : > { %v9037_v40 = vcombine.high %v565_v31, %v581_v32  ;;  %v533_v42 = vld [vmem:[#allocation5 + $0x318] sm:$0xff]  ;;  %v9036_v47 = vcombine.low %v565_v31, %v581_v32  ;;  %v9003_v48 = vcombine.high %v532_v35, %v548_v36  ;;  %v484_v55 = vld [vmem:[#allocation5 + $0x190] sm:$0xff]  ;;  %v11438_v11 = vld [vmem:[#allocation5 + $0x720] sm:$0xff] }
  0x8c   : > { %v501_v49 = vld [vmem:[#allocation5 + $0x218] sm:$0xff]  ;;  %v416_v56 = vld [vmem:[%s11394_s25 + $0x30] sm:$0xff]  ;;  %v11440_v12 = vld [vmem:[#allocation5 + $0x7a0] sm:$0xff] }
  0x8d   : > { %2147 = vmatpush1.bf16.msra.mxu0 %v8998_v43  ;;  %2260 = vmatpush1.bf16.msra.mxu1 %v9000_v44  ;;  %v549_v43 = vld [vmem:[#allocation5 + $0x398] sm:$0xff]  ;;  %v9034_v44 = vcombine.low %v564_v28, %v580_v29  ;;  %v436_v1 = vld [vmem:[#allocation5 + $0x10] sm:$0xff]  ;;  %v663_v18 = vld [vmem:[#allocation5 + $0x728] sm:$0xff]  ;;  %v9135_v22 = vcombine.high %v11438_v11, %v11440_v12 }
  0x8e   : > { %2148 = vmatprep.subr.bf16.mxu0 %v8967_v45  ;;  %2261 = vmatprep.subr.bf16.mxu1 %v8969_v46  ;;  %v500_v45 = vld [vmem:[#allocation5 + $0x210] sm:$0xff]  ;;  %v517_v50 = vld [vmem:[#allocation5 + $0x298] sm:$0xff]  ;;  %v9004_v57 = vcombine.low %v533_v42, %v549_v43  ;;  %v679_v19 = vld [vmem:[#allocation5 + $0x7a8] sm:$0xff] }
  0x8f   : > { %v516_v46 = vld [vmem:[#allocation5 + $0x290] sm:$0xff]  ;;  %v8972_v3 = vcombine.low %v501_v49, %v517_v50  ;;  %v437_v5 = vld [vmem:[#allocation5 + $0x18] sm:$0xff]  ;;  %v9137_v24 = vcombine.high %v663_v18, %v679_v19  ;;  %v422_v28 = vld [vmem:[%s11394_s25 + $0x60] sm:$0xff] }
  0x90   : > { %v8971_v58 = vcombine.high %v500_v45, %v516_v46  ;;  %v8970_v63 = vcombine.low %v500_v45, %v516_v46  ;;  %v452_v2 = vld [vmem:[#allocation5 + $0x90] sm:$0xff]  ;;  %v453_v6 = vld [vmem:[#allocation5 + $0x98] sm:$0xff]  ;;  %v423_v29 = vld [vmem:[%s11394_s25 + $0x68] sm:$0xff] }
  0x91   : > { %2149 = vmatpush1.bf16.msra.mxu0 %v8966_v51  ;;  %2262 = vmatpush1.bf16.msra.mxu1 %v8968_v52  ;;  %v11428_v51 = vpack.c.bf16 %v415_v41, %v414_v37  ;;  %v9005_v52 = vcombine.high %v533_v42, %v549_v43  ;;  %v8907_v15 = vcombine.high %v436_v1, %v452_v2  ;;  %v424_v31 = vld [vmem:[%s11394_s25 + $0x70] sm:$0xff]  ;;  %v425_v32 = vld [vmem:[%s11394_s25 + $0x78] sm:$0xff]  ;;  %v631_v37 = vld [vmem:[#allocation5 + $0x628] sm:$0xff] }
  0x92   : > { %2150 = vmatprep.subr.bf16.mxu0 %v8935_v53  ;;  %2263 = vmatprep.subr.bf16.mxu1 %v8937_v54  ;;  %v9002_v53 = vcombine.low %v532_v35, %v548_v36  ;;  %v468_v54 = vld [vmem:[#allocation5 + $0x110] sm:$0xff]  ;;  %v8908_v21 = vcombine.low %v437_v5, %v453_v6  ;;  %v630_v35 = vld [vmem:[#allocation5 + $0x620] sm:$0xff]  ;;  %v9136_v41 = vcombine.low %v663_v18, %v679_v19  ;;  %v599_v45 = vld [vmem:[#allocation5 + $0x528] sm:$0xff] }
  0x93   : > { %v646_v36 = vld [vmem:[#allocation5 + $0x6a0] sm:$0xff]  ;;  %v615_v46 = vld [vmem:[#allocation5 + $0x5a8] sm:$0xff] }
  0x94   : > { %v614_v42 = vld [vmem:[#allocation5 + $0x5a0] sm:$0xff]  ;;  %v9103_v43 = vcombine.high %v630_v35, %v646_v36 }
  0x95   : > { %2151 = vmatpush1.bf16.msra.mxu0 %v8934_v59  ;;  %2264 = vmatpush1.bf16.msra.mxu1 %v8936_v60  ;;  %v8973_v59 = vcombine.high %v501_v49, %v517_v50  ;;  %v417_v60 = vld [vmem:[%s11394_s25 + $0x38] sm:$0xff]  ;;  %v566_v50 = vld [vmem:[#allocation5 + $0x420] sm:$0xff] }
  0x96   : > { %2152 = vmatprep.subr.bf16.mxu0 %v8903_v61  ;;  %2265 = vmatprep.subr.bf16.mxu1 %v8905_v62  ;;  %v469_v61 = vld [vmem:[#allocation5 + $0x118] sm:$0xff] }
  0x97   : > { %v485_v62 = vld [vmem:[#allocation5 + $0x198] sm:$0xff] }
  0x98   : > { %v8940_v14 = vcombine.low %v469_v61, %v485_v62 }
  0x99   : > { %2153 = vmatpush1.bf16.msra.mxu0 %v8902_v4  ;;  %2266 = vmatpush1.bf16.msra.mxu1 %v8904_v7  ;;  %v8939_v4 = vcombine.high %v468_v54, %v484_v55  ;;  %v11436_v7 = vpack.c.bf16 %v417_v60, %v416_v56 }
  0x9a   : > { %2364 = vmatprep.subr.bf16.mxu0 %v9131_v8  ;;  %2477 = vmatprep.subr.bf16.mxu1 %v9133_v9  ;;  %v8941_v8 = vcombine.high %v469_v61, %v485_v62  ;;  %v8938_v9 = vcombine.low %v468_v54, %v484_v55  ;;  %v567_v54 = vld [vmem:[#allocation5 + $0x428] sm:$0xff] }
  0x9b   : > { %v583_v55 = vld [vmem:[#allocation5 + $0x4a8] sm:$0xff] }
  0x9c   : > { %2171 = vmatmul.mubr.bf16.vlgmr.msra.gmra.mxu0 %v11412_v10  ;;  %2284 = vmatmul.mubr.bf16.vlgmr.msra.gmra.mxu1 %v11412_v10  ;;  %v535_v61 = vld [vmem:[#allocation5 + $0x328] sm:$0xff] }
  0x9d   : > { %2365 = vmatpush1.bf16.msra.mxu0 %v9130_v13  ;;  %2478 = vmatpush1.bf16.msra.mxu1 %v9132_v16  ;;  %v418_v13 = vld [vmem:[%s11394_s25 + $0x40] sm:$0xff]  ;;  %v8909_v16 = vcombine.high %v437_v5, %v453_v6  ;;  %v551_v62 = vld [vmem:[#allocation5 + $0x3a8] sm:$0xff] }
  0x9e   : > { %2180 = vmatprep.mubr.bf16.mxu0 %v14348_v0  ;;  %2293 = vmatprep.mubr.bf16.mxu1 %v14348_v0  ;;  %v9009_v6 = vcombine.high %v535_v61, %v551_v62 }
  0x9f   : > { %2366 = vmatprep.subr.bf16.mxu0 %v9099_v17  ;;  %2479 = vmatprep.subr.bf16.mxu1 %v9101_v20  ;;  %v419_v17 = vld [vmem:[%s11394_s25 + $0x48] sm:$0xff]  ;;  %v8906_v20 = vcombine.low %v436_v1, %v452_v2  ;;  %v502_v2 = vld [vmem:[#allocation5 + $0x220] sm:$0xff] }
  0xa0   : > { %v11450_v23 = vpack.c.bf16 %v419_v17, %v418_v13  ;;  %v486_v13 = vld [vmem:[#allocation5 + $0x1a0] sm:$0xff]  ;;  %v487_v17 = vld [vmem:[#allocation5 + $0x1a8] sm:$0xff] }
  0xa1   : > { %2367 = vmatpush1.bf16.msra.mxu0 %v9098_v25  ;;  %2480 = vmatpush1.bf16.msra.mxu1 %v9100_v26  ;;  %v420_v25 = vld [vmem:[%s11394_s25 + $0x50] sm:$0xff]  ;;  %v421_v26 = vld [vmem:[%s11394_s25 + $0x58] sm:$0xff] }
  0xa2   : > { %2368 = vmatprep.subr.bf16.mxu0 %v9067_v27  ;;  %2481 = vmatprep.subr.bf16.mxu1 %v9069_v30  ;;  %v11458_v27 = vpack.c.bf16 %v421_v26, %v420_v25  ;;  %v11466_v30 = vpack.c.bf16 %v423_v29, %v422_v28  ;;  %v439_v26 = vld [vmem:[#allocation5 + $0x28] sm:$0xff] }
  0xa3   : > { %v455_v28 = vld [vmem:[#allocation5 + $0xa8] sm:$0xff] }
  0xa4   : > { %2181 = vmatmul.mubr.bf16.gmra.mxu0 %v11420_v33  ;;  %2294 = vmatmul.mubr.bf16.gmra.mxu1 %v11420_v33 }
  0xa5   : > { %2190 = vmatprep.mubr.bf16.mxu0 %v14348_v0  ;;  %2303 = vmatprep.mubr.bf16.mxu1 %v14348_v0 }
  0xa6   : > { %2369 = vmatpush1.bf16.msra.mxu0 %v9066_v34  ;;  %2482 = vmatpush1.bf16.msra.mxu1 %v9068_v38  ;;  %v11474_v34 = vpack.c.bf16 %v425_v32, %v424_v31  ;;  %v647_v38 = vld [vmem:[#allocation5 + $0x6a8] sm:$0xff]  ;;  %v664_v31 = vld [vmem:[#allocation5 + $0x730] sm:$0xff] }
  0xa7   : > { %2370 = vmatprep.subr.bf16.mxu0 %v9035_v39  ;;  %2483 = vmatprep.subr.bf16.mxu1 %v9037_v40  ;;  %v9134_v39 = vcombine.low %v11438_v11, %v11440_v12  ;;  %v598_v40 = vld [vmem:[#allocation5 + $0x520] sm:$0xff]  ;;  %v680_v32 = vld [vmem:[#allocation5 + $0x7b0] sm:$0xff] }
  0xa8   : > { %v9071_v49 = vcombine.high %v598_v40, %v614_v42  ;;  %v9070_v56 = vcombine.low %v598_v40, %v614_v42  ;;  %v470_v12 = vld [vmem:[#allocation5 + $0x120] sm:$0xff]  ;;  %v9139_v42 = vcombine.high %v664_v31, %v680_v32 }
  0xa9   : > { %v8942_v29 = vcombine.low %v470_v12, %v486_v13 }
  0xaa   : > { %2371 = vmatpush1.bf16.msra.mxu0 %v9034_v44  ;;  %2484 = vmatpush1.bf16.msra.mxu1 %v9036_v47  ;;  %v9105_v44 = vcombine.high %v631_v37, %v647_v38  ;;  %v9102_v47 = vcombine.low %v630_v35, %v646_v36 }
  0xab   : > { %2372 = vmatprep.subr.bf16.mxu0 %v9003_v48  ;;  %2485 = vmatprep.subr.bf16.mxu1 %v9005_v52  ;;  %v9104_v48 = vcombine.low %v631_v37, %v647_v38  ;;  %v582_v52 = vld [vmem:[#allocation5 + $0x4a0] sm:$0xff]  ;;  %v665_v37 = vld [vmem:[#allocation5 + $0x738] sm:$0xff] }
  0xac   : > { %2191 = vmatmul.mubr.bf16.gmra.mxu0 %v11428_v51  ;;  %2304 = vmatmul.mubr.bf16.gmra.mxu1 %v11428_v51  ;;  %v9039_v60 = vcombine.high %v566_v50, %v582_v52  ;;  %v9038_v1 = vcombine.low %v566_v50, %v582_v52  ;;  %v681_v38 = vld [vmem:[#allocation5 + $0x7b8] sm:$0xff]  ;;  %v616_v52 = vld [vmem:[#allocation5 + $0x5b0] sm:$0xff] }
  0xad   : > { %2200 = vmatprep.mubr.bf16.mxu0 %v14348_v0  ;;  %2313 = vmatprep.mubr.bf16.mxu1 %v14348_v0  ;;  %v9140_v50 = vcombine.low %v665_v37, %v681_v38 }
  0xae   : > { %2373 = vmatpush1.bf16.msra.mxu0 %v9002_v53  ;;  %2486 = vmatpush1.bf16.msra.mxu1 %v9004_v57  ;;  %v9073_v53 = vcombine.high %v599_v45, %v615_v46  ;;  %v534_v57 = vld [vmem:[#allocation5 + $0x320] sm:$0xff] }
  0xaf   : > { %2374 = vmatprep.subr.bf16.mxu0 %v8971_v58  ;;  %2487 = vmatprep.subr.bf16.mxu1 %v8973_v59  ;;  %v550_v58 = vld [vmem:[#allocation5 + $0x3a0] sm:$0xff]  ;;  %v9072_v59 = vcombine.low %v599_v45, %v615_v46  ;;  %v648_v45 = vld [vmem:[#allocation5 + $0x6b0] sm:$0xff]  ;;  %v633_v46 = vld [vmem:[#allocation5 + $0x638] sm:$0xff] }
  0xb0   : > { %v9007_v5 = vcombine.high %v534_v57, %v550_v58  ;;  %v9006_v11 = vcombine.low %v534_v57, %v550_v58 }
  0xb2   : > { %2375 = vmatpush1.bf16.msra.mxu0 %v8970_v63  ;;  %2488 = vmatpush1.bf16.msra.mxu1 %v8972_v3  ;;  %v9041_v63 = vcombine.high %v567_v54, %v583_v55  ;;  %v518_v3 = vld [vmem:[#allocation5 + $0x2a0] sm:$0xff] }
  0xb3   : > { %2376 = vmatprep.subr.bf16.mxu0 %v8939_v4  ;;  %2489 = vmatprep.subr.bf16.mxu1 %v8941_v8  ;;  %v9040_v4 = vcombine.low %v567_v54, %v583_v55  ;;  %v503_v8 = vld [vmem:[#allocation5 + $0x228] sm:$0xff]  ;;  %v8974_v19 = vcombine.low %v502_v2, %v518_v3  ;;  %v601_v55 = vld [vmem:[#allocation5 + $0x538] sm:$0xff] }
  0xb4   : > { %2201 = vmatmul.mubr.bf16.gmra.mxu0 %v11436_v7  ;;  %2314 = vmatmul.mubr.bf16.gmra.mxu1 %v11436_v7 }
  0xb5   : > { %2210 = vmatprep.mubr.bf16.mxu0 %v14348_v0  ;;  %2323 = vmatprep.mubr.bf16.mxu1 %v14348_v0 }
  0xb6   : > { %2377 = vmatpush1.bf16.msra.mxu0 %v8938_v9  ;;  %2490 = vmatpush1.bf16.msra.mxu1 %v8940_v14  ;;  %v519_v9 = vld [vmem:[#allocation5 + $0x2a8] sm:$0xff]  ;;  %v9008_v14 = vcombine.low %v535_v61, %v551_v62  ;;  %v584_v61 = vld [vmem:[#allocation5 + $0x4b0] sm:$0xff] }
  0xb7   : > { %2378 = vmatprep.subr.bf16.mxu0 %v8907_v15  ;;  %2491 = vmatprep.subr.bf16.mxu1 %v8909_v16  ;;  %v8975_v15 = vcombine.high %v502_v2, %v518_v3  ;;  %v471_v16 = vld [vmem:[#allocation5 + $0x128] sm:$0xff]  ;;  %v8977_v18 = vcombine.high %v503_v8, %v519_v9  ;;  %v536_v3 = vld [vmem:[#allocation5 + $0x330] sm:$0xff] }
  0xb8   : > { %v8945_v25 = vcombine.high %v471_v16, %v487_v17  ;;  %v8944_v35 = vcombine.low %v471_v16, %v487_v17 }
  0xba   : > { %2379 = vmatpush1.bf16.msra.mxu0 %v8906_v20  ;;  %2492 = vmatpush1.bf16.msra.mxu1 %v8908_v21  ;;  %v438_v20 = vld [vmem:[#allocation5 + $0x20] sm:$0xff] }
  0xbb   : > { %2590 = vmatprep.subr.bf16.mxu0 %v9135_v22  ;;  %2703 = vmatprep.subr.bf16.mxu1 %v9137_v24  ;;  %v454_v21 = vld [vmem:[#allocation5 + $0xa0] sm:$0xff]  ;;  %v8976_v22 = vcombine.low %v503_v8, %v519_v9  ;;  %v8943_v24 = vcombine.high %v470_v12, %v486_v13  ;;  %v537_v8 = vld [vmem:[#allocation5 + $0x338] sm:$0xff]  ;;  %v504_v13 = vld [vmem:[#allocation5 + $0x230] sm:$0xff] }
  0xbc   : > { %2211 = vmatmul.mubr.bf16.gmra.mxu0 %v11450_v23  ;;  %2324 = vmatmul.mubr.bf16.gmra.mxu1 %v11450_v23  ;;  %v8911_v36 = vcombine.high %v438_v20, %v454_v21  ;;  %v8910_v40 = vcombine.low %v438_v20, %v454_v21  ;;  %v553_v9 = vld [vmem:[#allocation5 + $0x3b8] sm:$0xff]  ;;  %v472_v21 = vld [vmem:[#allocation5 + $0x130] sm:$0xff] }
  0xbd   : > { %2220 = vmatprep.mubr.bf16.mxu0 %v14348_v0  ;;  %2333 = vmatprep.mubr.bf16.mxu1 %v14348_v0  ;;  %v9013_v17 = vcombine.high %v537_v8, %v553_v9 }
  0xc4   : > { %2221 = vmatmul.mubr.bf16.gmra.mxu0 %v11458_v27  ;;  %2334 = vmatmul.mubr.bf16.gmra.mxu1 %v11458_v27 }
  0xc5   : > { %2230 = vmatprep.mubr.bf16.mxu0 %v14348_v0  ;;  %2343 = vmatprep.mubr.bf16.mxu1 %v14348_v0 }
  0xcc   : > { %2231 = vmatmul.mubr.bf16.gmra.mxu0 %v11466_v30  ;;  %2344 = vmatmul.mubr.bf16.gmra.mxu1 %v11466_v30 }
  0xcd   : > { %2240 = vmatprep.mubr.bf16.mxu0 %v14348_v0  ;;  %2353 = vmatprep.mubr.bf16.mxu1 %v14348_v0 }
  0xd4   : > { %2241 = vmatmul.mubr.bf16.gmra.mxu0 %v11474_v34  ;;  %2354 = vmatmul.mubr.bf16.gmra.mxu1 %v11474_v34 }
  0xd5   : > { %2396 = vmatprep.mubr.bf16.mxu0 %v14348_v0  ;;  %2509 = vmatprep.mubr.bf16.mxu1 %v14348_v0 }
  0xdc   : > { %2397 = vmatmul.mubr.bf16.vlgmr.msra.gmra.mxu0 %v11412_v10  ;;  %2510 = vmatmul.mubr.bf16.vlgmr.msra.gmra.mxu1 %v11412_v10 }
  0xdd   : > { %2591 = vmatpush1.bf16.msra.mxu0 %v9134_v39  ;;  %2704 = vmatpush1.bf16.msra.mxu1 %v9136_v41  ;;  %v8913_v39 = vcombine.high %v439_v26, %v455_v28  ;;  %v8912_v41 = vcombine.low %v439_v26, %v455_v28  ;;  %v473_v26 = vld [vmem:[#allocation5 + $0x138] sm:$0xff] }
  0xde   : > { %2406 = vmatprep.mubr.bf16.mxu0 %v14348_v0  ;;  %2519 = vmatprep.mubr.bf16.mxu1 %v14348_v0  ;;  %v489_v28 = vld [vmem:[#allocation5 + $0x1b8] sm:$0xff] }
  0xdf   : > { %2592 = vmatprep.subr.bf16.mxu0 %v9103_v43  ;;  %2705 = vmatprep.subr.bf16.mxu1 %v9105_v44  ;;  %v9141_v43 = vcombine.high %v665_v37, %v681_v38  ;;  %v632_v44 = vld [vmem:[#allocation5 + $0x630] sm:$0xff]  ;;  %v8949_v38 = vcombine.high %v473_v26, %v489_v28 }
  0xe0   : > { %v9106_v57 = vcombine.low %v632_v44, %v648_v45 }
  0xe1   : > { %2593 = vmatpush1.bf16.msra.mxu0 %v9102_v47  ;;  %2706 = vmatpush1.bf16.msra.mxu1 %v9104_v48  ;;  %v649_v47 = vld [vmem:[#allocation5 + $0x6b8] sm:$0xff]  ;;  %v9138_v48 = vcombine.low %v664_v31, %v680_v32  ;;  %v440_v32 = vld [vmem:[#allocation5 + $0x30] sm:$0xff] }
  0xe2   : > { %2594 = vmatprep.subr.bf16.mxu0 %v9071_v49  ;;  %2707 = vmatprep.subr.bf16.mxu1 %v9073_v53  ;;  %v600_v49 = vld [vmem:[#allocation5 + $0x530] sm:$0xff]  ;;  %v9107_v53 = vcombine.high %v632_v44, %v648_v45  ;;  %v9109_v54 = vcombine.high %v633_v46, %v649_v47  ;;  %v9108_v58 = vcombine.low %v633_v46, %v649_v47  ;;  %v11530_v46 = vld [vmem:[#allocation5 + $0x748] sm:$0xff] }
  0xe3   : > { %v9074_v2 = vcombine.low %v600_v49, %v616_v52  ;;  %v8948_v44 = vcombine.low %v473_v26, %v489_v28  ;;  %v11532_v47 = vld [vmem:[#allocation5 + $0x7c8] sm:$0xff]  ;;  %v11611_v26 = vld [vmem:[#allocation5 + $0x440] sm:$0xff] }
  0xe4   : > { %2407 = vmatmul.mubr.bf16.gmra.mxu0 %v11420_v33  ;;  %2520 = vmatmul.mubr.bf16.gmra.mxu1 %v11420_v33 }
  0xe5   : > { %2416 = vmatprep.mubr.bf16.mxu0 %v14348_v0  ;;  %2529 = vmatprep.mubr.bf16.mxu1 %v14348_v0 }
  0xe6   : > { %2595 = vmatpush1.bf16.msra.mxu0 %v9070_v56  ;;  %2708 = vmatpush1.bf16.msra.mxu1 %v9072_v59  ;;  %v617_v56 = vld [vmem:[#allocation5 + $0x5b8] sm:$0xff]  ;;  %v9075_v59 = vcombine.high %v600_v49, %v616_v52 }
  0xe7   : > { %2596 = vmatprep.subr.bf16.mxu0 %v9039_v60  ;;  %2709 = vmatprep.subr.bf16.mxu1 %v9041_v63  ;;  %v568_v60 = vld [vmem:[#allocation5 + $0x430] sm:$0xff]  ;;  %v9077_v62 = vcombine.high %v601_v55, %v617_v56  ;;  %v569_v63 = vld [vmem:[#allocation5 + $0x438] sm:$0xff] }
  0xe8   : > { %v9042_v12 = vcombine.low %v568_v60, %v584_v61 }
  0xea   : > { %2597 = vmatpush1.bf16.msra.mxu0 %v9038_v1  ;;  %2710 = vmatpush1.bf16.msra.mxu1 %v9040_v4  ;;  %v585_v1 = vld [vmem:[#allocation5 + $0x4b8] sm:$0xff]  ;;  %v552_v4 = vld [vmem:[#allocation5 + $0x3b0] sm:$0xff] }
  0xeb   : > { %2598 = vmatprep.subr.bf16.mxu0 %v9007_v5  ;;  %2711 = vmatprep.subr.bf16.mxu1 %v9009_v6  ;;  %v9076_v5 = vcombine.low %v601_v55, %v617_v56  ;;  %v9043_v6 = vcombine.high %v568_v60, %v584_v61  ;;  %v9011_v16 = vcombine.high %v536_v3, %v552_v4  ;;  %v11560_v56 = vld [vmem:[#allocation7] sm:$0xff] }
  0xec   : > { %2417 = vmatmul.mubr.bf16.gmra.mxu0 %v11428_v51  ;;  %2530 = vmatmul.mubr.bf16.gmra.mxu1 %v11428_v51  ;;  %v9010_v20 = vcombine.low %v536_v3, %v552_v4  ;;  %v634_v60 = vld [vmem:[#allocation5 + $0x640] sm:$0xff] }
  0xed   : > { %2426 = vmatprep.mubr.bf16.mxu0 %v14348_v0  ;;  %2539 = vmatprep.mubr.bf16.mxu1 %v14348_v0  ;;  %v650_v61 = vld [vmem:[#allocation5 + $0x6c0] sm:$0xff] }
  0xee   : > { %2599 = vmatpush1.bf16.msra.mxu0 %v9006_v11  ;;  %2712 = vmatpush1.bf16.msra.mxu1 %v9008_v14  ;;  %v9045_v11 = vcombine.high %v569_v63, %v585_v1  ;;  %v520_v14 = vld [vmem:[#allocation5 + $0x2b0] sm:$0xff]  ;;  %v11576_v3 = vld [vmem:[#allocation5 + $0x540] sm:$0xff] }
  0xef   : > { %2600 = vmatprep.subr.bf16.mxu0 %v8975_v15  ;;  %2713 = vmatprep.subr.bf16.mxu1 %v8977_v18  ;;  %v9044_v15 = vcombine.low %v569_v63, %v585_v1  ;;  %v505_v18 = vld [vmem:[#allocation5 + $0x238] sm:$0xff]  ;;  %v8978_v31 = vcombine.low %v504_v13, %v520_v14  ;;  %v635_v63 = vld [vmem:[#allocation5 + $0x648] sm:$0xff]  ;;  %v11578_v4 = vld [vmem:[#allocation5 + $0x5c0] sm:$0xff] }
  0xf0   : > { %v651_v1 = vld [vmem:[#allocation5 + $0x6c8] sm:$0xff] }
  0xf2   : > { %2601 = vmatpush1.bf16.msra.mxu0 %v8974_v19  ;;  %2714 = vmatpush1.bf16.msra.mxu1 %v8976_v22  ;;  %v521_v19 = vld [vmem:[#allocation5 + $0x2b8] sm:$0xff]  ;;  %v488_v22 = vld [vmem:[#allocation5 + $0x1b0] sm:$0xff] }
  0xf3   : > { %2602 = vmatprep.subr.bf16.mxu0 %v8943_v24  ;;  %2715 = vmatprep.subr.bf16.mxu1 %v8945_v25  ;;  %v9012_v24 = vcombine.low %v537_v8, %v553_v9  ;;  %v8979_v25 = vcombine.high %v504_v13, %v520_v14  ;;  %v8947_v37 = vcombine.high %v472_v21, %v488_v22 }
  0xf4   : > { %2427 = vmatmul.mubr.bf16.gmra.mxu0 %v11436_v7  ;;  %2540 = vmatmul.mubr.bf16.gmra.mxu1 %v11436_v7  ;;  %v9111_v9 = vcombine.high %v634_v60, %v650_v61  ;;  %v9113_v14 = vcombine.high %v635_v63, %v651_v1 }
  0xf5   : > { %2436 = vmatprep.mubr.bf16.mxu0 %v14348_v0  ;;  %2549 = vmatprep.mubr.bf16.mxu1 %v14348_v0 }
  0xf6   : > { %2603 = vmatpush1.bf16.msra.mxu0 %v8942_v29  ;;  %2716 = vmatpush1.bf16.msra.mxu1 %v8944_v35  ;;  %v8981_v29 = vcombine.high %v505_v18, %v521_v19  ;;  %v456_v35 = vld [vmem:[#allocation5 + $0xb0] sm:$0xff] }
  0xf7   : > { %2604 = vmatprep.subr.bf16.mxu0 %v8911_v36  ;;  %2717 = vmatprep.subr.bf16.mxu1 %v8913_v39  ;;  %v8980_v36 = vcombine.low %v505_v18, %v521_v19  ;;  %v441_v39 = vld [vmem:[#allocation5 + $0x38] sm:$0xff]  ;;  %v8915_v45 = vcombine.high %v440_v32, %v456_v35  ;;  %v8914_v49 = vcombine.low %v440_v32, %v456_v35  ;;  %v11616_v32 = vld [vmem:[#allocation5 + $0x448] sm:$0xff] }
  0xfa   : > { %2605 = vmatpush1.bf16.msra.mxu0 %v8910_v40  ;;  %2718 = vmatpush1.bf16.msra.mxu1 %v8912_v41  ;;  %v457_v40 = vld [vmem:[#allocation5 + $0xb8] sm:$0xff]  ;;  %v8946_v41 = vcombine.low %v472_v21, %v488_v22  ;;  %v9079_v21 = vcombine.high %v11576_v3, %v11578_v4 }
  0xfb   : > { %2816 = vmatprep.subr.bf16.mxu0 %v9139_v42  ;;  %2929 = vmatprep.subr.bf16.mxu1 %v9141_v43  ;;  %v11526_v42 = vld [vmem:[#allocation5 + $0x740] sm:$0xff] }
  0xfc   : > { %2437 = vmatmul.mubr.bf16.gmra.mxu0 %v11450_v23  ;;  %2550 = vmatmul.mubr.bf16.gmra.mxu1 %v11450_v23  ;;  %v11528_v43 = vld [vmem:[#allocation5 + $0x7c0] sm:$0xff] }
  0xfd   : > { %2446 = vmatprep.mubr.bf16.mxu0 %v14348_v0  ;;  %2559 = vmatprep.mubr.bf16.mxu1 %v14348_v0  ;;  %v9143_v52 = vcombine.high %v11526_v42, %v11528_v43 }
 0x104   : > { %2447 = vmatmul.mubr.bf16.gmra.mxu0 %v11458_v27  ;;  %2560 = vmatmul.mubr.bf16.gmra.mxu1 %v11458_v27 }
 0x105   : > { %2456 = vmatprep.mubr.bf16.mxu0 %v14348_v0  ;;  %2569 = vmatprep.mubr.bf16.mxu1 %v14348_v0 }
 0x10c   : > { %2457 = vmatmul.mubr.bf16.gmra.mxu0 %v11466_v30  ;;  %2570 = vmatmul.mubr.bf16.gmra.mxu1 %v11466_v30 }
 0x10d   : > { %2466 = vmatprep.mubr.bf16.mxu0 %v14348_v0  ;;  %2579 = vmatprep.mubr.bf16.mxu1 %v14348_v0 }
 0x114   : > { %2467 = vmatmul.mubr.bf16.gmra.mxu0 %v11474_v34  ;;  %2580 = vmatmul.mubr.bf16.gmra.mxu1 %v11474_v34 }
 0x115   : > { %2622 = vmatprep.mubr.bf16.mxu0 %v14348_v0  ;;  %2735 = vmatprep.mubr.bf16.mxu1 %v14348_v0 }
 0x11c   : > { %2623 = vmatmul.mubr.bf16.vlgmr.msra.gmra.mxu0 %v11412_v10  ;;  %2736 = vmatmul.mubr.bf16.vlgmr.msra.gmra.mxu1 %v11412_v10 }
 0x11d   : > { %2817 = vmatpush1.bf16.msra.mxu0 %v9138_v48  ;;  %2930 = vmatpush1.bf16.msra.mxu1 %v9140_v50  ;;  %v8917_v48 = vcombine.high %v441_v39, %v457_v40  ;;  %v8916_v50 = vcombine.low %v441_v39, %v457_v40  ;;  %v11622_v39 = vld [vmem:[#allocation5 + $0x4c8] sm:$0xff] }
 0x11e   : > { %2632 = vmatprep.mubr.bf16.mxu0 %v14348_v0  ;;  %2745 = vmatprep.mubr.bf16.mxu1 %v14348_v0 }
 0x11f   : > { %2818 = vmatprep.subr.bf16.mxu0 %v9107_v53  ;;  %2931 = vmatprep.subr.bf16.mxu1 %v9109_v54  ;;  %v9145_v53 = vcombine.high %v11530_v46, %v11532_v47  ;;  %v698_v54 = vlaneseq }
 0x121   : > { %2819 = vmatpush1.bf16.msra.mxu0 %v9106_v57  ;;  %2932 = vmatpush1.bf16.msra.mxu1 %v9108_v58  ;;  %v11554_v55 = vshrl.u32 %v698_v54, 7 }
 0x122   : > { %2820 = vmatprep.subr.bf16.mxu0 %v9075_v59  ;;  %2933 = vmatprep.subr.bf16.mxu1 %v9077_v62 }
 0x123   : > { %v11563_v57 = vsub.s32 0, %v11554_v55  ;;  %v11566_v58 = vsub.s32 2, %v11554_v55  ;;  %v11569_v59 = vsub.s32 1, %v11554_v55  ;;  %v11572_v62 = vsub.s32 3, %v11554_v55 }
 0x124   : > { %2633 = vmatmul.mubr.bf16.gmra.mxu0 %v11420_v33  ;;  %2746 = vmatmul.mubr.bf16.gmra.mxu1 %v11420_v33 }
 0x125   : > { %2642 = vmatprep.mubr.bf16.mxu0 %v14348_v0  ;;  %2755 = vmatprep.mubr.bf16.mxu1 %v14348_v0  ;;  %v11586_v8 = vrot.slane %v11560_v56, %v11563_v57  ;;  %v11592_v13 = vrot.slane %v11560_v56, %v11566_v58  ;;  %v11602_v19 = vrot.slane %v11560_v56, %v11572_v62 }
 0x126   : > { %2821 = vmatpush1.bf16.msra.mxu0 %v9074_v2  ;;  %2934 = vmatpush1.bf16.msra.mxu1 %v9076_v5  ;;  %v9142_v2 = vcombine.low %v11526_v42, %v11528_v43  ;;  %v9144_v5 = vcombine.low %v11530_v46, %v11532_v47 }
 0x127   : > { %2822 = vmatprep.subr.bf16.mxu0 %v9043_v6  ;;  %2935 = vmatprep.subr.bf16.mxu1 %v9045_v11  ;;  %v11582_v6 = vld [vmem:[#allocation5 + $0x548] sm:$0xff] }
 0x128   : > { %v11588_v11 = vld [vmem:[#allocation5 + $0x5c8] sm:$0xff] }
 0x129   : > { %v9080_v43 = vcombine.low %v11582_v6, %v11588_v11 }
 0x12a   : > { %2823 = vmatpush1.bf16.msra.mxu0 %v9042_v12  ;;  %2936 = vmatpush1.bf16.msra.mxu1 %v9044_v15 }
 0x12b   : > { %2824 = vmatprep.subr.bf16.mxu0 %v9011_v16  ;;  %2937 = vmatprep.subr.bf16.mxu1 %v9013_v17  ;;  %v11598_v16 = vrot.slane %v11560_v56, %v11569_v59  ;;  %v9110_v17 = vcombine.low %v634_v60, %v650_v61 }
 0x12c   : > { %2643 = vmatmul.mubr.bf16.gmra.mxu0 %v11428_v51  ;;  %2756 = vmatmul.mubr.bf16.gmra.mxu1 %v11428_v51 }
 0x12d   : > { %2652 = vmatprep.mubr.bf16.mxu0 %v14348_v0  ;;  %2765 = vmatprep.mubr.bf16.mxu1 %v14348_v0 }
 0x12e   : > { %2825 = vmatpush1.bf16.msra.mxu0 %v9010_v20  ;;  %2938 = vmatpush1.bf16.msra.mxu1 %v9012_v24  ;;  %v9112_v20 = vcombine.low %v635_v63, %v651_v1  ;;  %v9049_v1 = vcombine.high %v11616_v32, %v11622_v39 }
 0x12f   : > { %2826 = vmatprep.subr.bf16.mxu0 %v8979_v25  ;;  %2939 = vmatprep.subr.bf16.mxu1 %v8981_v29  ;;  %v9081_v25 = vcombine.high %v11582_v6, %v11588_v11 }
 0x132   : > { %2827 = vmatpush1.bf16.msra.mxu0 %v8978_v31  ;;  %2940 = vmatpush1.bf16.msra.mxu1 %v8980_v36  ;;  %v11614_v31 = vld [vmem:[#allocation5 + $0x4c0] sm:$0xff] }
 0x133   : > { %2828 = vmatprep.subr.bf16.mxu0 %v8947_v37  ;;  %2941 = vmatprep.subr.bf16.mxu1 %v8949_v38  ;;  %v9078_v38 = vcombine.low %v11576_v3, %v11578_v4  ;;  %v9046_v6 = vcombine.low %v11611_v26, %v11614_v31 }
 0x134   : > { %2653 = vmatmul.mubr.bf16.gmra.mxu0 %v11436_v7  ;;  %2766 = vmatmul.mubr.bf16.gmra.mxu1 %v11436_v7 }
 0x135   : > { %2662 = vmatprep.mubr.bf16.mxu0 %v14348_v0  ;;  %2775 = vmatprep.mubr.bf16.mxu1 %v14348_v0 }
 0x136   : > { %2829 = vmatpush1.bf16.msra.mxu0 %v8946_v41  ;;  %2942 = vmatpush1.bf16.msra.mxu1 %v8948_v44  ;;  %v11628_v44 = vld [vmem:[#allocation5 + $0x340] sm:$0xff] }
 0x137   : > { %2830 = vmatprep.subr.bf16.mxu0 %v8915_v45  ;;  %2943 = vmatprep.subr.bf16.mxu1 %v8917_v48  ;;  %v11630_v45 = vld [vmem:[#allocation5 + $0x3c0] sm:$0xff] }
 0x13a   : > { %2831 = vmatpush1.bf16.msra.mxu0 %v8914_v49  ;;  %2944 = vmatpush1.bf16.msra.mxu1 %v8916_v50  ;;  %v9047_v50 = vcombine.high %v11611_v26, %v11614_v31 }
 0x13b   : > { %3042 = vmatprep.subr.bf16.mxu0 %v9143_v52  ;;  %3155 = vmatprep.subr.bf16.mxu1 %v9145_v53  ;;  %v11635_v52 = vld [vmem:[#allocation5 + $0x348] sm:$0xff] }
 0x13c   : > { %2663 = vmatmul.mubr.bf16.gmra.mxu0 %v11450_v23  ;;  %2776 = vmatmul.mubr.bf16.gmra.mxu1 %v11450_v23  ;;  %v11637_v53 = vld [vmem:[#allocation5 + $0x3c8] sm:$0xff] }
 0x13d   : > { %2672 = vmatprep.mubr.bf16.mxu0 %v14348_v0  ;;  %2785 = vmatprep.mubr.bf16.mxu1 %v14348_v0  ;;  %v9017_v26 = vcombine.high %v11635_v52, %v11637_v53 }
 0x144   : > { %2673 = vmatmul.mubr.bf16.gmra.mxu0 %v11458_v27  ;;  %2786 = vmatmul.mubr.bf16.gmra.mxu1 %v11458_v27 }
 0x145   : > { %2682 = vmatprep.mubr.bf16.mxu0 %v14348_v0  ;;  %2795 = vmatprep.mubr.bf16.mxu1 %v14348_v0 }
 0x14c   : > { %2683 = vmatmul.mubr.bf16.gmra.mxu0 %v11466_v30  ;;  %2796 = vmatmul.mubr.bf16.gmra.mxu1 %v11466_v30 }
 0x14d   : > { %2692 = vmatprep.mubr.bf16.mxu0 %v14348_v0  ;;  %2805 = vmatprep.mubr.bf16.mxu1 %v14348_v0 }
 0x154   : > { %2693 = vmatmul.mubr.bf16.gmra.mxu0 %v11474_v34  ;;  %2806 = vmatmul.mubr.bf16.gmra.mxu1 %v11474_v34 }
 0x155   : > { %2848 = vmatprep.mubr.bf16.mxu0 %v14348_v0  ;;  %2961 = vmatprep.mubr.bf16.mxu1 %v14348_v0 }
 0x15c   : > { %v2172_v12 = vpop.f32.mrf.mxu0  ;;  %2849 = vmatmul.mubr.bf16.vlgmr.msra.gmra.mxu0 %v11412_v10  ;;  %v2285_v15 = vpop.f32.mrf.mxu1  ;;  %2962 = vmatmul.mubr.bf16.vlgmr.msra.gmra.mxu1 %v11412_v10 }
 0x15d   : > { %3043 = vmatpush1.bf16.msra.mxu0 %v9142_v2  ;;  %3156 = vmatpush1.bf16.msra.mxu1 %v9144_v5  ;;  %v2173_v22 = vadd.f32 %v2172_v12, %v11586_v8  ;;  %v2286_v28 = vadd.f32 %v2285_v15, %v11592_v13  ;;  %v9048_v15 = vcombine.low %v11616_v32, %v11622_v39 }
 0x15e   : > { %v2174_v18 = vpop.f32.mrf.mxu0  ;;  %2858 = vmatprep.mubr.bf16.mxu0 %v14348_v0  ;;  %v2287_v24 = vpop.f32.mrf.mxu1  ;;  %2971 = vmatprep.mubr.bf16.mxu1 %v14348_v0 }
 0x15f   : > { %3044 = vmatprep.subr.bf16.mxu0 %v9111_v9  ;;  %3157 = vmatprep.subr.bf16.mxu1 %v9113_v14  ;;  %v2175_v35 = vadd.f32 %v2174_v18, %v11598_v16  ;;  %v2288_v40 = vadd.f32 %v2287_v24, %v11602_v19  ;;  %v3946_v46 = vmax.f32 %v2173_v22, 0.0  ;;  %v3948_v54 = vmax.f32 %v2286_v28, 0.0  ;;  %v11664_v28 = vld [vmem:[#allocation5 + $0x2c0] sm:$0xff] }
 0x160   : > { %v2176_v29 = vpop.f32.mrf.mxu0  ;;  %v2289_v37 = vpop.f32.mrf.mxu1 }
 0x161   : > { %v2177_v36 = vadd.f32 %v2176_v29, %v11586_v8  ;;  %3045 = vmatpush1.bf16.msra.mxu0 %v9110_v17  ;;  %v2290_v41 = vadd.f32 %v2289_v37, %v11592_v13  ;;  %3158 = vmatpush1.bf16.msra.mxu1 %v9112_v20  ;;  %v3947_v2 = vmax.f32 %v2175_v35, 0.0  ;;  %v3949_v9 = vmax.f32 %v2288_v40, 0.0  ;;  %v11666_v29 = vld [vmem:[#allocation5 + $0x248] sm:$0xff] }
 0x162   : > { %v2178_v42 = vpop.f32.mrf.mxu0  ;;  %3046 = vmatprep.subr.bf16.mxu0 %v9079_v21  ;;  %v2291_v49 = vpop.f32.mrf.mxu1  ;;  %3159 = vmatprep.subr.bf16.mxu1 %v9081_v25  ;;  %v9015_v20 = vcombine.high %v11628_v44, %v11630_v45  ;;  %v11657_v21 = vld [vmem:[#allocation5 + $0x240] sm:$0xff]  ;;  %v11672_v37 = vld [vmem:[#allocation5 + $0x2c8] sm:$0xff] }
 0x163   : > { %v3978_v47 = vmax.f32 %v2177_v36, 0.0  ;;  %v2179_v48 = vadd.f32 %v2178_v42, %v11598_v16  ;;  %v3980_v60 = vmax.f32 %v2290_v41, 0.0  ;;  %v2292_v61 = vadd.f32 %v2291_v49, %v11602_v19 }
 0x164   : > { %v2182_v63 = vpop.f32.mrf.mxu0  ;;  %2859 = vmatmul.mubr.bf16.gmra.mxu0 %v11420_v33  ;;  %v2295_v5 = vpop.f32.mrf.mxu1  ;;  %2972 = vmatmul.mubr.bf16.gmra.mxu1 %v11420_v33  ;;  %v9014_v41 = vcombine.low %v11628_v44, %v11630_v45  ;;  %v9016_v42 = vcombine.low %v11635_v52, %v11637_v53  ;;  %v11689_v44 = vld [vmem:[#allocation5 + $0x1c8] sm:$0xff] }
 0x165   : > { %v11643_v3 = vpack.c.bf16 %v3978_v47, %v3946_v46  ;;  %v3979_v4 = vmax.f32 %v2179_v48, 0.0  ;;  %2868 = vmatprep.mubr.bf16.mxu0 %v14348_v0  ;;  %v11649_v11 = vpack.c.bf16 %v3980_v60, %v3948_v54  ;;  %v3981_v12 = vmax.f32 %v2292_v61, 0.0  ;;  %2981 = vmatprep.mubr.bf16.mxu1 %v14348_v0  ;;  %v11682_v46 = vld [vmem:[#allocation5 + $0x1c0] sm:$0xff]  ;;  %v11687_v60 = vld [vmem:[#allocation5 + $0x148] sm:$0xff] }
 0x166   : > { %v2184_v14 = vpop.f32.mrf.mxu0  ;;  %3047 = vmatpush1.bf16.msra.mxu0 %v9078_v38  ;;  %v2183_v17 = vadd.f32 %v2182_v63, %v11586_v8  ;;  %v2297_v18 = vpop.f32.mrf.mxu1  ;;  %3160 = vmatpush1.bf16.msra.mxu1 %v9080_v43  ;;  %v2296_v24 = vadd.f32 %v2295_v5, %v11592_v13  ;;  %v11680_v43 = vld [vmem:[#allocation5 + $0x140] sm:$0xff]  ;;  %v8983_v54 = vcombine.high %v11657_v21, %v11664_v28 }
 0x167   : > { %3048 = vmatprep.subr.bf16.mxu0 %v9047_v50  ;;  %v11659_v22 = vpack.c.bf16 %v3979_v4, %v3947_v2  ;;  %3161 = vmatprep.subr.bf16.mxu1 %v9049_v1  ;;  %v11668_v31 = vpack.c.bf16 %v3981_v12, %v3949_v9  ;;  %v2185_v32 = vadd.f32 %v2184_v14, %v11598_v16 }
 0x168   : > { %v2186_v25 = vpop.f32.mrf.mxu0  ;;  %v2299_v36 = vpop.f32.mrf.mxu1  ;;  %v2298_v38 = vadd.f32 %v2297_v18, %v11602_v19  ;;  %v4010_v47 = vmax.f32 %v2183_v17, 0.0  ;;  %v4012_v45 = vmax.f32 %v2296_v24, 0.0  ;;  %v8985_v63 = vcombine.high %v11666_v29, %v11672_v37 }
 0x169   : > { %v2187_v35 = vadd.f32 %v2186_v25, %v11586_v8  ;;  %v2300_v39 = vadd.f32 %v2299_v36, %v11592_v13  ;;  %v4011_v1 = vmax.f32 %v2185_v32, 0.0  ;;  %v8984_v17 = vcombine.low %v11666_v29, %v11672_v37  ;;  %v458_v29 = vld [vmem:[#allocation5 + $0xc0] sm:$0xff] }
 0x16a   : > { %v2188_v40 = vpop.f32.mrf.mxu0  ;;  %3049 = vmatpush1.bf16.msra.mxu0 %v9046_v6  ;;  %v2301_v50 = vpop.f32.mrf.mxu1  ;;  %3162 = vmatpush1.bf16.msra.mxu1 %v9048_v15  ;;  %v8982_v6 = vcombine.low %v11657_v21, %v11664_v28  ;;  %v4013_v9 = vmax.f32 %v2298_v38, 0.0  ;;  %v8951_v24 = vcombine.high %v11680_v43, %v11682_v46  ;;  %v11709_v21 = vld [vmem:[#allocation5 + $0x40] sm:$0xff]  ;;  %v8953_v32 = vcombine.high %v11687_v60, %v11689_v44 }
 0x16b   : > { %v4042_v48 = vmax.f32 %v2187_v35, 0.0  ;;  %v2189_v49 = vadd.f32 %v2188_v40, %v11598_v16  ;;  %3050 = vmatprep.subr.bf16.mxu0 %v9015_v20  ;;  %v4044_v52 = vmax.f32 %v2300_v39, 0.0  ;;  %v2302_v53 = vadd.f32 %v2301_v50, %v11602_v19  ;;  %3163 = vmatprep.subr.bf16.mxu1 %v9017_v26  ;;  %v11716_v35 = vld [vmem:[#allocation5 + $0x48] sm:$0xff]  ;;  %v11728_v50 = vld [vmem:[#allocation5 + $0x750] sm:$0xff] }
 0x16c   : > { %v2192_v61 = vpop.f32.mrf.mxu0  ;;  %2869 = vmatmul.mubr.bf16.gmra.mxu0 %v11428_v51  ;;  %v2305_v5 = vpop.f32.mrf.mxu1  ;;  %2982 = vmatmul.mubr.bf16.gmra.mxu1 %v11428_v51  ;;  %v459_v40 = vld [vmem:[#allocation5 + $0xc8] sm:$0xff] }
 0x16d   : > { %v11695_v2 = vpack.c.bf16 %v4042_v48, %v4010_v47  ;;  %v4043_v4 = vmax.f32 %v2189_v49, 0.0  ;;  %2878 = vmatprep.mubr.bf16.mxu0 %v14348_v0  ;;  %v11701_v12 = vpack.c.bf16 %v4044_v52, %v4012_v45  ;;  %v4045_v14 = vmax.f32 %v2302_v53, 0.0  ;;  %2991 = vmatprep.mubr.bf16.mxu1 %v14348_v0 }
 0x16e   : > { %v2194_v15 = vpop.f32.mrf.mxu0  ;;  %3051 = vmatpush1.bf16.msra.mxu0 %v9014_v41  ;;  %v2193_v18 = vadd.f32 %v2192_v61, %v11586_v8  ;;  %v2307_v20 = vpop.f32.mrf.mxu1  ;;  %3164 = vmatpush1.bf16.msra.mxu1 %v9016_v42  ;;  %v2306_v26 = vadd.f32 %v2305_v5, %v11592_v13  ;;  %v8950_v48 = vcombine.low %v11680_v43, %v11682_v46 }
 0x16f   : > { %3052 = vmatprep.subr.bf16.mxu0 %v8983_v54  ;;  %v11711_v25 = vpack.c.bf16 %v4043_v4, %v4011_v1  ;;  %3165 = vmatprep.subr.bf16.mxu1 %v8985_v63  ;;  %v11718_v36 = vpack.c.bf16 %v4045_v14, %v4013_v9  ;;  %v2195_v37 = vadd.f32 %v2194_v15, %v11598_v16  ;;  %v11730_v54 = vld [vmem:[#allocation5 + $0x7d0] sm:$0xff]  ;;  %v11742_v15 = vld [vmem:[#allocation5 + $0x758] sm:$0xff] }
 0x170   : > { %v2196_v28 = vpop.f32.mrf.mxu0  ;;  %v2309_v39 = vpop.f32.mrf.mxu1  ;;  %v2308_v41 = vadd.f32 %v2307_v20, %v11602_v19  ;;  %v8952_v49 = vcombine.low %v11687_v60, %v11689_v44  ;;  %v4074_v45 = vmax.f32 %v2193_v18, 0.0  ;;  %v8919_v63 = vcombine.high %v11709_v21, %v458_v29 }
 0x171   : > { %v2197_v38 = vadd.f32 %v2196_v28, %v11586_v8  ;;  %v2310_v42 = vadd.f32 %v2309_v39, %v11592_v13  ;;  %v4076_v1 = vmax.f32 %v2306_v26, 0.0  ;;  %v8921_v60 = vcombine.high %v11716_v35, %v459_v40 }
 0x172   : > { %v2198_v47 = vpop.f32.mrf.mxu0  ;;  %3053 = vmatpush1.bf16.msra.mxu0 %v8982_v6  ;;  %v2311_v61 = vpop.f32.mrf.mxu1  ;;  %3166 = vmatpush1.bf16.msra.mxu1 %v8984_v17  ;;  %v4075_v44 = vmax.f32 %v2195_v37, 0.0  ;;  %v8918_v14 = vcombine.low %v11709_v21, %v458_v29  ;;  %v11744_v17 = vld [vmem:[#allocation5 + $0x7d8] sm:$0xff]  ;;  %v4077_v18 = vmax.f32 %v2308_v41, 0.0  ;;  %v8920_v28 = vcombine.low %v11716_v35, %v459_v40 }
 0x173   : > { %v4106_v52 = vmax.f32 %v2197_v38, 0.0  ;;  %v2199_v53 = vadd.f32 %v2198_v47, %v11598_v16  ;;  %3054 = vmatprep.subr.bf16.mxu0 %v8951_v24  ;;  %v4108_v4 = vmax.f32 %v2310_v42, 0.0  ;;  %v2312_v43 = vadd.f32 %v2311_v61, %v11602_v19  ;;  %3167 = vmatprep.subr.bf16.mxu1 %v8953_v32 }
 0x174   : > { %v2202_v46 = vpop.f32.mrf.mxu0  ;;  %2879 = vmatmul.mubr.bf16.gmra.mxu0 %v11436_v7  ;;  %v2315_v9 = vpop.f32.mrf.mxu1  ;;  %2992 = vmatmul.mubr.bf16.gmra.mxu1 %v11436_v7  ;;  %v9147_v21 = vcombine.high %v11728_v50, %v11730_v54  ;;  %v9149_v41 = vcombine.high %v11742_v15, %v11744_v17 }
 0x175   : > { %v11737_v5 = vpack.c.bf16 %v4106_v52, %v4074_v45  ;;  %v4107_v6 = vmax.f32 %v2199_v53, 0.0  ;;  %2888 = vmatprep.mubr.bf16.mxu0 %v14348_v0  ;;  %v11746_v20 = vpack.c.bf16 %v4108_v4, %v4076_v1  ;;  %v4109_v24 = vmax.f32 %v2312_v43, 0.0  ;;  %3001 = vmatprep.mubr.bf16.mxu1 %v14348_v0 }
 0x176   : > { %v2204_v26 = vpop.f32.mrf.mxu0  ;;  %3055 = vmatpush1.bf16.msra.mxu0 %v8950_v48  ;;  %v2203_v32 = vadd.f32 %v2202_v46, %v11586_v8  ;;  %v2317_v37 = vpop.f32.mrf.mxu1  ;;  %3168 = vmatpush1.bf16.msra.mxu1 %v8952_v49  ;;  %v2316_v38 = vadd.f32 %v2315_v9, %v11592_v13 }
 0x177   : > { %3056 = vmatprep.subr.bf16.mxu0 %v8919_v63  ;;  %v11753_v29 = vpack.c.bf16 %v4107_v6, %v4075_v44  ;;  %3169 = vmatprep.subr.bf16.mxu1 %v8921_v60  ;;  %v11758_v42 = vpack.c.bf16 %v4109_v24, %v4077_v18  ;;  %v2205_v35 = vadd.f32 %v2204_v26, %v11598_v16 }
 0x178   : > { %v2206_v39 = vpop.f32.mrf.mxu0  ;;  %v2319_v47 = vpop.f32.mrf.mxu1  ;;  %v2318_v48 = vadd.f32 %v2317_v37, %v11602_v19  ;;  %v4138_v52 = vmax.f32 %v2203_v32, 0.0  ;;  %v4140_v1 = vmax.f32 %v2316_v38, 0.0 }
 0x179   : > { %v2207_v40 = vadd.f32 %v2206_v39, %v11586_v8  ;;  %v2320_v49 = vadd.f32 %v2319_v47, %v11592_v13  ;;  %v4139_v60 = vmax.f32 %v2205_v35, 0.0 }
 0x17a   : > { %v2208_v45 = vpop.f32.mrf.mxu0  ;;  %3057 = vmatpush1.bf16.msra.mxu0 %v8918_v14  ;;  %v2321_v63 = vpop.f32.mrf.mxu1  ;;  %3170 = vmatpush1.bf16.msra.mxu1 %v8920_v28  ;;  %v4141_v14 = vmax.f32 %v2318_v48, 0.0 }
 0x17b   : > { %v4170_v53 = vmax.f32 %v2207_v40, 0.0  ;;  %v2209_v61 = vadd.f32 %v2208_v45, %v11598_v16  ;;  %3268 = vmatprep.subr.bf16.mxu0 %v9147_v21  ;;  %v4172_v4 = vmax.f32 %v2320_v49, 0.0  ;;  %v2322_v43 = vadd.f32 %v2321_v63, %v11602_v19  ;;  %3381 = vmatprep.subr.bf16.mxu1 %v9149_v41 }
 0x17c   : > { %v2212_v46 = vpop.f32.mrf.mxu0  ;;  %2889 = vmatmul.mubr.bf16.gmra.mxu0 %v11450_v23  ;;  %v2325_v9 = vpop.f32.mrf.mxu1  ;;  %3002 = vmatmul.mubr.bf16.gmra.mxu1 %v11450_v23 }
 0x17d   : > { %v11767_v44 = vpack.c.bf16 %v4170_v53, %v4138_v52  ;;  %v4171_v6 = vmax.f32 %v2209_v61, 0.0  ;;  %2898 = vmatprep.mubr.bf16.mxu0 %v14348_v0  ;;  %v11771_v18 = vpack.c.bf16 %v4172_v4, %v4140_v1  ;;  %v4173_v24 = vmax.f32 %v2322_v43, 0.0  ;;  %3011 = vmatprep.mubr.bf16.mxu1 %v14348_v0 }
 0x17e   : > { %v2214_v26 = vpop.f32.mrf.mxu0  ;;  %v2213_v28 = vadd.f32 %v2212_v46, %v11586_v8  ;;  %v2327_v32 = vpop.f32.mrf.mxu1  ;;  %v2326_v21 = vadd.f32 %v2325_v9, %v11592_v13 }
 0x17f   : > { %14371 = vst [vmem:[#allocation16_spill] sm:$0xff] %v11767_v44  ;;  %14372 = vst [vmem:[#allocation17_spill] sm:$0xff] %v11771_v18  ;;  %v11775_v37 = vpack.c.bf16 %v4171_v6, %v4139_v60  ;;  %v11778_v39 = vpack.c.bf16 %v4173_v24, %v4141_v14  ;;  %v2215_v41 = vadd.f32 %v2214_v26, %v11598_v16  ;;  %v11891_v44 = vld [vmem:[#allocation5 + $0x558] sm:$0xff] }
 0x180   : > { %v2216_v38 = vpop.f32.mrf.mxu0  ;;  %v2329_v40 = vpop.f32.mrf.mxu1  ;;  %v2328_v47 = vadd.f32 %v2327_v32, %v11602_v19  ;;  %v4202_v45 = vmax.f32 %v2213_v28, 0.0  ;;  %v4204_v63 = vmax.f32 %v2326_v21, 0.0 }
 0x181   : > { %14373 = vst [vmem:[#allocation18_spill] sm:$0xff] %v11775_v37  ;;  %14374 = vst [vmem:[#allocation19_spill] sm:$0xff] %v11778_v39  ;;  %v2217_v35 = vadd.f32 %v2216_v38, %v11586_v8  ;;  %v2330_v48 = vadd.f32 %v2329_v40, %v11592_v13  ;;  %v4203_v46 = vmax.f32 %v2215_v41, 0.0  ;;  %v11893_v39 = vld [vmem:[#allocation5 + $0x5d8] sm:$0xff]  ;;  %v12179_v37 = vld [vmem:[#allocation5 + $0x5e8] sm:$0xff] }
 0x182   : > { %v2218_v49 = vpop.f32.mrf.mxu0  ;;  %v2331_v61 = vpop.f32.mrf.mxu1  ;;  %v4205_v14 = vmax.f32 %v2328_v47, 0.0 }
 0x183   : > { %v4234_v52 = vmax.f32 %v2217_v35, 0.0  ;;  %v2219_v53 = vadd.f32 %v2218_v49, %v11598_v16  ;;  %v4236_v1 = vmax.f32 %v2330_v48, 0.0  ;;  %v2332_v4 = vadd.f32 %v2331_v61, %v11602_v19 }
 0x184   : > { %v2222_v43 = vpop.f32.mrf.mxu0  ;;  %2899 = vmatmul.mubr.bf16.gmra.mxu0 %v11458_v27  ;;  %v2335_v9 = vpop.f32.mrf.mxu1  ;;  %3012 = vmatmul.mubr.bf16.gmra.mxu1 %v11458_v27 }
 0x185   : > { %v11787_v60 = vpack.c.bf16 %v4234_v52, %v4202_v45  ;;  %v4235_v6 = vmax.f32 %v2219_v53, 0.0  ;;  %2908 = vmatprep.mubr.bf16.mxu0 %v14348_v0  ;;  %v11791_v24 = vpack.c.bf16 %v4236_v1, %v4204_v63  ;;  %v4237_v26 = vmax.f32 %v2332_v4, 0.0  ;;  %3021 = vmatprep.mubr.bf16.mxu1 %v14348_v0 }
 0x186   : > { %v2224_v28 = vpop.f32.mrf.mxu0  ;;  %v2223_v32 = vadd.f32 %v2222_v43, %v11586_v8  ;;  %v2337_v21 = vpop.f32.mrf.mxu1  ;;  %v2336_v41 = vadd.f32 %v2335_v9, %v11592_v13 }
 0x187   : > { %14375 = vst [vmem:[#allocation20_spill] sm:$0xff] %v11787_v60  ;;  %14376 = vst [vmem:[#allocation21_spill] sm:$0xff] %v11791_v24  ;;  %v11795_v38 = vpack.c.bf16 %v4235_v6, %v4203_v46  ;;  %v11798_v40 = vpack.c.bf16 %v4237_v26, %v4205_v14  ;;  %v2225_v48 = vadd.f32 %v2224_v28, %v11598_v16 }
 0x188   : > { %v2226_v35 = vpop.f32.mrf.mxu0  ;;  %v2339_v49 = vpop.f32.mrf.mxu1  ;;  %v2338_v45 = vadd.f32 %v2337_v21, %v11602_v19  ;;  %v4266_v61 = vmax.f32 %v2223_v32, 0.0  ;;  %v4268_v43 = vmax.f32 %v2336_v41, 0.0 }
 0x189   : > { %14377 = vst [vmem:[#allocation22_spill] sm:$0xff] %v11795_v38  ;;  %14378 = vst [vmem:[#allocation23_spill] sm:$0xff] %v11798_v40  ;;  %v2227_v47 = vadd.f32 %v2226_v35, %v11586_v8  ;;  %v2340_v52 = vadd.f32 %v2339_v49, %v11592_v13  ;;  %v4267_v14 = vmax.f32 %v2225_v48, 0.0 }
 0x18a   : > { %v2228_v53 = vpop.f32.mrf.mxu0  ;;  %v2341_v4 = vpop.f32.mrf.mxu1  ;;  %v4269_v32 = vmax.f32 %v2338_v45, 0.0 }
 0x18b   : > { %v4298_v63 = vmax.f32 %v2227_v47, 0.0  ;;  %v2229_v1 = vadd.f32 %v2228_v53, %v11598_v16  ;;  %v4300_v46 = vmax.f32 %v2340_v52, 0.0  ;;  %v2342_v6 = vadd.f32 %v2341_v4, %v11602_v19 }
 0x18c   : > { %v2232_v9 = vpop.f32.mrf.mxu0  ;;  %2909 = vmatmul.mubr.bf16.gmra.mxu0 %v11466_v30  ;;  %v2345_v21 = vpop.f32.mrf.mxu1  ;;  %3022 = vmatmul.mubr.bf16.gmra.mxu1 %v11466_v30 }
 0x18d   : > { %v11807_v26 = vpack.c.bf16 %v4298_v63, %v4266_v61  ;;  %v4299_v28 = vmax.f32 %v2229_v1, 0.0  ;;  %2918 = vmatprep.mubr.bf16.mxu0 %v14348_v0  ;;  %v11811_v35 = vpack.c.bf16 %v4300_v46, %v4268_v43  ;;  %v4301_v47 = vmax.f32 %v2342_v6, 0.0  ;;  %3031 = vmatprep.mubr.bf16.mxu1 %v14348_v0 }
 0x18e   : > { %v2234_v41 = vpop.f32.mrf.mxu0  ;;  %v2233_v49 = vadd.f32 %v2232_v9, %v11586_v8  ;;  %v2347_v52 = vpop.f32.mrf.mxu1  ;;  %v2346_v48 = vadd.f32 %v2345_v21, %v11592_v13  ;;  %v11824_v6 = vsub.s32 4, %v11554_v55  ;;  %v11827_v9 = vsub.s32 6, %v11554_v55 }
 0x18f   : > { %14379 = vst [vmem:[#allocation24_spill] sm:$0xff] %v11807_v26  ;;  %14380 = vst [vmem:[#allocation25_spill] sm:$0xff] %v11811_v35  ;;  %v11815_v53 = vpack.c.bf16 %v4299_v28, %v4267_v14  ;;  %v11818_v63 = vpack.c.bf16 %v4301_v47, %v4269_v32  ;;  %v2235_v1 = vadd.f32 %v2234_v41, %v11598_v16  ;;  %v11830_v14 = vsub.s32 5, %v11554_v55 }
 0x190   : > { %v2236_v61 = vpop.f32.mrf.mxu0  ;;  %v2349_v4 = vpop.f32.mrf.mxu1  ;;  %v4330_v28 = vmax.f32 %v2233_v49, 0.0  ;;  %v2348_v21 = vadd.f32 %v2347_v52, %v11602_v19  ;;  %v11837_v26 = vsub.s32 7, %v11554_v55  ;;  %v14384_v52 = vmov 0  }
 0x191   : > { %14381 = vst [vmem:[#allocation26_spill] sm:$0xff] %v11815_v53  ;;  %14382 = vst [vmem:[#allocation27_spill] sm:$0xff] %v11818_v63  ;;  %v2237_v45 = vadd.f32 %v2236_v61, %v11586_v8  ;;  %v2350_v43 = vadd.f32 %v2349_v4, %v11592_v13  ;;  %v4332_v61 = vmax.f32 %v2346_v48, 0.0  ;;  %v4331_v63 = vmax.f32 %v2235_v1, 0.0 }
 0x192   : > { %v2238_v46 = vpop.f32.mrf.mxu0  ;;  %v2351_v41 = vpop.f32.mrf.mxu1  ;;  %v11849_v1 = vrot.slane %v11560_v56, %v11824_v6 }
 0x193   : > { %v4362_v32 = vmax.f32 %v2237_v45, 0.0  ;;  %v2239_v47 = vadd.f32 %v2238_v46, %v11598_v16  ;;  %v4364_v0 = vmax.f32 %v2350_v43, 0.0  ;;  %v2352_v4 = vadd.f32 %v2351_v41, %v11602_v19 }
 0x194   : > { %v2242_v35 = vpop.f32.mrf.mxu0  ;;  %2919 = vmatmul.mubr.bf16.gmra.mxu0 %v11474_v34  ;;  %v2355_v24 = vpop.f32.mrf.mxu1  ;;  %3032 = vmatmul.mubr.bf16.gmra.mxu1 %v11474_v34  ;;  %v4333_v46 = vmax.f32 %v2348_v21, 0.0  ;;  %v11868_v21 = vrot.slane %v11560_v56, %v11837_v26 }
 0x195   : > { %v11839_v53 = vpack.c.bf16 %v4362_v32, %v4330_v28  ;;  %v4363_v49 = vmax.f32 %v2239_v47, 0.0  ;;  %3074 = vmatprep.mubr.bf16.mxu0 %v14384_v52  ;;  %v11843_v45 = vpack.c.bf16 %v4364_v0, %v4332_v61  ;;  %v4365_v48 = vmax.f32 %v2352_v4, 0.0  ;;  %3187 = vmatprep.mubr.bf16.mxu1 %v14384_v52  ;;  %v11851_v28 = vld [vmem:[#allocation5 + $0x650] sm:$0xff] }
 0x196   : > { %v2244_v43 = vpop.f32.mrf.mxu0  ;;  %v2243_v41 = vadd.f32 %v2242_v35, %v11586_v8  ;;  %v2357_v55 = vpop.f32.mrf.mxu1  ;;  %v11853_v32 = vld [vmem:[#allocation5 + $0x6d0] sm:$0xff]  ;;  %v2356_v0 = vadd.f32 %v2355_v24, %v11592_v13  ;;  %v11860_v4 = vrot.slane %v11560_v56, %v11827_v9  ;;  %v11864_v35 = vrot.slane %v11560_v56, %v11830_v14 }
 0x197   : > { %14383 = vst [vmem:[#allocation28_spill] sm:$0xff] %v11839_v53  ;;  %14385 = vst [vmem:[#allocation29_spill] sm:$0xff] %v11843_v45  ;;  %v11855_v47 = vpack.c.bf16 %v4363_v49, %v4331_v63  ;;  %v9146_v63 = vcombine.low %v11728_v50, %v11730_v54  ;;  %v9148_v24 = vcombine.low %v11742_v15, %v11744_v17  ;;  %v637_v49 = vld [vmem:[#allocation5 + $0x658] sm:$0xff]  ;;  %v11884_v50 = vld [vmem:[#allocation5 + $0x5d0] sm:$0xff] }
 0x198   : > { %v2246_v61 = vpop.f32.mrf.mxu0  ;;  %v2359_v53 = vpop.f32.mrf.mxu1  ;;  %v11875_v60 = vpack.c.bf16 %v4365_v48, %v4333_v46  ;;  %v2245_v40 = vadd.f32 %v2244_v43, %v11598_v16  ;;  %v2358_v38 = vadd.f32 %v2357_v55, %v11602_v19  ;;  %v4394_v54 = vmax.f32 %v2243_v41, 0.0 }
 0x199   : > { %14386 = vst [vmem:[#allocation30_spill] sm:$0xff] %v11855_v47  ;;  %v2247_v45 = vadd.f32 %v2246_v61, %v11586_v8  ;;  %v653_v47 = vld [vmem:[#allocation5 + $0x6d8] sm:$0xff]  ;;  %v2360_v56 = vadd.f32 %v2359_v53, %v11592_v13  ;;  %v9114_v8 = vcombine.low %v11851_v28, %v11853_v32  ;;  %v11882_v61 = vld [vmem:[#allocation5 + $0x550] sm:$0xff]  ;;  %v9115_v43 = vcombine.high %v11851_v28, %v11853_v32 }
 0x19a   : > { %14387 = vst [vmem:[#allocation31_spill] sm:$0xff] %v11875_v60  ;;  %v2248_v18 = vpop.f32.mrf.mxu0  ;;  %v2361_v48 = vpop.f32.mrf.mxu1  ;;  %v4396_v46 = vmax.f32 %v2356_v0, 0.0  ;;  %v9117_v60 = vcombine.high %v637_v49, %v653_v47  ;;  %v9083_v28 = vcombine.high %v11882_v61, %v11884_v50  ;;  %v4397_v32 = vmax.f32 %v2358_v38, 0.0  ;;  %v11908_v38 = vld [vmem:[#allocation5 + $0x450] sm:$0xff] }
 0x19b   : > { %v4426_v15 = vmax.f32 %v2247_v45, 0.0  ;;  %v2249_v17 = vadd.f32 %v2248_v18, %v11598_v16  ;;  %v4428_v55 = vmax.f32 %v2360_v56, 0.0  ;;  %v2362_v13 = vadd.f32 %v2361_v48, %v11602_v19 }
 0x19c   : > { %v2398_v53 = vpop.f32.mrf.mxu0  ;;  %3075 = vmatmul.mubr.bf16.vlgmr.msra.gmra.mxu0 %v11412_v10  ;;  %v2511_v16 = vpop.f32.mrf.mxu1  ;;  %3188 = vmatmul.mubr.bf16.vlgmr.msra.gmra.mxu1 %v11412_v10  ;;  %v9116_v18 = vcombine.low %v637_v49, %v653_v47  ;;  %v4395_v19 = vmax.f32 %v2245_v40, 0.0  ;;  %v9085_v47 = vcombine.high %v11891_v44, %v11893_v39  ;;  %v11910_v49 = vld [vmem:[#allocation5 + $0x4d0] sm:$0xff] }
 0x19d   : > { %v11895_v41 = vpack.c.bf16 %v4426_v15, %v4394_v54  ;;  %v4427_v45 = vmax.f32 %v2249_v17, 0.0  ;;  %3269 = vmatpush1.bf16.msra.mxu0 %v9146_v63  ;;  %v11900_v0 = vpack.c.bf16 %v4428_v55, %v4396_v46  ;;  %v4429_v56 = vmax.f32 %v2362_v13, 0.0  ;;  %3382 = vmatpush1.bf16.msra.mxu1 %v9148_v24 }
 0x19e   : > { %v2400_v48 = vpop.f32.mrf.mxu0  ;;  %3084 = vmatprep.mubr.bf16.mxu0 %v14384_v52  ;;  %v2399_v54 = vadd.f32 %v2398_v53, %v11849_v1  ;;  %v2513_v15 = vpop.f32.mrf.mxu1  ;;  %3197 = vmatprep.mubr.bf16.mxu1 %v14384_v52  ;;  %v2512_v63 = vadd.f32 %v2511_v16, %v11860_v4  ;;  %v9082_v13 = vcombine.low %v11882_v61, %v11884_v50  ;;  %v11920_v53 = vld [vmem:[#allocation5 + $0x458] sm:$0xff] }
 0x19f   : > { %14388 = vst [vmem:[#allocation32_spill] sm:$0xff] %v11895_v41  ;;  %14389 = vst [vmem:[#allocation33_spill] sm:$0xff] %v11900_v0  ;;  %3270 = vmatprep.subr.bf16.mxu0 %v9115_v43  ;;  %3383 = vmatprep.subr.bf16.mxu1 %v9117_v60  ;;  %v11912_v24 = vpack.c.bf16 %v4427_v45, %v4395_v19  ;;  %v11914_v17 = vpack.c.bf16 %v4429_v56, %v4397_v32  ;;  %v11922_v60 = vld [vmem:[#allocation5 + $0x4d8] sm:$0xff] }
 0x1a0   : > { %v2402_v40 = vpop.f32.mrf.mxu0  ;;  %v2401_v46 = vadd.f32 %v2400_v48, %v11864_v35  ;;  %v2515_v43 = vpop.f32.mrf.mxu1  ;;  %v2514_v16 = vadd.f32 %v2513_v15, %v11868_v21  ;;  %v9084_v32 = vcombine.low %v11891_v44, %v11893_v39  ;;  %v3950_v56 = vmax.f32 %v2399_v54, 0.0  ;;  %v11935_v44 = vld [vmem:[#allocation5 + $0x350] sm:$0xff] }
 0x1a1   : > { %14390 = vst [vmem:[#allocation34_spill] sm:$0xff] %v11912_v24  ;;  %14391 = vst [vmem:[#allocation35_spill] sm:$0xff] %v11914_v17  ;;  %v2403_v55 = vadd.f32 %v2402_v40, %v11849_v1  ;;  %3271 = vmatpush1.bf16.msra.mxu0 %v9114_v8  ;;  %v2516_v45 = vadd.f32 %v2515_v43, %v11860_v4  ;;  %3384 = vmatpush1.bf16.msra.mxu1 %v9116_v18  ;;  %v3952_v50 = vmax.f32 %v2512_v63, 0.0  ;;  %v11937_v39 = vld [vmem:[#allocation5 + $0x3d0] sm:$0xff] }
 0x1a2   : > { %v2404_v19 = vpop.f32.mrf.mxu0  ;;  %3272 = vmatprep.subr.bf16.mxu0 %v9083_v28  ;;  %v2517_v40 = vpop.f32.mrf.mxu1  ;;  %3385 = vmatprep.subr.bf16.mxu1 %v9085_v47  ;;  %v9051_v61 = vcombine.high %v11908_v38, %v11910_v49  ;;  %v9053_v18 = vcombine.high %v11920_v53, %v11922_v60  ;;  %v3951_v28 = vmax.f32 %v2401_v46, 0.0  ;;  %v9050_v63 = vcombine.low %v11908_v38, %v11910_v49 }
 0x1a3   : > { %v3982_v48 = vmax.f32 %v2403_v55, 0.0  ;;  %v2405_v8 = vadd.f32 %v2404_v19, %v11864_v35  ;;  %v3984_v0 = vmax.f32 %v2516_v45, 0.0  ;;  %v2518_v15 = vadd.f32 %v2517_v40, %v11868_v21  ;;  %v11945_v45 = vld [vmem:[#allocation5 + $0x358] sm:$0xff] }
 0x1a4   : > { %v2408_v43 = vpop.f32.mrf.mxu0  ;;  %3085 = vmatmul.mubr.bf16.gmra.mxu0 %v11420_v33  ;;  %v2521_v55 = vpop.f32.mrf.mxu1  ;;  %3198 = vmatmul.mubr.bf16.gmra.mxu1 %v11420_v33  ;;  %v11947_v19 = vld [vmem:[#allocation5 + $0x3d8] sm:$0xff]  ;;  %v3953_v40 = vmax.f32 %v2514_v16, 0.0  ;;  %v9019_v38 = vcombine.high %v11935_v44, %v11937_v39 }
 0x1a5   : > { %v11939_v54 = vpack.c.bf16 %v3982_v48, %v3950_v56  ;;  %v3983_v47 = vmax.f32 %v2405_v8, 0.0  ;;  %3094 = vmatprep.mubr.bf16.mxu0 %v14384_v52  ;;  %v11949_v41 = vpack.c.bf16 %v3984_v0, %v3952_v50  ;;  %v3985_v17 = vmax.f32 %v2518_v15, 0.0  ;;  %3207 = vmatprep.mubr.bf16.mxu1 %v14384_v52  ;;  %v11962_v50 = vld [vmem:[#allocation5 + $0x250] sm:$0xff] }
 0x1a6   : > { %v2410_v46 = vpop.f32.mrf.mxu0  ;;  %3273 = vmatpush1.bf16.msra.mxu0 %v9082_v13  ;;  %v9052_v56 = vcombine.low %v11920_v53, %v11922_v60  ;;  %v2409_v48 = vadd.f32 %v2408_v43, %v11849_v1  ;;  %v2523_v8 = vpop.f32.mrf.mxu1  ;;  %3386 = vmatpush1.bf16.msra.mxu1 %v9084_v32  ;;  %v2522_v0 = vadd.f32 %v2521_v55, %v11860_v4  ;;  %v11964_v53 = vld [vmem:[#allocation5 + $0x2d0] sm:$0xff]  ;;  %v11970_v43 = vld [vmem:[#allocation5 + $0x258] sm:$0xff] }
 0x1a7   : > { %14392 = vst [vmem:[#allocation36_spill] sm:$0xff] %v11939_v54  ;;  %14393 = vst [vmem:[#allocation37_spill] sm:$0xff] %v11949_v41  ;;  %3274 = vmatprep.subr.bf16.mxu0 %v9051_v61  ;;  %v11957_v49 = vpack.c.bf16 %v3983_v47, %v3951_v28  ;;  %3387 = vmatprep.subr.bf16.mxu1 %v9053_v18  ;;  %v9021_v13 = vcombine.high %v11945_v45, %v11947_v19  ;;  %v11972_v28 = vld [vmem:[#allocation5 + $0x2d8] sm:$0xff] }
 0x1a8   : > { %v2412_v16 = vpop.f32.mrf.mxu0  ;;  %v11966_v60 = vpack.c.bf16 %v3985_v17, %v3953_v40  ;;  %v2411_v32 = vadd.f32 %v2410_v46, %v11864_v35  ;;  %v2525_v15 = vpop.f32.mrf.mxu1  ;;  %v2524_v18 = vadd.f32 %v2523_v8, %v11868_v21  ;;  %v9018_v41 = vcombine.low %v11935_v44, %v11937_v39  ;;  %v11987_v39 = vld [vmem:[#allocation5 + $0x150] sm:$0xff] }
 0x1a9   : > { %14394 = vst [vmem:[#allocation38_spill] sm:$0xff] %v11957_v49  ;;  %v2413_v61 = vadd.f32 %v2412_v16, %v11849_v1  ;;  %v2526_v47 = vadd.f32 %v2525_v15, %v11860_v4  ;;  %v9020_v17 = vcombine.low %v11945_v45, %v11947_v19  ;;  %v4014_v40 = vmax.f32 %v2409_v48, 0.0  ;;  %v11989_v45 = vld [vmem:[#allocation5 + $0x1d0] sm:$0xff] }
 0x1aa   : > { %14395 = vst [vmem:[#allocation39_spill] sm:$0xff] %v11966_v60  ;;  %v2414_v55 = vpop.f32.mrf.mxu0  ;;  %3275 = vmatpush1.bf16.msra.mxu0 %v9050_v63  ;;  %v2527_v54 = vpop.f32.mrf.mxu1  ;;  %3388 = vmatpush1.bf16.msra.mxu1 %v9052_v56  ;;  %v8987_v8 = vcombine.high %v11962_v50, %v11964_v53  ;;  %v4016_v60 = vmax.f32 %v2522_v0, 0.0  ;;  %v8989_v44 = vcombine.high %v11970_v43, %v11972_v28  ;;  %v4015_v19 = vmax.f32 %v2411_v32, 0.0  ;;  %v11997_v0 = vld [vmem:[#allocation5 + $0x158] sm:$0xff] }
 0x1ab   : > { %v4046_v46 = vmax.f32 %v2413_v61, 0.0  ;;  %v2415_v16 = vadd.f32 %v2414_v55, %v11864_v35  ;;  %3276 = vmatprep.subr.bf16.mxu0 %v9019_v38  ;;  %v4048_v15 = vmax.f32 %v2526_v47, 0.0  ;;  %v2528_v63 = vadd.f32 %v2527_v54, %v11868_v21  ;;  %3389 = vmatprep.subr.bf16.mxu1 %v9021_v13  ;;  %v11999_v13 = vld [vmem:[#allocation5 + $0x1d8] sm:$0xff] }
 0x1ac   : > { %v2418_v49 = vpop.f32.mrf.mxu0  ;;  %3095 = vmatmul.mubr.bf16.gmra.mxu0 %v11428_v51  ;;  %v2531_v38 = vpop.f32.mrf.mxu1  ;;  %3208 = vmatmul.mubr.bf16.gmra.mxu1 %v11428_v51  ;;  %v8986_v54 = vcombine.low %v11962_v50, %v11964_v53  ;;  %v4017_v61 = vmax.f32 %v2524_v18, 0.0  ;;  %v8955_v50 = vcombine.high %v11987_v39, %v11989_v45 }
 0x1ad   : > { %v11991_v56 = vpack.c.bf16 %v4046_v46, %v4014_v40  ;;  %v4047_v48 = vmax.f32 %v2415_v16, 0.0  ;;  %3104 = vmatprep.mubr.bf16.mxu0 %v14384_v52  ;;  %v12001_v47 = vpack.c.bf16 %v4048_v15, %v4016_v60  ;;  %v4049_v55 = vmax.f32 %v2528_v63, 0.0  ;;  %3217 = vmatprep.mubr.bf16.mxu1 %v14384_v52  ;;  %v12014_v15 = vld [vmem:[#allocation5 + $0x50] sm:$0xff]  ;;  %v445_v63 = vld [vmem:[#allocation5 + $0x58] sm:$0xff] }
 0x1ae   : > { %v2420_v32 = vpop.f32.mrf.mxu0  ;;  %3277 = vmatpush1.bf16.msra.mxu0 %v9018_v41  ;;  %v8988_v40 = vcombine.low %v11970_v43, %v11972_v28  ;;  %v2419_v46 = vadd.f32 %v2418_v49, %v11849_v1  ;;  %v2533_v16 = vpop.f32.mrf.mxu1  ;;  %3390 = vmatpush1.bf16.msra.mxu1 %v9020_v17  ;;  %v2532_v60 = vadd.f32 %v2531_v38, %v11860_v4  ;;  %v460_v43 = vld [vmem:[#allocation5 + $0xd0] sm:$0xff] }
 0x1af   : > { %14396 = vst [vmem:[#allocation40_spill] sm:$0xff] %v11991_v56  ;;  %14397 = vst [vmem:[#allocation41_spill] sm:$0xff] %v12001_v47  ;;  %3278 = vmatprep.subr.bf16.mxu0 %v8987_v8  ;;  %v12009_v53 = vpack.c.bf16 %v4047_v48, %v4015_v19  ;;  %3391 = vmatprep.subr.bf16.mxu1 %v8989_v44  ;;  %v8957_v41 = vcombine.high %v11997_v0, %v11999_v13  ;;  %v461_v19 = vld [vmem:[#allocation5 + $0xd8] sm:$0xff] }
 0x1b0   : > { %v2422_v18 = vpop.f32.mrf.mxu0  ;;  %v12016_v28 = vpack.c.bf16 %v4049_v55, %v4017_v61  ;;  %v2421_v49 = vadd.f32 %v2420_v32, %v11864_v35  ;;  %v2535_v8 = vpop.f32.mrf.mxu1  ;;  %v2534_v48 = vadd.f32 %v2533_v16, %v11868_v21  ;;  %v8954_v47 = vcombine.low %v11987_v39, %v11989_v45  ;;  %v12030_v45 = vld [vmem:[#allocation5 + $0x760] sm:$0xff] }
 0x1b1   : > { %14398 = vst [vmem:[#allocation42_spill] sm:$0xff] %v12009_v53  ;;  %v2423_v17 = vadd.f32 %v2422_v18, %v11849_v1  ;;  %v2536_v38 = vadd.f32 %v2535_v8, %v11860_v4  ;;  %v8956_v61 = vcombine.low %v11997_v0, %v11999_v13  ;;  %v4078_v55 = vmax.f32 %v2419_v46, 0.0  ;;  %v12032_v0 = vld [vmem:[#allocation5 + $0x7e0] sm:$0xff] }
 0x1b2   : > { %14399 = vst [vmem:[#allocation43_spill] sm:$0xff] %v12016_v28  ;;  %v2424_v44 = vpop.f32.mrf.mxu0  ;;  %3279 = vmatpush1.bf16.msra.mxu0 %v8986_v54  ;;  %v2537_v18 = vpop.f32.mrf.mxu1  ;;  %3392 = vmatpush1.bf16.msra.mxu1 %v8988_v40  ;;  %v8923_v28 = vcombine.high %v12014_v15, %v460_v43  ;;  %v4080_v16 = vmax.f32 %v2532_v60, 0.0  ;;  %v8925_v39 = vcombine.high %v445_v63, %v461_v19  ;;  %v4079_v13 = vmax.f32 %v2421_v49, 0.0 }
 0x1b3   : > { %v4110_v56 = vmax.f32 %v2423_v17, 0.0  ;;  %v2425_v32 = vadd.f32 %v2424_v44, %v11864_v35  ;;  %3280 = vmatprep.subr.bf16.mxu0 %v8955_v50  ;;  %v4112_v53 = vmax.f32 %v2536_v38, 0.0  ;;  %v2538_v8 = vadd.f32 %v2537_v18, %v11868_v21  ;;  %3393 = vmatprep.subr.bf16.mxu1 %v8957_v41  ;;  %v12039_v17 = vld [vmem:[#allocation5 + $0x768] sm:$0xff] }
 0x1b4   : > { %v2428_v54 = vpop.f32.mrf.mxu0  ;;  %3105 = vmatmul.mubr.bf16.gmra.mxu0 %v11436_v7  ;;  %v2541_v50 = vpop.f32.mrf.mxu1  ;;  %3218 = vmatmul.mubr.bf16.gmra.mxu1 %v11436_v7  ;;  %v8922_v60 = vcombine.low %v12014_v15, %v460_v43  ;;  %v12041_v38 = vld [vmem:[#allocation5 + $0x7e8] sm:$0xff]  ;;  %v4081_v41 = vmax.f32 %v2534_v48, 0.0  ;;  %v9151_v15 = vcombine.high %v12030_v45, %v12032_v0 }
 0x1b5   : > { %v12034_v46 = vpack.c.bf16 %v4110_v56, %v4078_v55  ;;  %v4111_v40 = vmax.f32 %v2425_v32, 0.0  ;;  %3114 = vmatprep.mubr.bf16.mxu0 %v14384_v52  ;;  %v12043_v44 = vpack.c.bf16 %v4112_v53, %v4080_v16  ;;  %v4113_v18 = vmax.f32 %v2538_v8, 0.0  ;;  %3227 = vmatprep.mubr.bf16.mxu1 %v14384_v52 }
 0x1b6   : > { %v2430_v24 = vpop.f32.mrf.mxu0  ;;  %3281 = vmatpush1.bf16.msra.mxu0 %v8954_v47  ;;  %v8924_v56 = vcombine.low %v445_v63, %v461_v19  ;;  %v2429_v49 = vadd.f32 %v2428_v54, %v11849_v1  ;;  %v2543_v55 = vpop.f32.mrf.mxu1  ;;  %3394 = vmatpush1.bf16.msra.mxu1 %v8956_v61  ;;  %v2542_v48 = vadd.f32 %v2541_v50, %v11860_v4 }
 0x1b7   : > { %14400 = vst [vmem:[#allocation44_spill] sm:$0xff] %v12034_v46  ;;  %14401 = vst [vmem:[#allocation45_spill] sm:$0xff] %v12043_v44  ;;  %3282 = vmatprep.subr.bf16.mxu0 %v8923_v28  ;;  %v12049_v43 = vpack.c.bf16 %v4111_v40, %v4079_v13  ;;  %3395 = vmatprep.subr.bf16.mxu1 %v8925_v39  ;;  %v9153_v32 = vcombine.high %v12039_v17, %v12041_v38 }
 0x1b8   : > { %v2432_v53 = vpop.f32.mrf.mxu0  ;;  %v12054_v16 = vpack.c.bf16 %v4113_v18, %v4081_v41  ;;  %v2431_v47 = vadd.f32 %v2430_v24, %v11864_v35  ;;  %v2545_v19 = vpop.f32.mrf.mxu1  ;;  %v2544_v28 = vadd.f32 %v2543_v55, %v11868_v21  ;;  %v4142_v54 = vmax.f32 %v2429_v49, 0.0 }
 0x1b9   : > { %14402 = vst [vmem:[#allocation46_spill] sm:$0xff] %v12049_v43  ;;  %v2433_v63 = vadd.f32 %v2432_v53, %v11849_v1  ;;  %v2546_v61 = vadd.f32 %v2545_v19, %v11860_v4  ;;  %v4144_v50 = vmax.f32 %v2542_v48, 0.0  ;;  %v12177_v43 = vld [vmem:[#allocation5 + $0x568] sm:$0xff] }
 0x1ba   : > { %14403 = vst [vmem:[#allocation47_spill] sm:$0xff] %v12054_v16  ;;  %v2434_v8 = vpop.f32.mrf.mxu0  ;;  %3283 = vmatpush1.bf16.msra.mxu0 %v8922_v60  ;;  %v2547_v40 = vpop.f32.mrf.mxu1  ;;  %3396 = vmatpush1.bf16.msra.mxu1 %v8924_v56  ;;  %v4143_v55 = vmax.f32 %v2431_v47, 0.0  ;;  %v4145_v49 = vmax.f32 %v2544_v28, 0.0 }
 0x1bb   : > { %v4174_v13 = vmax.f32 %v2433_v63, 0.0  ;;  %v2435_v39 = vadd.f32 %v2434_v8, %v11864_v35  ;;  %3494 = vmatprep.subr.bf16.mxu0 %v9151_v15  ;;  %v4176_v41 = vmax.f32 %v2546_v61, 0.0  ;;  %v2548_v24 = vadd.f32 %v2547_v40, %v11868_v21  ;;  %3607 = vmatprep.subr.bf16.mxu1 %v9153_v32 }
 0x1bc   : > { %v2438_v18 = vpop.f32.mrf.mxu0  ;;  %3115 = vmatmul.mubr.bf16.gmra.mxu0 %v11450_v23  ;;  %v2551_v60 = vpop.f32.mrf.mxu1  ;;  %3228 = vmatmul.mubr.bf16.gmra.mxu1 %v11450_v23 }
 0x1bd   : > { %v12063_v53 = vpack.c.bf16 %v4174_v13, %v4142_v54  ;;  %v4175_v19 = vmax.f32 %v2435_v39, 0.0  ;;  %3124 = vmatprep.mubr.bf16.mxu0 %v14384_v52  ;;  %v12067_v56 = vpack.c.bf16 %v4176_v41, %v4144_v50  ;;  %v4177_v15 = vmax.f32 %v2548_v24, 0.0  ;;  %3237 = vmatprep.mubr.bf16.mxu1 %v14384_v52 }
 0x1be   : > { %v2440_v48 = vpop.f32.mrf.mxu0  ;;  %v2439_v63 = vadd.f32 %v2438_v18, %v11849_v1  ;;  %v2553_v61 = vpop.f32.mrf.mxu1  ;;  %v2552_v47 = vadd.f32 %v2551_v60, %v11860_v4 }
 0x1bf   : > { %14404 = vst [vmem:[#allocation48_spill] sm:$0xff] %v12063_v53  ;;  %14405 = vst [vmem:[#allocation49_spill] sm:$0xff] %v12067_v56  ;;  %v12071_v32 = vpack.c.bf16 %v4175_v19, %v4143_v55  ;;  %v12074_v54 = vpack.c.bf16 %v4177_v15, %v4145_v49  ;;  %v2441_v13 = vadd.f32 %v2440_v48, %v11864_v35 }
 0x1c0   : > { %v2442_v8 = vpop.f32.mrf.mxu0  ;;  %v2555_v39 = vpop.f32.mrf.mxu1  ;;  %v2554_v40 = vadd.f32 %v2553_v61, %v11868_v21  ;;  %v4206_v24 = vmax.f32 %v2439_v63, 0.0  ;;  %v4208_v56 = vmax.f32 %v2552_v47, 0.0 }
 0x1c1   : > { %14406 = vst [vmem:[#allocation50_spill] sm:$0xff] %v12071_v32  ;;  %14407 = vst [vmem:[#allocation51_spill] sm:$0xff] %v12074_v54  ;;  %v2443_v28 = vadd.f32 %v2442_v8, %v11849_v1  ;;  %v2556_v50 = vadd.f32 %v2555_v39, %v11860_v4  ;;  %v4207_v48 = vmax.f32 %v2441_v13, 0.0 }
 0x1c2   : > { %v2444_v41 = vpop.f32.mrf.mxu0  ;;  %v2557_v19 = vpop.f32.mrf.mxu1  ;;  %v4209_v63 = vmax.f32 %v2554_v40, 0.0 }
 0x1c3   : > { %v4238_v18 = vmax.f32 %v2443_v28, 0.0  ;;  %v2445_v55 = vadd.f32 %v2444_v41, %v11864_v35  ;;  %v4240_v60 = vmax.f32 %v2556_v50, 0.0  ;;  %v2558_v49 = vadd.f32 %v2557_v19, %v11868_v21 }
 0x1c4   : > { %v2448_v15 = vpop.f32.mrf.mxu0  ;;  %3125 = vmatmul.mubr.bf16.gmra.mxu0 %v11458_v27  ;;  %v2561_v61 = vpop.f32.mrf.mxu1  ;;  %3238 = vmatmul.mubr.bf16.gmra.mxu1 %v11458_v27 }
 0x1c5   : > { %v12083_v8 = vpack.c.bf16 %v4238_v18, %v4206_v24  ;;  %v4239_v53 = vmax.f32 %v2445_v55, 0.0  ;;  %3134 = vmatprep.mubr.bf16.mxu0 %v14384_v52  ;;  %v12087_v28 = vpack.c.bf16 %v4240_v60, %v4208_v56  ;;  %v4241_v39 = vmax.f32 %v2558_v49, 0.0  ;;  %3247 = vmatprep.mubr.bf16.mxu1 %v14384_v52 }
 0x1c6   : > { %v2450_v47 = vpop.f32.mrf.mxu0  ;;  %v2449_v50 = vadd.f32 %v2448_v15, %v11849_v1  ;;  %v2563_v41 = vpop.f32.mrf.mxu1  ;;  %v2562_v13 = vadd.f32 %v2561_v61, %v11860_v4 }
 0x1c7   : > { %14408 = vst [vmem:[#allocation52_spill] sm:$0xff] %v12083_v8  ;;  %14409 = vst [vmem:[#allocation53_spill] sm:$0xff] %v12087_v28  ;;  %v12091_v19 = vpack.c.bf16 %v4239_v53, %v4207_v48  ;;  %v12094_v18 = vpack.c.bf16 %v4241_v39, %v4209_v63  ;;  %v2451_v55 = vadd.f32 %v2450_v47, %v11864_v35 }
 0x1c8   : > { %v2452_v24 = vpop.f32.mrf.mxu0  ;;  %v2565_v56 = vpop.f32.mrf.mxu1  ;;  %v2564_v60 = vadd.f32 %v2563_v41, %v11868_v21  ;;  %v4270_v8 = vmax.f32 %v2449_v50, 0.0 }
 0x1c9   : > { %14410 = vst [vmem:[#allocation54_spill] sm:$0xff] %v12091_v19  ;;  %14411 = vst [vmem:[#allocation55_spill] sm:$0xff] %v12094_v18  ;;  %v2453_v40 = vadd.f32 %v2452_v24, %v11849_v1  ;;  %v2566_v49 = vadd.f32 %v2565_v56, %v11860_v4  ;;  %v4272_v19 = vmax.f32 %v2562_v13, 0.0  ;;  %v4271_v47 = vmax.f32 %v2451_v55, 0.0 }
 0x1ca   : > { %v2454_v28 = vpop.f32.mrf.mxu0  ;;  %v2567_v48 = vpop.f32.mrf.mxu1  ;;  %v4273_v50 = vmax.f32 %v2564_v60, 0.0 }
 0x1cb   : > { %v4302_v15 = vmax.f32 %v2453_v40, 0.0  ;;  %v2455_v53 = vadd.f32 %v2454_v28, %v11864_v35  ;;  %v4304_v61 = vmax.f32 %v2566_v49, 0.0  ;;  %v2568_v63 = vadd.f32 %v2567_v48, %v11868_v21 }
 0x1cc   : > { %v2458_v39 = vpop.f32.mrf.mxu0  ;;  %3135 = vmatmul.mubr.bf16.gmra.mxu0 %v11466_v30  ;;  %v2571_v41 = vpop.f32.mrf.mxu1  ;;  %3248 = vmatmul.mubr.bf16.gmra.mxu1 %v11466_v30 }
 0x1cd   : > { %v12103_v24 = vpack.c.bf16 %v4302_v15, %v4270_v8  ;;  %v4303_v18 = vmax.f32 %v2455_v53, 0.0  ;;  %3144 = vmatprep.mubr.bf16.mxu0 %v14384_v52  ;;  %v12107_v40 = vpack.c.bf16 %v4304_v61, %v4272_v19  ;;  %v4305_v28 = vmax.f32 %v2568_v63, 0.0  ;;  %3257 = vmatprep.mubr.bf16.mxu1 %v14384_v52 }
 0x1ce   : > { %v2460_v13 = vpop.f32.mrf.mxu0  ;;  %v2459_v56 = vadd.f32 %v2458_v39, %v11849_v1  ;;  %v2573_v49 = vpop.f32.mrf.mxu1  ;;  %v2572_v8 = vadd.f32 %v2571_v41, %v11860_v4 }
 0x1cf   : > { %14412 = vst [vmem:[#allocation56_spill] sm:$0xff] %v12103_v24  ;;  %14413 = vst [vmem:[#allocation57_spill] sm:$0xff] %v12107_v40  ;;  %v12111_v48 = vpack.c.bf16 %v4303_v18, %v4271_v47  ;;  %v12114_v15 = vpack.c.bf16 %v4305_v28, %v4273_v50  ;;  %v2461_v53 = vadd.f32 %v2460_v13, %v11864_v35  ;;  %v12123_v13 = vld [vmem:[#allocation7 + $0x8] sm:$0xff] }
 0x1d0   : > { %v2462_v55 = vpop.f32.mrf.mxu0  ;;  %v2575_v19 = vpop.f32.mrf.mxu1  ;;  %v4334_v40 = vmax.f32 %v2459_v56, 0.0  ;;  %v2574_v24 = vadd.f32 %v2573_v49, %v11868_v21 }
 0x1d1   : > { %14414 = vst [vmem:[#allocation58_spill] sm:$0xff] %v12111_v48  ;;  %14415 = vst [vmem:[#allocation59_spill] sm:$0xff] %v12114_v15  ;;  %v2463_v60 = vadd.f32 %v2462_v55, %v11849_v1  ;;  %v2576_v61 = vadd.f32 %v2575_v19, %v11860_v4  ;;  %v4336_v48 = vmax.f32 %v2572_v8, 0.0  ;;  %v4335_v55 = vmax.f32 %v2461_v53, 0.0  ;;  %v12137_v53 = vld [vmem:[#allocation5 + $0x660] sm:$0xff] }
 0x1d2   : > { %v2464_v63 = vpop.f32.mrf.mxu0  ;;  %v2577_v47 = vpop.f32.mrf.mxu1 }
 0x1d3   : > { %v4366_v39 = vmax.f32 %v2463_v60, 0.0  ;;  %v2465_v18 = vadd.f32 %v2464_v63, %v11864_v35  ;;  %v4368_v41 = vmax.f32 %v2576_v61, 0.0  ;;  %v2578_v50 = vadd.f32 %v2577_v47, %v11868_v21 }
 0x1d4   : > { %v2468_v28 = vpop.f32.mrf.mxu0  ;;  %3145 = vmatmul.mubr.bf16.gmra.mxu0 %v11474_v34  ;;  %v2581_v56 = vpop.f32.mrf.mxu1  ;;  %3258 = vmatmul.mubr.bf16.gmra.mxu1 %v11474_v34  ;;  %v4337_v61 = vmax.f32 %v2574_v24, 0.0  ;;  %v12150_v24 = vrot.slane %v12123_v13, %v11569_v59 }
 0x1d5   : > { %v12125_v15 = vpack.c.bf16 %v4366_v39, %v4334_v40  ;;  %v4367_v19 = vmax.f32 %v2465_v18, 0.0  ;;  %3300 = vmatprep.mubr.bf16.mxu0 %v14384_v52  ;;  %v12129_v49 = vpack.c.bf16 %v4368_v41, %v4336_v48  ;;  %v4369_v8 = vmax.f32 %v2578_v50, 0.0  ;;  %3413 = vmatprep.mubr.bf16.mxu1 %v14384_v52  ;;  %v12139_v39 = vld [vmem:[#allocation5 + $0x6e0] sm:$0xff] }
 0x1d6   : > { %v2470_v60 = vpop.f32.mrf.mxu0  ;;  %v2469_v63 = vadd.f32 %v2468_v28, %v11849_v1  ;;  %v2583_v47 = vpop.f32.mrf.mxu1  ;;  %v12135_v40 = vrot.slane %v12123_v13, %v11563_v57  ;;  %v2582_v48 = vadd.f32 %v2581_v56, %v11860_v4  ;;  %v12146_v50 = vrot.slane %v12123_v13, %v11566_v58  ;;  %v639_v56 = vld [vmem:[#allocation5 + $0x668] sm:$0xff] }
 0x1d7   : > { %14416 = vst [vmem:[#allocation60_spill] sm:$0xff] %v12125_v15  ;;  %14417 = vst [vmem:[#allocation61_spill] sm:$0xff] %v12129_v49  ;;  %v12141_v18 = vpack.c.bf16 %v4367_v19, %v4335_v55  ;;  %v12154_v28 = vrot.slane %v12123_v13, %v11572_v62  ;;  %v9150_v55 = vcombine.low %v12030_v45, %v12032_v0  ;;  %v12170_v45 = vld [vmem:[#allocation5 + $0x5e0] sm:$0xff] }
 0x1d8   : > { %v2472_v41 = vpop.f32.mrf.mxu0  ;;  %v2585_v15 = vpop.f32.mrf.mxu1  ;;  %v9152_v19 = vcombine.low %v12039_v17, %v12041_v38  ;;  %v12161_v54 = vpack.c.bf16 %v4369_v8, %v4337_v61  ;;  %v2471_v32 = vadd.f32 %v2470_v60, %v11864_v35  ;;  %v2584_v44 = vadd.f32 %v2583_v47, %v11868_v21 }
 0x1d9   : > { %14418 = vst [vmem:[#allocation62_spill] sm:$0xff] %v12141_v18  ;;  %v2473_v49 = vadd.f32 %v2472_v41, %v11849_v1  ;;  %v655_v18 = vld [vmem:[#allocation5 + $0x6e8] sm:$0xff]  ;;  %v2586_v46 = vadd.f32 %v2585_v15, %v11860_v4  ;;  %v9118_v1 = vcombine.low %v12137_v53, %v12139_v39  ;;  %v12168_v41 = vld [vmem:[#allocation5 + $0x560] sm:$0xff]  ;;  %v4398_v0 = vmax.f32 %v2469_v63, 0.0 }
 0x1da   : > { %14419 = vst [vmem:[#allocation63_spill] sm:$0xff] %v12161_v54  ;;  %v2474_v16 = vpop.f32.mrf.mxu0  ;;  %v2587_v8 = vpop.f32.mrf.mxu1  ;;  %v9119_v60 = vcombine.high %v12137_v53, %v12139_v39  ;;  %v4400_v61 = vmax.f32 %v2582_v48, 0.0  ;;  %v9121_v54 = vcombine.high %v639_v56, %v655_v18  ;;  %v4401_v53 = vmax.f32 %v2584_v44, 0.0  ;;  %v12194_v44 = vld [vmem:[#allocation5 + $0x460] sm:$0xff] }
 0x1db   : > { %v4430_v17 = vmax.f32 %v2473_v49, 0.0  ;;  %v2475_v38 = vadd.f32 %v2474_v16, %v11864_v35  ;;  %v4432_v47 = vmax.f32 %v2586_v46, 0.0  ;;  %v2588_v4 = vadd.f32 %v2587_v8, %v11868_v21 }
 0x1dc   : > { %v2624_v15 = vpop.f32.mrf.mxu0  ;;  %3301 = vmatmul.mubr.bf16.vlgmr.msra.gmra.mxu0 %v11412_v10  ;;  %v2737_v35 = vpop.f32.mrf.mxu1  ;;  %3414 = vmatmul.mubr.bf16.vlgmr.msra.gmra.mxu1 %v11412_v10  ;;  %v9120_v16 = vcombine.low %v639_v56, %v655_v18  ;;  %v9087_v46 = vcombine.high %v12168_v41, %v12170_v45  ;;  %v4399_v21 = vmax.f32 %v2471_v32, 0.0  ;;  %v9089_v18 = vcombine.high %v12177_v43, %v12179_v37  ;;  %v12196_v56 = vld [vmem:[#allocation5 + $0x4e0] sm:$0xff] }
 0x1dd   : > { %v12181_v63 = vpack.c.bf16 %v4430_v17, %v4398_v0  ;;  %v4431_v49 = vmax.f32 %v2475_v38, 0.0  ;;  %3495 = vmatpush1.bf16.msra.mxu0 %v9150_v55  ;;  %v12186_v39 = vpack.c.bf16 %v4432_v47, %v4400_v61  ;;  %v4433_v48 = vmax.f32 %v2588_v4, 0.0  ;;  %3608 = vmatpush1.bf16.msra.mxu1 %v9152_v19 }
 0x1de   : > { %v2626_v8 = vpop.f32.mrf.mxu0  ;;  %3310 = vmatprep.mubr.bf16.mxu0 %v14384_v52  ;;  %v2625_v0 = vadd.f32 %v2624_v15, %v12135_v40  ;;  %v2739_v17 = vpop.f32.mrf.mxu1  ;;  %3423 = vmatprep.mubr.bf16.mxu1 %v14384_v52  ;;  %v2738_v55 = vadd.f32 %v2737_v35, %v12146_v50  ;;  %v9086_v4 = vcombine.low %v12168_v41, %v12170_v45  ;;  %v12206_v15 = vld [vmem:[#allocation5 + $0x468] sm:$0xff] }
 0x1df   : > { %14420 = vst [vmem:[#allocation64_spill] sm:$0xff] %v12181_v63  ;;  %14421 = vst [vmem:[#allocation65_spill] sm:$0xff] %v12186_v39  ;;  %3496 = vmatprep.subr.bf16.mxu0 %v9119_v60  ;;  %3609 = vmatprep.subr.bf16.mxu1 %v9121_v54  ;;  %v12198_v19 = vpack.c.bf16 %v4431_v49, %v4399_v21  ;;  %v12200_v38 = vpack.c.bf16 %v4433_v48, %v4401_v53  ;;  %v12208_v54 = vld [vmem:[#allocation5 + $0x4e8] sm:$0xff] }
 0x1e0   : > { %v2628_v32 = vpop.f32.mrf.mxu0  ;;  %v2627_v61 = vadd.f32 %v2626_v8, %v12150_v24  ;;  %v2741_v60 = vpop.f32.mrf.mxu1  ;;  %v2740_v35 = vadd.f32 %v2739_v17, %v12154_v28  ;;  %v9088_v53 = vcombine.low %v12177_v43, %v12179_v37  ;;  %v3954_v48 = vmax.f32 %v2625_v0, 0.0  ;;  %v12221_v37 = vld [vmem:[#allocation5 + $0x360] sm:$0xff] }
 0x1e1   : > { %14422 = vst [vmem:[#allocation66_spill] sm:$0xff] %v12198_v19  ;;  %14423 = vst [vmem:[#allocation67_spill] sm:$0xff] %v12200_v38  ;;  %v2629_v47 = vadd.f32 %v2628_v32, %v12135_v40  ;;  %3497 = vmatpush1.bf16.msra.mxu0 %v9118_v1  ;;  %v2742_v49 = vadd.f32 %v2741_v60, %v12146_v50  ;;  %3610 = vmatpush1.bf16.msra.mxu1 %v9120_v16  ;;  %v3956_v45 = vmax.f32 %v2738_v55, 0.0  ;;  %v12223_v43 = vld [vmem:[#allocation5 + $0x3e0] sm:$0xff] }
 0x1e2   : > { %v2630_v21 = vpop.f32.mrf.mxu0  ;;  %3498 = vmatprep.subr.bf16.mxu0 %v9087_v46  ;;  %v2743_v32 = vpop.f32.mrf.mxu1  ;;  %3611 = vmatprep.subr.bf16.mxu1 %v9089_v18  ;;  %v9055_v41 = vcombine.high %v12194_v44, %v12196_v56  ;;  %v9057_v16 = vcombine.high %v12206_v15, %v12208_v54  ;;  %v3955_v46 = vmax.f32 %v2627_v61, 0.0  ;;  %v9054_v55 = vcombine.low %v12194_v44, %v12196_v56 }
 0x1e3   : > { %v3986_v8 = vmax.f32 %v2629_v47, 0.0  ;;  %v2631_v1 = vadd.f32 %v2630_v21, %v12150_v24  ;;  %v3988_v39 = vmax.f32 %v2742_v49, 0.0  ;;  %v2744_v17 = vadd.f32 %v2743_v32, %v12154_v28  ;;  %v12231_v49 = vld [vmem:[#allocation5 + $0x368] sm:$0xff] }
 0x1e4   : > { %v2634_v60 = vpop.f32.mrf.mxu0  ;;  %3311 = vmatmul.mubr.bf16.gmra.mxu0 %v11420_v33  ;;  %v2747_v47 = vpop.f32.mrf.mxu1  ;;  %3424 = vmatmul.mubr.bf16.gmra.mxu1 %v11420_v33  ;;  %v12233_v21 = vld [vmem:[#allocation5 + $0x3e8] sm:$0xff]  ;;  %v3957_v32 = vmax.f32 %v2740_v35, 0.0  ;;  %v9023_v44 = vcombine.high %v12221_v37, %v12223_v43 }
 0x1e5   : > { %v12225_v0 = vpack.c.bf16 %v3986_v8, %v3954_v48  ;;  %v3987_v18 = vmax.f32 %v2631_v1, 0.0  ;;  %3320 = vmatprep.mubr.bf16.mxu0 %v14384_v52  ;;  %v12235_v63 = vpack.c.bf16 %v3988_v39, %v3956_v45  ;;  %v3989_v38 = vmax.f32 %v2744_v17, 0.0  ;;  %3433 = vmatprep.mubr.bf16.mxu1 %v14384_v52  ;;  %v12248_v45 = vld [vmem:[#allocation5 + $0x260] sm:$0xff] }
 0x1e6   : > { %v2636_v61 = vpop.f32.mrf.mxu0  ;;  %3499 = vmatpush1.bf16.msra.mxu0 %v9086_v4  ;;  %v9056_v48 = vcombine.low %v12206_v15, %v12208_v54  ;;  %v2635_v8 = vadd.f32 %v2634_v60, %v12135_v40  ;;  %v2749_v1 = vpop.f32.mrf.mxu1  ;;  %3612 = vmatpush1.bf16.msra.mxu1 %v9088_v53  ;;  %v2748_v39 = vadd.f32 %v2747_v47, %v12146_v50  ;;  %v12250_v15 = vld [vmem:[#allocation5 + $0x2e0] sm:$0xff]  ;;  %v12256_v60 = vld [vmem:[#allocation5 + $0x268] sm:$0xff] }
 0x1e7   : > { %14424 = vst [vmem:[#allocation68_spill] sm:$0xff] %v12225_v0  ;;  %14425 = vst [vmem:[#allocation69_spill] sm:$0xff] %v12235_v63  ;;  %3500 = vmatprep.subr.bf16.mxu0 %v9055_v41  ;;  %v12243_v56 = vpack.c.bf16 %v3987_v18, %v3955_v46  ;;  %3613 = vmatprep.subr.bf16.mxu1 %v9057_v16  ;;  %v9025_v4 = vcombine.high %v12231_v49, %v12233_v21  ;;  %v12258_v46 = vld [vmem:[#allocation5 + $0x2e8] sm:$0xff] }
 0x1e8   : > { %v2638_v35 = vpop.f32.mrf.mxu0  ;;  %v12252_v54 = vpack.c.bf16 %v3989_v38, %v3957_v32  ;;  %v2637_v53 = vadd.f32 %v2636_v61, %v12150_v24  ;;  %v2751_v17 = vpop.f32.mrf.mxu1  ;;  %v2750_v16 = vadd.f32 %v2749_v1, %v12154_v28  ;;  %v9022_v63 = vcombine.low %v12221_v37, %v12223_v43  ;;  %v12273_v43 = vld [vmem:[#allocation5 + $0x160] sm:$0xff] }
 0x1e9   : > { %14426 = vst [vmem:[#allocation70_spill] sm:$0xff] %v12243_v56  ;;  %v2639_v41 = vadd.f32 %v2638_v35, %v12135_v40  ;;  %v2752_v18 = vadd.f32 %v2751_v17, %v12146_v50  ;;  %v9024_v38 = vcombine.low %v12231_v49, %v12233_v21  ;;  %v4018_v32 = vmax.f32 %v2635_v8, 0.0  ;;  %v12275_v49 = vld [vmem:[#allocation5 + $0x1e0] sm:$0xff] }
 0x1ea   : > { %14427 = vst [vmem:[#allocation71_spill] sm:$0xff] %v12252_v54  ;;  %v2640_v47 = vpop.f32.mrf.mxu0  ;;  %3501 = vmatpush1.bf16.msra.mxu0 %v9054_v55  ;;  %v2753_v0 = vpop.f32.mrf.mxu1  ;;  %3614 = vmatpush1.bf16.msra.mxu1 %v9056_v48  ;;  %v8991_v1 = vcombine.high %v12248_v45, %v12250_v15  ;;  %v4020_v54 = vmax.f32 %v2748_v39, 0.0  ;;  %v8993_v37 = vcombine.high %v12256_v60, %v12258_v46  ;;  %v4019_v21 = vmax.f32 %v2637_v53, 0.0  ;;  %v12283_v39 = vld [vmem:[#allocation5 + $0x168] sm:$0xff] }
 0x1eb   : > { %v4050_v61 = vmax.f32 %v2639_v41, 0.0  ;;  %v2641_v35 = vadd.f32 %v2640_v47, %v12150_v24  ;;  %3502 = vmatprep.subr.bf16.mxu0 %v9023_v44  ;;  %v4052_v17 = vmax.f32 %v2752_v18, 0.0  ;;  %v2754_v55 = vadd.f32 %v2753_v0, %v12154_v28  ;;  %3615 = vmatprep.subr.bf16.mxu1 %v9025_v4  ;;  %v12285_v4 = vld [vmem:[#allocation5 + $0x1e8] sm:$0xff] }
 0x1ec   : > { %v2644_v56 = vpop.f32.mrf.mxu0  ;;  %3321 = vmatmul.mubr.bf16.gmra.mxu0 %v11428_v51  ;;  %v2757_v44 = vpop.f32.mrf.mxu1  ;;  %3434 = vmatmul.mubr.bf16.gmra.mxu1 %v11428_v51  ;;  %v8990_v0 = vcombine.low %v12248_v45, %v12250_v15  ;;  %v4021_v41 = vmax.f32 %v2750_v16, 0.0  ;;  %v8959_v45 = vcombine.high %v12273_v43, %v12275_v49 }
 0x1ed   : > { %v12277_v48 = vpack.c.bf16 %v4050_v61, %v4018_v32  ;;  %v4051_v8 = vmax.f32 %v2641_v35, 0.0  ;;  %3330 = vmatprep.mubr.bf16.mxu0 %v14384_v52  ;;  %v12287_v18 = vpack.c.bf16 %v4052_v17, %v4020_v54  ;;  %v4053_v47 = vmax.f32 %v2754_v55, 0.0  ;;  %3443 = vmatprep.mubr.bf16.mxu1 %v14384_v52  ;;  %v12300_v17 = vld [vmem:[#allocation5 + $0x60] sm:$0xff]  ;;  %v447_v55 = vld [vmem:[#allocation5 + $0x68] sm:$0xff] }
 0x1ee   : > { %v2646_v53 = vpop.f32.mrf.mxu0  ;;  %3503 = vmatpush1.bf16.msra.mxu0 %v9022_v63  ;;  %v8992_v32 = vcombine.low %v12256_v60, %v12258_v46  ;;  %v2645_v61 = vadd.f32 %v2644_v56, %v12135_v40  ;;  %v2759_v35 = vpop.f32.mrf.mxu1  ;;  %3616 = vmatpush1.bf16.msra.mxu1 %v9024_v38  ;;  %v2758_v54 = vadd.f32 %v2757_v44, %v12146_v50  ;;  %v462_v60 = vld [vmem:[#allocation5 + $0xe0] sm:$0xff] }
 0x1ef   : > { %14428 = vst [vmem:[#allocation72_spill] sm:$0xff] %v12277_v48  ;;  %14429 = vst [vmem:[#allocation73_spill] sm:$0xff] %v12287_v18  ;;  %3504 = vmatprep.subr.bf16.mxu0 %v8991_v1  ;;  %v12295_v15 = vpack.c.bf16 %v4051_v8, %v4019_v21  ;;  %3617 = vmatprep.subr.bf16.mxu1 %v8993_v37  ;;  %v8961_v63 = vcombine.high %v12283_v39, %v12285_v4  ;;  %v463_v21 = vld [vmem:[#allocation5 + $0xe8] sm:$0xff] }
 0x1f0   : > { %v2648_v16 = vpop.f32.mrf.mxu0  ;;  %v12302_v46 = vpack.c.bf16 %v4053_v47, %v4021_v41  ;;  %v2647_v56 = vadd.f32 %v2646_v53, %v12150_v24  ;;  %v2761_v1 = vpop.f32.mrf.mxu1  ;;  %v2760_v8 = vadd.f32 %v2759_v35, %v12154_v28  ;;  %v8958_v18 = vcombine.low %v12273_v43, %v12275_v49  ;;  %v12316_v49 = vld [vmem:[#allocation5 + $0x770] sm:$0xff] }
 0x1f1   : > { %14430 = vst [vmem:[#allocation74_spill] sm:$0xff] %v12295_v15  ;;  %v2649_v38 = vadd.f32 %v2648_v16, %v12135_v40  ;;  %v2762_v44 = vadd.f32 %v2761_v1, %v12146_v50  ;;  %v8960_v41 = vcombine.low %v12283_v39, %v12285_v4  ;;  %v4082_v47 = vmax.f32 %v2645_v61, 0.0  ;;  %v12318_v39 = vld [vmem:[#allocation5 + $0x7f0] sm:$0xff] }
 0x1f2   : > { %14431 = vst [vmem:[#allocation75_spill] sm:$0xff] %v12302_v46  ;;  %v2650_v37 = vpop.f32.mrf.mxu0  ;;  %3505 = vmatpush1.bf16.msra.mxu0 %v8990_v0  ;;  %v2763_v16 = vpop.f32.mrf.mxu1  ;;  %3618 = vmatpush1.bf16.msra.mxu1 %v8992_v32  ;;  %v8927_v46 = vcombine.high %v12300_v17, %v462_v60  ;;  %v4084_v35 = vmax.f32 %v2758_v54, 0.0  ;;  %v8929_v43 = vcombine.high %v447_v55, %v463_v21  ;;  %v4083_v4 = vmax.f32 %v2647_v56, 0.0 }
 0x1f3   : > { %v4114_v48 = vmax.f32 %v2649_v38, 0.0  ;;  %v2651_v53 = vadd.f32 %v2650_v37, %v12150_v24  ;;  %3506 = vmatprep.subr.bf16.mxu0 %v8959_v45  ;;  %v4116_v15 = vmax.f32 %v2762_v44, 0.0  ;;  %v2764_v1 = vadd.f32 %v2763_v16, %v12154_v28  ;;  %3619 = vmatprep.subr.bf16.mxu1 %v8961_v63  ;;  %v12325_v38 = vld [vmem:[#allocation5 + $0x778] sm:$0xff] }
 0x1f4   : > { %v2654_v0 = vpop.f32.mrf.mxu0  ;;  %3331 = vmatmul.mubr.bf16.gmra.mxu0 %v11436_v7  ;;  %v2767_v45 = vpop.f32.mrf.mxu1  ;;  %3444 = vmatmul.mubr.bf16.gmra.mxu1 %v11436_v7  ;;  %v8926_v54 = vcombine.low %v12300_v17, %v462_v60  ;;  %v12327_v44 = vld [vmem:[#allocation5 + $0x7f8] sm:$0xff]  ;;  %v4085_v63 = vmax.f32 %v2760_v8, 0.0  ;;  %v9155_v17 = vcombine.high %v12316_v49, %v12318_v39 }
 0x1f5   : > { %v12320_v61 = vpack.c.bf16 %v4114_v48, %v4082_v47  ;;  %v4115_v32 = vmax.f32 %v2651_v53, 0.0  ;;  %3340 = vmatprep.mubr.bf16.mxu0 %v14384_v52  ;;  %v12329_v37 = vpack.c.bf16 %v4116_v15, %v4084_v35  ;;  %v4117_v16 = vmax.f32 %v2764_v1, 0.0  ;;  %3453 = vmatprep.mubr.bf16.mxu1 %v14384_v52 }
 0x1f6   : > { %v2656_v19 = vpop.f32.mrf.mxu0  ;;  %3507 = vmatpush1.bf16.msra.mxu0 %v8958_v18  ;;  %v8928_v48 = vcombine.low %v447_v55, %v463_v21  ;;  %v2655_v56 = vadd.f32 %v2654_v0, %v12135_v40  ;;  %v2769_v47 = vpop.f32.mrf.mxu1  ;;  %3620 = vmatpush1.bf16.msra.mxu1 %v8960_v41  ;;  %v2768_v8 = vadd.f32 %v2767_v45, %v12146_v50 }
 0x1f7   : > { %14432 = vst [vmem:[#allocation76_spill] sm:$0xff] %v12320_v61  ;;  %14433 = vst [vmem:[#allocation77_spill] sm:$0xff] %v12329_v37  ;;  %3508 = vmatprep.subr.bf16.mxu0 %v8927_v46  ;;  %v12335_v60 = vpack.c.bf16 %v4115_v32, %v4083_v4  ;;  %3621 = vmatprep.subr.bf16.mxu1 %v8929_v43  ;;  %v9157_v53 = vcombine.high %v12325_v38, %v12327_v44  ;;  %v12461_v61 = vld [vmem:[#allocation5 + $0x578] sm:$0xff] }
 0x1f8   : > { %v2658_v15 = vpop.f32.mrf.mxu0  ;;  %v12340_v35 = vpack.c.bf16 %v4117_v16, %v4085_v63  ;;  %v2657_v18 = vadd.f32 %v2656_v19, %v12150_v24  ;;  %v2771_v21 = vpop.f32.mrf.mxu1  ;;  %v2770_v46 = vadd.f32 %v2769_v47, %v12154_v28  ;;  %v4146_v0 = vmax.f32 %v2655_v56, 0.0 }
 0x1f9   : > { %14434 = vst [vmem:[#allocation78_spill] sm:$0xff] %v12335_v60  ;;  %v2659_v55 = vadd.f32 %v2658_v15, %v12135_v40  ;;  %v2772_v41 = vadd.f32 %v2771_v21, %v12146_v50  ;;  %v4148_v45 = vmax.f32 %v2768_v8, 0.0 }
 0x1fa   : > { %14435 = vst [vmem:[#allocation79_spill] sm:$0xff] %v12340_v35  ;;  %v2660_v1 = vpop.f32.mrf.mxu0  ;;  %3509 = vmatpush1.bf16.msra.mxu0 %v8926_v54  ;;  %v2773_v32 = vpop.f32.mrf.mxu1  ;;  %3622 = vmatpush1.bf16.msra.mxu1 %v8928_v48  ;;  %v4147_v47 = vmax.f32 %v2657_v18, 0.0  ;;  %v4149_v56 = vmax.f32 %v2770_v46, 0.0  ;;  %v12463_v35 = vld [vmem:[#allocation5 + $0x5f8] sm:$0xff] }
 0x1fb   : > { %v4178_v4 = vmax.f32 %v2659_v55, 0.0  ;;  %v2661_v43 = vadd.f32 %v2660_v1, %v12150_v24  ;;  %3720 = vmatprep.subr.bf16.mxu0 %v9155_v17  ;;  %v4180_v63 = vmax.f32 %v2772_v41, 0.0  ;;  %v2774_v19 = vadd.f32 %v2773_v32, %v12154_v28  ;;  %3833 = vmatprep.subr.bf16.mxu1 %v9157_v53 }
 0x1fc   : > { %v2664_v16 = vpop.f32.mrf.mxu0  ;;  %3341 = vmatmul.mubr.bf16.gmra.mxu0 %v11450_v23  ;;  %v2777_v54 = vpop.f32.mrf.mxu1  ;;  %3454 = vmatmul.mubr.bf16.gmra.mxu1 %v11450_v23 }
 0x1fd   : > { %v12349_v15 = vpack.c.bf16 %v4178_v4, %v4146_v0  ;;  %v4179_v21 = vmax.f32 %v2661_v43, 0.0  ;;  %3350 = vmatprep.mubr.bf16.mxu0 %v14384_v52  ;;  %v12353_v48 = vpack.c.bf16 %v4180_v63, %v4148_v45  ;;  %v4181_v17 = vmax.f32 %v2774_v19, 0.0  ;;  %3463 = vmatprep.mubr.bf16.mxu1 %v14384_v52 }
 0x1fe   : > { %v2666_v8 = vpop.f32.mrf.mxu0  ;;  %v2665_v55 = vadd.f32 %v2664_v16, %v12135_v40  ;;  %v2779_v41 = vpop.f32.mrf.mxu1  ;;  %v2778_v18 = vadd.f32 %v2777_v54, %v12146_v50 }
 0x1ff   : > { %14436 = vst [vmem:[#allocation80_spill] sm:$0xff] %v12349_v15  ;;  %14437 = vst [vmem:[#allocation81_spill] sm:$0xff] %v12353_v48  ;;  %v12357_v53 = vpack.c.bf16 %v4179_v21, %v4147_v47  ;;  %v12360_v0 = vpack.c.bf16 %v4181_v17, %v4149_v56  ;;  %v2667_v4 = vadd.f32 %v2666_v8, %v12150_v24 }
 0x200   : > { %v2668_v1 = vpop.f32.mrf.mxu0  ;;  %v2781_v43 = vpop.f32.mrf.mxu1  ;;  %v2780_v32 = vadd.f32 %v2779_v41, %v12154_v28  ;;  %v4210_v19 = vmax.f32 %v2665_v55, 0.0  ;;  %v4212_v48 = vmax.f32 %v2778_v18, 0.0 }
 0x201   : > { %14438 = vst [vmem:[#allocation82_spill] sm:$0xff] %v12357_v53  ;;  %14439 = vst [vmem:[#allocation83_spill] sm:$0xff] %v12360_v0  ;;  %v2669_v46 = vadd.f32 %v2668_v1, %v12135_v40  ;;  %v2782_v45 = vadd.f32 %v2781_v43, %v12146_v50  ;;  %v4211_v8 = vmax.f32 %v2667_v4, 0.0 }
 0x202   : > { %v2670_v63 = vpop.f32.mrf.mxu0  ;;  %v2783_v21 = vpop.f32.mrf.mxu1  ;;  %v4213_v55 = vmax.f32 %v2780_v32, 0.0 }
 0x203   : > { %v4242_v16 = vmax.f32 %v2669_v46, 0.0  ;;  %v2671_v47 = vadd.f32 %v2670_v63, %v12150_v24  ;;  %v4244_v54 = vmax.f32 %v2782_v45, 0.0  ;;  %v2784_v56 = vadd.f32 %v2783_v21, %v12154_v28 }
 0x204   : > { %v2674_v17 = vpop.f32.mrf.mxu0  ;;  %3351 = vmatmul.mubr.bf16.gmra.mxu0 %v11458_v27  ;;  %v2787_v41 = vpop.f32.mrf.mxu1  ;;  %3464 = vmatmul.mubr.bf16.gmra.mxu1 %v11458_v27 }
 0x205   : > { %v12369_v1 = vpack.c.bf16 %v4242_v16, %v4210_v19  ;;  %v4243_v15 = vmax.f32 %v2671_v47, 0.0  ;;  %3360 = vmatprep.mubr.bf16.mxu0 %v14384_v52  ;;  %v12373_v46 = vpack.c.bf16 %v4244_v54, %v4212_v48  ;;  %v4245_v43 = vmax.f32 %v2784_v56, 0.0  ;;  %3473 = vmatprep.mubr.bf16.mxu1 %v14384_v52 }
 0x206   : > { %v2676_v18 = vpop.f32.mrf.mxu0  ;;  %v2675_v45 = vadd.f32 %v2674_v17, %v12135_v40  ;;  %v2789_v63 = vpop.f32.mrf.mxu1  ;;  %v2788_v4 = vadd.f32 %v2787_v41, %v12146_v50 }
 0x207   : > { %14440 = vst [vmem:[#allocation84_spill] sm:$0xff] %v12369_v1  ;;  %14441 = vst [vmem:[#allocation85_spill] sm:$0xff] %v12373_v46  ;;  %v12377_v21 = vpack.c.bf16 %v4243_v15, %v4211_v8  ;;  %v12380_v16 = vpack.c.bf16 %v4245_v43, %v4213_v55  ;;  %v2677_v47 = vadd.f32 %v2676_v18, %v12150_v24 }
 0x208   : > { %v2678_v19 = vpop.f32.mrf.mxu0  ;;  %v2791_v48 = vpop.f32.mrf.mxu1  ;;  %v2790_v54 = vadd.f32 %v2789_v63, %v12154_v28  ;;  %v4274_v1 = vmax.f32 %v2675_v45, 0.0 }
 0x209   : > { %14442 = vst [vmem:[#allocation86_spill] sm:$0xff] %v12377_v21  ;;  %14443 = vst [vmem:[#allocation87_spill] sm:$0xff] %v12380_v16  ;;  %v2679_v32 = vadd.f32 %v2678_v19, %v12135_v40  ;;  %v2792_v56 = vadd.f32 %v2791_v48, %v12146_v50  ;;  %v4276_v21 = vmax.f32 %v2788_v4, 0.0  ;;  %v4275_v18 = vmax.f32 %v2677_v47, 0.0 }
 0x20a   : > { %v2680_v46 = vpop.f32.mrf.mxu0  ;;  %v2793_v8 = vpop.f32.mrf.mxu1  ;;  %v4277_v45 = vmax.f32 %v2790_v54, 0.0 }
 0x20b   : > { %v4306_v17 = vmax.f32 %v2679_v32, 0.0  ;;  %v2681_v15 = vadd.f32 %v2680_v46, %v12150_v24  ;;  %v4308_v41 = vmax.f32 %v2792_v56, 0.0  ;;  %v2794_v55 = vadd.f32 %v2793_v8, %v12154_v28 }
 0x20c   : > { %v2684_v43 = vpop.f32.mrf.mxu0  ;;  %3361 = vmatmul.mubr.bf16.gmra.mxu0 %v11466_v30  ;;  %v2797_v63 = vpop.f32.mrf.mxu1  ;;  %3474 = vmatmul.mubr.bf16.gmra.mxu1 %v11466_v30 }
 0x20d   : > { %v12389_v19 = vpack.c.bf16 %v4306_v17, %v4274_v1  ;;  %v4307_v16 = vmax.f32 %v2681_v15, 0.0  ;;  %3370 = vmatprep.mubr.bf16.mxu0 %v14384_v52  ;;  %v12393_v32 = vpack.c.bf16 %v4308_v41, %v4276_v21  ;;  %v4309_v46 = vmax.f32 %v2794_v55, 0.0  ;;  %3483 = vmatprep.mubr.bf16.mxu1 %v14384_v52 }
 0x20e   : > { %v2686_v4 = vpop.f32.mrf.mxu0  ;;  %v2685_v48 = vadd.f32 %v2684_v43, %v12135_v40  ;;  %v2799_v56 = vpop.f32.mrf.mxu1  ;;  %v2798_v1 = vadd.f32 %v2797_v63, %v12146_v50 }
 0x20f   : > { %14444 = vst [vmem:[#allocation88_spill] sm:$0xff] %v12389_v19  ;;  %14445 = vst [vmem:[#allocation89_spill] sm:$0xff] %v12393_v32  ;;  %v12397_v8 = vpack.c.bf16 %v4307_v16, %v4275_v18  ;;  %v12400_v17 = vpack.c.bf16 %v4309_v46, %v4277_v45  ;;  %v2687_v15 = vadd.f32 %v2686_v4, %v12150_v24 }
 0x210   : > { %v2688_v47 = vpop.f32.mrf.mxu0  ;;  %v2801_v21 = vpop.f32.mrf.mxu1  ;;  %v2800_v41 = vadd.f32 %v2799_v56, %v12154_v28  ;;  %v4338_v19 = vmax.f32 %v2685_v48, 0.0 }
 0x211   : > { %14446 = vst [vmem:[#allocation90_spill] sm:$0xff] %v12397_v8  ;;  %14447 = vst [vmem:[#allocation91_spill] sm:$0xff] %v12400_v17  ;;  %v2689_v54 = vadd.f32 %v2688_v47, %v12135_v40  ;;  %v2802_v55 = vadd.f32 %v2801_v21, %v12146_v50  ;;  %v4340_v8 = vmax.f32 %v2798_v1, 0.0  ;;  %v4339_v4 = vmax.f32 %v2687_v15, 0.0  ;;  %v12421_v15 = vld [vmem:[#allocation5 + $0x670] sm:$0xff] }
 0x212   : > { %v2690_v32 = vpop.f32.mrf.mxu0  ;;  %v2803_v18 = vpop.f32.mrf.mxu1  ;;  %v4341_v48 = vmax.f32 %v2800_v41, 0.0 }
 0x213   : > { %v4370_v43 = vmax.f32 %v2689_v54, 0.0  ;;  %v2691_v16 = vadd.f32 %v2690_v32, %v12150_v24  ;;  %v4372_v63 = vmax.f32 %v2802_v55, 0.0  ;;  %v2804_v45 = vadd.f32 %v2803_v18, %v12154_v28 }
 0x214   : > { %v2694_v46 = vpop.f32.mrf.mxu0  ;;  %3371 = vmatmul.mubr.bf16.gmra.mxu0 %v11474_v34  ;;  %v2807_v56 = vpop.f32.mrf.mxu1  ;;  %3484 = vmatmul.mubr.bf16.gmra.mxu1 %v11474_v34  ;;  %v12430_v18 = vrot.slane %v12123_v13, %v11827_v9 }
 0x215   : > { %v12409_v47 = vpack.c.bf16 %v4370_v43, %v4338_v19  ;;  %v4371_v17 = vmax.f32 %v2691_v16, 0.0  ;;  %3526 = vmatprep.mubr.bf16.mxu0 %v14384_v52  ;;  %v12413_v54 = vpack.c.bf16 %v4372_v63, %v4340_v8  ;;  %v4373_v32 = vmax.f32 %v2804_v45, 0.0  ;;  %3639 = vmatprep.mubr.bf16.mxu1 %v14384_v52  ;;  %v12423_v43 = vld [vmem:[#allocation5 + $0x6f0] sm:$0xff] }
 0x216   : > { %v2696_v1 = vpop.f32.mrf.mxu0  ;;  %v2695_v21 = vadd.f32 %v2694_v46, %v12135_v40  ;;  %v2809_v55 = vpop.f32.mrf.mxu1  ;;  %v12419_v19 = vrot.slane %v12123_v13, %v11824_v6  ;;  %v2808_v8 = vadd.f32 %v2807_v56, %v12146_v50  ;;  %v12434_v63 = vrot.slane %v12123_v13, %v11830_v14 }
 0x217   : > { %14448 = vst [vmem:[#allocation92_spill] sm:$0xff] %v12409_v47  ;;  %14449 = vst [vmem:[#allocation93_spill] sm:$0xff] %v12413_v54  ;;  %v12425_v16 = vpack.c.bf16 %v4371_v17, %v4339_v4  ;;  %v12436_v45 = vpack.c.bf16 %v4373_v32, %v4341_v48  ;;  %v9154_v17 = vcombine.low %v12316_v49, %v12318_v39  ;;  %v641_v47 = vld [vmem:[#allocation5 + $0x678] sm:$0xff]  ;;  %v12452_v49 = vld [vmem:[#allocation5 + $0x570] sm:$0xff] }
 0x218   : > { %v2698_v41 = vpop.f32.mrf.mxu0  ;;  %v2811_v54 = vpop.f32.mrf.mxu1  ;;  %v12443_v4 = vrot.slane %v12123_v13, %v11837_v26  ;;  %v9156_v56 = vcombine.low %v12325_v38, %v12327_v44  ;;  %v2697_v0 = vadd.f32 %v2696_v1, %v12150_v24  ;;  %v2810_v48 = vadd.f32 %v2809_v55, %v12154_v28  ;;  %v12454_v39 = vld [vmem:[#allocation5 + $0x5f0] sm:$0xff] }
 0x219   : > { %14450 = vst [vmem:[#allocation94_spill] sm:$0xff] %v12425_v16  ;;  %14451 = vst [vmem:[#allocation95_spill] sm:$0xff] %v12436_v45  ;;  %v2699_v46 = vadd.f32 %v2698_v41, %v12135_v40  ;;  %v657_v16 = vld [vmem:[#allocation5 + $0x6f8] sm:$0xff]  ;;  %v2812_v32 = vadd.f32 %v2811_v54, %v12146_v50  ;;  %v9122_v41 = vcombine.low %v12421_v15, %v12423_v43  ;;  %v4402_v13 = vmax.f32 %v2695_v21, 0.0 }
 0x21a   : > { %v2700_v40 = vpop.f32.mrf.mxu0  ;;  %v2813_v44 = vpop.f32.mrf.mxu1  ;;  %v9123_v1 = vcombine.high %v12421_v15, %v12423_v43  ;;  %v4404_v53 = vmax.f32 %v2808_v8, 0.0  ;;  %v9125_v37 = vcombine.high %v641_v47, %v657_v16  ;;  %v9124_v15 = vcombine.low %v641_v47, %v657_v16 }
 0x21b   : > { %v4434_v45 = vmax.f32 %v2699_v46, 0.0  ;;  %v2701_v38 = vadd.f32 %v2700_v40, %v12150_v24  ;;  %v4436_v55 = vmax.f32 %v2812_v32, 0.0  ;;  %v2814_v50 = vadd.f32 %v2813_v44, %v12154_v28 }
 0x21c   : > { %v2850_v54 = vpop.f32.mrf.mxu0  ;;  %3527 = vmatmul.mubr.bf16.vlgmr.msra.gmra.mxu0 %v11412_v10  ;;  %v2963_v24 = vpop.f32.mrf.mxu1  ;;  %3640 = vmatmul.mubr.bf16.vlgmr.msra.gmra.mxu1 %v11412_v10  ;;  %v9091_v43 = vcombine.high %v12452_v49, %v12454_v39  ;;  %v4403_v28 = vmax.f32 %v2697_v0, 0.0  ;;  %v4405_v8 = vmax.f32 %v2810_v48, 0.0  ;;  %v9093_v47 = vcombine.high %v12461_v61, %v12463_v35 }
 0x21d   : > { %v12465_v21 = vpack.c.bf16 %v4434_v45, %v4402_v13  ;;  %v4435_v46 = vmax.f32 %v2701_v38, 0.0  ;;  %3721 = vmatpush1.bf16.msra.mxu0 %v9154_v17  ;;  %v12470_v32 = vpack.c.bf16 %v4436_v55, %v4404_v53  ;;  %v4437_v40 = vmax.f32 %v2814_v50, 0.0  ;;  %3834 = vmatpush1.bf16.msra.mxu1 %v9156_v56  ;;  %v12478_v53 = vld [vmem:[#allocation5 + $0x470] sm:$0xff] }
 0x21e   : > { %v2852_v44 = vpop.f32.mrf.mxu0  ;;  %3536 = vmatprep.mubr.bf16.mxu0 %v14384_v52  ;;  %v2851_v45 = vadd.f32 %v2850_v54, %v12419_v19  ;;  %v2965_v13 = vpop.f32.mrf.mxu1  ;;  %3649 = vmatprep.mubr.bf16.mxu1 %v14384_v52  ;;  %v2964_v16 = vadd.f32 %v2963_v24, %v12430_v18  ;;  %v12480_v17 = vld [vmem:[#allocation5 + $0x4f0] sm:$0xff]  ;;  %v9090_v50 = vcombine.low %v12452_v49, %v12454_v39  ;;  %v12490_v54 = vld [vmem:[#allocation5 + $0x478] sm:$0xff] }
 0x21f   : > { %14452 = vst [vmem:[#allocation96_spill] sm:$0xff] %v12465_v21  ;;  %14453 = vst [vmem:[#allocation97_spill] sm:$0xff] %v12470_v32  ;;  %3722 = vmatprep.subr.bf16.mxu0 %v9123_v1  ;;  %3835 = vmatprep.subr.bf16.mxu1 %v9125_v37  ;;  %v12482_v56 = vpack.c.bf16 %v4435_v46, %v4403_v28  ;;  %v12484_v48 = vpack.c.bf16 %v4437_v40, %v4405_v8  ;;  %v12492_v37 = vld [vmem:[#allocation5 + $0x4f8] sm:$0xff] }
 0x220   : > { %v2854_v0 = vpop.f32.mrf.mxu0  ;;  %v2853_v38 = vadd.f32 %v2852_v44, %v12434_v63  ;;  %v2967_v1 = vpop.f32.mrf.mxu1  ;;  %v2966_v24 = vadd.f32 %v2965_v13, %v12443_v4  ;;  %v9092_v8 = vcombine.low %v12461_v61, %v12463_v35  ;;  %v3958_v40 = vmax.f32 %v2851_v45, 0.0  ;;  %v12505_v61 = vld [vmem:[#allocation5 + $0x370] sm:$0xff] }
 0x221   : > { %14454 = vst [vmem:[#allocation98_spill] sm:$0xff] %v12482_v56  ;;  %14455 = vst [vmem:[#allocation99_spill] sm:$0xff] %v12484_v48  ;;  %v2855_v55 = vadd.f32 %v2854_v0, %v12419_v19  ;;  %3723 = vmatpush1.bf16.msra.mxu0 %v9122_v41  ;;  %v2968_v46 = vadd.f32 %v2967_v1, %v12430_v18  ;;  %3836 = vmatpush1.bf16.msra.mxu1 %v9124_v15  ;;  %v3960_v39 = vmax.f32 %v2964_v16, 0.0  ;;  %v12507_v35 = vld [vmem:[#allocation5 + $0x3f0] sm:$0xff] }
 0x222   : > { %v2856_v28 = vpop.f32.mrf.mxu0  ;;  %3724 = vmatprep.subr.bf16.mxu0 %v9091_v43  ;;  %v2969_v0 = vpop.f32.mrf.mxu1  ;;  %3837 = vmatprep.subr.bf16.mxu1 %v9093_v47  ;;  %v9059_v49 = vcombine.high %v12478_v53, %v12480_v17  ;;  %v9061_v15 = vcombine.high %v12490_v54, %v12492_v37  ;;  %v3959_v43 = vmax.f32 %v2853_v38, 0.0  ;;  %v9058_v16 = vcombine.low %v12478_v53, %v12480_v17 }
 0x223   : > { %v3990_v44 = vmax.f32 %v2855_v55, 0.0  ;;  %v2857_v41 = vadd.f32 %v2856_v28, %v12434_v63  ;;  %v3992_v32 = vmax.f32 %v2968_v46, 0.0  ;;  %v2970_v13 = vadd.f32 %v2969_v0, %v12443_v4  ;;  %v12515_v46 = vld [vmem:[#allocation5 + $0x378] sm:$0xff] }
 0x224   : > { %v2860_v1 = vpop.f32.mrf.mxu0  ;;  %3537 = vmatmul.mubr.bf16.gmra.mxu0 %v11420_v33  ;;  %v2973_v55 = vpop.f32.mrf.mxu1  ;;  %3650 = vmatmul.mubr.bf16.gmra.mxu1 %v11420_v33  ;;  %v12517_v28 = vld [vmem:[#allocation5 + $0x3f8] sm:$0xff]  ;;  %v3961_v0 = vmax.f32 %v2966_v24, 0.0  ;;  %v9027_v53 = vcombine.high %v12505_v61, %v12507_v35 }
 0x225   : > { %v12509_v45 = vpack.c.bf16 %v3990_v44, %v3958_v40  ;;  %v3991_v47 = vmax.f32 %v2857_v41, 0.0  ;;  %3546 = vmatprep.mubr.bf16.mxu0 %v14384_v52  ;;  %v12519_v21 = vpack.c.bf16 %v3992_v32, %v3960_v39  ;;  %v3993_v48 = vmax.f32 %v2970_v13, 0.0  ;;  %3659 = vmatprep.mubr.bf16.mxu1 %v14384_v52  ;;  %v12532_v39 = vld [vmem:[#allocation5 + $0x270] sm:$0xff] }
 0x226   : > { %v2862_v38 = vpop.f32.mrf.mxu0  ;;  %3725 = vmatpush1.bf16.msra.mxu0 %v9090_v50  ;;  %v9060_v40 = vcombine.low %v12490_v54, %v12492_v37  ;;  %v2861_v44 = vadd.f32 %v2860_v1, %v12419_v19  ;;  %v2975_v41 = vpop.f32.mrf.mxu1  ;;  %3838 = vmatpush1.bf16.msra.mxu1 %v9092_v8  ;;  %v2974_v32 = vadd.f32 %v2973_v55, %v12430_v18  ;;  %v12534_v54 = vld [vmem:[#allocation5 + $0x2f0] sm:$0xff]  ;;  %v12540_v1 = vld [vmem:[#allocation5 + $0x278] sm:$0xff] }
 0x227   : > { %14456 = vst [vmem:[#allocation100_spill] sm:$0xff] %v12509_v45  ;;  %14457 = vst [vmem:[#allocation101_spill] sm:$0xff] %v12519_v21  ;;  %3726 = vmatprep.subr.bf16.mxu0 %v9059_v49  ;;  %v12527_v17 = vpack.c.bf16 %v3991_v47, %v3959_v43  ;;  %3839 = vmatprep.subr.bf16.mxu1 %v9061_v15  ;;  %v9029_v50 = vcombine.high %v12515_v46, %v12517_v28  ;;  %v12542_v43 = vld [vmem:[#allocation5 + $0x2f8] sm:$0xff] }
 0x228   : > { %v2864_v24 = vpop.f32.mrf.mxu0  ;;  %v12536_v37 = vpack.c.bf16 %v3993_v48, %v3961_v0  ;;  %v2863_v8 = vadd.f32 %v2862_v38, %v12434_v63  ;;  %v2977_v13 = vpop.f32.mrf.mxu1  ;;  %v2976_v15 = vadd.f32 %v2975_v41, %v12443_v4  ;;  %v9026_v21 = vcombine.low %v12505_v61, %v12507_v35  ;;  %v12557_v35 = vld [vmem:[#allocation5 + $0x170] sm:$0xff] }
 0x229   : > { %14458 = vst [vmem:[#allocation102_spill] sm:$0xff] %v12527_v17  ;;  %v2865_v49 = vadd.f32 %v2864_v24, %v12419_v19  ;;  %v2978_v47 = vadd.f32 %v2977_v13, %v12430_v18  ;;  %v9028_v48 = vcombine.low %v12515_v46, %v12517_v28  ;;  %v4022_v0 = vmax.f32 %v2861_v44, 0.0  ;;  %v12559_v46 = vld [vmem:[#allocation5 + $0x1f0] sm:$0xff] }
 0x22a   : > { %14459 = vst [vmem:[#allocation103_spill] sm:$0xff] %v12536_v37  ;;  %v2866_v55 = vpop.f32.mrf.mxu0  ;;  %3727 = vmatpush1.bf16.msra.mxu0 %v9058_v16  ;;  %v2979_v45 = vpop.f32.mrf.mxu1  ;;  %3840 = vmatpush1.bf16.msra.mxu1 %v9060_v40  ;;  %v8995_v41 = vcombine.high %v12532_v39, %v12534_v54  ;;  %v4024_v37 = vmax.f32 %v2974_v32, 0.0  ;;  %v8997_v61 = vcombine.high %v12540_v1, %v12542_v43  ;;  %v4023_v28 = vmax.f32 %v2863_v8, 0.0  ;;  %v481_v32 = vld [vmem:[#allocation5 + $0x178] sm:$0xff] }
 0x22b   : > { %v4054_v38 = vmax.f32 %v2865_v49, 0.0  ;;  %v2867_v24 = vadd.f32 %v2866_v55, %v12434_v63  ;;  %3728 = vmatprep.subr.bf16.mxu0 %v9027_v53  ;;  %v4056_v13 = vmax.f32 %v2978_v47, 0.0  ;;  %v2980_v16 = vadd.f32 %v2979_v45, %v12443_v4  ;;  %3841 = vmatprep.subr.bf16.mxu1 %v9029_v50  ;;  %v497_v50 = vld [vmem:[#allocation5 + $0x1f8] sm:$0xff] }
 0x22c   : > { %v2870_v17 = vpop.f32.mrf.mxu0  ;;  %3547 = vmatmul.mubr.bf16.gmra.mxu0 %v11428_v51  ;;  %v2983_v53 = vpop.f32.mrf.mxu1  ;;  %3660 = vmatmul.mubr.bf16.gmra.mxu1 %v11428_v51  ;;  %v8994_v45 = vcombine.low %v12532_v39, %v12534_v54  ;;  %v4025_v49 = vmax.f32 %v2976_v15, 0.0  ;;  %v8996_v8 = vcombine.low %v12540_v1, %v12542_v43  ;;  %v8963_v39 = vcombine.high %v12557_v35, %v12559_v46 }
 0x22d   : > { %v12561_v40 = vpack.c.bf16 %v4054_v38, %v4022_v0  ;;  %v4055_v44 = vmax.f32 %v2867_v24, 0.0  ;;  %3556 = vmatprep.mubr.bf16.mxu0 %v14384_v52  ;;  %v12567_v47 = vpack.c.bf16 %v4056_v13, %v4024_v37  ;;  %v4057_v55 = vmax.f32 %v2980_v16, 0.0  ;;  %3669 = vmatprep.mubr.bf16.mxu1 %v14384_v52  ;;  %v448_v13 = vld [vmem:[#allocation5 + $0x70] sm:$0xff] }
 0x22e   : > { %v2872_v56 = vpop.f32.mrf.mxu0  ;;  %3729 = vmatpush1.bf16.msra.mxu0 %v9026_v21  ;;  %v2871_v0 = vadd.f32 %v2870_v17, %v12419_v19  ;;  %v2985_v38 = vpop.f32.mrf.mxu1  ;;  %3842 = vmatpush1.bf16.msra.mxu1 %v9028_v48  ;;  %v2984_v37 = vadd.f32 %v2983_v53, %v12430_v18  ;;  %v8965_v24 = vcombine.high %v481_v32, %v497_v50  ;;  %v464_v21 = vld [vmem:[#allocation5 + $0xf0] sm:$0xff]  ;;  %v449_v48 = vld [vmem:[#allocation5 + $0x78] sm:$0xff] }
 0x22f   : > { %14460 = vst [vmem:[#allocation104_spill] sm:$0xff] %v12561_v40  ;;  %14461 = vst [vmem:[#allocation105_spill] sm:$0xff] %v12567_v47  ;;  %3730 = vmatprep.subr.bf16.mxu0 %v8995_v41  ;;  %v12575_v54 = vpack.c.bf16 %v4055_v44, %v4023_v28  ;;  %3843 = vmatprep.subr.bf16.mxu1 %v8997_v61  ;;  %v12578_v16 = vpack.c.bf16 %v4057_v55, %v4025_v49  ;;  %v465_v41 = vld [vmem:[#allocation5 + $0xf8] sm:$0xff] }
 0x230   : > { %v2874_v15 = vpop.f32.mrf.mxu0  ;;  %v2873_v1 = vadd.f32 %v2872_v56, %v12434_v63  ;;  %v2987_v43 = vpop.f32.mrf.mxu1  ;;  %v2986_v47 = vadd.f32 %v2985_v38, %v12443_v4  ;;  %v8962_v61 = vcombine.low %v12557_v35, %v12559_v46  ;;  %v8964_v53 = vcombine.low %v481_v32, %v497_v50 }
 0x231   : > { %14462 = vst [vmem:[#allocation106_spill] sm:$0xff] %v12575_v54  ;;  %14463 = vst [vmem:[#allocation107_spill] sm:$0xff] %v12578_v16  ;;  %v2875_v17 = vadd.f32 %v2874_v15, %v12419_v19  ;;  %v2988_v28 = vadd.f32 %v2987_v43, %v12430_v18  ;;  %v4086_v40 = vmax.f32 %v2871_v0, 0.0  ;;  %v8931_v15 = vcombine.high %v448_v13, %v464_v21 }
 0x232   : > { %v2876_v44 = vpop.f32.mrf.mxu0  ;;  %3731 = vmatpush1.bf16.msra.mxu0 %v8994_v45  ;;  %v2989_v56 = vpop.f32.mrf.mxu1  ;;  %3844 = vmatpush1.bf16.msra.mxu1 %v8996_v8  ;;  %v4088_v16 = vmax.f32 %v2984_v37, 0.0  ;;  %v8933_v45 = vcombine.high %v449_v48, %v465_v41  ;;  %v4087_v43 = vmax.f32 %v2873_v1, 0.0  ;;  %v4089_v50 = vmax.f32 %v2986_v47, 0.0 }
 0x233   : > { %v4118_v49 = vmax.f32 %v2875_v17, 0.0  ;;  %v2877_v55 = vadd.f32 %v2876_v44, %v12434_v63  ;;  %3732 = vmatprep.subr.bf16.mxu0 %v8963_v39  ;;  %v4120_v54 = vmax.f32 %v2988_v28, 0.0  ;;  %v2990_v38 = vadd.f32 %v2989_v56, %v12443_v4  ;;  %3845 = vmatprep.subr.bf16.mxu1 %v8965_v24  ;;  %v10664_v17 = vld [vmem:[#allocation8 + $0x78] sm:$0xff]  }
 0x234   : > { %v2880_v60 = vpop.f32.mrf.mxu0  ;;  %3557 = vmatmul.mubr.bf16.gmra.mxu0 %v11436_v7  ;;  %v2993_v32 = vpop.f32.mrf.mxu1  ;;  %3670 = vmatmul.mubr.bf16.gmra.mxu1 %v11436_v7  ;;  %v8930_v37 = vcombine.low %v448_v13, %v464_v21 }
 0x235   : > { %v12589_v35 = vpack.c.bf16 %v4118_v49, %v4086_v40  ;;  %v4119_v46 = vmax.f32 %v2877_v55, 0.0  ;;  %3566 = vmatprep.mubr.bf16.mxu0 %v14384_v52  ;;  %v12593_v8 = vpack.c.bf16 %v4120_v54, %v4088_v16  ;;  %v4121_v0 = vmax.f32 %v2990_v38, 0.0  ;;  %3679 = vmatprep.mubr.bf16.mxu1 %v14384_v52  ;;  %v10666_v54 = vld [vmem:[#allocation8 + $0xf8] sm:$0xff]  }
 0x236   : > { %v2882_v39 = vpop.f32.mrf.mxu0  ;;  %3733 = vmatpush1.bf16.msra.mxu0 %v8962_v61  ;;  %v2881_v24 = vadd.f32 %v2880_v60, %v12419_v19  ;;  %v2995_v1 = vpop.f32.mrf.mxu1  ;;  %3846 = vmatpush1.bf16.msra.mxu1 %v8964_v53  ;;  %v8932_v40 = vcombine.low %v449_v48, %v465_v41  ;;  %v2994_v44 = vadd.f32 %v2993_v32, %v12430_v18 }
 0x237   : > { %3734 = vmatprep.subr.bf16.mxu0 %v8931_v15  ;;  %v12597_v28 = vpack.c.bf16 %v4119_v46, %v4087_v43  ;;  %3847 = vmatprep.subr.bf16.mxu1 %v8933_v45  ;;  %v12600_v16 = vpack.c.bf16 %v4121_v0, %v4089_v50  ;;  %v2883_v49 = vadd.f32 %v2882_v39, %v12434_v63 }
 0x238   : > { %v2884_v47 = vpop.f32.mrf.mxu0  ;;  %v2997_v21 = vpop.f32.mrf.mxu1  ;;  %v2996_v60 = vadd.f32 %v2995_v1, %v12443_v4  ;;  %v4150_v41 = vmax.f32 %v2881_v24, 0.0  ;;  %v4152_v15 = vmax.f32 %v2994_v44, 0.0 }
 0x239   : > { %v2885_v13 = vadd.f32 %v2884_v47, %v12419_v19  ;;  %v2998_v61 = vadd.f32 %v2997_v21, %v12430_v18  ;;  %v4151_v46 = vmax.f32 %v2883_v49, 0.0 }
 0x23a   : > { %v2886_v48 = vpop.f32.mrf.mxu0  ;;  %3735 = vmatpush1.bf16.msra.mxu0 %v8930_v37  ;;  %v2999_v56 = vpop.f32.mrf.mxu1  ;;  %3848 = vmatpush1.bf16.msra.mxu1 %v8932_v40  ;;  %v4153_v39 = vmax.f32 %v2996_v60, 0.0 }
 0x23b   : > { %v4182_v53 = vmax.f32 %v2885_v13, 0.0  ;;  %v2887_v55 = vadd.f32 %v2886_v48, %v12434_v63  ;;  %9425 = vmatprep.subr.bf16.mxu0 %v10664_v17  ;;  %v4184_v38 = vmax.f32 %v2998_v61, 0.0  ;;  %v3000_v45 = vadd.f32 %v2999_v56, %v12443_v4  ;;  %9489 = vmatprep.subr.bf16.mxu1 %v10666_v54 }
 0x23c   : > { %v2890_v43 = vpop.f32.mrf.mxu0  ;;  %3567 = vmatmul.mubr.bf16.gmra.mxu0 %v11450_v23  ;;  %v3003_v0 = vpop.f32.mrf.mxu1  ;;  %3680 = vmatmul.mubr.bf16.gmra.mxu1 %v11450_v23 }
 0x23d   : > { %v12609_v32 = vpack.c.bf16 %v4182_v53, %v4150_v41  ;;  %v4183_v50 = vmax.f32 %v2887_v55, 0.0  ;;  %3576 = vmatprep.mubr.bf16.mxu0 %v14384_v52  ;;  %v12613_v37 = vpack.c.bf16 %v4184_v38, %v4152_v15  ;;  %v4185_v24 = vmax.f32 %v3000_v45, 0.0  ;;  %3689 = vmatprep.mubr.bf16.mxu1 %v14384_v52 }
 0x23e   : > { %v2892_v1 = vpop.f32.mrf.mxu0  ;;  %v2891_v40 = vadd.f32 %v2890_v43, %v12419_v19  ;;  %v3005_v17 = vpop.f32.mrf.mxu1  ;;  %v3004_v47 = vadd.f32 %v3003_v0, %v12430_v18 }
 0x23f   : > { %14464 = vst [vmem:[#allocation108_spill] sm:$0xff] %v12613_v37  ;;  %v12617_v44 = vpack.c.bf16 %v4183_v50, %v4151_v46  ;;  %v12620_v49 = vpack.c.bf16 %v4185_v24, %v4153_v39  ;;  %v2893_v13 = vadd.f32 %v2892_v1, %v12434_v63  ;;  %v3006_v61 = vadd.f32 %v3005_v17, %v12443_v4 }
 0x240   : > { %v2894_v54 = vpop.f32.mrf.mxu0  ;;  %v3007_v60 = vpop.f32.mrf.mxu1  ;;  %v4214_v53 = vmax.f32 %v2891_v40, 0.0  ;;  %v4216_v38 = vmax.f32 %v3004_v47, 0.0 }
 0x241   : > { %v2895_v21 = vadd.f32 %v2894_v54, %v12419_v19  ;;  %v3008_v48 = vadd.f32 %v3007_v60, %v12430_v18  ;;  %v4215_v50 = vmax.f32 %v2893_v13, 0.0  ;;  %v4217_v1 = vmax.f32 %v3006_v61, 0.0 }
 0x242   : > { %v2896_v41 = vpop.f32.mrf.mxu0  ;;  %v3009_v15 = vpop.f32.mrf.mxu1 }
 0x243   : > { %v4246_v55 = vmax.f32 %v2895_v21, 0.0  ;;  %v2897_v56 = vadd.f32 %v2896_v41, %v12434_v63  ;;  %v4248_v45 = vmax.f32 %v3008_v48, 0.0  ;;  %v3010_v43 = vadd.f32 %v3009_v15, %v12443_v4 }
 0x244   : > { %v2900_v46 = vpop.f32.mrf.mxu0  ;;  %3577 = vmatmul.mubr.bf16.gmra.mxu0 %v11458_v27  ;;  %v3013_v24 = vpop.f32.mrf.mxu1  ;;  %3690 = vmatmul.mubr.bf16.gmra.mxu1 %v11458_v27 }
 0x245   : > { %v12629_v0 = vpack.c.bf16 %v4246_v55, %v4214_v53  ;;  %v4247_v39 = vmax.f32 %v2897_v56, 0.0  ;;  %3586 = vmatprep.mubr.bf16.mxu0 %v14384_v52  ;;  %v12633_v40 = vpack.c.bf16 %v4248_v45, %v4216_v38  ;;  %v4249_v17 = vmax.f32 %v3010_v43, 0.0  ;;  %3699 = vmatprep.mubr.bf16.mxu1 %v14384_v52 }
 0x246   : > { %v2902_v47 = vpop.f32.mrf.mxu0  ;;  %v2901_v54 = vadd.f32 %v2900_v46, %v12419_v19  ;;  %v3015_v21 = vpop.f32.mrf.mxu1  ;;  %v3014_v13 = vadd.f32 %v3013_v24, %v12430_v18 }
 0x247   : > { %14465 = vst [vmem:[#allocation109_spill] sm:$0xff] %v12629_v0  ;;  %14466 = vst [vmem:[#allocation110_spill] sm:$0xff] %v12633_v40  ;;  %v12637_v60 = vpack.c.bf16 %v4247_v39, %v4215_v50  ;;  %v12640_v41 = vpack.c.bf16 %v4249_v17, %v4217_v1  ;;  %v2903_v53 = vadd.f32 %v2902_v47, %v12434_v63 }
 0x248   : > { %v2904_v48 = vpop.f32.mrf.mxu0  ;;  %v3017_v55 = vpop.f32.mrf.mxu1  ;;  %v3016_v56 = vadd.f32 %v3015_v21, %v12443_v4  ;;  %v4278_v45 = vmax.f32 %v2901_v54, 0.0  ;;  %v4280_v39 = vmax.f32 %v3014_v13, 0.0 }
 0x249   : > { %14467 = vst [vmem:[#allocation111_spill] sm:$0xff] %v12637_v60  ;;  %14468 = vst [vmem:[#allocation112_spill] sm:$0xff] %v12640_v41  ;;  %v2905_v61 = vadd.f32 %v2904_v48, %v12419_v19  ;;  %v3018_v15 = vadd.f32 %v3017_v55, %v12430_v18  ;;  %v4279_v47 = vmax.f32 %v2903_v53, 0.0 }
 0x24a   : > { %v2906_v38 = vpop.f32.mrf.mxu0  ;;  %v3019_v50 = vpop.f32.mrf.mxu1  ;;  %v4281_v54 = vmax.f32 %v3016_v56, 0.0 }
 0x24b   : > { %v4310_v43 = vmax.f32 %v2905_v61, 0.0  ;;  %v2907_v46 = vadd.f32 %v2906_v38, %v12434_v63  ;;  %v4312_v24 = vmax.f32 %v3018_v15, 0.0  ;;  %v3020_v1 = vadd.f32 %v3019_v50, %v12443_v4 }
 0x24c   : > { %v2910_v17 = vpop.f32.mrf.mxu0  ;;  %3587 = vmatmul.mubr.bf16.gmra.mxu0 %v11466_v30  ;;  %v3023_v21 = vpop.f32.mrf.mxu1  ;;  %3700 = vmatmul.mubr.bf16.gmra.mxu1 %v11466_v30 }
 0x24d   : > { %v12649_v48 = vpack.c.bf16 %v4310_v43, %v4278_v45  ;;  %v4311_v40 = vmax.f32 %v2907_v46, 0.0  ;;  %3596 = vmatprep.mubr.bf16.mxu0 %v14384_v52  ;;  %v12653_v61 = vpack.c.bf16 %v4312_v24, %v4280_v39  ;;  %v4313_v55 = vmax.f32 %v3020_v1, 0.0  ;;  %3709 = vmatprep.mubr.bf16.mxu1 %v14384_v52 }
 0x24e   : > { %v2912_v13 = vpop.f32.mrf.mxu0  ;;  %v2911_v15 = vadd.f32 %v2910_v17, %v12419_v19  ;;  %v3025_v38 = vpop.f32.mrf.mxu1  ;;  %v3024_v53 = vadd.f32 %v3023_v21, %v12430_v18 }
 0x24f   : > { %14469 = vst [vmem:[#allocation113_spill] sm:$0xff] %v12649_v48  ;;  %14470 = vst [vmem:[#allocation114_spill] sm:$0xff] %v12653_v61  ;;  %v12657_v50 = vpack.c.bf16 %v4311_v40, %v4279_v47  ;;  %v12660_v43 = vpack.c.bf16 %v4313_v55, %v4281_v54  ;;  %v2913_v46 = vadd.f32 %v2912_v13, %v12434_v63 }
 0x250   : > { %v2914_v45 = vpop.f32.mrf.mxu0  ;;  %v3027_v39 = vpop.f32.mrf.mxu1  ;;  %v3026_v24 = vadd.f32 %v3025_v38, %v12443_v4  ;;  %v4342_v48 = vmax.f32 %v2911_v15, 0.0 }
 0x251   : > { %14471 = vst [vmem:[#allocation115_spill] sm:$0xff] %v12657_v50  ;;  %14472 = vst [vmem:[#allocation116_spill] sm:$0xff] %v12660_v43  ;;  %v2915_v56 = vadd.f32 %v2914_v45, %v12419_v19  ;;  %v3028_v1 = vadd.f32 %v3027_v39, %v12430_v18  ;;  %v4344_v50 = vmax.f32 %v3024_v53, 0.0  ;;  %v4343_v13 = vmax.f32 %v2913_v46, 0.0 }
 0x252   : > { %v2916_v61 = vpop.f32.mrf.mxu0  ;;  %v3029_v47 = vpop.f32.mrf.mxu1  ;;  %v4345_v15 = vmax.f32 %v3026_v24, 0.0 }
 0x253   : > { %v4374_v17 = vmax.f32 %v2915_v56, 0.0  ;;  %v2917_v40 = vadd.f32 %v2916_v61, %v12434_v63  ;;  %v4376_v21 = vmax.f32 %v3028_v1, 0.0  ;;  %v3030_v54 = vadd.f32 %v3029_v47, %v12443_v4  ;;  %v12677_v47 = vld [vmem:[#allocation7 + $0x10] sm:$0xff] }
 0x254   : > { %v2920_v55 = vpop.f32.mrf.mxu0  ;;  %3597 = vmatmul.mubr.bf16.gmra.mxu0 %v11474_v34  ;;  %v3033_v38 = vpop.f32.mrf.mxu1  ;;  %3710 = vmatmul.mubr.bf16.gmra.mxu1 %v11474_v34  ;;  %v12710_v41 = vrot.slane %v12677_v47, %v11572_v62 }
 0x255   : > { %v12669_v45 = vpack.c.bf16 %v4374_v17, %v4342_v48  ;;  %v4375_v43 = vmax.f32 %v2917_v40, 0.0  ;;  %3752 = vmatprep.mubr.bf16.mxu0 %v14384_v52  ;;  %v12673_v56 = vpack.c.bf16 %v4376_v21, %v4344_v50  ;;  %v4377_v61 = vmax.f32 %v3030_v54, 0.0  ;;  %3865 = vmatprep.mubr.bf16.mxu1 %v14384_v52  ;;  %v10665_v21 = vld [vmem:[#allocation8 + $0x38] sm:$0xff]  }
 0x256   : > { %v2922_v53 = vpop.f32.mrf.mxu0  ;;  %v2921_v39 = vadd.f32 %v2920_v55, %v12419_v19  ;;  %v3035_v1 = vpop.f32.mrf.mxu1  ;;  %v3034_v46 = vadd.f32 %v3033_v38, %v12430_v18  ;;  %v12689_v55 = vrot.slane %v12677_v47, %v11563_v57 }
 0x257   : > { %14473 = vst [vmem:[#allocation117_spill] sm:$0xff] %v12669_v45  ;;  %14474 = vst [vmem:[#allocation118_spill] sm:$0xff] %v12673_v56  ;;  %v12679_v48 = vpack.c.bf16 %v4375_v43, %v4343_v13  ;;  %v12682_v40 = vpack.c.bf16 %v4377_v61, %v4345_v15  ;;  %v2923_v54 = vadd.f32 %v2922_v53, %v12434_v63  ;;  %v10667_v43 = vld [vmem:[#allocation8 + $0xb8] sm:$0xff]  }
 0x258   : > { %v2924_v17 = vpop.f32.mrf.mxu0  ;;  %v3037_v50 = vpop.f32.mrf.mxu1  ;;  %v4406_v13 = vmax.f32 %v2921_v39, 0.0  ;;  %v3036_v38 = vadd.f32 %v3035_v1, %v12443_v4 }
 0x259   : > { %14475 = vst [vmem:[#allocation119_spill] sm:$0xff] %v12679_v48  ;;  %14476 = vst [vmem:[#allocation120_spill] sm:$0xff] %v12682_v40  ;;  %v2925_v24 = vadd.f32 %v2924_v17, %v12419_v19  ;;  %v3038_v56 = vadd.f32 %v3037_v50, %v12430_v18  ;;  %v10668_v19 = vld [vmem:[#allocation8 + $0x70] sm:$0xff]   ;;  %v4408_v17 = vmax.f32 %v3034_v46, 0.0  ;;  %v12696_v18 = vrot.slane %v12677_v47, %v11566_v58 }
 0x25a   : > { %v2926_v45 = vpop.f32.mrf.mxu0  ;;  %v3039_v61 = vpop.f32.mrf.mxu1  ;;  %v10670_v50 = vld [vmem:[#allocation8 + $0xf0] sm:$0xff]  }
 0x25b   : > { %v4438_v48 = vmax.f32 %v2925_v24, 0.0  ;;  %v2927_v15 = vadd.f32 %v2926_v45, %v12434_v63  ;;  %v4440_v40 = vmax.f32 %v3038_v56, 0.0  ;;  %v3040_v53 = vadd.f32 %v3039_v61, %v12443_v4  ;;  %v10669_v4 = vld [vmem:[#allocation8 + $0x30] sm:$0xff]  }
 0x25c   : > { %v3076_v0 = vpop.f32.mrf.mxu0  ;;  %3753 = vmatmul.mubr.bf16.vlgmr.msra.gmra.mxu0 %v11412_v10  ;;  %v3189_v24 = vpop.f32.mrf.mxu1  ;;  %3866 = vmatmul.mubr.bf16.vlgmr.msra.gmra.mxu1 %v11412_v10  ;;  %v12704_v63 = vrot.slane %v12677_v47, %v11569_v59  ;;  %v4407_v45 = vmax.f32 %v2923_v54, 0.0  ;;  %v10672_v10 = vld [vmem:[#allocation8 + $0x68] sm:$0xff]  }
 0x25d   : > { %v12699_v39 = vpack.c.bf16 %v4438_v48, %v4406_v13  ;;  %v4439_v1 = vmax.f32 %v2927_v15, 0.0  ;;  %9426 = vmatpush3.bf16.msra.mxu0 %v10665_v21  ;;  %v12706_v56 = vpack.c.bf16 %v4440_v40, %v4408_v17  ;;  %v4441_v46 = vmax.f32 %v3040_v53, 0.0  ;;  %9490 = vmatpush3.bf16.msra.mxu1 %v10667_v43  ;;  %v10671_v48 = vld [vmem:[#allocation8 + $0xb0] sm:$0xff]   ;;  %v10674_v40 = vld [vmem:[#allocation8 + $0xe8] sm:$0xff]  }
 0x25e   : > { %v3078_v61 = vpop.f32.mrf.mxu0  ;;  %3762 = vmatprep.mubr.bf16.mxu0 %v14384_v52  ;;  %v4409_v21 = vmax.f32 %v3036_v38, 0.0  ;;  %v3077_v13 = vadd.f32 %v3076_v0, %v12689_v55  ;;  %v3191_v15 = vpop.f32.mrf.mxu1  ;;  %3875 = vmatprep.mubr.bf16.mxu1 %v14384_v52  ;;  %v3190_v54 = vadd.f32 %v3189_v24, %v12696_v18  ;;  %v10673_v24 = vld [vmem:[#allocation8 + $0x28] sm:$0xff]  }
 0x25f   : > { %14477 = vst [vmem:[#allocation121_spill] sm:$0xff] %v12699_v39  ;;  %14478 = vst [vmem:[#allocation122_spill] sm:$0xff] %v12706_v56  ;;  %9427 = vmatprep.subr.bf16.mxu0 %v10668_v19  ;;  %9491 = vmatprep.subr.bf16.mxu1 %v10670_v50  ;;  %v12716_v53 = vpack.c.bf16 %v4439_v1, %v4407_v45  ;;  %v3079_v43 = vadd.f32 %v3078_v61, %v12704_v63  ;;  %v10675_v61 = vld [vmem:[#allocation8 + $0xa8] sm:$0xff]  }
 0x260   : > { %v3080_v17 = vpop.f32.mrf.mxu0  ;;  %v3193_v39 = vpop.f32.mrf.mxu1  ;;  %v12720_v38 = vpack.c.bf16 %v4441_v46, %v4409_v21  ;;  %v3192_v0 = vadd.f32 %v3191_v15, %v12710_v41  ;;  %v3962_v37 = vmax.f32 %v3077_v13, 0.0 }
 0x261   : > { %14479 = vst [vmem:[#allocation123_spill] sm:$0xff] %v12716_v53  ;;  %v3081_v56 = vadd.f32 %v3080_v17, %v12689_v55  ;;  %9428 = vmatpush3.bf16.msra.mxu0 %v10669_v4  ;;  %v3194_v60 = vadd.f32 %v3193_v39, %v12696_v18  ;;  %9492 = vmatpush3.bf16.msra.mxu1 %v10671_v48  ;;  %v10676_v17 = vld [vmem:[#allocation8 + $0x60] sm:$0xff]   ;;  %v3964_v53 = vmax.f32 %v3190_v54, 0.0  ;;  %v3963_v15 = vmax.f32 %v3079_v43, 0.0 }
 0x262   : > { %v3082_v19 = vpop.f32.mrf.mxu0  ;;  %9429 = vmatprep.subr.bf16.mxu0 %v10672_v10  ;;  %v3195_v45 = vpop.f32.mrf.mxu1  ;;  %9493 = vmatprep.subr.bf16.mxu1 %v10674_v40  ;;  %v10678_v39 = vld [vmem:[#allocation8 + $0xe0] sm:$0xff]  }
 0x263   : > { %v3994_v50 = vmax.f32 %v3081_v56, 0.0  ;;  %v3083_v1 = vadd.f32 %v3082_v19, %v12704_v63  ;;  %v3996_v4 = vmax.f32 %v3194_v60, 0.0  ;;  %v3196_v46 = vadd.f32 %v3195_v45, %v12710_v41  ;;  %v10677_v19 = vld [vmem:[#allocation8 + $0x20] sm:$0xff]  }
 0x264   : > { %v3086_v21 = vpop.f32.mrf.mxu0  ;;  %3763 = vmatmul.mubr.bf16.gmra.mxu0 %v11420_v33  ;;  %v3199_v13 = vpop.f32.mrf.mxu1  ;;  %3876 = vmatmul.mubr.bf16.gmra.mxu1 %v11420_v33  ;;  %v3965_v56 = vmax.f32 %v3192_v0, 0.0 }
 0x265   : > { %v12727_v48 = vpack.c.bf16 %v3994_v50, %v3962_v37  ;;  %v3995_v10 = vmax.f32 %v3083_v1, 0.0  ;;  %3772 = vmatprep.mubr.bf16.mxu0 %v14384_v52  ;;  %v12731_v40 = vpack.c.bf16 %v3996_v4, %v3964_v53  ;;  %v3997_v54 = vmax.f32 %v3196_v46, 0.0  ;;  %3885 = vmatprep.mubr.bf16.mxu1 %v14384_v52  ;;  %v10679_v37 = vld [vmem:[#allocation8 + $0xa0] sm:$0xff]   ;;  %v10680_v50 = vld [vmem:[#allocation8 + $0x58] sm:$0xff]  }
 0x266   : > { %v3088_v60 = vpop.f32.mrf.mxu0  ;;  %9430 = vmatpush3.bf16.msra.mxu0 %v10673_v24  ;;  %v3087_v45 = vadd.f32 %v3086_v21, %v12689_v55  ;;  %v3201_v43 = vpop.f32.mrf.mxu1  ;;  %9494 = vmatpush3.bf16.msra.mxu1 %v10675_v61  ;;  %v3200_v33 = vadd.f32 %v3199_v13, %v12696_v18  ;;  %v10682_v53 = vld [vmem:[#allocation8 + $0xd8] sm:$0xff]  }
 0x267   : > { %14480 = vst [vmem:[#allocation124_spill] sm:$0xff] %v12727_v48  ;;  %14481 = vst [vmem:[#allocation125_spill] sm:$0xff] %v12731_v40  ;;  %9431 = vmatprep.subr.bf16.mxu0 %v10676_v17  ;;  %v12735_v1 = vpack.c.bf16 %v3995_v10, %v3963_v15  ;;  %9495 = vmatprep.subr.bf16.mxu1 %v10678_v39  ;;  %v12738_v4 = vpack.c.bf16 %v3997_v54, %v3965_v56  ;;  %v10681_v15 = vld [vmem:[#allocation8 + $0x18] sm:$0xff]   ;;  %v10684_v54 = vld [vmem:[#allocation8 + $0x50] sm:$0xff]  }
 0x268   : > { %v3090_v0 = vpop.f32.mrf.mxu0  ;;  %v3089_v46 = vadd.f32 %v3088_v60, %v12704_v63  ;;  %v3203_v40 = vpop.f32.mrf.mxu1  ;;  %v3202_v21 = vadd.f32 %v3201_v43, %v12710_v41  ;;  %v4026_v10 = vmax.f32 %v3087_v45, 0.0  ;;  %v10683_v56 = vld [vmem:[#allocation8 + $0x98] sm:$0xff]   ;;  %v4028_v60 = vmax.f32 %v3200_v33, 0.0 }
 0x269   : > { %14482 = vst [vmem:[#allocation126_spill] sm:$0xff] %v12735_v1  ;;  %14483 = vst [vmem:[#allocation127_spill] sm:$0xff] %v12738_v4  ;;  %v3091_v24 = vadd.f32 %v3090_v0, %v12689_v55  ;;  %v3204_v61 = vadd.f32 %v3203_v40, %v12696_v18  ;;  %v10686_v40 = vld [vmem:[#allocation8 + $0xd0] sm:$0xff]  }
 0x26a   : > { %v3092_v17 = vpop.f32.mrf.mxu0  ;;  %9432 = vmatpush3.bf16.msra.mxu0 %v10677_v19  ;;  %v3205_v39 = vpop.f32.mrf.mxu1  ;;  %9496 = vmatpush3.bf16.msra.mxu1 %v10679_v37  ;;  %v4027_v19 = vmax.f32 %v3089_v46, 0.0  ;;  %v4029_v37 = vmax.f32 %v3202_v21, 0.0 }
 0x26b   : > { %v4058_v48 = vmax.f32 %v3091_v24, 0.0  ;;  %v3093_v13 = vadd.f32 %v3092_v17, %v12704_v63  ;;  %9433 = vmatprep.subr.bf16.mxu0 %v10680_v50  ;;  %v4060_v4 = vmax.f32 %v3204_v61, 0.0  ;;  %v3206_v0 = vadd.f32 %v3205_v39, %v12710_v41  ;;  %9497 = vmatprep.subr.bf16.mxu1 %v10682_v53  ;;  %v10685_v17 = vld [vmem:[#allocation8 + $0x10] sm:$0xff]  }
 0x26c   : > { %v3096_v1 = vpop.f32.mrf.mxu0  ;;  %3773 = vmatmul.mubr.bf16.gmra.mxu0 %v11428_v51  ;;  %v3209_v24 = vpop.f32.mrf.mxu1  ;;  %3886 = vmatmul.mubr.bf16.gmra.mxu1 %v11428_v51 }
 0x26d   : > { %v12747_v43 = vpack.c.bf16 %v4058_v48, %v4026_v10  ;;  %v4059_v45 = vmax.f32 %v3093_v13, 0.0  ;;  %3782 = vmatprep.mubr.bf16.mxu0 %v14384_v52  ;;  %v12751_v50 = vpack.c.bf16 %v4060_v4, %v4028_v60  ;;  %v4061_v33 = vmax.f32 %v3206_v0, 0.0  ;;  %3895 = vmatprep.mubr.bf16.mxu1 %v14384_v52  ;;  %v10687_v48 = vld [vmem:[#allocation8 + $0x90] sm:$0xff]   ;;  %v10688_v10 = vld [vmem:[#allocation8 + $0x48] sm:$0xff]  }
 0x26e   : > { %v3098_v61 = vpop.f32.mrf.mxu0  ;;  %9434 = vmatpush3.bf16.msra.mxu0 %v10681_v15  ;;  %v3097_v53 = vadd.f32 %v3096_v1, %v12689_v55  ;;  %v3211_v46 = vpop.f32.mrf.mxu1  ;;  %9498 = vmatpush3.bf16.msra.mxu1 %v10683_v56  ;;  %v3210_v51 = vadd.f32 %v3209_v24, %v12696_v18  ;;  %v10690_v4 = vld [vmem:[#allocation8 + $0xc8] sm:$0xff]  }
 0x26f   : > { %14484 = vst [vmem:[#allocation128_spill] sm:$0xff] %v12747_v43  ;;  %14485 = vst [vmem:[#allocation129_spill] sm:$0xff] %v12751_v50  ;;  %9435 = vmatprep.subr.bf16.mxu0 %v10684_v54  ;;  %v12755_v13 = vpack.c.bf16 %v4059_v45, %v4027_v19  ;;  %9499 = vmatprep.subr.bf16.mxu1 %v10686_v40  ;;  %v12758_v39 = vpack.c.bf16 %v4061_v33, %v4029_v37  ;;  %v10689_v19 = vld [vmem:[#allocation8 + $0x8] sm:$0xff]   ;;  %v10692_v33 = vld [vmem:[#allocation8 + $0x40] sm:$0xff]  }
 0x270   : > { %v3100_v21 = vpop.f32.mrf.mxu0  ;;  %v3099_v60 = vadd.f32 %v3098_v61, %v12704_v63  ;;  %v3213_v0 = vpop.f32.mrf.mxu1  ;;  %v3212_v1 = vadd.f32 %v3211_v46, %v12710_v41  ;;  %v4090_v45 = vmax.f32 %v3097_v53, 0.0  ;;  %v10691_v37 = vld [vmem:[#allocation8 + $0x88] sm:$0xff]   ;;  %v4092_v61 = vmax.f32 %v3210_v51, 0.0  ;;  %v10694_v46 = vld [vmem:[#allocation8 + $0xc0] sm:$0xff]  }
 0x271   : > { %14486 = vst [vmem:[#allocation130_spill] sm:$0xff] %v12758_v39  ;;  %v3101_v15 = vadd.f32 %v3100_v21, %v12689_v55  ;;  %v3214_v56 = vadd.f32 %v3213_v0, %v12696_v18 }
 0x272   : > { %v3102_v54 = vpop.f32.mrf.mxu0  ;;  %9436 = vmatpush3.bf16.msra.mxu0 %v10685_v17  ;;  %v3215_v40 = vpop.f32.mrf.mxu1  ;;  %9500 = vmatpush3.bf16.msra.mxu1 %v10687_v48  ;;  %v4091_v17 = vmax.f32 %v3099_v60, 0.0  ;;  %v4093_v48 = vmax.f32 %v3212_v1, 0.0 }
 0x273   : > { %v4122_v50 = vmax.f32 %v3101_v15, 0.0  ;;  %v3103_v24 = vadd.f32 %v3102_v54, %v12704_v63  ;;  %9437 = vmatprep.subr.bf16.mxu0 %v10688_v10  ;;  %v4124_v43 = vmax.f32 %v3214_v56, 0.0  ;;  %v3216_v21 = vadd.f32 %v3215_v40, %v12710_v41  ;;  %9501 = vmatprep.subr.bf16.mxu1 %v10690_v4  ;;  %v10693_v54 = vld [vmem:[#allocation8] sm:$0xff]  }
 0x274   : > { %v3106_v39 = vpop.f32.mrf.mxu0  ;;  %3783 = vmatmul.mubr.bf16.gmra.mxu0 %v11436_v7  ;;  %v3219_v15 = vpop.f32.mrf.mxu1  ;;  %3896 = vmatmul.mubr.bf16.gmra.mxu1 %v11436_v7 }
 0x275   : > { %v12767_v0 = vpack.c.bf16 %v4122_v50, %v4090_v45  ;;  %v4123_v53 = vmax.f32 %v3103_v24, 0.0  ;;  %3792 = vmatprep.mubr.bf16.mxu0 %v14384_v52  ;;  %v12771_v10 = vpack.c.bf16 %v4124_v43, %v4092_v61  ;;  %v4125_v51 = vmax.f32 %v3216_v21, 0.0  ;;  %3905 = vmatprep.mubr.bf16.mxu1 %v14384_v52  ;;  %v10695_v50 = vld [vmem:[#allocation8 + $0x80] sm:$0xff]   ;;  %v10696_v45 = vld [vmem:[#allocation8 + $0x178] sm:$0xff]  }
 0x276   : > { %v3108_v56 = vpop.f32.mrf.mxu0  ;;  %9438 = vmatpush3.bf16.msra.mxu0 %v10689_v19  ;;  %v3107_v4 = vadd.f32 %v3106_v39, %v12689_v55  ;;  %v3221_v60 = vpop.f32.mrf.mxu1  ;;  %9502 = vmatpush3.bf16.msra.mxu1 %v10691_v37  ;;  %v3220_v7 = vadd.f32 %v3219_v15, %v12696_v18  ;;  %v10698_v43 = vld [vmem:[#allocation8 + $0x1f8] sm:$0xff]  }
 0x277   : > { %14487 = vst [vmem:[#allocation131_spill] sm:$0xff] %v12771_v10  ;;  %9439 = vmatprep.subr.bf16.mxu0 %v10692_v33  ;;  %v12775_v24 = vpack.c.bf16 %v4123_v53, %v4091_v17  ;;  %9503 = vmatprep.subr.bf16.mxu1 %v10694_v46  ;;  %v12778_v40 = vpack.c.bf16 %v4125_v51, %v4093_v48 }
 0x278   : > { %v3110_v1 = vpop.f32.mrf.mxu0  ;;  %v3109_v61 = vadd.f32 %v3108_v56, %v12704_v63  ;;  %v3223_v21 = vpop.f32.mrf.mxu1  ;;  %v3222_v39 = vadd.f32 %v3221_v60, %v12710_v41  ;;  %v4154_v17 = vmax.f32 %v3107_v4, 0.0  ;;  %v4156_v46 = vmax.f32 %v3220_v7, 0.0 }
 0x279   : > { %v3111_v19 = vadd.f32 %v3110_v1, %v12689_v55  ;;  %v3224_v37 = vadd.f32 %v3223_v21, %v12696_v18 }
 0x27a   : > { %v3112_v33 = vpop.f32.mrf.mxu0  ;;  %9440 = vmatpush3.bf16.msra.mxu0 %v10693_v54  ;;  %v3225_v10 = vpop.f32.mrf.mxu1  ;;  %9504 = vmatpush3.bf16.msra.mxu1 %v10695_v50  ;;  %v4155_v60 = vmax.f32 %v3109_v61, 0.0  ;;  %v4157_v4 = vmax.f32 %v3222_v39, 0.0 }
 0x27b   : > { %v4186_v53 = vmax.f32 %v3111_v19, 0.0  ;;  %v3113_v15 = vadd.f32 %v3112_v33, %v12704_v63  ;;  %9553 = vmatprep.subr.bf16.mxu0 %v10696_v45  ;;  %v4188_v48 = vmax.f32 %v3224_v37, 0.0  ;;  %v3226_v51 = vadd.f32 %v3225_v10, %v12710_v41  ;;  %9617 = vmatprep.subr.bf16.mxu1 %v10698_v43 }
 0x27c   : > { %v3116_v56 = vpop.f32.mrf.mxu0  ;;  %3793 = vmatmul.mubr.bf16.gmra.mxu0 %v11450_v23  ;;  %v3229_v54 = vpop.f32.mrf.mxu1  ;;  %3906 = vmatmul.mubr.bf16.gmra.mxu1 %v11450_v23 }
 0x27d   : > { %v12787_v1 = vpack.c.bf16 %v4186_v53, %v4154_v17  ;;  %v4187_v21 = vmax.f32 %v3113_v15, 0.0  ;;  %3802 = vmatprep.mubr.bf16.mxu0 %v14384_v52  ;;  %v12791_v50 = vpack.c.bf16 %v4188_v48, %v4156_v46  ;;  %v4189_v45 = vmax.f32 %v3226_v51, 0.0  ;;  %3915 = vmatprep.mubr.bf16.mxu1 %v14384_v52 }
 0x27e   : > { %v3118_v7 = vpop.f32.mrf.mxu0  ;;  %v3117_v10 = vadd.f32 %v3116_v56, %v12689_v55  ;;  %v3231_v19 = vpop.f32.mrf.mxu1  ;;  %v3230_v61 = vadd.f32 %v3229_v54, %v12696_v18 }
 0x27f   : > { %14488 = vst [vmem:[#allocation132_spill] sm:$0xff] %v12791_v50  ;;  %v12795_v43 = vpack.c.bf16 %v4187_v21, %v4155_v60  ;;  %v12798_v33 = vpack.c.bf16 %v4189_v45, %v4157_v4  ;;  %v3119_v23 = vadd.f32 %v3118_v7, %v12704_v63  ;;  %v3232_v53 = vadd.f32 %v3231_v19, %v12710_v41 }
 0x280   : > { %v3120_v37 = vpop.f32.mrf.mxu0  ;;  %v3233_v17 = vpop.f32.mrf.mxu1  ;;  %v4218_v48 = vmax.f32 %v3117_v10, 0.0  ;;  %v4220_v21 = vmax.f32 %v3230_v61, 0.0 }
 0x281   : > { %v3121_v39 = vadd.f32 %v3120_v37, %v12689_v55  ;;  %v3234_v15 = vadd.f32 %v3233_v17, %v12696_v18  ;;  %v4219_v7 = vmax.f32 %v3119_v23, 0.0  ;;  %v4221_v10 = vmax.f32 %v3232_v53, 0.0 }
 0x282   : > { %v3122_v46 = vpop.f32.mrf.mxu0  ;;  %v3235_v60 = vpop.f32.mrf.mxu1 }
 0x283   : > { %v4250_v51 = vmax.f32 %v3121_v39, 0.0  ;;  %v3123_v56 = vadd.f32 %v3122_v46, %v12704_v63  ;;  %v4252_v54 = vmax.f32 %v3234_v15, 0.0  ;;  %v3236_v4 = vadd.f32 %v3235_v60, %v12710_v41 }
 0x284   : > { %v3126_v45 = vpop.f32.mrf.mxu0  ;;  %3803 = vmatmul.mubr.bf16.gmra.mxu0 %v11458_v27  ;;  %v3239_v19 = vpop.f32.mrf.mxu1  ;;  %3916 = vmatmul.mubr.bf16.gmra.mxu1 %v11458_v27 }
 0x285   : > { %v12807_v37 = vpack.c.bf16 %v4250_v51, %v4218_v48  ;;  %v4251_v50 = vmax.f32 %v3123_v56, 0.0  ;;  %3812 = vmatprep.mubr.bf16.mxu0 %v14384_v52  ;;  %v12811_v39 = vpack.c.bf16 %v4252_v54, %v4220_v21  ;;  %v4253_v17 = vmax.f32 %v3236_v4, 0.0  ;;  %3925 = vmatprep.mubr.bf16.mxu1 %v14384_v52 }
 0x286   : > { %v3128_v61 = vpop.f32.mrf.mxu0  ;;  %v3127_v15 = vadd.f32 %v3126_v45, %v12689_v55  ;;  %v3241_v46 = vpop.f32.mrf.mxu1  ;;  %v3240_v23 = vadd.f32 %v3239_v19, %v12696_v18 }
 0x287   : > { %14489 = vst [vmem:[#allocation133_spill] sm:$0xff] %v12807_v37  ;;  %14490 = vst [vmem:[#allocation134_spill] sm:$0xff] %v12811_v39  ;;  %v12815_v60 = vpack.c.bf16 %v4251_v50, %v4219_v7  ;;  %v12818_v51 = vpack.c.bf16 %v4253_v17, %v4221_v10  ;;  %v3129_v27 = vadd.f32 %v3128_v61, %v12704_v63 }
 0x288   : > { %v3130_v48 = vpop.f32.mrf.mxu0  ;;  %v3243_v56 = vpop.f32.mrf.mxu1  ;;  %v3242_v21 = vadd.f32 %v3241_v46, %v12710_v41  ;;  %v4282_v39 = vmax.f32 %v3127_v15, 0.0  ;;  %v4284_v37 = vmax.f32 %v3240_v23, 0.0 }
 0x289   : > { %14491 = vst [vmem:[#allocation135_spill] sm:$0xff] %v12818_v51  ;;  %v3131_v53 = vadd.f32 %v3130_v48, %v12689_v55  ;;  %v3244_v54 = vadd.f32 %v3243_v56, %v12696_v18  ;;  %v4283_v61 = vmax.f32 %v3129_v27, 0.0 }
 0x28a   : > { %v3132_v4 = vpop.f32.mrf.mxu0  ;;  %v3245_v7 = vpop.f32.mrf.mxu1  ;;  %v4285_v15 = vmax.f32 %v3242_v21, 0.0 }
 0x28b   : > { %v4314_v45 = vmax.f32 %v3131_v53, 0.0  ;;  %v3133_v50 = vadd.f32 %v3132_v4, %v12704_v63  ;;  %v4316_v19 = vmax.f32 %v3244_v54, 0.0  ;;  %v3246_v10 = vadd.f32 %v3245_v7, %v12710_v41 }
 0x28c   : > { %v3136_v17 = vpop.f32.mrf.mxu0  ;;  %3813 = vmatmul.mubr.bf16.gmra.mxu0 %v11466_v30  ;;  %v3249_v46 = vpop.f32.mrf.mxu1  ;;  %3926 = vmatmul.mubr.bf16.gmra.mxu1 %v11466_v30 }
 0x28d   : > { %v12827_v48 = vpack.c.bf16 %v4314_v45, %v4282_v39  ;;  %v4315_v51 = vmax.f32 %v3133_v50, 0.0  ;;  %3822 = vmatprep.mubr.bf16.mxu0 %v14384_v52  ;;  %v12831_v53 = vpack.c.bf16 %v4316_v19, %v4284_v37  ;;  %v4317_v56 = vmax.f32 %v3246_v10, 0.0  ;;  %3935 = vmatprep.mubr.bf16.mxu1 %v14384_v52 }
 0x28e   : > { %v3138_v23 = vpop.f32.mrf.mxu0  ;;  %v3137_v54 = vadd.f32 %v3136_v17, %v12689_v55  ;;  %v3251_v4 = vpop.f32.mrf.mxu1  ;;  %v3250_v39 = vadd.f32 %v3249_v46, %v12696_v18 }
 0x28f   : > { %14492 = vst [vmem:[#allocation136_spill] sm:$0xff] %v12827_v48  ;;  %14493 = vst [vmem:[#allocation137_spill] sm:$0xff] %v12831_v53  ;;  %v12835_v7 = vpack.c.bf16 %v4315_v51, %v4283_v61  ;;  %v12838_v45 = vpack.c.bf16 %v4317_v56, %v4285_v15  ;;  %v3139_v30 = vadd.f32 %v3138_v23, %v12704_v63 }
 0x290   : > { %v3140_v27 = vpop.f32.mrf.mxu0  ;;  %v3253_v37 = vpop.f32.mrf.mxu1  ;;  %v3252_v50 = vadd.f32 %v3251_v4, %v12710_v41  ;;  %v4346_v10 = vmax.f32 %v3137_v54, 0.0  ;;  %v4348_v53 = vmax.f32 %v3250_v39, 0.0 }
 0x291   : > { %v3141_v21 = vadd.f32 %v3140_v27, %v12689_v55  ;;  %v3254_v19 = vadd.f32 %v3253_v37, %v12696_v18  ;;  %v4347_v23 = vmax.f32 %v3139_v30, 0.0 }
 0x292   : > { %v3142_v52 = vpop.f32.mrf.mxu0  ;;  %v3255_v61 = vpop.f32.mrf.mxu1  ;;  %v4349_v54 = vmax.f32 %v3252_v50, 0.0 }
 0x293   : > { %v4378_v17 = vmax.f32 %v3141_v21, 0.0  ;;  %v3143_v51 = vadd.f32 %v3142_v52, %v12704_v63  ;;  %v4380_v46 = vmax.f32 %v3254_v19, 0.0  ;;  %v3256_v15 = vadd.f32 %v3255_v61, %v12710_v41 }
 0x294   : > { %v3146_v56 = vpop.f32.mrf.mxu0  ;;  %3823 = vmatmul.mubr.bf16.gmra.mxu0 %v11474_v34  ;;  %v3259_v4 = vpop.f32.mrf.mxu1  ;;  %3936 = vmatmul.mubr.bf16.gmra.mxu1 %v11474_v34 }
 0x295   : > { %v12847_v27 = vpack.c.bf16 %v4378_v17, %v4346_v10  ;;  %v4379_v48 = vmax.f32 %v3143_v51, 0.0  ;;  %6801 = vmatprep.mubr.bf16.mxu0 %v11659_v22  ;;  %v12851_v21 = vpack.c.bf16 %v4380_v46, %v4348_v53  ;;  %v4381_v37 = vmax.f32 %v3256_v15, 0.0  ;;  %6898 = vmatprep.mubr.bf16.mxu1 %v11668_v31  ;;  %v10697_v46 = vld [vmem:[#allocation8 + $0x138] sm:$0xff]  }
 0x296   : > { %v3148_v39 = vpop.f32.mrf.mxu0  ;;  %v3147_v19 = vadd.f32 %v3146_v56, %v12689_v55  ;;  %v3261_v52 = vpop.f32.mrf.mxu1  ;;  %v3260_v30 = vadd.f32 %v3259_v4, %v12696_v18  ;;  %v12865_v31 = vrot.slane %v12677_v47, %v11824_v6 }
 0x297   : > { %14494 = vst [vmem:[#allocation138_spill] sm:$0xff] %v12851_v21  ;;  %v12855_v61 = vpack.c.bf16 %v4379_v48, %v4347_v23  ;;  %v12858_v17 = vpack.c.bf16 %v4381_v37, %v4349_v54  ;;  %v3149_v53 = vadd.f32 %v3148_v39, %v12704_v63  ;;  %v3262_v15 = vadd.f32 %v3261_v52, %v12710_v41  ;;  %v10699_v54 = vld [vmem:[#allocation8 + $0x1b8] sm:$0xff]  }
 0x298   : > { %v3150_v10 = vpop.f32.mrf.mxu0  ;;  %v3263_v22 = vpop.f32.mrf.mxu1  ;;  %v4410_v48 = vmax.f32 %v3147_v19, 0.0  ;;  %v4412_v37 = vmax.f32 %v3260_v30, 0.0  ;;  %v10702_v19 = vld [vmem:[#allocation8 + $0x1f0] sm:$0xff]  }
 0x299   : > { %v3151_v34 = vadd.f32 %v3150_v10, %v12689_v55  ;;  %v3264_v50 = vadd.f32 %v3263_v22, %v12696_v18  ;;  %v10700_v55 = vld [vmem:[#allocation8 + $0x170] sm:$0xff]   ;;  %v12872_v22 = vrot.slane %v12677_v47, %v11827_v9 }
 0x29a   : > { %v3152_v51 = vpop.f32.mrf.mxu0  ;;  %v3265_v4 = vpop.f32.mrf.mxu1 }
 0x29b   : > { %v4442_v56 = vmax.f32 %v3151_v34, 0.0  ;;  %v3153_v23 = vadd.f32 %v3152_v51, %v12704_v63  ;;  %v4444_v10 = vmax.f32 %v3264_v50, 0.0  ;;  %v3266_v39 = vadd.f32 %v3265_v4, %v12710_v41 }
 0x29c   : > { %v3302_v18 = vpop.f32.mrf.mxu0  ;;  %6802 = vmatmul.mubr.bf16.vlgmr.msra.gmra.mxu0 %v11643_v3  ;;  %v3415_v34 = vpop.f32.mrf.mxu1  ;;  %6899 = vmatmul.mubr.bf16.vlgmr.msra.gmra.mxu1 %v11649_v11  ;;  %v12881_v63 = vrot.slane %v12677_v47, %v11830_v14  ;;  %v4411_v41 = vmax.f32 %v3149_v53, 0.0  ;;  %v12888_v51 = vrot.slane %v12677_v47, %v11837_v26  ;;  %v4413_v11 = vmax.f32 %v3262_v15, 0.0  ;;  %v10704_v53 = vld [vmem:[#allocation8 + $0x168] sm:$0xff]  }
 0x29d   : > { %v12875_v21 = vpack.c.bf16 %v4442_v56, %v4410_v48  ;;  %v4443_v52 = vmax.f32 %v3153_v23, 0.0  ;;  %6809 = vmatprep.mubr.bf16.mxu0 %v11711_v25  ;;  %v12883_v30 = vpack.c.bf16 %v4444_v10, %v4412_v37  ;;  %v4445_v50 = vmax.f32 %v3266_v39, 0.0  ;;  %6906 = vmatprep.mubr.bf16.mxu1 %v11718_v36  ;;  %v10701_v48 = vld [vmem:[#allocation8 + $0x130] sm:$0xff]   ;;  %v10706_v36 = vld [vmem:[#allocation8 + $0x1e8] sm:$0xff]  }
 0x29e   : > { %9554 = vmatpush3.bf16.msra.mxu0 %v10697_v46  ;;  %v3304_v3 = vpop.f32.mrf.mxu0  ;;  %v3303_v25 = vadd.f32 %v3302_v18, %v12865_v31  ;;  %v3417_v56 = vpop.f32.mrf.mxu1  ;;  %9618 = vmatpush3.bf16.msra.mxu1 %v10699_v54  ;;  %v10703_v23 = vld [vmem:[#allocation8 + $0x1b0] sm:$0xff]   ;;  %v3416_v4 = vadd.f32 %v3415_v34, %v12872_v22 }
 0x29f   : > { %14495 = vst [vmem:[#allocation139_spill] sm:$0xff] %v12875_v21  ;;  %14496 = vst [vmem:[#allocation140_spill] sm:$0xff] %v12883_v30  ;;  %9555 = vmatprep.subr.bf16.mxu0 %v10700_v55  ;;  %9619 = vmatprep.subr.bf16.mxu1 %v10702_v19  ;;  %v12892_v46 = vpack.c.bf16 %v4443_v52, %v4411_v41  ;;  %v3305_v10 = vadd.f32 %v3304_v3, %v12881_v63  ;;  %v10705_v30 = vld [vmem:[#allocation8 + $0x128] sm:$0xff]   ;;  %v10708_v3 = vld [vmem:[#allocation8 + $0x160] sm:$0xff]  }
 0x2a0   : > { %v3306_v37 = vpop.f32.mrf.mxu0  ;;  %v3419_v39 = vpop.f32.mrf.mxu1  ;;  %v12896_v15 = vpack.c.bf16 %v4445_v50, %v4413_v11  ;;  %v3418_v18 = vadd.f32 %v3417_v56, %v12888_v51  ;;  %v3966_v34 = vmax.f32 %v3303_v25, 0.0  ;;  %v10707_v41 = vld [vmem:[#allocation8 + $0x1a8] sm:$0xff]   ;;  %v10710_v56 = vld [vmem:[#allocation8 + $0x1e0] sm:$0xff]  }
 0x2a1   : > { %14497 = vst [vmem:[#allocation141_spill] sm:$0xff] %v12892_v46  ;;  %v3307_v47 = vadd.f32 %v3306_v37, %v12865_v31  ;;  %v3420_v54 = vadd.f32 %v3419_v39, %v12872_v22  ;;  %v3968_v37 = vmax.f32 %v3416_v4, 0.0 }
 0x2a2   : > { %v3308_v55 = vpop.f32.mrf.mxu0  ;;  %9556 = vmatpush3.bf16.msra.mxu0 %v10701_v48  ;;  %v3421_v52 = vpop.f32.mrf.mxu1  ;;  %9620 = vmatpush3.bf16.msra.mxu1 %v10703_v23  ;;  %v3967_v48 = vmax.f32 %v3305_v10, 0.0  ;;  %v3969_v23 = vmax.f32 %v3418_v18, 0.0 }
 0x2a3   : > { %v3998_v21 = vmax.f32 %v3307_v47, 0.0  ;;  %v3309_v19 = vadd.f32 %v3308_v55, %v12881_v63  ;;  %9557 = vmatprep.subr.bf16.mxu0 %v10704_v53  ;;  %v4000_v46 = vmax.f32 %v3420_v54, 0.0  ;;  %v3422_v50 = vadd.f32 %v3421_v52, %v12888_v51  ;;  %9621 = vmatprep.subr.bf16.mxu1 %v10706_v36  ;;  %v10712_v55 = vld [vmem:[#allocation8 + $0x158] sm:$0xff]  }
 0x2a4   : > { %v3312_v11 = vpop.f32.mrf.mxu0  ;;  %6810 = vmatmul.mubr.bf16.gmra.mxu0 %v11695_v2  ;;  %v3425_v47 = vpop.f32.mrf.mxu1  ;;  %6907 = vmatmul.mubr.bf16.gmra.mxu1 %v11701_v12  ;;  %v10709_v2 = vld [vmem:[#allocation8 + $0x120] sm:$0xff]  }
 0x2a5   : > { %v12903_v39 = vpack.c.bf16 %v3998_v21, %v3966_v34  ;;  %v3999_v25 = vmax.f32 %v3309_v19, 0.0  ;;  %6817 = vmatprep.mubr.bf16.mxu0 %v11753_v29  ;;  %v12907_v53 = vpack.c.bf16 %v4000_v46, %v3968_v37  ;;  %v4001_v4 = vmax.f32 %v3422_v50, 0.0  ;;  %6914 = vmatprep.mubr.bf16.mxu1 %v11758_v42  ;;  %v10711_v21 = vld [vmem:[#allocation8 + $0x1a0] sm:$0xff]   ;;  %v10714_v46 = vld [vmem:[#allocation8 + $0x1d8] sm:$0xff]  }
 0x2a6   : > { %v3314_v54 = vpop.f32.mrf.mxu0  ;;  %9558 = vmatpush3.bf16.msra.mxu0 %v10705_v30  ;;  %v3313_v36 = vadd.f32 %v3312_v11, %v12865_v31  ;;  %v3427_v10 = vpop.f32.mrf.mxu1  ;;  %9622 = vmatpush3.bf16.msra.mxu1 %v10707_v41  ;;  %v3426_v12 = vadd.f32 %v3425_v47, %v12872_v22  ;;  %v10713_v37 = vld [vmem:[#allocation8 + $0x118] sm:$0xff]   ;;  %v10716_v47 = vld [vmem:[#allocation8 + $0x150] sm:$0xff]  }
 0x2a7   : > { %9559 = vmatprep.subr.bf16.mxu0 %v10708_v3  ;;  %v12911_v34 = vpack.c.bf16 %v3999_v25, %v3967_v48  ;;  %9623 = vmatprep.subr.bf16.mxu1 %v10710_v56  ;;  %v12914_v18 = vpack.c.bf16 %v4001_v4, %v3969_v23  ;;  %v3315_v42 = vadd.f32 %v3314_v54, %v12881_v63  ;;  %v10715_v25 = vld [vmem:[#allocation8 + $0x198] sm:$0xff]  }
 0x2a8   : > { %v3316_v29 = vpop.f32.mrf.mxu0  ;;  %v3429_v19 = vpop.f32.mrf.mxu1  ;;  %v3428_v52 = vadd.f32 %v3427_v10, %v12888_v51  ;;  %v4030_v50 = vmax.f32 %v3313_v36, 0.0  ;;  %v4032_v23 = vmax.f32 %v3426_v12, 0.0  ;;  %v10718_v10 = vld [vmem:[#allocation8 + $0x1d0] sm:$0xff]  }
 0x2a9   : > { %v3317_v30 = vadd.f32 %v3316_v29, %v12865_v31  ;;  %v3430_v41 = vadd.f32 %v3429_v19, %v12872_v22 }
 0x2aa   : > { %v3318_v3 = vpop.f32.mrf.mxu0  ;;  %9560 = vmatpush3.bf16.msra.mxu0 %v10709_v2  ;;  %v3431_v56 = vpop.f32.mrf.mxu1  ;;  %9624 = vmatpush3.bf16.msra.mxu1 %v10711_v21  ;;  %v4031_v2 = vmax.f32 %v3315_v42, 0.0  ;;  %v14499_v21 = vld [vmem:[#allocation18_spill] sm:$0xff] }
 0x2ab   : > { %v4062_v11 = vmax.f32 %v3317_v30, 0.0  ;;  %v3319_v48 = vadd.f32 %v3318_v3, %v12881_v63  ;;  %9561 = vmatprep.subr.bf16.mxu0 %v10712_v55  ;;  %v4064_v4 = vmax.f32 %v3430_v41, 0.0  ;;  %v3432_v54 = vadd.f32 %v3431_v56, %v12888_v51  ;;  %9625 = vmatprep.subr.bf16.mxu1 %v10714_v46  ;;  %v14501_v41 = vld [vmem:[#allocation19_spill] sm:$0xff] }
 0x2ac   : > { %v3322_v29 = vpop.f32.mrf.mxu0  ;;  %6818 = vmatmul.mubr.bf16.gmra.mxu0 %v11737_v5  ;;  %v3435_v30 = vpop.f32.mrf.mxu1  ;;  %6915 = vmatmul.mubr.bf16.gmra.mxu1 %v11746_v20  ;;  %v4033_v55 = vmax.f32 %v3428_v52, 0.0  ;;  %v10717_v5 = vld [vmem:[#allocation8 + $0x110] sm:$0xff]  }
 0x2ad   : > { %v12923_v19 = vpack.c.bf16 %v4062_v11, %v4030_v50  ;;  %v4063_v36 = vmax.f32 %v3319_v48, 0.0  ;;  %6825 = vmatprep.mubr.bf16.mxu0 %v14499_v21  ;;  %v12927_v3 = vpack.c.bf16 %v4064_v4, %v4032_v23  ;;  %v4065_v12 = vmax.f32 %v3432_v54, 0.0  ;;  %6922 = vmatprep.mubr.bf16.mxu1 %v14501_v41  ;;  %v10719_v50 = vld [vmem:[#allocation8 + $0x190] sm:$0xff]   ;;  %v10720_v11 = vld [vmem:[#allocation8 + $0x148] sm:$0xff]  }
 0x2ae   : > { %v3324_v56 = vpop.f32.mrf.mxu0  ;;  %9562 = vmatpush3.bf16.msra.mxu0 %v10713_v37  ;;  %v3323_v46 = vadd.f32 %v3322_v29, %v12865_v31  ;;  %v3437_v42 = vpop.f32.mrf.mxu1  ;;  %9626 = vmatpush3.bf16.msra.mxu1 %v10715_v25  ;;  %v3436_v20 = vadd.f32 %v3435_v30, %v12872_v22  ;;  %v10722_v23 = vld [vmem:[#allocation8 + $0x1c8] sm:$0xff]  }
 0x2af   : > { %14498 = vst [vmem:[#allocation142_spill] sm:$0xff] %v12923_v19  ;;  %14500 = vst [vmem:[#allocation18_spill] sm:$0xff] %v12927_v3  ;;  %9563 = vmatprep.subr.bf16.mxu0 %v10716_v47  ;;  %v12931_v48 = vpack.c.bf16 %v4063_v36, %v4031_v2  ;;  %9627 = vmatprep.subr.bf16.mxu1 %v10718_v10  ;;  %v12934_v4 = vpack.c.bf16 %v4065_v12, %v4033_v55  ;;  %v10721_v2 = vld [vmem:[#allocation8 + $0x108] sm:$0xff]   ;;  %v10724_v12 = vld [vmem:[#allocation8 + $0x140] sm:$0xff]  }
 0x2b0   : > { %v3326_v52 = vpop.f32.mrf.mxu0  ;;  %v3325_v54 = vadd.f32 %v3324_v56, %v12881_v63  ;;  %v3439_v21 = vpop.f32.mrf.mxu1  ;;  %v3438_v29 = vadd.f32 %v3437_v42, %v12888_v51  ;;  %v4094_v36 = vmax.f32 %v3323_v46, 0.0  ;;  %v10723_v55 = vld [vmem:[#allocation8 + $0x188] sm:$0xff]   ;;  %v4096_v56 = vmax.f32 %v3436_v20, 0.0  ;;  %v14504_v42 = vld [vmem:[#allocation16_spill] sm:$0xff] }
 0x2b1   : > { %14502 = vst [vmem:[#allocation19_spill] sm:$0xff] %v12931_v48  ;;  %14503 = vst [vmem:[#allocation143_spill] sm:$0xff] %v12934_v4  ;;  %v3327_v37 = vadd.f32 %v3326_v52, %v12865_v31  ;;  %v3440_v25 = vadd.f32 %v3439_v21, %v12872_v22  ;;  %v10726_v21 = vld [vmem:[#allocation8 + $0x1c0] sm:$0xff]  }
 0x2b2   : > { %v3328_v47 = vpop.f32.mrf.mxu0  ;;  %9564 = vmatpush3.bf16.msra.mxu0 %v10717_v5  ;;  %v3441_v10 = vpop.f32.mrf.mxu1  ;;  %9628 = vmatpush3.bf16.msra.mxu1 %v10719_v50  ;;  %v4095_v5 = vmax.f32 %v3325_v54, 0.0  ;;  %v14506_v50 = vld [vmem:[#allocation22_spill] sm:$0xff] }
 0x2b3   : > { %v4126_v41 = vmax.f32 %v3327_v37, 0.0  ;;  %v3329_v30 = vadd.f32 %v3328_v47, %v12881_v63  ;;  %9565 = vmatprep.subr.bf16.mxu0 %v10720_v11  ;;  %v4128_v3 = vmax.f32 %v3440_v25, 0.0  ;;  %v3442_v52 = vadd.f32 %v3441_v10, %v12888_v51  ;;  %9629 = vmatprep.subr.bf16.mxu1 %v10722_v23  ;;  %v14505_v47 = vld [vmem:[#allocation17_spill] sm:$0xff]  ;;  %v14508_v25 = vld [vmem:[#allocation23_spill] sm:$0xff] }
 0x2b4   : > { %v3332_v19 = vpop.f32.mrf.mxu0  ;;  %6826 = vmatmul.mubr.bf16.gmra.mxu0 %v14504_v42  ;;  %v3445_v37 = vpop.f32.mrf.mxu1  ;;  %6923 = vmatmul.mubr.bf16.gmra.mxu1 %v14505_v47  ;;  %v4097_v11 = vmax.f32 %v3438_v29, 0.0  ;;  %v10725_v42 = vld [vmem:[#allocation8 + $0x100] sm:$0xff]  }
 0x2b5   : > { %v12943_v4 = vpack.c.bf16 %v4126_v41, %v4094_v36  ;;  %v4127_v46 = vmax.f32 %v3329_v30, 0.0  ;;  %6833 = vmatprep.mubr.bf16.mxu0 %v14506_v50  ;;  %v12947_v48 = vpack.c.bf16 %v4128_v3, %v4096_v56  ;;  %v4129_v20 = vmax.f32 %v3442_v52, 0.0  ;;  %6930 = vmatprep.mubr.bf16.mxu1 %v14508_v25  ;;  %v10727_v36 = vld [vmem:[#allocation8 + $0x180] sm:$0xff]   ;;  %v10728_v41 = vld [vmem:[#allocation8 + $0x278] sm:$0xff]  }
 0x2b6   : > { %v3334_v10 = vpop.f32.mrf.mxu0  ;;  %9566 = vmatpush3.bf16.msra.mxu0 %v10721_v2  ;;  %v3333_v23 = vadd.f32 %v3332_v19, %v12865_v31  ;;  %v3447_v54 = vpop.f32.mrf.mxu1  ;;  %9630 = vmatpush3.bf16.msra.mxu1 %v10723_v55  ;;  %v3446_v47 = vadd.f32 %v3445_v37, %v12872_v22  ;;  %v10730_v3 = vld [vmem:[#allocation8 + $0x2f8] sm:$0xff]  }
 0x2b7   : > { %14507 = vst [vmem:[#allocation16_spill] sm:$0xff] %v12947_v48  ;;  %9567 = vmatprep.subr.bf16.mxu0 %v10724_v12  ;;  %v12951_v30 = vpack.c.bf16 %v4127_v46, %v4095_v5  ;;  %9631 = vmatprep.subr.bf16.mxu1 %v10726_v21  ;;  %v12954_v56 = vpack.c.bf16 %v4129_v20, %v4097_v11 }
 0x2b8   : > { %v3336_v29 = vpop.f32.mrf.mxu0  ;;  %v3335_v52 = vadd.f32 %v3334_v10, %v12881_v63  ;;  %v3449_v50 = vpop.f32.mrf.mxu1  ;;  %v3448_v19 = vadd.f32 %v3447_v54, %v12888_v51  ;;  %v4158_v5 = vmax.f32 %v3333_v23, 0.0  ;;  %v4160_v21 = vmax.f32 %v3446_v47, 0.0  ;;  %v14511_v23 = vld [vmem:[#allocation21_spill] sm:$0xff]  ;;  %v14514_v47 = vld [vmem:[#allocation27_spill] sm:$0xff] }
 0x2b9   : > { %v3337_v2 = vadd.f32 %v3336_v29, %v12865_v31  ;;  %v3450_v55 = vadd.f32 %v3449_v50, %v12872_v22  ;;  %v14509_v29 = vld [vmem:[#allocation20_spill] sm:$0xff] }
 0x2ba   : > { %v3338_v12 = vpop.f32.mrf.mxu0  ;;  %9568 = vmatpush3.bf16.msra.mxu0 %v10725_v42  ;;  %v3451_v25 = vpop.f32.mrf.mxu1  ;;  %9632 = vmatpush3.bf16.msra.mxu1 %v10727_v36  ;;  %v4159_v54 = vmax.f32 %v3335_v52, 0.0 }
 0x2bb   : > { %v4190_v46 = vmax.f32 %v3337_v2, 0.0  ;;  %v3339_v37 = vadd.f32 %v3338_v12, %v12881_v63  ;;  %9681 = vmatprep.subr.bf16.mxu0 %v10728_v41  ;;  %v4192_v11 = vmax.f32 %v3450_v55, 0.0  ;;  %v3452_v20 = vadd.f32 %v3451_v25, %v12888_v51  ;;  %9745 = vmatprep.subr.bf16.mxu1 %v10730_v3  ;;  %v14512_v2 = vld [vmem:[#allocation26_spill] sm:$0xff] }
 0x2bc   : > { %v3342_v10 = vpop.f32.mrf.mxu0  ;;  %6834 = vmatmul.mubr.bf16.gmra.mxu0 %v14509_v29  ;;  %v3455_v42 = vpop.f32.mrf.mxu1  ;;  %6931 = vmatmul.mubr.bf16.gmra.mxu1 %v14511_v23  ;;  %v4161_v12 = vmax.f32 %v3448_v19, 0.0 }
 0x2bd   : > { %v12963_v48 = vpack.c.bf16 %v4190_v46, %v4158_v5  ;;  %v4191_v50 = vmax.f32 %v3339_v37, 0.0  ;;  %6841 = vmatprep.mubr.bf16.mxu0 %v14512_v2  ;;  %v12967_v36 = vpack.c.bf16 %v4192_v11, %v4160_v21  ;;  %v4193_v41 = vmax.f32 %v3452_v20, 0.0  ;;  %6938 = vmatprep.mubr.bf16.mxu1 %v14514_v47 }
 0x2be   : > { %v3344_v55 = vpop.f32.mrf.mxu0  ;;  %v3343_v25 = vadd.f32 %v3342_v10, %v12865_v31  ;;  %v3457_v29 = vpop.f32.mrf.mxu1  ;;  %v3456_v52 = vadd.f32 %v3455_v42, %v12872_v22 }
 0x2bf   : > { %14510 = vst [vmem:[#allocation17_spill] sm:$0xff] %v12963_v48  ;;  %14513 = vst [vmem:[#allocation22_spill] sm:$0xff] %v12967_v36  ;;  %v12971_v3 = vpack.c.bf16 %v4191_v50, %v4159_v54  ;;  %v12974_v46 = vpack.c.bf16 %v4193_v41, %v4161_v12  ;;  %v3345_v37 = vadd.f32 %v3344_v55, %v12881_v63  ;;  %v14517_v36 = vld [vmem:[#allocation24_spill] sm:$0xff] }
 0x2c0   : > { %v3346_v5 = vpop.f32.mrf.mxu0  ;;  %v3459_v21 = vpop.f32.mrf.mxu1  ;;  %v3458_v11 = vadd.f32 %v3457_v29, %v12888_v51  ;;  %v4222_v2 = vmax.f32 %v3343_v25, 0.0  ;;  %v4224_v47 = vmax.f32 %v3456_v52, 0.0  ;;  %v14522_v52 = vld [vmem:[#allocation31_spill] sm:$0xff] }
 0x2c1   : > { %14515 = vst [vmem:[#allocation23_spill] sm:$0xff] %v12971_v3  ;;  %14516 = vst [vmem:[#allocation20_spill] sm:$0xff] %v12974_v46  ;;  %v3347_v19 = vadd.f32 %v3346_v5, %v12865_v31  ;;  %v3460_v20 = vadd.f32 %v3459_v21, %v12872_v22  ;;  %v4223_v55 = vmax.f32 %v3345_v37, 0.0  ;;  %v14519_v46 = vld [vmem:[#allocation25_spill] sm:$0xff]  ;;  %v14520_v21 = vld [vmem:[#allocation30_spill] sm:$0xff] }
 0x2c2   : > { %v3348_v23 = vpop.f32.mrf.mxu0  ;;  %v3461_v50 = vpop.f32.mrf.mxu1  ;;  %v4225_v25 = vmax.f32 %v3458_v11, 0.0 }
 0x2c3   : > { %v4254_v10 = vmax.f32 %v3347_v19, 0.0  ;;  %v3349_v54 = vadd.f32 %v3348_v23, %v12881_v63  ;;  %v4256_v42 = vmax.f32 %v3460_v20, 0.0  ;;  %v3462_v12 = vadd.f32 %v3461_v50, %v12888_v51 }
 0x2c4   : > { %v3352_v41 = vpop.f32.mrf.mxu0  ;;  %6842 = vmatmul.mubr.bf16.gmra.mxu0 %v14517_v36  ;;  %v3465_v29 = vpop.f32.mrf.mxu1  ;;  %6939 = vmatmul.mubr.bf16.gmra.mxu1 %v14519_v46 }
 0x2c5   : > { %v12983_v5 = vpack.c.bf16 %v4254_v10, %v4222_v2  ;;  %v4255_v48 = vmax.f32 %v3349_v54, 0.0  ;;  %6849 = vmatprep.mubr.bf16.mxu0 %v14520_v21  ;;  %v12987_v19 = vpack.c.bf16 %v4256_v42, %v4224_v47  ;;  %v4257_v23 = vmax.f32 %v3462_v12, 0.0  ;;  %6946 = vmatprep.mubr.bf16.mxu1 %v14522_v52 }
 0x2c6   : > { %v3354_v20 = vpop.f32.mrf.mxu0  ;;  %v3353_v50 = vadd.f32 %v3352_v41, %v12865_v31  ;;  %v3467_v3 = vpop.f32.mrf.mxu1  ;;  %v3466_v37 = vadd.f32 %v3465_v29, %v12872_v22 }
 0x2c7   : > { %14518 = vst [vmem:[#allocation21_spill] sm:$0xff] %v12983_v5  ;;  %14521 = vst [vmem:[#allocation26_spill] sm:$0xff] %v12987_v19  ;;  %v12991_v36 = vpack.c.bf16 %v4255_v48, %v4223_v55  ;;  %v12994_v10 = vpack.c.bf16 %v4257_v23, %v4225_v25  ;;  %v3355_v46 = vadd.f32 %v3354_v20, %v12881_v63  ;;  %v14525_v19 = vld [vmem:[#allocation28_spill] sm:$0xff] }
 0x2c8   : > { %v3356_v2 = vpop.f32.mrf.mxu0  ;;  %v3469_v54 = vpop.f32.mrf.mxu1  ;;  %v3468_v47 = vadd.f32 %v3467_v3, %v12888_v51  ;;  %v4286_v21 = vmax.f32 %v3353_v50, 0.0  ;;  %v4288_v52 = vmax.f32 %v3466_v37, 0.0  ;;  %v14530_v37 = vld [vmem:[#allocation35_spill] sm:$0xff] }
 0x2c9   : > { %14523 = vst [vmem:[#allocation27_spill] sm:$0xff] %v12991_v36  ;;  %14524 = vst [vmem:[#allocation24_spill] sm:$0xff] %v12994_v10  ;;  %v3357_v11 = vadd.f32 %v3356_v2, %v12865_v31  ;;  %v3470_v42 = vadd.f32 %v3469_v54, %v12872_v22  ;;  %v4287_v20 = vmax.f32 %v3355_v46, 0.0  ;;  %v14527_v10 = vld [vmem:[#allocation29_spill] sm:$0xff]  ;;  %v14528_v54 = vld [vmem:[#allocation34_spill] sm:$0xff] }
 0x2ca   : > { %v3358_v12 = vpop.f32.mrf.mxu0  ;;  %v3471_v55 = vpop.f32.mrf.mxu1  ;;  %v4289_v50 = vmax.f32 %v3468_v47, 0.0 }
 0x2cb   : > { %v4318_v41 = vmax.f32 %v3357_v11, 0.0  ;;  %v3359_v48 = vadd.f32 %v3358_v12, %v12881_v63  ;;  %v4320_v29 = vmax.f32 %v3470_v42, 0.0  ;;  %v3472_v25 = vadd.f32 %v3471_v55, %v12888_v51 }
 0x2cc   : > { %v3362_v23 = vpop.f32.mrf.mxu0  ;;  %6850 = vmatmul.mubr.bf16.gmra.mxu0 %v14525_v19  ;;  %v3475_v3 = vpop.f32.mrf.mxu1  ;;  %6947 = vmatmul.mubr.bf16.gmra.mxu1 %v14527_v10 }
 0x2cd   : > { %v13003_v2 = vpack.c.bf16 %v4318_v41, %v4286_v21  ;;  %v4319_v5 = vmax.f32 %v3359_v48, 0.0  ;;  %6857 = vmatprep.mubr.bf16.mxu0 %v14528_v54  ;;  %v13007_v11 = vpack.c.bf16 %v4320_v29, %v4288_v52  ;;  %v4321_v12 = vmax.f32 %v3472_v25, 0.0  ;;  %6954 = vmatprep.mubr.bf16.mxu1 %v14530_v37 }
 0x2ce   : > { %v3364_v42 = vpop.f32.mrf.mxu0  ;;  %v3363_v55 = vadd.f32 %v3362_v23, %v12865_v31  ;;  %v3477_v36 = vpop.f32.mrf.mxu1  ;;  %v3476_v46 = vadd.f32 %v3475_v3, %v12872_v22 }
 0x2cf   : > { %14526 = vst [vmem:[#allocation25_spill] sm:$0xff] %v13003_v2  ;;  %14529 = vst [vmem:[#allocation30_spill] sm:$0xff] %v13007_v11  ;;  %v13011_v19 = vpack.c.bf16 %v4319_v5, %v4287_v20  ;;  %v13014_v41 = vpack.c.bf16 %v4321_v12, %v4289_v50  ;;  %v3365_v10 = vadd.f32 %v3364_v42, %v12881_v63  ;;  %v14533_v11 = vld [vmem:[#allocation32_spill] sm:$0xff] }
 0x2d0   : > { %v3366_v21 = vpop.f32.mrf.mxu0  ;;  %v3479_v48 = vpop.f32.mrf.mxu1  ;;  %v3478_v52 = vadd.f32 %v3477_v36, %v12888_v51  ;;  %v4350_v54 = vmax.f32 %v3363_v55, 0.0  ;;  %v4352_v37 = vmax.f32 %v3476_v46, 0.0  ;;  %v14538_v46 = vld [vmem:[#allocation39_spill] sm:$0xff] }
 0x2d1   : > { %14531 = vst [vmem:[#allocation31_spill] sm:$0xff] %v13011_v19  ;;  %14532 = vst [vmem:[#allocation28_spill] sm:$0xff] %v13014_v41  ;;  %v3367_v47 = vadd.f32 %v3366_v21, %v12865_v31  ;;  %v3480_v29 = vadd.f32 %v3479_v48, %v12872_v22  ;;  %v4351_v42 = vmax.f32 %v3365_v10, 0.0  ;;  %v14535_v41 = vld [vmem:[#allocation33_spill] sm:$0xff]  ;;  %v14536_v48 = vld [vmem:[#allocation38_spill] sm:$0xff] }
 0x2d2   : > { %v3368_v25 = vpop.f32.mrf.mxu0  ;;  %v3481_v20 = vpop.f32.mrf.mxu1  ;;  %v4353_v55 = vmax.f32 %v3478_v52, 0.0 }
 0x2d3   : > { %v4382_v23 = vmax.f32 %v3367_v47, 0.0  ;;  %v3369_v5 = vadd.f32 %v3368_v25, %v12881_v63  ;;  %v4384_v3 = vmax.f32 %v3480_v29, 0.0  ;;  %v3482_v50 = vadd.f32 %v3481_v20, %v12888_v51 }
 0x2d4   : > { %v3372_v12 = vpop.f32.mrf.mxu0  ;;  %6858 = vmatmul.mubr.bf16.gmra.mxu0 %v14533_v11  ;;  %v3485_v36 = vpop.f32.mrf.mxu1  ;;  %6955 = vmatmul.mubr.bf16.gmra.mxu1 %v14535_v41 }
 0x2d5   : > { %v13023_v21 = vpack.c.bf16 %v4382_v23, %v4350_v54  ;;  %v4383_v2 = vmax.f32 %v3369_v5, 0.0  ;;  %6995 = vmatprep.mubr.bf16.mxu0 %v14536_v48  ;;  %v13027_v47 = vpack.c.bf16 %v4384_v3, %v4352_v37  ;;  %v4385_v25 = vmax.f32 %v3482_v50, 0.0  ;;  %7092 = vmatprep.mubr.bf16.mxu1 %v14538_v46  ;;  %v13034_v23 = vld [vmem:[#allocation7 + $0x18] sm:$0xff] }
 0x2d6   : > { %v3374_v29 = vpop.f32.mrf.mxu0  ;;  %v3373_v20 = vadd.f32 %v3372_v12, %v12865_v31  ;;  %v3487_v19 = vpop.f32.mrf.mxu1  ;;  %v3486_v10 = vadd.f32 %v3485_v36, %v12872_v22  ;;  %v10729_v48 = vld [vmem:[#allocation8 + $0x238] sm:$0xff]  }
 0x2d7   : > { %14534 = vst [vmem:[#allocation29_spill] sm:$0xff] %v13023_v21  ;;  %14537 = vst [vmem:[#allocation34_spill] sm:$0xff] %v13027_v47  ;;  %v13031_v11 = vpack.c.bf16 %v4383_v2, %v4351_v42  ;;  %v13036_v41 = vpack.c.bf16 %v4385_v25, %v4353_v55  ;;  %v3375_v52 = vadd.f32 %v3374_v29, %v12881_v63  ;;  %v10731_v25 = vld [vmem:[#allocation8 + $0x2b8] sm:$0xff]   ;;  %v10732_v29 = vld [vmem:[#allocation8 + $0x270] sm:$0xff]  }
 0x2d8   : > { %v3376_v54 = vpop.f32.mrf.mxu0  ;;  %v3489_v37 = vpop.f32.mrf.mxu1  ;;  %v3488_v3 = vadd.f32 %v3487_v19, %v12888_v51  ;;  %v4414_v2 = vmax.f32 %v3373_v20, 0.0  ;;  %v13045_v55 = vrot.slane %v13034_v23, %v11563_v57  ;;  %v4416_v47 = vmax.f32 %v3486_v10, 0.0  ;;  %v14541_v20 = vld [vmem:[#allocation36_spill] sm:$0xff]  ;;  %v14543_v21 = vld [vmem:[#allocation37_spill] sm:$0xff] }
 0x2d9   : > { %14539 = vst [vmem:[#allocation35_spill] sm:$0xff] %v13031_v11  ;;  %14540 = vst [vmem:[#allocation32_spill] sm:$0xff] %v13036_v41  ;;  %v3377_v5 = vadd.f32 %v3376_v54, %v12865_v31  ;;  %v3490_v50 = vadd.f32 %v3489_v37, %v12872_v22  ;;  %v13050_v22 = vrot.slane %v13034_v23, %v11566_v58  ;;  %v14544_v41 = vld [vmem:[#allocation42_spill] sm:$0xff] }
 0x2da   : > { %v3378_v12 = vpop.f32.mrf.mxu0  ;;  %v3491_v46 = vpop.f32.mrf.mxu1  ;;  %v4417_v10 = vmax.f32 %v3488_v3, 0.0 }
 0x2db   : > { %v4446_v42 = vmax.f32 %v3377_v5, 0.0  ;;  %v3379_v36 = vadd.f32 %v3378_v12, %v12881_v63  ;;  %v4448_v31 = vmax.f32 %v3490_v50, 0.0  ;;  %v3492_v54 = vadd.f32 %v3491_v46, %v12888_v51  ;;  %v10734_v5 = vld [vmem:[#allocation8 + $0x2f0] sm:$0xff]   ;;  %v14546_v46 = vld [vmem:[#allocation43_spill] sm:$0xff] }
 0x2dc   : > { %v3528_v19 = vpop.f32.mrf.mxu0  ;;  %6996 = vmatmul.mubr.bf16.vlgmr.msra.gmra.mxu0 %v14541_v20  ;;  %v4415_v63 = vmax.f32 %v3375_v52, 0.0  ;;  %v3641_v57 = vpop.f32.mrf.mxu1  ;;  %7093 = vmatmul.mubr.bf16.vlgmr.msra.gmra.mxu1 %v14543_v21  ;;  %v13059_v51 = vrot.slane %v13034_v23, %v11569_v59  ;;  %v10735_v59 = vld [vmem:[#allocation8 + $0x2b0] sm:$0xff]  }
 0x2dd   : > { %v13053_v37 = vpack.c.bf16 %v4446_v42, %v4414_v2  ;;  %v4447_v12 = vmax.f32 %v3379_v36, 0.0  ;;  %7003 = vmatprep.mubr.bf16.mxu0 %v14544_v41  ;;  %v13061_v50 = vpack.c.bf16 %v4448_v31, %v4416_v47  ;;  %v4449_v58 = vmax.f32 %v3492_v54, 0.0  ;;  %7100 = vmatprep.mubr.bf16.mxu1 %v14546_v46  ;;  %v10733_v42 = vld [vmem:[#allocation8 + $0x230] sm:$0xff]   ;;  %v10736_v36 = vld [vmem:[#allocation8 + $0x268] sm:$0xff]  }
 0x2de   : > { %9682 = vmatpush3.bf16.msra.mxu0 %v10729_v48  ;;  %v3530_v52 = vpop.f32.mrf.mxu0  ;;  %v13066_v2 = vrot.slane %v13034_v23, %v11572_v62  ;;  %v3529_v21 = vadd.f32 %v3528_v19, %v13045_v55  ;;  %v3643_v41 = vpop.f32.mrf.mxu1  ;;  %9746 = vmatpush3.bf16.msra.mxu1 %v10731_v25  ;;  %v3642_v47 = vadd.f32 %v3641_v57, %v13050_v22  ;;  %v10738_v48 = vld [vmem:[#allocation8 + $0x2e8] sm:$0xff]  }
 0x2df   : > { %14542 = vst [vmem:[#allocation33_spill] sm:$0xff] %v13053_v37  ;;  %14545 = vst [vmem:[#allocation38_spill] sm:$0xff] %v13061_v50  ;;  %9683 = vmatprep.subr.bf16.mxu0 %v10732_v29  ;;  %v13069_v3 = vpack.c.bf16 %v4447_v12, %v4415_v63  ;;  %9747 = vmatprep.subr.bf16.mxu1 %v10734_v5  ;;  %v13072_v54 = vpack.c.bf16 %v4449_v58, %v4417_v10  ;;  %v10737_v63 = vld [vmem:[#allocation8 + $0x228] sm:$0xff]   ;;  %v10740_v58 = vld [vmem:[#allocation8 + $0x260] sm:$0xff]  }
 0x2e0   : > { %v3532_v31 = vpop.f32.mrf.mxu0  ;;  %v3531_v62 = vadd.f32 %v3530_v52, %v13059_v51  ;;  %v3645_v46 = vpop.f32.mrf.mxu1  ;;  %v3644_v19 = vadd.f32 %v3643_v41, %v13066_v2  ;;  %v3970_v12 = vmax.f32 %v3529_v21, 0.0  ;;  %v10739_v10 = vld [vmem:[#allocation8 + $0x2a8] sm:$0xff]   ;;  %v3972_v52 = vmax.f32 %v3642_v47, 0.0  ;;  %v14549_v41 = vld [vmem:[#allocation40_spill] sm:$0xff] }
 0x2e1   : > { %14547 = vst [vmem:[#allocation39_spill] sm:$0xff] %v13069_v3  ;;  %14548 = vst [vmem:[#allocation36_spill] sm:$0xff] %v13072_v54  ;;  %v3533_v20 = vadd.f32 %v3532_v31, %v13045_v55  ;;  %v3646_v25 = vadd.f32 %v3645_v46, %v13050_v22  ;;  %v10742_v46 = vld [vmem:[#allocation8 + $0x2e0] sm:$0xff]  }
 0x2e2   : > { %v3534_v29 = vpop.f32.mrf.mxu0  ;;  %9684 = vmatpush3.bf16.msra.mxu0 %v10733_v42  ;;  %v3647_v5 = vpop.f32.mrf.mxu1  ;;  %9748 = vmatpush3.bf16.msra.mxu1 %v10735_v59  ;;  %v3971_v42 = vmax.f32 %v3531_v62, 0.0  ;;  %v14552_v59 = vld [vmem:[#allocation46_spill] sm:$0xff] }
 0x2e3   : > { %v4002_v50 = vmax.f32 %v3533_v20, 0.0  ;;  %v3535_v57 = vadd.f32 %v3534_v29, %v13059_v51  ;;  %9685 = vmatprep.subr.bf16.mxu0 %v10736_v36  ;;  %v4004_v37 = vmax.f32 %v3646_v25, 0.0  ;;  %v3648_v31 = vadd.f32 %v3647_v5, %v13066_v2  ;;  %9749 = vmatprep.subr.bf16.mxu1 %v10738_v48  ;;  %v14551_v29 = vld [vmem:[#allocation41_spill] sm:$0xff]  ;;  %v14554_v25 = vld [vmem:[#allocation47_spill] sm:$0xff] }
 0x2e4   : > { %v3538_v54 = vpop.f32.mrf.mxu0  ;;  %7004 = vmatmul.mubr.bf16.gmra.mxu0 %v14549_v41  ;;  %v3651_v20 = vpop.f32.mrf.mxu1  ;;  %7101 = vmatmul.mubr.bf16.gmra.mxu1 %v14551_v29  ;;  %v3973_v36 = vmax.f32 %v3644_v19, 0.0  ;;  %v10741_v41 = vld [vmem:[#allocation8 + $0x220] sm:$0xff]  }
 0x2e5   : > { %v13081_v3 = vpack.c.bf16 %v4002_v50, %v3970_v12  ;;  %v4003_v21 = vmax.f32 %v3535_v57, 0.0  ;;  %7011 = vmatprep.mubr.bf16.mxu0 %v14552_v59  ;;  %v13085_v11 = vpack.c.bf16 %v4004_v37, %v3972_v52  ;;  %v4005_v47 = vmax.f32 %v3648_v31, 0.0  ;;  %7108 = vmatprep.mubr.bf16.mxu1 %v14554_v25  ;;  %v10743_v50 = vld [vmem:[#allocation8 + $0x2a0] sm:$0xff]   ;;  %v10744_v12 = vld [vmem:[#allocation8 + $0x258] sm:$0xff]  }
 0x2e6   : > { %v3540_v5 = vpop.f32.mrf.mxu0  ;;  %9686 = vmatpush3.bf16.msra.mxu0 %v10737_v63  ;;  %v3539_v48 = vadd.f32 %v3538_v54, %v13045_v55  ;;  %v3653_v62 = vpop.f32.mrf.mxu1  ;;  %9750 = vmatpush3.bf16.msra.mxu1 %v10739_v10  ;;  %v3652_v29 = vadd.f32 %v3651_v20, %v13050_v22  ;;  %v10746_v37 = vld [vmem:[#allocation8 + $0x2d8] sm:$0xff]  }
 0x2e7   : > { %14550 = vst [vmem:[#allocation37_spill] sm:$0xff] %v13081_v3  ;;  %14553 = vst [vmem:[#allocation42_spill] sm:$0xff] %v13085_v11  ;;  %9687 = vmatprep.subr.bf16.mxu0 %v10740_v58  ;;  %v13089_v57 = vpack.c.bf16 %v4003_v21, %v3971_v42  ;;  %9751 = vmatprep.subr.bf16.mxu1 %v10742_v46  ;;  %v13092_v52 = vpack.c.bf16 %v4005_v47, %v3973_v36  ;;  %v10745_v42 = vld [vmem:[#allocation8 + $0x218] sm:$0xff]   ;;  %v10748_v47 = vld [vmem:[#allocation8 + $0x250] sm:$0xff]  }
 0x2e8   : > { %v3542_v19 = vpop.f32.mrf.mxu0  ;;  %v3541_v31 = vadd.f32 %v3540_v5, %v13059_v51  ;;  %v3655_v59 = vpop.f32.mrf.mxu1  ;;  %v3654_v54 = vadd.f32 %v3653_v62, %v13066_v2  ;;  %v4034_v21 = vmax.f32 %v3539_v48, 0.0  ;;  %v10747_v36 = vld [vmem:[#allocation8 + $0x298] sm:$0xff]   ;;  %v4036_v5 = vmax.f32 %v3652_v29, 0.0  ;;  %v14557_v62 = vld [vmem:[#allocation44_spill] sm:$0xff] }
 0x2e9   : > { %14555 = vst [vmem:[#allocation43_spill] sm:$0xff] %v13089_v57  ;;  %14556 = vst [vmem:[#allocation40_spill] sm:$0xff] %v13092_v52  ;;  %v3543_v63 = vadd.f32 %v3542_v19, %v13045_v55  ;;  %v3656_v10 = vadd.f32 %v3655_v59, %v13050_v22  ;;  %v10750_v59 = vld [vmem:[#allocation8 + $0x2d0] sm:$0xff]  }
 0x2ea   : > { %v3544_v58 = vpop.f32.mrf.mxu0  ;;  %9688 = vmatpush3.bf16.msra.mxu0 %v10741_v41  ;;  %v3657_v46 = vpop.f32.mrf.mxu1  ;;  %9752 = vmatpush3.bf16.msra.mxu1 %v10743_v50  ;;  %v4035_v41 = vmax.f32 %v3541_v31, 0.0  ;;  %v14560_v50 = vld [vmem:[#allocation50_spill] sm:$0xff] }
 0x2eb   : > { %v4066_v25 = vmax.f32 %v3543_v63, 0.0  ;;  %v3545_v20 = vadd.f32 %v3544_v58, %v13059_v51  ;;  %9689 = vmatprep.subr.bf16.mxu0 %v10744_v12  ;;  %v4068_v11 = vmax.f32 %v3656_v10, 0.0  ;;  %v3658_v19 = vadd.f32 %v3657_v46, %v13066_v2  ;;  %9753 = vmatprep.subr.bf16.mxu1 %v10746_v37  ;;  %v14559_v58 = vld [vmem:[#allocation45_spill] sm:$0xff]  ;;  %v14562_v10 = vld [vmem:[#allocation51_spill] sm:$0xff] }
 0x2ec   : > { %v3548_v3 = vpop.f32.mrf.mxu0  ;;  %7012 = vmatmul.mubr.bf16.gmra.mxu0 %v14557_v62  ;;  %v3661_v63 = vpop.f32.mrf.mxu1  ;;  %7109 = vmatmul.mubr.bf16.gmra.mxu1 %v14559_v58  ;;  %v4037_v12 = vmax.f32 %v3654_v54, 0.0  ;;  %v10749_v62 = vld [vmem:[#allocation8 + $0x210] sm:$0xff]  }
 0x2ed   : > { %v13101_v52 = vpack.c.bf16 %v4066_v25, %v4034_v21  ;;  %v4067_v48 = vmax.f32 %v3545_v20, 0.0  ;;  %7019 = vmatprep.mubr.bf16.mxu0 %v14560_v50  ;;  %v13105_v57 = vpack.c.bf16 %v4068_v11, %v4036_v5  ;;  %v4069_v29 = vmax.f32 %v3658_v19, 0.0  ;;  %7116 = vmatprep.mubr.bf16.mxu1 %v14562_v10  ;;  %v10751_v21 = vld [vmem:[#allocation8 + $0x290] sm:$0xff]   ;;  %v10752_v25 = vld [vmem:[#allocation8 + $0x248] sm:$0xff]  }
 0x2ee   : > { %v3550_v46 = vpop.f32.mrf.mxu0  ;;  %9690 = vmatpush3.bf16.msra.mxu0 %v10745_v42  ;;  %v3549_v37 = vadd.f32 %v3548_v3, %v13045_v55  ;;  %v3663_v31 = vpop.f32.mrf.mxu1  ;;  %9754 = vmatpush3.bf16.msra.mxu1 %v10747_v36  ;;  %v3662_v58 = vadd.f32 %v3661_v63, %v13050_v22  ;;  %v10754_v11 = vld [vmem:[#allocation8 + $0x2c8] sm:$0xff]  }
 0x2ef   : > { %14558 = vst [vmem:[#allocation41_spill] sm:$0xff] %v13101_v52  ;;  %14561 = vst [vmem:[#allocation46_spill] sm:$0xff] %v13105_v57  ;;  %9691 = vmatprep.subr.bf16.mxu0 %v10748_v47  ;;  %v13109_v20 = vpack.c.bf16 %v4067_v48, %v4035_v41  ;;  %9755 = vmatprep.subr.bf16.mxu1 %v10750_v59  ;;  %v13112_v5 = vpack.c.bf16 %v4069_v29, %v4037_v12  ;;  %v10753_v41 = vld [vmem:[#allocation8 + $0x208] sm:$0xff]   ;;  %v10756_v29 = vld [vmem:[#allocation8 + $0x240] sm:$0xff]  }
 0x2f0   : > { %v3552_v54 = vpop.f32.mrf.mxu0  ;;  %v3551_v19 = vadd.f32 %v3550_v46, %v13059_v51  ;;  %v3665_v50 = vpop.f32.mrf.mxu1  ;;  %v3664_v3 = vadd.f32 %v3663_v31, %v13066_v2  ;;  %v4098_v48 = vmax.f32 %v3549_v37, 0.0  ;;  %v10755_v12 = vld [vmem:[#allocation8 + $0x288] sm:$0xff]   ;;  %v4100_v46 = vmax.f32 %v3662_v58, 0.0  ;;  %v14565_v31 = vld [vmem:[#allocation48_spill] sm:$0xff] }
 0x2f1   : > { %14563 = vst [vmem:[#allocation47_spill] sm:$0xff] %v13109_v20  ;;  %14564 = vst [vmem:[#allocation44_spill] sm:$0xff] %v13112_v5  ;;  %v3553_v42 = vadd.f32 %v3552_v54, %v13045_v55  ;;  %v3666_v36 = vadd.f32 %v3665_v50, %v13050_v22  ;;  %v10758_v50 = vld [vmem:[#allocation8 + $0x2c0] sm:$0xff]  }
 0x2f2   : > { %v3554_v47 = vpop.f32.mrf.mxu0  ;;  %9692 = vmatpush3.bf16.msra.mxu0 %v10749_v62  ;;  %v3667_v59 = vpop.f32.mrf.mxu1  ;;  %9756 = vmatpush3.bf16.msra.mxu1 %v10751_v21  ;;  %v4099_v62 = vmax.f32 %v3551_v19, 0.0  ;;  %v14567_v21 = vld [vmem:[#allocation54_spill] sm:$0xff] }
 0x2f3   : > { %v4130_v10 = vmax.f32 %v3553_v42, 0.0  ;;  %v3555_v63 = vadd.f32 %v3554_v47, %v13059_v51  ;;  %9693 = vmatprep.subr.bf16.mxu0 %v10752_v25  ;;  %v4132_v57 = vmax.f32 %v3666_v36, 0.0  ;;  %v3668_v54 = vadd.f32 %v3667_v59, %v13066_v2  ;;  %9757 = vmatprep.subr.bf16.mxu1 %v10754_v11  ;;  %v14566_v47 = vld [vmem:[#allocation49_spill] sm:$0xff]  ;;  %v14569_v36 = vld [vmem:[#allocation55_spill] sm:$0xff] }
 0x2f4   : > { %v3558_v52 = vpop.f32.mrf.mxu0  ;;  %7020 = vmatmul.mubr.bf16.gmra.mxu0 %v14565_v31  ;;  %v3671_v42 = vpop.f32.mrf.mxu1  ;;  %7117 = vmatmul.mubr.bf16.gmra.mxu1 %v14566_v47  ;;  %v4101_v25 = vmax.f32 %v3664_v3, 0.0  ;;  %v10757_v31 = vld [vmem:[#allocation8 + $0x200] sm:$0xff]  }
 0x2f5   : > { %v13121_v5 = vpack.c.bf16 %v4130_v10, %v4098_v48  ;;  %v4131_v37 = vmax.f32 %v3555_v63, 0.0  ;;  %7027 = vmatprep.mubr.bf16.mxu0 %v14567_v21  ;;  %v13125_v20 = vpack.c.bf16 %v4132_v57, %v4100_v46  ;;  %v4133_v58 = vmax.f32 %v3668_v54, 0.0  ;;  %7124 = vmatprep.mubr.bf16.mxu1 %v14569_v36  ;;  %v10759_v48 = vld [vmem:[#allocation8 + $0x280] sm:$0xff]   ;;  %v10760_v10 = vld [vmem:[#allocation8 + $0x378] sm:$0xff]  }
 0x2f6   : > { %v3560_v59 = vpop.f32.mrf.mxu0  ;;  %9694 = vmatpush3.bf16.msra.mxu0 %v10753_v41  ;;  %v3559_v11 = vadd.f32 %v3558_v52, %v13045_v55  ;;  %v3673_v19 = vpop.f32.mrf.mxu1  ;;  %9758 = vmatpush3.bf16.msra.mxu1 %v10755_v12  ;;  %v3672_v47 = vadd.f32 %v3671_v42, %v13050_v22  ;;  %v10762_v57 = vld [vmem:[#allocation8 + $0x3f8] sm:$0xff]  }
 0x2f7   : > { %14568 = vst [vmem:[#allocation45_spill] sm:$0xff] %v13125_v20  ;;  %9695 = vmatprep.subr.bf16.mxu0 %v10756_v29  ;;  %v13129_v63 = vpack.c.bf16 %v4131_v37, %v4099_v62  ;;  %9759 = vmatprep.subr.bf16.mxu1 %v10758_v50  ;;  %v13132_v46 = vpack.c.bf16 %v4133_v58, %v4101_v25 }
 0x2f8   : > { %v3562_v3 = vpop.f32.mrf.mxu0  ;;  %v3561_v54 = vadd.f32 %v3560_v59, %v13059_v51  ;;  %v3675_v21 = vpop.f32.mrf.mxu1  ;;  %v3674_v52 = vadd.f32 %v3673_v19, %v13066_v2  ;;  %v4162_v62 = vmax.f32 %v3559_v11, 0.0  ;;  %v4164_v50 = vmax.f32 %v3672_v47, 0.0  ;;  %v14572_v11 = vld [vmem:[#allocation53_spill] sm:$0xff]  ;;  %v14575_v47 = vld [vmem:[#allocation59_spill] sm:$0xff] }
 0x2f9   : > { %v3563_v41 = vadd.f32 %v3562_v3, %v13045_v55  ;;  %v3676_v12 = vadd.f32 %v3675_v21, %v13050_v22  ;;  %v14570_v3 = vld [vmem:[#allocation52_spill] sm:$0xff] }
 0x2fa   : > { %v3564_v29 = vpop.f32.mrf.mxu0  ;;  %9696 = vmatpush3.bf16.msra.mxu0 %v10757_v31  ;;  %v3677_v36 = vpop.f32.mrf.mxu1  ;;  %9760 = vmatpush3.bf16.msra.mxu1 %v10759_v48  ;;  %v4163_v19 = vmax.f32 %v3561_v54, 0.0 }
 0x2fb   : > { %v4194_v37 = vmax.f32 %v3563_v41, 0.0  ;;  %v3565_v42 = vadd.f32 %v3564_v29, %v13059_v51  ;;  %9809 = vmatprep.subr.bf16.mxu0 %v10760_v10  ;;  %v4196_v25 = vmax.f32 %v3676_v12, 0.0  ;;  %v3678_v58 = vadd.f32 %v3677_v36, %v13066_v2  ;;  %9873 = vmatprep.subr.bf16.mxu1 %v10762_v57  ;;  %v14573_v41 = vld [vmem:[#allocation58_spill] sm:$0xff] }
 0x2fc   : > { %v3568_v59 = vpop.f32.mrf.mxu0  ;;  %7028 = vmatmul.mubr.bf16.gmra.mxu0 %v14570_v3  ;;  %v3681_v31 = vpop.f32.mrf.mxu1  ;;  %7125 = vmatmul.mubr.bf16.gmra.mxu1 %v14572_v11  ;;  %v4165_v29 = vmax.f32 %v3674_v52, 0.0 }
 0x2fd   : > { %v13141_v20 = vpack.c.bf16 %v4194_v37, %v4162_v62  ;;  %v4195_v21 = vmax.f32 %v3565_v42, 0.0  ;;  %7035 = vmatprep.mubr.bf16.mxu0 %v14573_v41  ;;  %v13145_v48 = vpack.c.bf16 %v4196_v25, %v4164_v50  ;;  %v4197_v10 = vmax.f32 %v3678_v58, 0.0  ;;  %7132 = vmatprep.mubr.bf16.mxu1 %v14575_v47 }
 0x2fe   : > { %v3570_v12 = vpop.f32.mrf.mxu0  ;;  %v3569_v36 = vadd.f32 %v3568_v59, %v13045_v55  ;;  %v3683_v3 = vpop.f32.mrf.mxu1  ;;  %v3682_v54 = vadd.f32 %v3681_v31, %v13050_v22 }
 0x2ff   : > { %14571 = vst [vmem:[#allocation50_spill] sm:$0xff] %v13141_v20  ;;  %14574 = vst [vmem:[#allocation51_spill] sm:$0xff] %v13145_v48  ;;  %v13149_v57 = vpack.c.bf16 %v4195_v21, %v4163_v19  ;;  %v13152_v37 = vpack.c.bf16 %v4197_v10, %v4165_v29  ;;  %v3571_v42 = vadd.f32 %v3570_v12, %v13059_v51  ;;  %v14578_v48 = vld [vmem:[#allocation56_spill] sm:$0xff] }
 0x300   : > { %v3572_v62 = vpop.f32.mrf.mxu0  ;;  %v3685_v50 = vpop.f32.mrf.mxu1  ;;  %v3684_v25 = vadd.f32 %v3683_v3, %v13066_v2  ;;  %v4226_v41 = vmax.f32 %v3569_v36, 0.0  ;;  %v4228_v47 = vmax.f32 %v3682_v54, 0.0  ;;  %v14583_v54 = vld [vmem:[#allocation63_spill] sm:$0xff] }
 0x301   : > { %14576 = vst [vmem:[#allocation48_spill] sm:$0xff] %v13149_v57  ;;  %14577 = vst [vmem:[#allocation49_spill] sm:$0xff] %v13152_v37  ;;  %v3573_v52 = vadd.f32 %v3572_v62, %v13045_v55  ;;  %v3686_v58 = vadd.f32 %v3685_v50, %v13050_v22  ;;  %v4227_v12 = vmax.f32 %v3571_v42, 0.0  ;;  %v14580_v37 = vld [vmem:[#allocation57_spill] sm:$0xff]  ;;  %v14581_v50 = vld [vmem:[#allocation62_spill] sm:$0xff] }
 0x302   : > { %v3574_v11 = vpop.f32.mrf.mxu0  ;;  %v3687_v21 = vpop.f32.mrf.mxu1  ;;  %v4229_v36 = vmax.f32 %v3684_v25, 0.0 }
 0x303   : > { %v4258_v59 = vmax.f32 %v3573_v52, 0.0  ;;  %v3575_v19 = vadd.f32 %v3574_v11, %v13059_v51  ;;  %v4260_v31 = vmax.f32 %v3686_v58, 0.0  ;;  %v3688_v29 = vadd.f32 %v3687_v21, %v13066_v2 }
 0x304   : > { %v3578_v10 = vpop.f32.mrf.mxu0  ;;  %7036 = vmatmul.mubr.bf16.gmra.mxu0 %v14578_v48  ;;  %v3691_v3 = vpop.f32.mrf.mxu1  ;;  %7133 = vmatmul.mubr.bf16.gmra.mxu1 %v14580_v37 }
 0x305   : > { %v13161_v62 = vpack.c.bf16 %v4258_v59, %v4226_v41  ;;  %v4259_v20 = vmax.f32 %v3575_v19, 0.0  ;;  %7043 = vmatprep.mubr.bf16.mxu0 %v14581_v50  ;;  %v13165_v52 = vpack.c.bf16 %v4260_v31, %v4228_v47  ;;  %v4261_v11 = vmax.f32 %v3688_v29, 0.0  ;;  %7140 = vmatprep.mubr.bf16.mxu1 %v14583_v54 }
 0x306   : > { %v3580_v58 = vpop.f32.mrf.mxu0  ;;  %v3579_v21 = vadd.f32 %v3578_v10, %v13045_v55  ;;  %v3693_v57 = vpop.f32.mrf.mxu1  ;;  %v3692_v42 = vadd.f32 %v3691_v3, %v13050_v22 }
 0x307   : > { %14579 = vst [vmem:[#allocation54_spill] sm:$0xff] %v13161_v62  ;;  %14582 = vst [vmem:[#allocation55_spill] sm:$0xff] %v13165_v52  ;;  %v13169_v48 = vpack.c.bf16 %v4259_v20, %v4227_v12  ;;  %v13172_v59 = vpack.c.bf16 %v4261_v11, %v4229_v36  ;;  %v3581_v37 = vadd.f32 %v3580_v58, %v13059_v51  ;;  %v14586_v52 = vld [vmem:[#allocation60_spill] sm:$0xff] }
 0x308   : > { %v3582_v41 = vpop.f32.mrf.mxu0  ;;  %v3695_v19 = vpop.f32.mrf.mxu1  ;;  %v3694_v47 = vadd.f32 %v3693_v57, %v13066_v2  ;;  %v4290_v50 = vmax.f32 %v3579_v21, 0.0  ;;  %v4292_v54 = vmax.f32 %v3692_v42, 0.0  ;;  %v14591_v42 = vld [vmem:[#allocation67_spill] sm:$0xff] }
 0x309   : > { %14584 = vst [vmem:[#allocation52_spill] sm:$0xff] %v13169_v48  ;;  %14585 = vst [vmem:[#allocation53_spill] sm:$0xff] %v13172_v59  ;;  %v3583_v25 = vadd.f32 %v3582_v41, %v13045_v55  ;;  %v3696_v31 = vadd.f32 %v3695_v19, %v13050_v22  ;;  %v4291_v58 = vmax.f32 %v3581_v37, 0.0  ;;  %v14588_v59 = vld [vmem:[#allocation61_spill] sm:$0xff]  ;;  %v14589_v19 = vld [vmem:[#allocation66_spill] sm:$0xff] }
 0x30a   : > { %v3584_v29 = vpop.f32.mrf.mxu0  ;;  %v3697_v12 = vpop.f32.mrf.mxu1  ;;  %v4293_v21 = vmax.f32 %v3694_v47, 0.0 }
 0x30b   : > { %v4322_v10 = vmax.f32 %v3583_v25, 0.0  ;;  %v3585_v20 = vadd.f32 %v3584_v29, %v13059_v51  ;;  %v4324_v3 = vmax.f32 %v3696_v31, 0.0  ;;  %v3698_v36 = vadd.f32 %v3697_v12, %v13066_v2 }
 0x30c   : > { %v3588_v11 = vpop.f32.mrf.mxu0  ;;  %7044 = vmatmul.mubr.bf16.gmra.mxu0 %v14586_v52  ;;  %v3701_v57 = vpop.f32.mrf.mxu1  ;;  %7141 = vmatmul.mubr.bf16.gmra.mxu1 %v14588_v59 }
 0x30d   : > { %v13181_v41 = vpack.c.bf16 %v4322_v10, %v4290_v50  ;;  %v4323_v62 = vmax.f32 %v3585_v20, 0.0  ;;  %7051 = vmatprep.mubr.bf16.mxu0 %v14589_v19  ;;  %v13185_v25 = vpack.c.bf16 %v4324_v3, %v4292_v54  ;;  %v4325_v29 = vmax.f32 %v3698_v36, 0.0  ;;  %7148 = vmatprep.mubr.bf16.mxu1 %v14591_v42 }
 0x30e   : > { %v3590_v31 = vpop.f32.mrf.mxu0  ;;  %v3589_v12 = vadd.f32 %v3588_v11, %v13045_v55  ;;  %v3703_v48 = vpop.f32.mrf.mxu1  ;;  %v3702_v37 = vadd.f32 %v3701_v57, %v13050_v22 }
 0x30f   : > { %14587 = vst [vmem:[#allocation58_spill] sm:$0xff] %v13181_v41  ;;  %14590 = vst [vmem:[#allocation59_spill] sm:$0xff] %v13185_v25  ;;  %v13189_v52 = vpack.c.bf16 %v4323_v62, %v4291_v58  ;;  %v13192_v10 = vpack.c.bf16 %v4325_v29, %v4293_v21  ;;  %v3591_v59 = vadd.f32 %v3590_v31, %v13059_v51  ;;  %v14594_v25 = vld [vmem:[#allocation64_spill] sm:$0xff] }
 0x310   : > { %v3592_v50 = vpop.f32.mrf.mxu0  ;;  %v3705_v20 = vpop.f32.mrf.mxu1  ;;  %v3704_v54 = vadd.f32 %v3703_v48, %v13066_v2  ;;  %v4354_v19 = vmax.f32 %v3589_v12, 0.0  ;;  %v4356_v42 = vmax.f32 %v3702_v37, 0.0  ;;  %v14599_v37 = vld [vmem:[#allocation71_spill] sm:$0xff] }
 0x311   : > { %14592 = vst [vmem:[#allocation56_spill] sm:$0xff] %v13189_v52  ;;  %14593 = vst [vmem:[#allocation57_spill] sm:$0xff] %v13192_v10  ;;  %v3593_v47 = vadd.f32 %v3592_v50, %v13045_v55  ;;  %v3706_v3 = vadd.f32 %v3705_v20, %v13050_v22  ;;  %v4355_v31 = vmax.f32 %v3591_v59, 0.0  ;;  %v14596_v10 = vld [vmem:[#allocation65_spill] sm:$0xff]  ;;  %v14597_v20 = vld [vmem:[#allocation70_spill] sm:$0xff] }
 0x312   : > { %v3594_v36 = vpop.f32.mrf.mxu0  ;;  %v3707_v58 = vpop.f32.mrf.mxu1  ;;  %v4357_v12 = vmax.f32 %v3704_v54, 0.0 }
 0x313   : > { %v4386_v11 = vmax.f32 %v3593_v47, 0.0  ;;  %v3595_v62 = vadd.f32 %v3594_v36, %v13059_v51  ;;  %v4388_v57 = vmax.f32 %v3706_v3, 0.0  ;;  %v3708_v21 = vadd.f32 %v3707_v58, %v13066_v2 }
 0x314   : > { %v3598_v29 = vpop.f32.mrf.mxu0  ;;  %7052 = vmatmul.mubr.bf16.gmra.mxu0 %v14594_v25  ;;  %v3711_v48 = vpop.f32.mrf.mxu1  ;;  %7149 = vmatmul.mubr.bf16.gmra.mxu1 %v14596_v10 }
 0x315   : > { %v13201_v50 = vpack.c.bf16 %v4386_v11, %v4354_v19  ;;  %v4387_v41 = vmax.f32 %v3595_v62, 0.0  ;;  %7189 = vmatprep.mubr.bf16.mxu0 %v14597_v20  ;;  %v13205_v47 = vpack.c.bf16 %v4388_v57, %v4356_v42  ;;  %v4389_v36 = vmax.f32 %v3708_v21, 0.0  ;;  %7286 = vmatprep.mubr.bf16.mxu1 %v14599_v37  ;;  %v10761_v20 = vld [vmem:[#allocation8 + $0x338] sm:$0xff]  }
 0x316   : > { %v3600_v3 = vpop.f32.mrf.mxu0  ;;  %v3599_v58 = vadd.f32 %v3598_v29, %v13045_v55  ;;  %v3713_v52 = vpop.f32.mrf.mxu1  ;;  %v3712_v59 = vadd.f32 %v3711_v48, %v13050_v22  ;;  %v13221_v48 = vrot.slane %v13034_v23, %v11824_v6 }
 0x317   : > { %14595 = vst [vmem:[#allocation62_spill] sm:$0xff] %v13201_v50  ;;  %14598 = vst [vmem:[#allocation63_spill] sm:$0xff] %v13205_v47  ;;  %v13209_v25 = vpack.c.bf16 %v4387_v41, %v4355_v31  ;;  %v13212_v11 = vpack.c.bf16 %v4389_v36, %v4357_v12  ;;  %v3601_v10 = vadd.f32 %v3600_v3, %v13059_v51  ;;  %v10763_v12 = vld [vmem:[#allocation8 + $0x3b8] sm:$0xff]   ;;  %v10764_v36 = vld [vmem:[#allocation8 + $0x370] sm:$0xff]  }
 0x318   : > { %v3602_v19 = vpop.f32.mrf.mxu0  ;;  %v3715_v62 = vpop.f32.mrf.mxu1  ;;  %v3714_v42 = vadd.f32 %v3713_v52, %v13066_v2  ;;  %v4418_v29 = vmax.f32 %v3599_v58, 0.0  ;;  %v4420_v3 = vmax.f32 %v3712_v59, 0.0  ;;  %v14600_v58 = vld [vmem:[#allocation68_spill] sm:$0xff]  ;;  %v14602_v47 = vld [vmem:[#allocation69_spill] sm:$0xff]  ;;  %v14603_v50 = vld [vmem:[#allocation74_spill] sm:$0xff] }
 0x319   : > { %v3603_v54 = vadd.f32 %v3602_v19, %v13045_v55  ;;  %v3716_v57 = vadd.f32 %v3715_v62, %v13050_v22  ;;  %v13226_v22 = vrot.slane %v13034_v23, %v11827_v9 }
 0x31a   : > { %v3604_v21 = vpop.f32.mrf.mxu0  ;;  %v3717_v31 = vpop.f32.mrf.mxu1  ;;  %v4421_v59 = vmax.f32 %v3714_v42, 0.0 }
 0x31b   : > { %v4450_v37 = vmax.f32 %v3603_v54, 0.0  ;;  %v3605_v41 = vadd.f32 %v3604_v21, %v13059_v51  ;;  %v4452_v55 = vmax.f32 %v3716_v57, 0.0  ;;  %v3718_v19 = vadd.f32 %v3717_v31, %v13066_v2  ;;  %v10766_v54 = vld [vmem:[#allocation8 + $0x3f0] sm:$0xff]   ;;  %v14605_v31 = vld [vmem:[#allocation75_spill] sm:$0xff] }
 0x31c   : > { %v3754_v52 = vpop.f32.mrf.mxu0  ;;  %7190 = vmatmul.mubr.bf16.vlgmr.msra.gmra.mxu0 %v14600_v58  ;;  %v4419_v51 = vmax.f32 %v3601_v10, 0.0  ;;  %v3867_v6 = vpop.f32.mrf.mxu1  ;;  %7287 = vmatmul.mubr.bf16.vlgmr.msra.gmra.mxu1 %v14602_v47  ;;  %v13235_v2 = vrot.slane %v13034_v23, %v11830_v14  ;;  %v10767_v14 = vld [vmem:[#allocation8 + $0x3b0] sm:$0xff]  }
 0x31d   : > { %v13229_v62 = vpack.c.bf16 %v4450_v37, %v4418_v29  ;;  %v4451_v21 = vmax.f32 %v3605_v41, 0.0  ;;  %7197 = vmatprep.mubr.bf16.mxu0 %v14603_v50  ;;  %v13237_v57 = vpack.c.bf16 %v4452_v55, %v4420_v3  ;;  %v4453_v9 = vmax.f32 %v3718_v19, 0.0  ;;  %7294 = vmatprep.mubr.bf16.mxu1 %v14605_v31  ;;  %v10765_v37 = vld [vmem:[#allocation8 + $0x330] sm:$0xff]   ;;  %v10768_v41 = vld [vmem:[#allocation8 + $0x368] sm:$0xff]  }
 0x31e   : > { %9810 = vmatpush3.bf16.msra.mxu0 %v10761_v20  ;;  %v3756_v10 = vpop.f32.mrf.mxu0  ;;  %v13242_v29 = vrot.slane %v13034_v23, %v11837_v26  ;;  %v3755_v47 = vadd.f32 %v3754_v52, %v13221_v48  ;;  %v3869_v50 = vpop.f32.mrf.mxu1  ;;  %9874 = vmatpush3.bf16.msra.mxu1 %v10763_v12  ;;  %v3868_v3 = vadd.f32 %v3867_v6, %v13226_v22  ;;  %v10770_v20 = vld [vmem:[#allocation8 + $0x3e8] sm:$0xff]  }
 0x31f   : > { %14601 = vst [vmem:[#allocation60_spill] sm:$0xff] %v13229_v62  ;;  %14604 = vst [vmem:[#allocation61_spill] sm:$0xff] %v13237_v57  ;;  %9811 = vmatprep.subr.bf16.mxu0 %v10764_v36  ;;  %v13245_v42 = vpack.c.bf16 %v4451_v21, %v4419_v51  ;;  %9875 = vmatprep.subr.bf16.mxu1 %v10766_v54  ;;  %v13248_v19 = vpack.c.bf16 %v4453_v9, %v4421_v59  ;;  %v10769_v51 = vld [vmem:[#allocation8 + $0x328] sm:$0xff]   ;;  %v10772_v9 = vld [vmem:[#allocation8 + $0x360] sm:$0xff]  }
 0x320   : > { %v3758_v55 = vpop.f32.mrf.mxu0  ;;  %v3757_v26 = vadd.f32 %v3756_v10, %v13235_v2  ;;  %v3871_v58 = vpop.f32.mrf.mxu1  ;;  %v3870_v52 = vadd.f32 %v3869_v50, %v13242_v29  ;;  %v3974_v21 = vmax.f32 %v3755_v47, 0.0  ;;  %v10771_v59 = vld [vmem:[#allocation8 + $0x3a8] sm:$0xff]   ;;  %v3976_v10 = vmax.f32 %v3868_v3, 0.0  ;;  %v14608_v50 = vld [vmem:[#allocation72_spill] sm:$0xff] }
 0x321   : > { %14606 = vst [vmem:[#allocation66_spill] sm:$0xff] %v13245_v42  ;;  %14607 = vst [vmem:[#allocation67_spill] sm:$0xff] %v13248_v19  ;;  %v3759_v23 = vadd.f32 %v3758_v55, %v13221_v48  ;;  %v3872_v12 = vadd.f32 %v3871_v58, %v13226_v22  ;;  %v10774_v58 = vld [vmem:[#allocation8 + $0x3e0] sm:$0xff]  }
 0x322   : > { %v3760_v36 = vpop.f32.mrf.mxu0  ;;  %9812 = vmatpush3.bf16.msra.mxu0 %v10765_v37  ;;  %v3873_v54 = vpop.f32.mrf.mxu1  ;;  %9876 = vmatpush3.bf16.msra.mxu1 %v10767_v14  ;;  %v3975_v37 = vmax.f32 %v3757_v26, 0.0  ;;  %v14611_v14 = vld [vmem:[#allocation78_spill] sm:$0xff] }
 0x323   : > { %v4006_v31 = vmax.f32 %v3759_v23, 0.0  ;;  %v3761_v6 = vadd.f32 %v3760_v36, %v13235_v2  ;;  %9813 = vmatprep.subr.bf16.mxu0 %v10768_v41  ;;  %v4008_v57 = vmax.f32 %v3872_v12, 0.0  ;;  %v3874_v55 = vadd.f32 %v3873_v54, %v13242_v29  ;;  %9877 = vmatprep.subr.bf16.mxu1 %v10770_v20  ;;  %v14610_v36 = vld [vmem:[#allocation73_spill] sm:$0xff]  ;;  %v14613_v12 = vld [vmem:[#allocation79_spill] sm:$0xff] }
 0x324   : > { %v3764_v62 = vpop.f32.mrf.mxu0  ;;  %7198 = vmatmul.mubr.bf16.gmra.mxu0 %v14608_v50  ;;  %v3877_v23 = vpop.f32.mrf.mxu1  ;;  %7295 = vmatmul.mubr.bf16.gmra.mxu1 %v14610_v36  ;;  %v3977_v41 = vmax.f32 %v3870_v52, 0.0  ;;  %v10773_v50 = vld [vmem:[#allocation8 + $0x320] sm:$0xff]  }
 0x325   : > { %v13257_v19 = vpack.c.bf16 %v4006_v31, %v3974_v21  ;;  %v4007_v47 = vmax.f32 %v3761_v6, 0.0  ;;  %7205 = vmatprep.mubr.bf16.mxu0 %v14611_v14  ;;  %v13261_v42 = vpack.c.bf16 %v4008_v57, %v3976_v10  ;;  %v4009_v3 = vmax.f32 %v3874_v55, 0.0  ;;  %7302 = vmatprep.mubr.bf16.mxu1 %v14613_v12  ;;  %v10775_v21 = vld [vmem:[#allocation8 + $0x3a0] sm:$0xff]   ;;  %v10776_v31 = vld [vmem:[#allocation8 + $0x358] sm:$0xff]  }
 0x326   : > { %v3766_v54 = vpop.f32.mrf.mxu0  ;;  %9814 = vmatpush3.bf16.msra.mxu0 %v10769_v51  ;;  %v3765_v20 = vadd.f32 %v3764_v62, %v13221_v48  ;;  %v3879_v26 = vpop.f32.mrf.mxu1  ;;  %9878 = vmatpush3.bf16.msra.mxu1 %v10771_v59  ;;  %v3878_v36 = vadd.f32 %v3877_v23, %v13226_v22  ;;  %v10778_v57 = vld [vmem:[#allocation8 + $0x3d8] sm:$0xff]  }
 0x327   : > { %14609 = vst [vmem:[#allocation64_spill] sm:$0xff] %v13257_v19  ;;  %14612 = vst [vmem:[#allocation65_spill] sm:$0xff] %v13261_v42  ;;  %9815 = vmatprep.subr.bf16.mxu0 %v10772_v9  ;;  %v13265_v6 = vpack.c.bf16 %v4007_v47, %v3975_v37  ;;  %9879 = vmatprep.subr.bf16.mxu1 %v10774_v58  ;;  %v13268_v10 = vpack.c.bf16 %v4009_v3, %v3977_v41  ;;  %v10777_v37 = vld [vmem:[#allocation8 + $0x318] sm:$0xff]   ;;  %v10780_v3 = vld [vmem:[#allocation8 + $0x350] sm:$0xff]  }
 0x328   : > { %v3768_v52 = vpop.f32.mrf.mxu0  ;;  %v3767_v55 = vadd.f32 %v3766_v54, %v13235_v2  ;;  %v3881_v14 = vpop.f32.mrf.mxu1  ;;  %v3880_v62 = vadd.f32 %v3879_v26, %v13242_v29  ;;  %v4038_v47 = vmax.f32 %v3765_v20, 0.0  ;;  %v10779_v41 = vld [vmem:[#allocation8 + $0x398] sm:$0xff]   ;;  %v4040_v54 = vmax.f32 %v3878_v36, 0.0  ;;  %v14616_v26 = vld [vmem:[#allocation76_spill] sm:$0xff] }
 0x329   : > { %14614 = vst [vmem:[#allocation70_spill] sm:$0xff] %v13265_v6  ;;  %14615 = vst [vmem:[#allocation71_spill] sm:$0xff] %v13268_v10  ;;  %v3769_v51 = vadd.f32 %v3768_v52, %v13221_v48  ;;  %v3882_v59 = vadd.f32 %v3881_v14, %v13226_v22  ;;  %v10782_v14 = vld [vmem:[#allocation8 + $0x3d0] sm:$0xff]  }
 0x32a   : > { %v3770_v9 = vpop.f32.mrf.mxu0  ;;  %9816 = vmatpush3.bf16.msra.mxu0 %v10773_v50  ;;  %v3883_v58 = vpop.f32.mrf.mxu1  ;;  %9880 = vmatpush3.bf16.msra.mxu1 %v10775_v21  ;;  %v4039_v50 = vmax.f32 %v3767_v55, 0.0  ;;  %v14619_v21 = vld [vmem:[#allocation82_spill] sm:$0xff] }
 0x32b   : > { %v4070_v12 = vmax.f32 %v3769_v51, 0.0  ;;  %v3771_v23 = vadd.f32 %v3770_v9, %v13235_v2  ;;  %9817 = vmatprep.subr.bf16.mxu0 %v10776_v31  ;;  %v4072_v42 = vmax.f32 %v3882_v59, 0.0  ;;  %v3884_v52 = vadd.f32 %v3883_v58, %v13242_v29  ;;  %9881 = vmatprep.subr.bf16.mxu1 %v10778_v57  ;;  %v14618_v9 = vld [vmem:[#allocation77_spill] sm:$0xff]  ;;  %v14621_v59 = vld [vmem:[#allocation83_spill] sm:$0xff] }
 0x32c   : > { %v3774_v19 = vpop.f32.mrf.mxu0  ;;  %7206 = vmatmul.mubr.bf16.gmra.mxu0 %v14616_v26  ;;  %v3887_v51 = vpop.f32.mrf.mxu1  ;;  %7303 = vmatmul.mubr.bf16.gmra.mxu1 %v14618_v9  ;;  %v4041_v31 = vmax.f32 %v3880_v62, 0.0  ;;  %v10781_v26 = vld [vmem:[#allocation8 + $0x310] sm:$0xff]  }
 0x32d   : > { %v13277_v10 = vpack.c.bf16 %v4070_v12, %v4038_v47  ;;  %v4071_v20 = vmax.f32 %v3771_v23, 0.0  ;;  %7213 = vmatprep.mubr.bf16.mxu0 %v14619_v21  ;;  %v13281_v6 = vpack.c.bf16 %v4072_v42, %v4040_v54  ;;  %v4073_v36 = vmax.f32 %v3884_v52, 0.0  ;;  %7310 = vmatprep.mubr.bf16.mxu1 %v14621_v59  ;;  %v10783_v47 = vld [vmem:[#allocation8 + $0x390] sm:$0xff]   ;;  %v10784_v12 = vld [vmem:[#allocation8 + $0x348] sm:$0xff]  }
 0x32e   : > { %v3776_v58 = vpop.f32.mrf.mxu0  ;;  %9818 = vmatpush3.bf16.msra.mxu0 %v10777_v37  ;;  %v3775_v57 = vadd.f32 %v3774_v19, %v13221_v48  ;;  %v3889_v55 = vpop.f32.mrf.mxu1  ;;  %9882 = vmatpush3.bf16.msra.mxu1 %v10779_v41  ;;  %v3888_v9 = vadd.f32 %v3887_v51, %v13226_v22  ;;  %v10786_v42 = vld [vmem:[#allocation8 + $0x3c8] sm:$0xff]  }
 0x32f   : > { %14617 = vst [vmem:[#allocation68_spill] sm:$0xff] %v13277_v10  ;;  %14620 = vst [vmem:[#allocation69_spill] sm:$0xff] %v13281_v6  ;;  %9819 = vmatprep.subr.bf16.mxu0 %v10780_v3  ;;  %v13285_v23 = vpack.c.bf16 %v4071_v20, %v4039_v50  ;;  %9883 = vmatprep.subr.bf16.mxu1 %v10782_v14  ;;  %v13288_v54 = vpack.c.bf16 %v4073_v36, %v4041_v31  ;;  %v10785_v50 = vld [vmem:[#allocation8 + $0x308] sm:$0xff]   ;;  %v10788_v36 = vld [vmem:[#allocation8 + $0x340] sm:$0xff]  }
 0x330   : > { %v3778_v62 = vpop.f32.mrf.mxu0  ;;  %v3777_v52 = vadd.f32 %v3776_v58, %v13235_v2  ;;  %v3891_v21 = vpop.f32.mrf.mxu1  ;;  %v3890_v19 = vadd.f32 %v3889_v55, %v13242_v29  ;;  %v4102_v20 = vmax.f32 %v3775_v57, 0.0  ;;  %v10787_v31 = vld [vmem:[#allocation8 + $0x388] sm:$0xff]   ;;  %v4104_v58 = vmax.f32 %v3888_v9, 0.0  ;;  %v14624_v55 = vld [vmem:[#allocation80_spill] sm:$0xff] }
 0x331   : > { %14622 = vst [vmem:[#allocation74_spill] sm:$0xff] %v13285_v23  ;;  %14623 = vst [vmem:[#allocation75_spill] sm:$0xff] %v13288_v54  ;;  %v3779_v37 = vadd.f32 %v3778_v62, %v13221_v48  ;;  %v3892_v41 = vadd.f32 %v3891_v21, %v13226_v22  ;;  %v10790_v21 = vld [vmem:[#allocation8 + $0x3c0] sm:$0xff]  }
 0x332   : > { %v3780_v3 = vpop.f32.mrf.mxu0  ;;  %9820 = vmatpush3.bf16.msra.mxu0 %v10781_v26  ;;  %v3893_v14 = vpop.f32.mrf.mxu1  ;;  %9884 = vmatpush3.bf16.msra.mxu1 %v10783_v47  ;;  %v4103_v26 = vmax.f32 %v3777_v52, 0.0  ;;  %v14627_v47 = vld [vmem:[#allocation86_spill] sm:$0xff] }
 0x333   : > { %v4134_v59 = vmax.f32 %v3779_v37, 0.0  ;;  %v3781_v51 = vadd.f32 %v3780_v3, %v13235_v2  ;;  %9821 = vmatprep.subr.bf16.mxu0 %v10784_v12  ;;  %v4136_v6 = vmax.f32 %v3892_v41, 0.0  ;;  %v3894_v62 = vadd.f32 %v3893_v14, %v13242_v29  ;;  %9885 = vmatprep.subr.bf16.mxu1 %v10786_v42  ;;  %v14626_v3 = vld [vmem:[#allocation81_spill] sm:$0xff]  ;;  %v14629_v41 = vld [vmem:[#allocation87_spill] sm:$0xff] }
 0x334   : > { %v3784_v10 = vpop.f32.mrf.mxu0  ;;  %7214 = vmatmul.mubr.bf16.gmra.mxu0 %v14624_v55  ;;  %v3897_v37 = vpop.f32.mrf.mxu1  ;;  %7311 = vmatmul.mubr.bf16.gmra.mxu1 %v14626_v3  ;;  %v4105_v12 = vmax.f32 %v3890_v19, 0.0  ;;  %v10789_v55 = vld [vmem:[#allocation8 + $0x300] sm:$0xff]  }
 0x335   : > { %v13297_v54 = vpack.c.bf16 %v4134_v59, %v4102_v20  ;;  %v4135_v57 = vmax.f32 %v3781_v51, 0.0  ;;  %7221 = vmatprep.mubr.bf16.mxu0 %v14627_v47  ;;  %v13301_v23 = vpack.c.bf16 %v4136_v6, %v4104_v58  ;;  %v4137_v9 = vmax.f32 %v3894_v62, 0.0  ;;  %7318 = vmatprep.mubr.bf16.mxu1 %v14629_v41  ;;  %v10791_v20 = vld [vmem:[#allocation8 + $0x380] sm:$0xff]   ;;  %v10792_v59 = vld [vmem:[#allocation8 + $0x478] sm:$0xff]  }
 0x336   : > { %v3786_v14 = vpop.f32.mrf.mxu0  ;;  %9822 = vmatpush3.bf16.msra.mxu0 %v10785_v50  ;;  %v3785_v42 = vadd.f32 %v3784_v10, %v13221_v48  ;;  %v3899_v52 = vpop.f32.mrf.mxu1  ;;  %9886 = vmatpush3.bf16.msra.mxu1 %v10787_v31  ;;  %v3898_v3 = vadd.f32 %v3897_v37, %v13226_v22  ;;  %v10794_v6 = vld [vmem:[#allocation8 + $0x4f8] sm:$0xff]  }
 0x337   : > { %14625 = vst [vmem:[#allocation72_spill] sm:$0xff] %v13297_v54  ;;  %14628 = vst [vmem:[#allocation73_spill] sm:$0xff] %v13301_v23  ;;  %9823 = vmatprep.subr.bf16.mxu0 %v10788_v36  ;;  %v13305_v51 = vpack.c.bf16 %v4135_v57, %v4103_v26  ;;  %9887 = vmatprep.subr.bf16.mxu1 %v10790_v21  ;;  %v13308_v58 = vpack.c.bf16 %v4137_v9, %v4105_v12  ;;  %v14690_v54 = vld [vmem:[#allocation124_spill] sm:$0xff] }
 0x338   : > { %v3788_v19 = vpop.f32.mrf.mxu0  ;;  %v3787_v62 = vadd.f32 %v3786_v14, %v13235_v2  ;;  %v3901_v47 = vpop.f32.mrf.mxu1  ;;  %v3900_v10 = vadd.f32 %v3899_v52, %v13242_v29  ;;  %v4166_v26 = vmax.f32 %v3785_v42, 0.0  ;;  %v4168_v21 = vmax.f32 %v3898_v3, 0.0  ;;  %v14632_v42 = vld [vmem:[#allocation85_spill] sm:$0xff]  ;;  %v14635_v3 = vld [vmem:[#allocation91_spill] sm:$0xff] }
 0x339   : > { %v3789_v50 = vadd.f32 %v3788_v19, %v13221_v48  ;;  %v3902_v31 = vadd.f32 %v3901_v47, %v13226_v22  ;;  %v14630_v19 = vld [vmem:[#allocation84_spill] sm:$0xff] }
 0x33a   : > { %v3790_v36 = vpop.f32.mrf.mxu0  ;;  %9824 = vmatpush3.bf16.msra.mxu0 %v10789_v55  ;;  %v3903_v41 = vpop.f32.mrf.mxu1  ;;  %9888 = vmatpush3.bf16.msra.mxu1 %v10791_v20  ;;  %v4167_v52 = vmax.f32 %v3787_v62, 0.0 }
 0x33b   : > { %v4198_v57 = vmax.f32 %v3789_v50, 0.0  ;;  %v3791_v37 = vadd.f32 %v3790_v36, %v13235_v2  ;;  %9937 = vmatprep.subr.bf16.mxu0 %v10792_v59  ;;  %v4200_v12 = vmax.f32 %v3902_v31, 0.0  ;;  %v3904_v9 = vadd.f32 %v3903_v41, %v13242_v29  ;;  %10001 = vmatprep.subr.bf16.mxu1 %v10794_v6  ;;  %v14633_v50 = vld [vmem:[#allocation90_spill] sm:$0xff] }
 0x33c   : > { %v3794_v14 = vpop.f32.mrf.mxu0  ;;  %7222 = vmatmul.mubr.bf16.gmra.mxu0 %v14630_v19  ;;  %v3907_v55 = vpop.f32.mrf.mxu1  ;;  %7319 = vmatmul.mubr.bf16.gmra.mxu1 %v14632_v42  ;;  %v4169_v36 = vmax.f32 %v3900_v10, 0.0 }
 0x33d   : > { %v13317_v23 = vpack.c.bf16 %v4198_v57, %v4166_v26  ;;  %v4199_v47 = vmax.f32 %v3791_v37, 0.0  ;;  %7229 = vmatprep.mubr.bf16.mxu0 %v14633_v50  ;;  %v13321_v20 = vpack.c.bf16 %v4200_v12, %v4168_v21  ;;  %v4201_v59 = vmax.f32 %v3904_v9, 0.0  ;;  %7326 = vmatprep.mubr.bf16.mxu1 %v14635_v3 }
 0x33e   : > { %v3796_v31 = vpop.f32.mrf.mxu0  ;;  %v3795_v41 = vadd.f32 %v3794_v14, %v13221_v48  ;;  %v3909_v19 = vpop.f32.mrf.mxu1  ;;  %v3908_v62 = vadd.f32 %v3907_v55, %v13226_v22 }
 0x33f   : > { %14631 = vst [vmem:[#allocation78_spill] sm:$0xff] %v13317_v23  ;;  %14634 = vst [vmem:[#allocation79_spill] sm:$0xff] %v13321_v20  ;;  %v13325_v6 = vpack.c.bf16 %v4199_v47, %v4167_v52  ;;  %v13328_v57 = vpack.c.bf16 %v4201_v59, %v4169_v36  ;;  %v3797_v37 = vadd.f32 %v3796_v31, %v13235_v2  ;;  %v14638_v20 = vld [vmem:[#allocation88_spill] sm:$0xff] }
 0x340   : > { %v3798_v26 = vpop.f32.mrf.mxu0  ;;  %v3911_v21 = vpop.f32.mrf.mxu1  ;;  %v3910_v12 = vadd.f32 %v3909_v19, %v13242_v29  ;;  %v4230_v50 = vmax.f32 %v3795_v41, 0.0  ;;  %v4232_v3 = vmax.f32 %v3908_v62, 0.0  ;;  %v14643_v62 = vld [vmem:[#allocation95_spill] sm:$0xff] }
 0x341   : > { %14636 = vst [vmem:[#allocation76_spill] sm:$0xff] %v13325_v6  ;;  %14637 = vst [vmem:[#allocation77_spill] sm:$0xff] %v13328_v57  ;;  %v3799_v10 = vadd.f32 %v3798_v26, %v13221_v48  ;;  %v3912_v9 = vadd.f32 %v3911_v21, %v13226_v22  ;;  %v4231_v31 = vmax.f32 %v3797_v37, 0.0  ;;  %v14640_v57 = vld [vmem:[#allocation89_spill] sm:$0xff]  ;;  %v14641_v21 = vld [vmem:[#allocation94_spill] sm:$0xff] }
 0x342   : > { %v3800_v42 = vpop.f32.mrf.mxu0  ;;  %v3913_v47 = vpop.f32.mrf.mxu1  ;;  %v4233_v41 = vmax.f32 %v3910_v12, 0.0 }
 0x343   : > { %v4262_v14 = vmax.f32 %v3799_v10, 0.0  ;;  %v3801_v52 = vadd.f32 %v3800_v42, %v13235_v2  ;;  %v4264_v55 = vmax.f32 %v3912_v9, 0.0  ;;  %v3914_v36 = vadd.f32 %v3913_v47, %v13242_v29 }
 0x344   : > { %v3804_v59 = vpop.f32.mrf.mxu0  ;;  %7230 = vmatmul.mubr.bf16.gmra.mxu0 %v14638_v20  ;;  %v3917_v19 = vpop.f32.mrf.mxu1  ;;  %7327 = vmatmul.mubr.bf16.gmra.mxu1 %v14640_v57 }
 0x345   : > { %v13337_v26 = vpack.c.bf16 %v4262_v14, %v4230_v50  ;;  %v4263_v23 = vmax.f32 %v3801_v52, 0.0  ;;  %7237 = vmatprep.mubr.bf16.mxu0 %v14641_v21  ;;  %v13341_v10 = vpack.c.bf16 %v4264_v55, %v4232_v3  ;;  %v4265_v42 = vmax.f32 %v3914_v36, 0.0  ;;  %7334 = vmatprep.mubr.bf16.mxu1 %v14643_v62 }
 0x346   : > { %v3806_v9 = vpop.f32.mrf.mxu0  ;;  %v3805_v47 = vadd.f32 %v3804_v59, %v13221_v48  ;;  %v3919_v6 = vpop.f32.mrf.mxu1  ;;  %v3918_v37 = vadd.f32 %v3917_v19, %v13226_v22 }
 0x347   : > { %14639 = vst [vmem:[#allocation82_spill] sm:$0xff] %v13337_v26  ;;  %14642 = vst [vmem:[#allocation83_spill] sm:$0xff] %v13341_v10  ;;  %v13345_v20 = vpack.c.bf16 %v4263_v23, %v4231_v31  ;;  %v13348_v14 = vpack.c.bf16 %v4265_v42, %v4233_v41  ;;  %v3807_v57 = vadd.f32 %v3806_v9, %v13235_v2  ;;  %v14646_v10 = vld [vmem:[#allocation92_spill] sm:$0xff] }
 0x348   : > { %v3808_v50 = vpop.f32.mrf.mxu0  ;;  %v3921_v52 = vpop.f32.mrf.mxu1  ;;  %v3920_v3 = vadd.f32 %v3919_v6, %v13242_v29  ;;  %v4294_v21 = vmax.f32 %v3805_v47, 0.0  ;;  %v4296_v62 = vmax.f32 %v3918_v37, 0.0  ;;  %v14651_v37 = vld [vmem:[#allocation99_spill] sm:$0xff] }
 0x349   : > { %14644 = vst [vmem:[#allocation80_spill] sm:$0xff] %v13345_v20  ;;  %14645 = vst [vmem:[#allocation81_spill] sm:$0xff] %v13348_v14  ;;  %v3809_v12 = vadd.f32 %v3808_v50, %v13221_v48  ;;  %v3922_v55 = vadd.f32 %v3921_v52, %v13226_v22  ;;  %v4295_v9 = vmax.f32 %v3807_v57, 0.0  ;;  %v14648_v14 = vld [vmem:[#allocation93_spill] sm:$0xff]  ;;  %v14649_v52 = vld [vmem:[#allocation98_spill] sm:$0xff] }
 0x34a   : > { %v3810_v36 = vpop.f32.mrf.mxu0  ;;  %v3923_v31 = vpop.f32.mrf.mxu1  ;;  %v4297_v47 = vmax.f32 %v3920_v3, 0.0 }
 0x34b   : > { %v4326_v59 = vmax.f32 %v3809_v12, 0.0  ;;  %v3811_v23 = vadd.f32 %v3810_v36, %v13235_v2  ;;  %v4328_v19 = vmax.f32 %v3922_v55, 0.0  ;;  %v3924_v41 = vadd.f32 %v3923_v31, %v13242_v29 }
 0x34c   : > { %v3814_v42 = vpop.f32.mrf.mxu0  ;;  %7238 = vmatmul.mubr.bf16.gmra.mxu0 %v14646_v10  ;;  %v3927_v6 = vpop.f32.mrf.mxu1  ;;  %7335 = vmatmul.mubr.bf16.gmra.mxu1 %v14648_v14 }
 0x34d   : > { %v13357_v50 = vpack.c.bf16 %v4326_v59, %v4294_v21  ;;  %v4327_v26 = vmax.f32 %v3811_v23, 0.0  ;;  %7245 = vmatprep.mubr.bf16.mxu0 %v14649_v52  ;;  %v13361_v12 = vpack.c.bf16 %v4328_v19, %v4296_v62  ;;  %v4329_v36 = vmax.f32 %v3924_v41, 0.0  ;;  %7342 = vmatprep.mubr.bf16.mxu1 %v14651_v37 }
 0x34e   : > { %v3816_v55 = vpop.f32.mrf.mxu0  ;;  %v3815_v31 = vadd.f32 %v3814_v42, %v13221_v48  ;;  %v3929_v20 = vpop.f32.mrf.mxu1  ;;  %v3928_v57 = vadd.f32 %v3927_v6, %v13226_v22 }
 0x34f   : > { %14647 = vst [vmem:[#allocation86_spill] sm:$0xff] %v13357_v50  ;;  %14650 = vst [vmem:[#allocation87_spill] sm:$0xff] %v13361_v12  ;;  %v13365_v10 = vpack.c.bf16 %v4327_v26, %v4295_v9  ;;  %v13368_v59 = vpack.c.bf16 %v4329_v36, %v4297_v47  ;;  %v3817_v14 = vadd.f32 %v3816_v55, %v13235_v2  ;;  %v14654_v12 = vld [vmem:[#allocation96_spill] sm:$0xff] }
 0x350   : > { %v3818_v21 = vpop.f32.mrf.mxu0  ;;  %v3931_v23 = vpop.f32.mrf.mxu1  ;;  %v3930_v62 = vadd.f32 %v3929_v20, %v13242_v29  ;;  %v4358_v52 = vmax.f32 %v3815_v31, 0.0  ;;  %v4360_v37 = vmax.f32 %v3928_v57, 0.0  ;;  %v14659_v57 = vld [vmem:[#allocation103_spill] sm:$0xff] }
 0x351   : > { %14652 = vst [vmem:[#allocation84_spill] sm:$0xff] %v13365_v10  ;;  %14653 = vst [vmem:[#allocation85_spill] sm:$0xff] %v13368_v59  ;;  %v3819_v3 = vadd.f32 %v3818_v21, %v13221_v48  ;;  %v3932_v19 = vadd.f32 %v3931_v23, %v13226_v22  ;;  %v4359_v55 = vmax.f32 %v3817_v14, 0.0  ;;  %v14656_v59 = vld [vmem:[#allocation97_spill] sm:$0xff]  ;;  %v14657_v23 = vld [vmem:[#allocation102_spill] sm:$0xff] }
 0x352   : > { %v3820_v41 = vpop.f32.mrf.mxu0  ;;  %v3933_v9 = vpop.f32.mrf.mxu1  ;;  %v4361_v31 = vmax.f32 %v3930_v62, 0.0 }
 0x353   : > { %v4390_v42 = vmax.f32 %v3819_v3, 0.0  ;;  %v3821_v26 = vadd.f32 %v3820_v41, %v13235_v2  ;;  %v4392_v6 = vmax.f32 %v3932_v19, 0.0  ;;  %v3934_v47 = vadd.f32 %v3933_v9, %v13242_v29 }
 0x354   : > { %v3824_v36 = vpop.f32.mrf.mxu0  ;;  %7246 = vmatmul.mubr.bf16.gmra.mxu0 %v14654_v12  ;;  %v3937_v20 = vpop.f32.mrf.mxu1  ;;  %7343 = vmatmul.mubr.bf16.gmra.mxu1 %v14656_v59 }
 0x355   : > { %v13377_v21 = vpack.c.bf16 %v4390_v42, %v4358_v52  ;;  %v4391_v50 = vmax.f32 %v3821_v26, 0.0  ;;  %7383 = vmatprep.mubr.bf16.mxu0 %v14657_v23  ;;  %v13381_v3 = vpack.c.bf16 %v4392_v6, %v4360_v37  ;;  %v4393_v41 = vmax.f32 %v3934_v47, 0.0  ;;  %7480 = vmatprep.mubr.bf16.mxu1 %v14659_v57  ;;  %v10793_v23 = vld [vmem:[#allocation8 + $0x438] sm:$0xff]  }
 0x356   : > { %v3826_v19 = vpop.f32.mrf.mxu0  ;;  %v3825_v9 = vadd.f32 %v3824_v36, %v13221_v48  ;;  %v3939_v10 = vpop.f32.mrf.mxu1  ;;  %v3938_v14 = vadd.f32 %v3937_v20, %v13226_v22  ;;  %v10795_v20 = vld [vmem:[#allocation8 + $0x4b8] sm:$0xff]  }
 0x357   : > { %14655 = vst [vmem:[#allocation90_spill] sm:$0xff] %v13377_v21  ;;  %14658 = vst [vmem:[#allocation91_spill] sm:$0xff] %v13381_v3  ;;  %v13385_v12 = vpack.c.bf16 %v4391_v50, %v4359_v55  ;;  %v13388_v42 = vpack.c.bf16 %v4393_v41, %v4361_v31  ;;  %v3827_v59 = vadd.f32 %v3826_v19, %v13235_v2  ;;  %v10796_v3 = vld [vmem:[#allocation8 + $0x470] sm:$0xff]  }
 0x358   : > { %v3828_v52 = vpop.f32.mrf.mxu0  ;;  %v3941_v26 = vpop.f32.mrf.mxu1  ;;  %v3940_v37 = vadd.f32 %v3939_v10, %v13242_v29  ;;  %v4422_v36 = vmax.f32 %v3825_v9, 0.0  ;;  %v4424_v31 = vmax.f32 %v3938_v14, 0.0  ;;  %v14664_v9 = vld [vmem:[#allocation101_spill] sm:$0xff] }
 0x359   : > { %14660 = vst [vmem:[#allocation88_spill] sm:$0xff] %v13385_v12  ;;  %14661 = vst [vmem:[#allocation89_spill] sm:$0xff] %v13388_v42  ;;  %v3829_v62 = vadd.f32 %v3828_v52, %v13221_v48  ;;  %v3942_v6 = vadd.f32 %v3941_v26, %v13226_v22  ;;  %v14662_v48 = vld [vmem:[#allocation100_spill] sm:$0xff]  ;;  %v10798_v52 = vld [vmem:[#allocation8 + $0x4f0] sm:$0xff]   ;;  %v4423_v10 = vmax.f32 %v3827_v59, 0.0 }
 0x35a   : > { %v3830_v47 = vpop.f32.mrf.mxu0  ;;  %v3943_v55 = vpop.f32.mrf.mxu1 }
 0x35b   : > { %v4454_v57 = vmax.f32 %v3829_v62, 0.0  ;;  %v3831_v50 = vadd.f32 %v3830_v47, %v13235_v2  ;;  %v4456_v41 = vmax.f32 %v3942_v6, 0.0  ;;  %v3944_v19 = vadd.f32 %v3943_v55, %v13242_v29  ;;  %v14665_v62 = vld [vmem:[#allocation106_spill] sm:$0xff]  ;;  %v14667_v6 = vld [vmem:[#allocation107_spill] sm:$0xff]  ;;  %v13407_v29 = vld [vmem:[%s14336_s4] ss:$0 sm:$0xff] }
 0x35c   : > { %v9441_v21 = vpop.f32.mrf.mxu0  ;;  %7384 = vmatmul.mubr.bf16.vlgmr.msra.gmra.mxu0 %v14662_v48  ;;  %v9505_v26 = vpop.f32.mrf.mxu1  ;;  %7481 = vmatmul.mubr.bf16.vlgmr.msra.gmra.mxu1 %v14664_v9  ;;  %v4425_v2 = vmax.f32 %v3940_v37, 0.0  ;;  %v10799_v55 = vld [vmem:[#allocation8 + $0x4b0] sm:$0xff]   ;;  %v10800_v48 = vld [vmem:[#allocation8 + $0x468] sm:$0xff]  }
 0x35d   : > { %v13397_v42 = vpack.c.bf16 %v4454_v57, %v4422_v36  ;;  %v4455_v22 = vmax.f32 %v3831_v50, 0.0  ;;  %7391 = vmatprep.mubr.bf16.mxu0 %v14665_v62  ;;  %v13401_v47 = vpack.c.bf16 %v4456_v41, %v4424_v31  ;;  %v4457_v14 = vmax.f32 %v3944_v19, 0.0  ;;  %7488 = vmatprep.mubr.bf16.mxu1 %v14667_v6  ;;  %v10797_v36 = vld [vmem:[#allocation8 + $0x430] sm:$0xff]   ;;  %v10802_v19 = vld [vmem:[#allocation8 + $0x4e8] sm:$0xff]  }
 0x35e   : > { %9938 = vmatpush3.bf16.msra.mxu0 %v10793_v23  ;;  %v9442_v59 = vpop.f32.mrf.mxu0  ;;  %v9506_v50 = vpop.f32.mrf.mxu1  ;;  %10002 = vmatpush3.bf16.msra.mxu1 %v10795_v20 }
 0x35f   : > { %14663 = vst [vmem:[#allocation94_spill] sm:$0xff] %v13397_v42  ;;  %14666 = vst [vmem:[#allocation95_spill] sm:$0xff] %v13401_v47  ;;  %v9443_v57 = vadd.f32 %v9442_v59, %v9441_v21  ;;  %9939 = vmatprep.subr.bf16.mxu0 %v10796_v3  ;;  %v13409_v37 = vpack.c.bf16 %v4455_v22, %v4423_v10  ;;  %v9507_v31 = vadd.f32 %v9506_v50, %v9505_v26  ;;  %v10801_v47 = vld [vmem:[#allocation8 + $0x428] sm:$0xff]   ;;  %v10804_v22 = vld [vmem:[#allocation8 + $0x460] sm:$0xff]  }
 0x360   : > { %v9444_v41 = vpop.f32.mrf.mxu0  ;;  %10003 = vmatprep.subr.bf16.mxu1 %v10798_v52  ;;  %v13411_v23 = vpack.c.bf16 %v4457_v14, %v4425_v2  ;;  %v9508_v62 = vpop.f32.mrf.mxu1  ;;  %v10803_v10 = vld [vmem:[#allocation8 + $0x4a8] sm:$0xff]   ;;  %v14670_v52 = vld [vmem:[#allocation104_spill] sm:$0xff] }
 0x361   : > { %14668 = vst [vmem:[#allocation92_spill] sm:$0xff] %v13409_v37  ;;  %v6804_v9 = vadd.f32 %v9443_v57, %v13407_v29  ;;  %v10806_v2 = vld [vmem:[#allocation8 + $0x4e0] sm:$0xff]   ;;  %v14671_v50 = vld [vmem:[#allocation105_spill] sm:$0xff]  ;;  %v10827_v37 = vld [vmem:[#allocation8 + $0x5b8] sm:$0xff]  }
 0x362   : > { %14669 = vst [vmem:[#allocation93_spill] sm:$0xff] %v13411_v23  ;;  %v9445_v6 = vpop.f32.mrf.mxu0  ;;  %9940 = vmatpush3.bf16.msra.mxu0 %v10797_v36  ;;  %v9509_v3 = vpop.f32.mrf.mxu1  ;;  %10004 = vmatpush3.bf16.msra.mxu1 %v10799_v55  ;;  %v10805_v55 = vld [vmem:[#allocation8 + $0x420] sm:$0xff]  }
 0x363   : > { %v13414_v21 = vadd.f32 %v9507_v31, %v6804_v9  ;;  %v9446_v20 = vadd.f32 %v9445_v6, %v9444_v41  ;;  %9941 = vmatprep.subr.bf16.mxu0 %v10800_v48  ;;  %v9510_v26 = vadd.f32 %v9509_v3, %v9508_v62  ;;  %10005 = vmatprep.subr.bf16.mxu1 %v10802_v19  ;;  %v10807_v19 = vld [vmem:[#allocation8 + $0x4a0] sm:$0xff]   ;;  %v10808_v9 = vld [vmem:[#allocation8 + $0x458] sm:$0xff]  }
 0x364   : > { %v9447_v59 = vpop.f32.mrf.mxu0  ;;  %7392 = vmatmul.mubr.bf16.gmra.mxu0 %v14670_v52  ;;  %v9511_v57 = vpop.f32.mrf.mxu1  ;;  %7489 = vmatmul.mubr.bf16.gmra.mxu1 %v14671_v50 }
 0x365   : > { %v6807_v14 = vadd.f32 %v9446_v20, %v13407_v29  ;;  %7399 = vmatprep.mubr.bf16.mxu0 %v12597_v28  ;;  %7496 = vmatprep.mubr.bf16.mxu1 %v12600_v16  ;;  %v10810_v20 = vld [vmem:[#allocation8 + $0x4d8] sm:$0xff]  }
 0x366   : > { %v9448_v36 = vpop.f32.mrf.mxu0  ;;  %9942 = vmatpush3.bf16.msra.mxu0 %v10801_v47  ;;  %v9512_v41 = vpop.f32.mrf.mxu1  ;;  %10006 = vmatpush3.bf16.msra.mxu1 %v10803_v10  ;;  %v10809_v16 = vld [vmem:[#allocation8 + $0x418] sm:$0xff]  }
 0x367   : > { %v13421_v48 = vadd.f32 %v9510_v26, %v6807_v14  ;;  %v9449_v31 = vadd.f32 %v9448_v36, %v9447_v59  ;;  %9943 = vmatprep.subr.bf16.mxu0 %v10804_v22  ;;  %v9513_v62 = vadd.f32 %v9512_v41, %v9511_v57  ;;  %10007 = vmatprep.subr.bf16.mxu1 %v10806_v2  ;;  %v10811_v10 = vld [vmem:[#allocation8 + $0x498] sm:$0xff]   ;;  %v10812_v22 = vld [vmem:[#allocation8 + $0x450] sm:$0xff]  }
 0x368   : > { %v9450_v6 = vpop.f32.mrf.mxu0  ;;  %v9514_v28 = vpop.f32.mrf.mxu1  ;;  %v10814_v2 = vld [vmem:[#allocation8 + $0x4d0] sm:$0xff]  }
 0x369   : > { %v6812_v3 = vadd.f32 %v9449_v31, %v13407_v29  ;;  %v10813_v31 = vld [vmem:[#allocation8 + $0x410] sm:$0xff]  }
 0x36a   : > { %v9451_v52 = vpop.f32.mrf.mxu0  ;;  %9944 = vmatpush3.bf16.msra.mxu0 %v10805_v55  ;;  %v9515_v14 = vpop.f32.mrf.mxu1  ;;  %10008 = vmatpush3.bf16.msra.mxu1 %v10807_v19 }
 0x36b   : > { %v13424_v47 = vadd.f32 %v9513_v62, %v6812_v3  ;;  %v9452_v26 = vadd.f32 %v9451_v52, %v9450_v6  ;;  %9945 = vmatprep.subr.bf16.mxu0 %v10808_v9  ;;  %v9516_v59 = vadd.f32 %v9515_v14, %v9514_v28  ;;  %10009 = vmatprep.subr.bf16.mxu1 %v10810_v20  ;;  %v10816_v62 = vld [vmem:[#allocation8 + $0x448] sm:$0xff]  }
 0x36c   : > { %v9453_v50 = vpop.f32.mrf.mxu0  ;;  %7400 = vmatmul.mubr.bf16.gmra.mxu0 %v12589_v35  ;;  %v9517_v36 = vpop.f32.mrf.mxu1  ;;  %7497 = vmatmul.mubr.bf16.gmra.mxu1 %v12593_v8  ;;  %v10815_v35 = vld [vmem:[#allocation8 + $0x490] sm:$0xff]   ;;  %v10818_v3 = vld [vmem:[#allocation8 + $0x4c8] sm:$0xff]  }
 0x36d   : > { %v6815_v57 = vadd.f32 %v9452_v26, %v13407_v29  ;;  %7407 = vmatprep.mubr.bf16.mxu0 %v12617_v44  ;;  %7504 = vmatprep.mubr.bf16.mxu1 %v12620_v49  ;;  %v10817_v49 = vld [vmem:[#allocation8 + $0x408] sm:$0xff]  }
 0x36e   : > { %v9454_v55 = vpop.f32.mrf.mxu0  ;;  %9946 = vmatpush3.bf16.msra.mxu0 %v10809_v16  ;;  %v9518_v9 = vpop.f32.mrf.mxu1  ;;  %10010 = vmatpush3.bf16.msra.mxu1 %v10811_v10  ;;  %v10819_v14 = vld [vmem:[#allocation8 + $0x488] sm:$0xff]   ;;  %v10820_v10 = vld [vmem:[#allocation8 + $0x440] sm:$0xff]  }
 0x36f   : > { %v13431_v41 = vadd.f32 %v9516_v59, %v6815_v57  ;;  %v9455_v19 = vadd.f32 %v9454_v55, %v9453_v50  ;;  %9947 = vmatprep.subr.bf16.mxu0 %v10812_v22  ;;  %v9519_v6 = vadd.f32 %v9518_v9, %v9517_v36  ;;  %10011 = vmatprep.subr.bf16.mxu1 %v10814_v2  ;;  %v10822_v50 = vld [vmem:[#allocation8 + $0x4c0] sm:$0xff]   ;;  %v14673_v55 = vld [vmem:[#allocation111_spill] sm:$0xff] }
 0x370   : > { %v9456_v20 = vpop.f32.mrf.mxu0  ;;  %v9520_v44 = vpop.f32.mrf.mxu1  ;;  %v14672_v36 = vld [vmem:[#allocation108_spill] sm:$0xff] }
 0x371   : > { %v6820_v8 = vadd.f32 %v9455_v19, %v13407_v29  ;;  %v10821_v9 = vld [vmem:[#allocation8 + $0x400] sm:$0xff]  }
 0x372   : > { %v9457_v28 = vpop.f32.mrf.mxu0  ;;  %9948 = vmatpush3.bf16.msra.mxu0 %v10813_v31  ;;  %v9521_v26 = vpop.f32.mrf.mxu1  ;;  %10012 = vmatpush3.bf16.msra.mxu1 %v10815_v35  ;;  %v14674_v31 = vld [vmem:[#allocation112_spill] sm:$0xff] }
 0x373   : > { %v13434_v52 = vadd.f32 %v9519_v6, %v6820_v8  ;;  %v9458_v16 = vadd.f32 %v9457_v28, %v9456_v20  ;;  %9949 = vmatprep.subr.bf16.mxu0 %v10816_v62  ;;  %v9522_v22 = vadd.f32 %v9521_v26, %v9520_v44  ;;  %10013 = vmatprep.subr.bf16.mxu1 %v10818_v3  ;;  %v10824_v20 = vld [vmem:[#allocation8 + $0x578] sm:$0xff]  }
 0x374   : > { %v9459_v59 = vpop.f32.mrf.mxu0  ;;  %7408 = vmatmul.mubr.bf16.gmra.mxu0 %v12609_v32  ;;  %v9523_v57 = vpop.f32.mrf.mxu1  ;;  %7505 = vmatmul.mubr.bf16.gmra.mxu1 %v14672_v36  ;;  %v10823_v32 = vld [vmem:[#allocation8 + $0x480] sm:$0xff]   ;;  %v10826_v44 = vld [vmem:[#allocation8 + $0x5f8] sm:$0xff]  }
 0x375   : > { %v6823_v2 = vadd.f32 %v9458_v16, %v13407_v29  ;;  %7415 = vmatprep.mubr.bf16.mxu0 %v14673_v55  ;;  %7512 = vmatprep.mubr.bf16.mxu1 %v14674_v31  ;;  %v14677_v55 = vld [vmem:[#allocation115_spill] sm:$0xff]  ;;  %v14678_v31 = vld [vmem:[#allocation116_spill] sm:$0xff] }
 0x376   : > { %v9460_v19 = vpop.f32.mrf.mxu0  ;;  %9950 = vmatpush3.bf16.msra.mxu0 %v10817_v49  ;;  %v9524_v6 = vpop.f32.mrf.mxu1  ;;  %10014 = vmatpush3.bf16.msra.mxu1 %v10819_v14 }
 0x377   : > { %v13441_v35 = vadd.f32 %v9522_v22, %v6823_v2  ;;  %v9461_v62 = vadd.f32 %v9460_v19, %v9459_v59  ;;  %9951 = vmatprep.subr.bf16.mxu0 %v10820_v10  ;;  %v9525_v3 = vadd.f32 %v9524_v6, %v9523_v57  ;;  %10015 = vmatprep.subr.bf16.mxu1 %v10822_v50  ;;  %v14675_v10 = vld [vmem:[#allocation109_spill] sm:$0xff]  ;;  %v14676_v57 = vld [vmem:[#allocation110_spill] sm:$0xff] }
 0x378   : > { %v9462_v8 = vpop.f32.mrf.mxu0  ;;  %v9526_v16 = vpop.f32.mrf.mxu1 }
 0x379   : > { %v6828_v28 = vadd.f32 %v9461_v62, %v13407_v29 }
 0x37a   : > { %v9463_v26 = vpop.f32.mrf.mxu0  ;;  %9952 = vmatpush3.bf16.msra.mxu0 %v10821_v9  ;;  %v9527_v22 = vpop.f32.mrf.mxu1  ;;  %10016 = vmatpush3.bf16.msra.mxu1 %v10823_v32 }
 0x37b   : > { %v13444_v36 = vadd.f32 %v9525_v3, %v6828_v28  ;;  %v9464_v49 = vadd.f32 %v9463_v26, %v9462_v8  ;;  %10065 = vmatprep.subr.bf16.mxu0 %v10824_v20  ;;  %v9528_v59 = vadd.f32 %v9527_v22, %v9526_v16  ;;  %10129 = vmatprep.subr.bf16.mxu1 %v10826_v44 }
 0x37c   : > { %v9465_v14 = vpop.f32.mrf.mxu0  ;;  %7416 = vmatmul.mubr.bf16.gmra.mxu0 %v14675_v10  ;;  %v9529_v50 = vpop.f32.mrf.mxu1  ;;  %7513 = vmatmul.mubr.bf16.gmra.mxu1 %v14676_v57  ;;  %v14679_v10 = vld [vmem:[#allocation113_spill] sm:$0xff] }
 0x37d   : > { %v6831_v2 = vadd.f32 %v9464_v49, %v13407_v29  ;;  %7423 = vmatprep.mubr.bf16.mxu0 %v14677_v55  ;;  %7520 = vmatprep.mubr.bf16.mxu1 %v14678_v31 }
 0x37e   : > { %v9466_v19 = vpop.f32.mrf.mxu0  ;;  %v9530_v6 = vpop.f32.mrf.mxu1 }
 0x37f   : > { %v13451_v9 = vadd.f32 %v9528_v59, %v6831_v2  ;;  %v9467_v62 = vadd.f32 %v9466_v19, %v9465_v14  ;;  %v9531_v32 = vadd.f32 %v9530_v6, %v9529_v50  ;;  %v14680_v2 = vld [vmem:[#allocation114_spill] sm:$0xff]  ;;  %v14681_v14 = vld [vmem:[#allocation119_spill] sm:$0xff]  ;;  %v14682_v50 = vld [vmem:[#allocation120_spill] sm:$0xff] }
 0x380   : > { %v9468_v20 = vpop.f32.mrf.mxu0  ;;  %v9532_v8 = vpop.f32.mrf.mxu1 }
 0x381   : > { %v6836_v3 = vadd.f32 %v9467_v62, %v13407_v29 }
 0x382   : > { %v9469_v44 = vpop.f32.mrf.mxu0  ;;  %v9533_v26 = vpop.f32.mrf.mxu1 }
 0x383   : > { %v13454_v28 = vadd.f32 %v9531_v32, %v6836_v3  ;;  %v9470_v16 = vadd.f32 %v9469_v44, %v9468_v20  ;;  %v9534_v49 = vadd.f32 %v9533_v26, %v9532_v8 }
 0x384   : > { %v9471_v22 = vpop.f32.mrf.mxu0  ;;  %7424 = vmatmul.mubr.bf16.gmra.mxu0 %v14679_v10  ;;  %v9535_v59 = vpop.f32.mrf.mxu1  ;;  %7521 = vmatmul.mubr.bf16.gmra.mxu1 %v14680_v2 }
 0x385   : > { %v6839_v57 = vadd.f32 %v9470_v16, %v13407_v29  ;;  %7431 = vmatprep.mubr.bf16.mxu0 %v14681_v14  ;;  %7528 = vmatprep.mubr.bf16.mxu1 %v14682_v50  ;;  %v14683_v14 = vld [vmem:[#allocation117_spill] sm:$0xff] }
 0x386   : > { %v9472_v55 = vpop.f32.mrf.mxu0  ;;  %v9536_v62 = vpop.f32.mrf.mxu1 }
 0x387   : > { %v13461_v31 = vadd.f32 %v9534_v49, %v6839_v57  ;;  %v9473_v19 = vadd.f32 %v9472_v55, %v9471_v22  ;;  %v9537_v6 = vadd.f32 %v9536_v62, %v9535_v59  ;;  %v14684_v57 = vld [vmem:[#allocation118_spill] sm:$0xff]  ;;  %v14685_v22 = vld [vmem:[#allocation123_spill] sm:$0xff] }
 0x388   : > { %v9474_v32 = vpop.f32.mrf.mxu0  ;;  %v9538_v3 = vpop.f32.mrf.mxu1 }
 0x389   : > { %v6844_v20 = vadd.f32 %v9473_v19, %v13407_v29 }
 0x38a   : > { %v9475_v8 = vpop.f32.mrf.mxu0  ;;  %v9539_v26 = vpop.f32.mrf.mxu1 }
 0x38b   : > { %v13464_v44 = vadd.f32 %v9537_v6, %v6844_v20  ;;  %v9476_v16 = vadd.f32 %v9475_v8, %v9474_v32  ;;  %v9540_v10 = vadd.f32 %v9539_v26, %v9538_v3 }
 0x38c   : > { %v9477_v2 = vpop.f32.mrf.mxu0  ;;  %7432 = vmatmul.mubr.bf16.gmra.mxu0 %v14683_v14  ;;  %v9541_v49 = vpop.f32.mrf.mxu1  ;;  %7529 = vmatmul.mubr.bf16.gmra.mxu1 %v14684_v57 }
 0x38d   : > { %v6847_v50 = vadd.f32 %v9476_v16, %v13407_v29  ;;  %7439 = vmatprep.mubr.bf16.mxu0 %v14685_v22  ;;  %7536 = vmatprep.mubr.bf16.mxu1 %v12720_v38  ;;  %v14686_v22 = vld [vmem:[#allocation121_spill] sm:$0xff] }
 0x38e   : > { %v9478_v59 = vpop.f32.mrf.mxu0  ;;  %v9542_v62 = vpop.f32.mrf.mxu1 }
 0x38f   : > { %v13471_v55 = vadd.f32 %v9540_v10, %v6847_v50  ;;  %v9479_v19 = vadd.f32 %v9478_v59, %v9477_v2  ;;  %v9543_v6 = vadd.f32 %v9542_v62, %v9541_v49  ;;  %v14687_v50 = vld [vmem:[#allocation122_spill] sm:$0xff]  ;;  %v14689_v49 = vld [vmem:[#allocation127_spill] sm:$0xff] }
 0x390   : > { %v9480_v32 = vpop.f32.mrf.mxu0  ;;  %v9544_v3 = vpop.f32.mrf.mxu1  ;;  %v14688_v2 = vld [vmem:[#allocation126_spill] sm:$0xff] }
 0x391   : > { %v6852_v20 = vadd.f32 %v9479_v19, %v13407_v29 }
 0x392   : > { %v9481_v8 = vpop.f32.mrf.mxu0  ;;  %v9545_v14 = vpop.f32.mrf.mxu1 }
 0x393   : > { %v13474_v26 = vadd.f32 %v9543_v6, %v6852_v20  ;;  %v9482_v16 = vadd.f32 %v9481_v8, %v9480_v32  ;;  %v9546_v57 = vadd.f32 %v9545_v14, %v9544_v3 }
 0x394   : > { %v9483_v42 = vpop.f32.mrf.mxu0  ;;  %7440 = vmatmul.mubr.bf16.gmra.mxu0 %v14686_v22  ;;  %v9547_v10 = vpop.f32.mrf.mxu1  ;;  %7537 = vmatmul.mubr.bf16.gmra.mxu1 %v14687_v50  ;;  %v10825_v22 = vld [vmem:[#allocation8 + $0x538] sm:$0xff]  }
 0x395   : > { %v6855_v38 = vadd.f32 %v9482_v16, %v13407_v29  ;;  %7577 = vmatprep.mubr.bf16.mxu0 %v14688_v2  ;;  %7674 = vmatprep.mubr.bf16.mxu1 %v14689_v49  ;;  %v10828_v2 = vld [vmem:[#allocation8 + $0x570] sm:$0xff]  }
 0x396   : > { %v9484_v59 = vpop.f32.mrf.mxu0  ;;  %v9548_v6 = vpop.f32.mrf.mxu1 }
 0x397   : > { %v13481_v19 = vadd.f32 %v9546_v57, %v6855_v38  ;;  %v9485_v62 = vadd.f32 %v9484_v59, %v9483_v42  ;;  %v9549_v32 = vadd.f32 %v9548_v6, %v9547_v10  ;;  %v10830_v57 = vld [vmem:[#allocation8 + $0x5f0] sm:$0xff]   ;;  %v14691_v10 = vld [vmem:[#allocation125_spill] sm:$0xff] }
 0x398   : > { %v9486_v20 = vpop.f32.mrf.mxu0  ;;  %v9550_v8 = vpop.f32.mrf.mxu1  ;;  %v14692_v59 = vld [vmem:[#allocation130_spill] sm:$0xff] }
 0x399   : > { %v6860_v3 = vadd.f32 %v9485_v62, %v13407_v29  ;;  %v10829_v6 = vld [vmem:[#allocation8 + $0x530] sm:$0xff]  }
 0x39a   : > { %v9487_v14 = vpop.f32.mrf.mxu0  ;;  %v9551_v50 = vpop.f32.mrf.mxu1 }
 0x39b   : > { %v13484_v16 = vadd.f32 %v9549_v32, %v6860_v3  ;;  %v9488_v23 = vadd.f32 %v9487_v14, %v9486_v20  ;;  %v9552_v12 = vadd.f32 %v9551_v50, %v9550_v8  ;;  %v10832_v8 = vld [vmem:[#allocation8 + $0x568] sm:$0xff]  }
 0x39c   : > { %v9569_v49 = vpop.f32.mrf.mxu0  ;;  %7578 = vmatmul.mubr.bf16.vlgmr.msra.gmra.mxu0 %v14690_v54  ;;  %v9633_v38 = vpop.f32.mrf.mxu1  ;;  %7675 = vmatmul.mubr.bf16.vlgmr.msra.gmra.mxu1 %v14691_v10  ;;  %v10831_v54 = vld [vmem:[#allocation8 + $0x5b0] sm:$0xff]  }
 0x39d   : > { %v6863_v42 = vadd.f32 %v9488_v23, %v13407_v29  ;;  %7585 = vmatprep.mubr.bf16.mxu0 %v12755_v13  ;;  %7682 = vmatprep.mubr.bf16.mxu1 %v14692_v59  ;;  %v10834_v23 = vld [vmem:[#allocation8 + $0x5e8] sm:$0xff]  }
 0x39e   : > { %10066 = vmatpush3.bf16.msra.mxu0 %v10825_v22  ;;  %v9570_v62 = vpop.f32.mrf.mxu0  ;;  %v9634_v3 = vpop.f32.mrf.mxu1  ;;  %10130 = vmatpush3.bf16.msra.mxu1 %v10827_v37  ;;  %v10833_v22 = vld [vmem:[#allocation8 + $0x528] sm:$0xff]  }
 0x39f   : > { %v13491_v32 = vadd.f32 %v9552_v12, %v6863_v42  ;;  %v9571_v20 = vadd.f32 %v9570_v62, %v9569_v49  ;;  %10067 = vmatprep.subr.bf16.mxu0 %v10828_v2  ;;  %v9635_v14 = vadd.f32 %v9634_v3, %v9633_v38  ;;  %10131 = vmatprep.subr.bf16.mxu1 %v10830_v57  ;;  %v10835_v37 = vld [vmem:[#allocation8 + $0x5a8] sm:$0xff]   ;;  %v10836_v2 = vld [vmem:[#allocation8 + $0x560] sm:$0xff]  }
 0x3a0   : > { %v9572_v29 = vpop.f32.mrf.mxu0  ;;  %v9636_v13 = vpop.f32.mrf.mxu1  ;;  %v14693_v38 = vld [vmem:[#allocation128_spill] sm:$0xff]  ;;  %v14694_v3 = vld [vmem:[#allocation129_spill] sm:$0xff] }
 0x3a1   : > { %v6998_v50 = vadd.f32 %v9571_v20, %v13414_v21  ;;  %v10838_v57 = vld [vmem:[#allocation8 + $0x5e0] sm:$0xff]  }
 0x3a2   : > { %v9573_v10 = vpop.f32.mrf.mxu0  ;;  %10068 = vmatpush3.bf16.msra.mxu0 %v10829_v6  ;;  %v9637_v42 = vpop.f32.mrf.mxu1  ;;  %10132 = vmatpush3.bf16.msra.mxu1 %v10831_v54  ;;  %v10837_v54 = vld [vmem:[#allocation8 + $0x520] sm:$0xff]  }
 0x3a3   : > { %v13494_v59 = vadd.f32 %v9635_v14, %v6998_v50  ;;  %v9574_v12 = vadd.f32 %v9573_v10, %v9572_v29  ;;  %10069 = vmatprep.subr.bf16.mxu0 %v10832_v8  ;;  %v9638_v49 = vadd.f32 %v9637_v42, %v9636_v13  ;;  %10133 = vmatprep.subr.bf16.mxu1 %v10834_v23  ;;  %v10839_v23 = vld [vmem:[#allocation8 + $0x5a0] sm:$0xff]   ;;  %v10840_v50 = vld [vmem:[#allocation8 + $0x558] sm:$0xff]  }
 0x3a4   : > { %v9575_v62 = vpop.f32.mrf.mxu0  ;;  %7586 = vmatmul.mubr.bf16.gmra.mxu0 %v14693_v38  ;;  %v9639_v20 = vpop.f32.mrf.mxu1  ;;  %7683 = vmatmul.mubr.bf16.gmra.mxu1 %v14694_v3  ;;  %v10842_v10 = vld [vmem:[#allocation8 + $0x5d8] sm:$0xff]  }
 0x3a5   : > { %v7001_v21 = vadd.f32 %v9574_v12, %v13421_v48  ;;  %7593 = vmatprep.mubr.bf16.mxu0 %v12775_v24  ;;  %7690 = vmatprep.mubr.bf16.mxu1 %v12778_v40  ;;  %v10841_v40 = vld [vmem:[#allocation8 + $0x518] sm:$0xff]  }
 0x3a6   : > { %v9576_v6 = vpop.f32.mrf.mxu0  ;;  %10070 = vmatpush3.bf16.msra.mxu0 %v10833_v22  ;;  %v9640_v29 = vpop.f32.mrf.mxu1  ;;  %10134 = vmatpush3.bf16.msra.mxu1 %v10835_v37  ;;  %v10843_v37 = vld [vmem:[#allocation8 + $0x598] sm:$0xff]  }
 0x3a7   : > { %v13501_v8 = vadd.f32 %v9638_v49, %v7001_v21  ;;  %v9577_v14 = vadd.f32 %v9576_v6, %v9575_v62  ;;  %10071 = vmatprep.subr.bf16.mxu0 %v10836_v2  ;;  %v9641_v13 = vadd.f32 %v9640_v29, %v9639_v20  ;;  %10135 = vmatprep.subr.bf16.mxu1 %v10838_v57  ;;  %v10844_v2 = vld [vmem:[#allocation8 + $0x550] sm:$0xff]   ;;  %v14695_v3 = vld [vmem:[#allocation131_spill] sm:$0xff] }
 0x3a8   : > { %v9578_v48 = vpop.f32.mrf.mxu0  ;;  %v9642_v24 = vpop.f32.mrf.mxu1  ;;  %v10846_v57 = vld [vmem:[#allocation8 + $0x5d0] sm:$0xff]  }
 0x3a9   : > { %v7006_v12 = vadd.f32 %v9577_v14, %v13424_v47 }
 0x3aa   : > { %v9579_v42 = vpop.f32.mrf.mxu0  ;;  %10072 = vmatpush3.bf16.msra.mxu0 %v10837_v54  ;;  %v9643_v38 = vpop.f32.mrf.mxu1  ;;  %10136 = vmatpush3.bf16.msra.mxu1 %v10839_v23  ;;  %v10845_v54 = vld [vmem:[#allocation8 + $0x510] sm:$0xff]  }
 0x3ab   : > { %v13504_v22 = vadd.f32 %v9641_v13, %v7006_v12  ;;  %v9580_v49 = vadd.f32 %v9579_v42, %v9578_v48  ;;  %10073 = vmatprep.subr.bf16.mxu0 %v10840_v50  ;;  %v9644_v62 = vadd.f32 %v9643_v38, %v9642_v24  ;;  %10137 = vmatprep.subr.bf16.mxu1 %v10842_v10  ;;  %v10848_v50 = vld [vmem:[#allocation8 + $0x548] sm:$0xff]   ;;  %v10852_v38 = vld [vmem:[#allocation8 + $0x540] sm:$0xff]  }
 0x3ac   : > { %v9581_v21 = vpop.f32.mrf.mxu0  ;;  %7594 = vmatmul.mubr.bf16.gmra.mxu0 %v12767_v0  ;;  %v9645_v20 = vpop.f32.mrf.mxu1  ;;  %7691 = vmatmul.mubr.bf16.gmra.mxu1 %v14695_v3  ;;  %v10847_v0 = vld [vmem:[#allocation8 + $0x590] sm:$0xff]   ;;  %v10850_v48 = vld [vmem:[#allocation8 + $0x5c8] sm:$0xff]   ;;  %v10853_v3 = vld [vmem:[#allocation8 + $0x500] sm:$0xff]  }
 0x3ad   : > { %v7009_v47 = vadd.f32 %v9580_v49, %v13431_v41  ;;  %7601 = vmatprep.mubr.bf16.mxu0 %v12795_v43  ;;  %7698 = vmatprep.mubr.bf16.mxu1 %v12798_v33  ;;  %v10849_v33 = vld [vmem:[#allocation8 + $0x508] sm:$0xff]  }
 0x3ae   : > { %v9582_v6 = vpop.f32.mrf.mxu0  ;;  %10074 = vmatpush3.bf16.msra.mxu0 %v10841_v40  ;;  %v9646_v23 = vpop.f32.mrf.mxu1  ;;  %10138 = vmatpush3.bf16.msra.mxu1 %v10843_v37  ;;  %v10851_v49 = vld [vmem:[#allocation8 + $0x588] sm:$0xff]  }
 0x3af   : > { %v13511_v14 = vadd.f32 %v9644_v62, %v7009_v47  ;;  %v9583_v29 = vadd.f32 %v9582_v6, %v9581_v21  ;;  %10075 = vmatprep.subr.bf16.mxu0 %v10844_v2  ;;  %v9647_v13 = vadd.f32 %v9646_v23, %v9645_v20  ;;  %10139 = vmatprep.subr.bf16.mxu1 %v10846_v57  ;;  %v10854_v62 = vld [vmem:[#allocation8 + $0x5c0] sm:$0xff]   ;;  %v14697_v47 = vld [vmem:[#allocation135_spill] sm:$0xff] }
 0x3b0   : > { %v9584_v41 = vpop.f32.mrf.mxu0  ;;  %v9648_v43 = vpop.f32.mrf.mxu1  ;;  %v14696_v57 = vld [vmem:[#allocation132_spill] sm:$0xff]  ;;  %v10856_v23 = vld [vmem:[#allocation8 + $0x678] sm:$0xff]  }
 0x3b1   : > { %v7014_v10 = vadd.f32 %v9583_v29, %v13434_v52 }
 0x3b2   : > { %v9585_v12 = vpop.f32.mrf.mxu0  ;;  %10076 = vmatpush3.bf16.msra.mxu0 %v10845_v54  ;;  %v9649_v40 = vpop.f32.mrf.mxu1  ;;  %10140 = vmatpush3.bf16.msra.mxu1 %v10847_v0 }
 0x3b3   : > { %v13514_v24 = vadd.f32 %v9647_v13, %v7014_v10  ;;  %v9586_v42 = vadd.f32 %v9585_v12, %v9584_v41  ;;  %10077 = vmatprep.subr.bf16.mxu0 %v10848_v50  ;;  %v9650_v37 = vadd.f32 %v9649_v40, %v9648_v43  ;;  %10141 = vmatprep.subr.bf16.mxu1 %v10850_v48  ;;  %v10858_v50 = vld [vmem:[#allocation8 + $0x6f8] sm:$0xff]  }
 0x3b4   : > { %v9587_v2 = vpop.f32.mrf.mxu0  ;;  %7602 = vmatmul.mubr.bf16.gmra.mxu0 %v12787_v1  ;;  %v9651_v21 = vpop.f32.mrf.mxu1  ;;  %7699 = vmatmul.mubr.bf16.gmra.mxu1 %v14696_v57  ;;  %v10855_v1 = vld [vmem:[#allocation8 + $0x580] sm:$0xff]  }
 0x3b5   : > { %v7017_v52 = vadd.f32 %v9586_v42, %v13441_v35  ;;  %7609 = vmatprep.mubr.bf16.mxu0 %v12815_v60  ;;  %7706 = vmatprep.mubr.bf16.mxu1 %v14697_v47  ;;  %v14698_v42 = vld [vmem:[#allocation133_spill] sm:$0xff] }
 0x3b6   : > { %v9588_v20 = vpop.f32.mrf.mxu0  ;;  %10078 = vmatpush3.bf16.msra.mxu0 %v10849_v33  ;;  %v9652_v29 = vpop.f32.mrf.mxu1  ;;  %10142 = vmatpush3.bf16.msra.mxu1 %v10851_v49 }
 0x3b7   : > { %v13521_v6 = vadd.f32 %v9650_v37, %v7017_v52  ;;  %v9589_v54 = vadd.f32 %v9588_v20, %v9587_v2  ;;  %10079 = vmatprep.subr.bf16.mxu0 %v10852_v38  ;;  %v9653_v0 = vadd.f32 %v9652_v29, %v9651_v21  ;;  %10143 = vmatprep.subr.bf16.mxu1 %v10854_v62  ;;  %v14699_v38 = vld [vmem:[#allocation134_spill] sm:$0xff] }
 0x3b8   : > { %v9590_v35 = vpop.f32.mrf.mxu0  ;;  %v9654_v60 = vpop.f32.mrf.mxu1 }
 0x3b9   : > { %v7022_v13 = vadd.f32 %v9589_v54, %v13444_v36 }
 0x3ba   : > { %v9591_v41 = vpop.f32.mrf.mxu0  ;;  %10080 = vmatpush3.bf16.msra.mxu0 %v10853_v3  ;;  %v9655_v43 = vpop.f32.mrf.mxu1  ;;  %10144 = vmatpush3.bf16.msra.mxu1 %v10855_v1 }
 0x3bb   : > { %v13524_v48 = vadd.f32 %v9653_v0, %v7022_v13  ;;  %v9592_v10 = vadd.f32 %v9591_v41, %v9590_v35  ;;  %10193 = vmatprep.subr.bf16.mxu0 %v10856_v23  ;;  %v9656_v12 = vadd.f32 %v9655_v43, %v9654_v60  ;;  %10257 = vmatprep.subr.bf16.mxu1 %v10858_v50  ;;  %v14701_v0 = vld [vmem:[#allocation137_spill] sm:$0xff] }
 0x3bc   : > { %v9593_v33 = vpop.f32.mrf.mxu0  ;;  %7610 = vmatmul.mubr.bf16.gmra.mxu0 %v14698_v42  ;;  %v9657_v49 = vpop.f32.mrf.mxu1  ;;  %7707 = vmatmul.mubr.bf16.gmra.mxu1 %v14699_v38  ;;  %v14702_v38 = vld [vmem:[#allocation138_spill] sm:$0xff] }
 0x3bd   : > { %v7025_v40 = vadd.f32 %v9592_v10, %v13451_v9  ;;  %7617 = vmatprep.mubr.bf16.mxu0 %v12835_v7  ;;  %7714 = vmatprep.mubr.bf16.mxu1 %v12838_v45  ;;  %v14700_v7 = vld [vmem:[#allocation136_spill] sm:$0xff] }
 0x3be   : > { %v9594_v36 = vpop.f32.mrf.mxu0  ;;  %v9658_v62 = vpop.f32.mrf.mxu1 }
 0x3bf   : > { %v13531_v37 = vadd.f32 %v9656_v12, %v7025_v40  ;;  %v9595_v2 = vadd.f32 %v9594_v36, %v9593_v33  ;;  %v9659_v52 = vadd.f32 %v9658_v62, %v9657_v49  ;;  %v14703_v36 = vld [vmem:[#allocation141_spill] sm:$0xff] }
 0x3c0   : > { %v9596_v21 = vpop.f32.mrf.mxu0  ;;  %v9660_v47 = vpop.f32.mrf.mxu1 }
 0x3c1   : > { %v7030_v57 = vadd.f32 %v9595_v2, %v13454_v28 }
 0x3c2   : > { %v9597_v20 = vpop.f32.mrf.mxu0  ;;  %v9661_v54 = vpop.f32.mrf.mxu1 }
 0x3c3   : > { %v13534_v3 = vadd.f32 %v9659_v52, %v7030_v57  ;;  %v9598_v9 = vadd.f32 %v9597_v20, %v9596_v21  ;;  %v9662_v29 = vadd.f32 %v9661_v54, %v9660_v47 }
 0x3c4   : > { %v9599_v1 = vpop.f32.mrf.mxu0  ;;  %7618 = vmatmul.mubr.bf16.gmra.mxu0 %v14700_v7  ;;  %v9663_v23 = vpop.f32.mrf.mxu1  ;;  %7715 = vmatmul.mubr.bf16.gmra.mxu1 %v14701_v0  ;;  %v14704_v7 = vld [vmem:[#allocation139_spill] sm:$0xff] }
 0x3c5   : > { %v7033_v45 = vadd.f32 %v9598_v9, %v13461_v31  ;;  %7625 = vmatprep.mubr.bf16.mxu0 %v12855_v61  ;;  %7722 = vmatprep.mubr.bf16.mxu1 %v12858_v17 }
 0x3c6   : > { %v9600_v28 = vpop.f32.mrf.mxu0  ;;  %v9664_v13 = vpop.f32.mrf.mxu1 }
 0x3c7   : > { %v13541_v35 = vadd.f32 %v9662_v29, %v7033_v45  ;;  %v9601_v50 = vadd.f32 %v9600_v28, %v9599_v1  ;;  %v9665_v60 = vadd.f32 %v9664_v13, %v9663_v23  ;;  %v14705_v23 = vld [vmem:[#allocation140_spill] sm:$0xff] }
 0x3c8   : > { %v9602_v41 = vpop.f32.mrf.mxu0  ;;  %v9666_v43 = vpop.f32.mrf.mxu1 }
 0x3c9   : > { %v7038_v10 = vadd.f32 %v9601_v50, %v13464_v44 }
 0x3ca   : > { %v9603_v12 = vpop.f32.mrf.mxu0  ;;  %v9667_v42 = vpop.f32.mrf.mxu1 }
 0x3cb   : > { %v13544_v33 = vadd.f32 %v9665_v60, %v7038_v10  ;;  %v9604_v31 = vadd.f32 %v9603_v12, %v9602_v41  ;;  %v9668_v40 = vadd.f32 %v9667_v42, %v9666_v43  ;;  %v10857_v12 = vld [vmem:[#allocation8 + $0x638] sm:$0xff]  }
 0x3cc   : > { %v9605_v49 = vpop.f32.mrf.mxu0  ;;  %7626 = vmatmul.mubr.bf16.gmra.mxu0 %v12847_v27  ;;  %v9669_v17 = vpop.f32.mrf.mxu1  ;;  %7723 = vmatmul.mubr.bf16.gmra.mxu1 %v14702_v38 }
 0x3cd   : > { %v7041_v61 = vadd.f32 %v9604_v31, %v13471_v55  ;;  %7633 = vmatprep.mubr.bf16.mxu0 %v14703_v36  ;;  %7730 = vmatprep.mubr.bf16.mxu1 %v12896_v15  ;;  %v14707_v36 = vld [vmem:[#allocation143_spill] sm:$0xff] }
 0x3ce   : > { %v9606_v44 = vpop.f32.mrf.mxu0  ;;  %v9670_v52 = vpop.f32.mrf.mxu1 }
 0x3cf   : > { %v13551_v2 = vadd.f32 %v9668_v40, %v7041_v61  ;;  %v9607_v62 = vadd.f32 %v9606_v44, %v9605_v49  ;;  %v9671_v21 = vadd.f32 %v9670_v52, %v9669_v17  ;;  %v10859_v40 = vld [vmem:[#allocation8 + $0x6b8] sm:$0xff]   ;;  %v10862_v61 = vld [vmem:[#allocation8 + $0x6f0] sm:$0xff]  }
 0x3d0   : > { %v9608_v57 = vpop.f32.mrf.mxu0  ;;  %v9672_v20 = vpop.f32.mrf.mxu1 }
 0x3d1   : > { %v7046_v47 = vadd.f32 %v9607_v62, %v13474_v26  ;;  %v10861_v62 = vld [vmem:[#allocation8 + $0x630] sm:$0xff]  }
 0x3d2   : > { %v9609_v27 = vpop.f32.mrf.mxu0  ;;  %v9673_v54 = vpop.f32.mrf.mxu1 }
 0x3d3   : > { %v13554_v9 = vadd.f32 %v9671_v21, %v7046_v47  ;;  %v9610_v55 = vadd.f32 %v9609_v27, %v9608_v57  ;;  %v9674_v29 = vadd.f32 %v9673_v54, %v9672_v20  ;;  %v10864_v47 = vld [vmem:[#allocation8 + $0x668] sm:$0xff]  }
 0x3d4   : > { %v9611_v1 = vpop.f32.mrf.mxu0  ;;  %7634 = vmatmul.mubr.bf16.gmra.mxu0 %v14704_v7  ;;  %v9675_v45 = vpop.f32.mrf.mxu1  ;;  %7731 = vmatmul.mubr.bf16.gmra.mxu1 %v14705_v23  ;;  %v10866_v27 = vld [vmem:[#allocation8 + $0x6e8] sm:$0xff]   ;;  %v10868_v23 = vld [vmem:[#allocation8 + $0x660] sm:$0xff]  }
 0x3d5   : > { %v7049_v15 = vadd.f32 %v9610_v55, %v13481_v19  ;;  %7771 = vmatprep.mubr.bf16.mxu0 %v12911_v34  ;;  %7868 = vmatprep.mubr.bf16.mxu1 %v12914_v18  ;;  %v10860_v34 = vld [vmem:[#allocation8 + $0x670] sm:$0xff]  }
 0x3d6   : > { %v9612_v26 = vpop.f32.mrf.mxu0  ;;  %v9676_v50 = vpop.f32.mrf.mxu1 }
 0x3d7   : > { %v13561_v0 = vadd.f32 %v9674_v29, %v7049_v15  ;;  %v9613_v28 = vadd.f32 %v9612_v26, %v9611_v1  ;;  %v9677_v13 = vadd.f32 %v9676_v50, %v9675_v45  ;;  %v10865_v29 = vld [vmem:[#allocation8 + $0x628] sm:$0xff]   ;;  %v14708_v50 = vld [vmem:[#allocation142_spill] sm:$0xff] }
 0x3d8   : > { %v9614_v60 = vpop.f32.mrf.mxu0  ;;  %v9678_v10 = vpop.f32.mrf.mxu1  ;;  %v10867_v45 = vld [vmem:[#allocation8 + $0x6a8] sm:$0xff]  }
 0x3d9   : > { %v7054_v41 = vadd.f32 %v9613_v28, %v13484_v16  ;;  %v14706_v16 = vld [vmem:[#allocation19_spill] sm:$0xff] }
 0x3da   : > { %v9615_v43 = vpop.f32.mrf.mxu0  ;;  %v9679_v42 = vpop.f32.mrf.mxu1 }
 0x3db   : > { %v13564_v19 = vadd.f32 %v9677_v13, %v7054_v41  ;;  %v9616_v31 = vadd.f32 %v9615_v43, %v9614_v60  ;;  %v9680_v49 = vadd.f32 %v9679_v42, %v9678_v10  ;;  %v10870_v13 = vld [vmem:[#allocation8 + $0x6e0] sm:$0xff]   ;;  %v14709_v41 = vld [vmem:[#allocation18_spill] sm:$0xff] }
 0x3dc   : > { %v9697_v18 = vpop.f32.mrf.mxu0  ;;  %7772 = vmatmul.mubr.bf16.vlgmr.msra.gmra.mxu0 %v12903_v39  ;;  %v9761_v38 = vpop.f32.mrf.mxu1  ;;  %7869 = vmatmul.mubr.bf16.vlgmr.msra.gmra.mxu1 %v12907_v53  ;;  %v10863_v39 = vld [vmem:[#allocation8 + $0x6b0] sm:$0xff]   ;;  %v10869_v43 = vld [vmem:[#allocation8 + $0x620] sm:$0xff]  }
 0x3dd   : > { %v7057_v17 = vadd.f32 %v9616_v31, %v13491_v32  ;;  %7779 = vmatprep.mubr.bf16.mxu0 %v14706_v16  ;;  %7876 = vmatprep.mubr.bf16.mxu1 %v14707_v36 }
 0x3de   : > { %10194 = vmatpush3.bf16.msra.mxu0 %v10857_v12  ;;  %v9698_v44 = vpop.f32.mrf.mxu0  ;;  %v9762_v57 = vpop.f32.mrf.mxu1  ;;  %10258 = vmatpush3.bf16.msra.mxu1 %v10859_v40  ;;  %v10871_v40 = vld [vmem:[#allocation8 + $0x6a0] sm:$0xff]  }
 0x3df   : > { %v13571_v52 = vadd.f32 %v9680_v49, %v7057_v17  ;;  %v9699_v21 = vadd.f32 %v9698_v44, %v9697_v18  ;;  %10195 = vmatprep.subr.bf16.mxu0 %v10860_v34  ;;  %v9763_v20 = vadd.f32 %v9762_v57, %v9761_v38  ;;  %10259 = vmatprep.subr.bf16.mxu1 %v10862_v61  ;;  %v10872_v34 = vld [vmem:[#allocation8 + $0x658] sm:$0xff]  }
 0x3e0   : > { %v9700_v32 = vpop.f32.mrf.mxu0  ;;  %v9764_v55 = vpop.f32.mrf.mxu1  ;;  %v10874_v18 = vld [vmem:[#allocation8 + $0x6d8] sm:$0xff]  }
 0x3e1   : > { %v7192_v53 = vadd.f32 %v9699_v21, %v13494_v59  ;;  %v10875_v44 = vld [vmem:[#allocation8 + $0x698] sm:$0xff]  }
 0x3e2   : > { %v9701_v54 = vpop.f32.mrf.mxu0  ;;  %10196 = vmatpush3.bf16.msra.mxu0 %v10861_v62  ;;  %v9765_v15 = vpop.f32.mrf.mxu1  ;;  %10260 = vmatpush3.bf16.msra.mxu1 %v10863_v39  ;;  %v10876_v62 = vld [vmem:[#allocation8 + $0x650] sm:$0xff]  }
 0x3e3   : > { %v13574_v1 = vadd.f32 %v9763_v20, %v7192_v53  ;;  %v9702_v7 = vadd.f32 %v9701_v54, %v9700_v32  ;;  %10197 = vmatprep.subr.bf16.mxu0 %v10864_v47  ;;  %v9766_v26 = vadd.f32 %v9765_v15, %v9764_v55  ;;  %10261 = vmatprep.subr.bf16.mxu1 %v10866_v27  ;;  %v10878_v39 = vld [vmem:[#allocation8 + $0x6d0] sm:$0xff]   ;;  %v14710_v20 = vld [vmem:[#allocation16_spill] sm:$0xff]  ;;  %v14711_v32 = vld [vmem:[#allocation23_spill] sm:$0xff] }
 0x3e4   : > { %v9703_v28 = vpop.f32.mrf.mxu0  ;;  %7780 = vmatmul.mubr.bf16.gmra.mxu0 %v14708_v50  ;;  %v9767_v60 = vpop.f32.mrf.mxu1  ;;  %7877 = vmatmul.mubr.bf16.gmra.mxu1 %v14709_v41  ;;  %v14712_v27 = vld [vmem:[#allocation20_spill] sm:$0xff]  ;;  %v10877_v55 = vld [vmem:[#allocation8 + $0x610] sm:$0xff]   ;;  %v10880_v15 = vld [vmem:[#allocation8 + $0x648] sm:$0xff]  }
 0x3e5   : > { %v7195_v59 = vadd.f32 %v9702_v7, %v13501_v8  ;;  %7787 = vmatprep.mubr.bf16.mxu0 %v12951_v30  ;;  %7884 = vmatprep.mubr.bf16.mxu1 %v12954_v56  ;;  %v10873_v56 = vld [vmem:[#allocation8 + $0x618] sm:$0xff]  }
 0x3e6   : > { %v9704_v10 = vpop.f32.mrf.mxu0  ;;  %10198 = vmatpush3.bf16.msra.mxu0 %v10865_v29  ;;  %v9768_v42 = vpop.f32.mrf.mxu1  ;;  %10262 = vmatpush3.bf16.msra.mxu1 %v10867_v45 }
 0x3e7   : > { %v13581_v12 = vadd.f32 %v9766_v26, %v7195_v59  ;;  %v9705_v31 = vadd.f32 %v9704_v10, %v9703_v28  ;;  %10199 = vmatprep.subr.bf16.mxu0 %v10868_v23  ;;  %v9769_v49 = vadd.f32 %v9768_v42, %v9767_v60  ;;  %10263 = vmatprep.subr.bf16.mxu1 %v10870_v13  ;;  %v10882_v23 = vld [vmem:[#allocation8 + $0x6c8] sm:$0xff]  }
 0x3e8   : > { %v9706_v8 = vpop.f32.mrf.mxu0  ;;  %v9770_v30 = vpop.f32.mrf.mxu1  ;;  %v10881_v13 = vld [vmem:[#allocation8 + $0x608] sm:$0xff]  }
 0x3e9   : > { %v7200_v61 = vadd.f32 %v9705_v31, %v13504_v22  ;;  %v10883_v10 = vld [vmem:[#allocation8 + $0x688] sm:$0xff]  }
 0x3ea   : > { %v9707_v17 = vpop.f32.mrf.mxu0  ;;  %10200 = vmatpush3.bf16.msra.mxu0 %v10869_v43  ;;  %v9771_v36 = vpop.f32.mrf.mxu1  ;;  %10264 = vmatpush3.bf16.msra.mxu1 %v10871_v40  ;;  %v10884_v43 = vld [vmem:[#allocation8 + $0x640] sm:$0xff]   ;;  %v14713_v40 = vld [vmem:[#allocation17_spill] sm:$0xff] }
 0x3eb   : > { %v13584_v38 = vadd.f32 %v9769_v49, %v7200_v61  ;;  %v9708_v16 = vadd.f32 %v9707_v17, %v9706_v8  ;;  %10201 = vmatprep.subr.bf16.mxu0 %v10872_v34  ;;  %v9772_v21 = vadd.f32 %v9771_v36, %v9770_v30  ;;  %10265 = vmatprep.subr.bf16.mxu1 %v10874_v18  ;;  %v10886_v34 = vld [vmem:[#allocation8 + $0x6c0] sm:$0xff]   ;;  %v14714_v8 = vld [vmem:[#allocation22_spill] sm:$0xff]  ;;  %v14715_v18 = vld [vmem:[#allocation27_spill] sm:$0xff] }
 0x3ec   : > { %v9709_v57 = vpop.f32.mrf.mxu0  ;;  %7788 = vmatmul.mubr.bf16.gmra.mxu0 %v12943_v4  ;;  %v9773_v47 = vpop.f32.mrf.mxu1  ;;  %7885 = vmatmul.mubr.bf16.gmra.mxu1 %v14710_v20  ;;  %v10879_v4 = vld [vmem:[#allocation8 + $0x690] sm:$0xff]   ;;  %v14716_v61 = vld [vmem:[#allocation24_spill] sm:$0xff] }
 0x3ed   : > { %v7203_v22 = vadd.f32 %v9708_v16, %v13511_v14  ;;  %7795 = vmatprep.mubr.bf16.mxu0 %v14711_v32  ;;  %7892 = vmatprep.mubr.bf16.mxu1 %v14712_v27  ;;  %v10885_v17 = vld [vmem:[#allocation8 + $0x600] sm:$0xff]  }
 0x3ee   : > { %v9710_v53 = vpop.f32.mrf.mxu0  ;;  %10202 = vmatpush3.bf16.msra.mxu0 %v10873_v56  ;;  %v9774_v7 = vpop.f32.mrf.mxu1  ;;  %10266 = vmatpush3.bf16.msra.mxu1 %v10875_v44  ;;  %v10887_v44 = vld [vmem:[#allocation8 + $0x680] sm:$0xff]  }
 0x3ef   : > { %v13591_v54 = vadd.f32 %v9772_v21, %v7203_v22  ;;  %v9711_v29 = vadd.f32 %v9710_v53, %v9709_v57  ;;  %10203 = vmatprep.subr.bf16.mxu0 %v10876_v62  ;;  %v9775_v45 = vadd.f32 %v9774_v7, %v9773_v47  ;;  %10267 = vmatprep.subr.bf16.mxu1 %v10878_v39  ;;  %v10888_v62 = vld [vmem:[#allocation8 + $0x778] sm:$0xff]  }
 0x3f0   : > { %v9712_v14 = vpop.f32.mrf.mxu0  ;;  %v9776_v28 = vpop.f32.mrf.mxu1  ;;  %v10890_v57 = vld [vmem:[#allocation8 + $0x7f8] sm:$0xff]  }
 0x3f1   : > { %v7208_v26 = vadd.f32 %v9711_v29, %v13514_v24  ;;  %v14717_v29 = vld [vmem:[#allocation21_spill] sm:$0xff] }
 0x3f2   : > { %v9713_v50 = vpop.f32.mrf.mxu0  ;;  %10204 = vmatpush3.bf16.msra.mxu0 %v10877_v55  ;;  %v9777_v41 = vpop.f32.mrf.mxu1  ;;  %10268 = vmatpush3.bf16.msra.mxu1 %v10879_v4 }
 0x3f3   : > { %v13594_v59 = vadd.f32 %v9775_v45, %v7208_v26  ;;  %v9714_v60 = vadd.f32 %v9713_v50, %v9712_v14  ;;  %10205 = vmatprep.subr.bf16.mxu0 %v10880_v15  ;;  %v9778_v31 = vadd.f32 %v9777_v41, %v9776_v28  ;;  %10269 = vmatprep.subr.bf16.mxu1 %v10882_v23  ;;  %v14718_v15 = vld [vmem:[#allocation26_spill] sm:$0xff]  ;;  %v14720_v45 = vld [vmem:[#allocation28_spill] sm:$0xff] }
 0x3f4   : > { %v9715_v42 = vpop.f32.mrf.mxu0  ;;  %7796 = vmatmul.mubr.bf16.gmra.mxu0 %v14713_v40  ;;  %v9779_v49 = vpop.f32.mrf.mxu1  ;;  %7893 = vmatmul.mubr.bf16.gmra.mxu1 %v14714_v8  ;;  %v14722_v8 = vld [vmem:[#allocation30_spill] sm:$0xff] }
 0x3f5   : > { %v7211_v24 = vadd.f32 %v9714_v60, %v13521_v6  ;;  %7803 = vmatprep.mubr.bf16.mxu0 %v14715_v18  ;;  %7900 = vmatprep.mubr.bf16.mxu1 %v14716_v61  ;;  %v14723_v18 = vld [vmem:[#allocation35_spill] sm:$0xff]  ;;  %v14724_v61 = vld [vmem:[#allocation32_spill] sm:$0xff] }
 0x3f6   : > { %v9716_v30 = vpop.f32.mrf.mxu0  ;;  %10206 = vmatpush3.bf16.msra.mxu0 %v10881_v13  ;;  %v9780_v36 = vpop.f32.mrf.mxu1  ;;  %10270 = vmatpush3.bf16.msra.mxu1 %v10883_v10 }
 0x3f7   : > { %v13601_v56 = vadd.f32 %v9778_v31, %v7211_v24  ;;  %v9717_v16 = vadd.f32 %v9716_v30, %v9715_v42  ;;  %10207 = vmatprep.subr.bf16.mxu0 %v10884_v43  ;;  %v9781_v21 = vadd.f32 %v9780_v36, %v9779_v49  ;;  %10271 = vmatprep.subr.bf16.mxu1 %v10886_v34  ;;  %v14721_v34 = vld [vmem:[#allocation25_spill] sm:$0xff] }
 0x3f8   : > { %v9718_v6 = vpop.f32.mrf.mxu0  ;;  %v9782_v22 = vpop.f32.mrf.mxu1 }
 0x3f9   : > { %v7216_v39 = vadd.f32 %v9717_v16, %v13524_v48  ;;  %v14719_v48 = vld [vmem:[#allocation31_spill] sm:$0xff] }
 0x3fa   : > { %v9719_v47 = vpop.f32.mrf.mxu0  ;;  %10208 = vmatpush3.bf16.msra.mxu0 %v10885_v17  ;;  %v9783_v27 = vpop.f32.mrf.mxu1  ;;  %10272 = vmatpush3.bf16.msra.mxu1 %v10887_v44 }
 0x3fb   : > { %v13604_v20 = vadd.f32 %v9781_v21, %v7216_v39  ;;  %v9720_v32 = vadd.f32 %v9719_v47, %v9718_v6  ;;  %10321 = vmatprep.subr.bf16.mxu0 %v10888_v62  ;;  %v9784_v53 = vadd.f32 %v9783_v27, %v9782_v22  ;;  %10385 = vmatprep.subr.bf16.mxu1 %v10890_v57 }
 0x3fc   : > { %v9721_v55 = vpop.f32.mrf.mxu0  ;;  %7804 = vmatmul.mubr.bf16.gmra.mxu0 %v14717_v29  ;;  %v9785_v4 = vpop.f32.mrf.mxu1  ;;  %7901 = vmatmul.mubr.bf16.gmra.mxu1 %v14718_v15  ;;  %v14727_v29 = vld [vmem:[#allocation39_spill] sm:$0xff] }
 0x3fd   : > { %v7219_v7 = vadd.f32 %v9720_v32, %v13531_v37  ;;  %7811 = vmatprep.mubr.bf16.mxu0 %v14719_v48  ;;  %7908 = vmatprep.mubr.bf16.mxu1 %v14720_v45  ;;  %v14725_v32 = vld [vmem:[#allocation29_spill] sm:$0xff] }
 0x3fe   : > { %v9722_v14 = vpop.f32.mrf.mxu0  ;;  %v9786_v28 = vpop.f32.mrf.mxu1 }
 0x3ff   : > { %v13611_v23 = vadd.f32 %v9784_v53, %v7219_v7  ;;  %v9723_v26 = vadd.f32 %v9722_v14, %v9721_v55  ;;  %v9787_v50 = vadd.f32 %v9786_v28, %v9785_v4  ;;  %v14726_v55 = vld [vmem:[#allocation34_spill] sm:$0xff]  ;;  %v14728_v7 = vld [vmem:[#allocation36_spill] sm:$0xff] }
 0x400   : > { %v9724_v13 = vpop.f32.mrf.mxu0  ;;  %v9788_v41 = vpop.f32.mrf.mxu1 }
 0x401   : > { %v7224_v60 = vadd.f32 %v9723_v26, %v13534_v3 }
 0x402   : > { %v9725_v10 = vpop.f32.mrf.mxu0  ;;  %v9789_v31 = vpop.f32.mrf.mxu1 }
 0x403   : > { %v13614_v43 = vadd.f32 %v9787_v50, %v7224_v60  ;;  %v9726_v37 = vadd.f32 %v9725_v10, %v9724_v13  ;;  %v9790_v42 = vadd.f32 %v9789_v31, %v9788_v41 }
 0x404   : > { %v9727_v40 = vpop.f32.mrf.mxu0  ;;  %7812 = vmatmul.mubr.bf16.gmra.mxu0 %v14721_v34  ;;  %v9791_v49 = vpop.f32.mrf.mxu1  ;;  %7909 = vmatmul.mubr.bf16.gmra.mxu1 %v14722_v8  ;;  %v14731_v34 = vld [vmem:[#allocation43_spill] sm:$0xff] }
 0x405   : > { %v7227_v24 = vadd.f32 %v9726_v37, %v13541_v35  ;;  %7819 = vmatprep.mubr.bf16.mxu0 %v14723_v18  ;;  %7916 = vmatprep.mubr.bf16.mxu1 %v14724_v61  ;;  %v14729_v37 = vld [vmem:[#allocation33_spill] sm:$0xff] }
 0x406   : > { %v9728_v3 = vpop.f32.mrf.mxu0  ;;  %v9792_v16 = vpop.f32.mrf.mxu1 }
 0x407   : > { %v13621_v30 = vadd.f32 %v9790_v42, %v7227_v24  ;;  %v9729_v17 = vadd.f32 %v9728_v3, %v9727_v40  ;;  %v9793_v36 = vadd.f32 %v9792_v16, %v9791_v49  ;;  %v14730_v40 = vld [vmem:[#allocation38_spill] sm:$0xff]  ;;  %v14732_v24 = vld [vmem:[#allocation40_spill] sm:$0xff] }
 0x408   : > { %v9730_v44 = vpop.f32.mrf.mxu0  ;;  %v9794_v21 = vpop.f32.mrf.mxu1 }
 0x409   : > { %v7232_v62 = vadd.f32 %v9729_v17, %v13544_v33 }
 0x40a   : > { %v9731_v6 = vpop.f32.mrf.mxu0  ;;  %v9795_v39 = vpop.f32.mrf.mxu1 }
 0x40b   : > { %v13624_v57 = vadd.f32 %v9793_v36, %v7232_v62  ;;  %v9732_v35 = vadd.f32 %v9731_v6, %v9730_v44  ;;  %v9796_v22 = vadd.f32 %v9795_v39, %v9794_v21  ;;  %v10889_v44 = vld [vmem:[#allocation8 + $0x738] sm:$0xff]  }
 0x40c   : > { %v9733_v47 = vpop.f32.mrf.mxu0  ;;  %7820 = vmatmul.mubr.bf16.gmra.mxu0 %v14725_v32  ;;  %v9797_v53 = vpop.f32.mrf.mxu1  ;;  %7917 = vmatmul.mubr.bf16.gmra.mxu1 %v14726_v55  ;;  %v10891_v6 = vld [vmem:[#allocation8 + $0x7b8] sm:$0xff]   ;;  %v10894_v32 = vld [vmem:[#allocation8 + $0x7f0] sm:$0xff]  }
 0x40d   : > { %v7235_v27 = vadd.f32 %v9732_v35, %v13551_v2  ;;  %7827 = vmatprep.mubr.bf16.mxu0 %v14727_v29  ;;  %7924 = vmatprep.mubr.bf16.mxu1 %v14728_v7  ;;  %v10892_v35 = vld [vmem:[#allocation8 + $0x770] sm:$0xff]   ;;  %v14736_v29 = vld [vmem:[#allocation44_spill] sm:$0xff] }
 0x40e   : > { %v9734_v33 = vpop.f32.mrf.mxu0  ;;  %v9798_v48 = vpop.f32.mrf.mxu1  ;;  %v14734_v55 = vld [vmem:[#allocation42_spill] sm:$0xff] }
 0x40f   : > { %v13631_v4 = vadd.f32 %v9796_v22, %v7235_v27  ;;  %v9735_v15 = vadd.f32 %v9734_v33, %v9733_v47  ;;  %v9799_v45 = vadd.f32 %v9798_v48, %v9797_v53  ;;  %v14733_v47 = vld [vmem:[#allocation37_spill] sm:$0xff]  ;;  %v10893_v33 = vld [vmem:[#allocation8 + $0x730] sm:$0xff]  }
 0x410   : > { %v9736_v14 = vpop.f32.mrf.mxu0  ;;  %v9800_v28 = vpop.f32.mrf.mxu1 }
 0x411   : > { %v7240_v26 = vadd.f32 %v9735_v15, %v13554_v9 }
 0x412   : > { %v9737_v50 = vpop.f32.mrf.mxu0  ;;  %v9801_v60 = vpop.f32.mrf.mxu1 }
 0x413   : > { %v13634_v13 = vadd.f32 %v9799_v45, %v7240_v26  ;;  %v9738_v2 = vadd.f32 %v9737_v50, %v9736_v14  ;;  %v9802_v41 = vadd.f32 %v9801_v60, %v9800_v28  ;;  %v10895_v14 = vld [vmem:[#allocation8 + $0x7b0] sm:$0xff]   ;;  %v10896_v26 = vld [vmem:[#allocation8 + $0x768] sm:$0xff]  }
 0x414   : > { %v9739_v10 = vpop.f32.mrf.mxu0  ;;  %7828 = vmatmul.mubr.bf16.gmra.mxu0 %v14729_v37  ;;  %v9803_v42 = vpop.f32.mrf.mxu1  ;;  %7925 = vmatmul.mubr.bf16.gmra.mxu1 %v14730_v40  ;;  %v10898_v50 = vld [vmem:[#allocation8 + $0x7e8] sm:$0xff]  }
 0x415   : > { %v7243_v31 = vadd.f32 %v9738_v2, %v13561_v0  ;;  %7965 = vmatprep.mubr.bf16.mxu0 %v14731_v34  ;;  %8062 = vmatprep.mubr.bf16.mxu1 %v14732_v24  ;;  %v10899_v40 = vld [vmem:[#allocation8 + $0x7a8] sm:$0xff]   ;;  %v10900_v34 = vld [vmem:[#allocation8 + $0x760] sm:$0xff]  }
 0x416   : > { %v9740_v9 = vpop.f32.mrf.mxu0  ;;  %v9804_v18 = vpop.f32.mrf.mxu1 }
 0x417   : > { %v13641_v49 = vadd.f32 %v9802_v41, %v7243_v31  ;;  %v9741_v8 = vadd.f32 %v9740_v9, %v9739_v10  ;;  %v9805_v61 = vadd.f32 %v9804_v18, %v9803_v42  ;;  %v10897_v10 = vld [vmem:[#allocation8 + $0x728] sm:$0xff]   ;;  %v10902_v18 = vld [vmem:[#allocation8 + $0x7e0] sm:$0xff]  }
 0x418   : > { %v9742_v3 = vpop.f32.mrf.mxu0  ;;  %v9806_v16 = vpop.f32.mrf.mxu1 }
 0x419   : > { %v7248_v17 = vadd.f32 %v9741_v8, %v13564_v19  ;;  %v14735_v19 = vld [vmem:[#allocation47_spill] sm:$0xff]  ;;  %v14737_v8 = vld [vmem:[#allocation41_spill] sm:$0xff] }
 0x41a   : > { %v9743_v36 = vpop.f32.mrf.mxu0  ;;  %v9807_v21 = vpop.f32.mrf.mxu1 }
 0x41b   : > { %v13644_v0 = vadd.f32 %v9805_v61, %v7248_v17  ;;  %v9744_v62 = vadd.f32 %v9743_v36, %v9742_v3  ;;  %v9808_v39 = vadd.f32 %v9807_v21, %v9806_v16  ;;  %v14738_v3 = vld [vmem:[#allocation46_spill] sm:$0xff]  ;;  %v10901_v16 = vld [vmem:[#allocation8 + $0x720] sm:$0xff]  }
 0x41c   : > { %v9825_v22 = vpop.f32.mrf.mxu0  ;;  %7966 = vmatmul.mubr.bf16.vlgmr.msra.gmra.mxu0 %v14733_v47  ;;  %v9889_v53 = vpop.f32.mrf.mxu1  ;;  %8063 = vmatmul.mubr.bf16.vlgmr.msra.gmra.mxu1 %v14734_v55  ;;  %v10903_v21 = vld [vmem:[#allocation8 + $0x7a0] sm:$0xff]   ;;  %v10907_v55 = vld [vmem:[#allocation8 + $0x798] sm:$0xff]  }
 0x41d   : > { %v7251_v27 = vadd.f32 %v9744_v62, %v13571_v52  ;;  %7973 = vmatprep.mubr.bf16.mxu0 %v14735_v19  ;;  %8070 = vmatprep.mubr.bf16.mxu1 %v14736_v29  ;;  %v10908_v19 = vld [vmem:[#allocation8 + $0x750] sm:$0xff]  }
 0x41e   : > { %10322 = vmatpush3.bf16.msra.mxu0 %v10889_v44  ;;  %v9826_v7 = vpop.f32.mrf.mxu0  ;;  %v9890_v45 = vpop.f32.mrf.mxu1  ;;  %10386 = vmatpush3.bf16.msra.mxu1 %v10891_v6  ;;  %v10904_v6 = vld [vmem:[#allocation8 + $0x758] sm:$0xff]  }
 0x41f   : > { %v13651_v15 = vadd.f32 %v9808_v39, %v7251_v27  ;;  %v9827_v48 = vadd.f32 %v9826_v7, %v9825_v22  ;;  %10323 = vmatprep.subr.bf16.mxu0 %v10892_v35  ;;  %v9891_v28 = vadd.f32 %v9890_v45, %v9889_v53  ;;  %10387 = vmatprep.subr.bf16.mxu1 %v10894_v32  ;;  %v10906_v39 = vld [vmem:[#allocation8 + $0x7d8] sm:$0xff]   ;;  %v14739_v45 = vld [vmem:[#allocation45_spill] sm:$0xff] }
 0x420   : > { %v9828_v52 = vpop.f32.mrf.mxu0  ;;  %v9892_v60 = vpop.f32.mrf.mxu1 }
 0x421   : > { %v7386_v2 = vadd.f32 %v9827_v48, %v13574_v1 }
 0x422   : > { %v9829_v41 = vpop.f32.mrf.mxu0  ;;  %10324 = vmatpush3.bf16.msra.mxu0 %v10893_v33  ;;  %v9893_v42 = vpop.f32.mrf.mxu1  ;;  %10388 = vmatpush3.bf16.msra.mxu1 %v10895_v14  ;;  %v10910_v33 = vld [vmem:[#allocation8 + $0x7d0] sm:$0xff]   ;;  %v14740_v14 = vld [vmem:[#allocation48_spill] sm:$0xff] }
 0x423   : > { %v13654_v37 = vadd.f32 %v9891_v28, %v7386_v2  ;;  %v9830_v31 = vadd.f32 %v9829_v41, %v9828_v52  ;;  %10325 = vmatprep.subr.bf16.mxu0 %v10896_v26  ;;  %v9894_v24 = vadd.f32 %v9893_v42, %v9892_v60  ;;  %10389 = vmatprep.subr.bf16.mxu1 %v10898_v50  ;;  %v14741_v26 = vld [vmem:[#allocation49_spill] sm:$0xff]  ;;  %v10909_v52 = vld [vmem:[#allocation8 + $0x710] sm:$0xff]  }
 0x424   : > { %v9831_v9 = vpop.f32.mrf.mxu0  ;;  %7974 = vmatmul.mubr.bf16.gmra.mxu0 %v14737_v8  ;;  %v9895_v61 = vpop.f32.mrf.mxu1  ;;  %8071 = vmatmul.mubr.bf16.gmra.mxu1 %v14738_v3  ;;  %v10912_v41 = vld [vmem:[#allocation8 + $0x748] sm:$0xff]  }
 0x425   : > { %v7389_v1 = vadd.f32 %v9830_v31, %v13581_v12  ;;  %7981 = vmatprep.mubr.bf16.mxu0 %v13129_v63  ;;  %8078 = vmatprep.mubr.bf16.mxu1 %v13132_v46  ;;  %v10905_v46 = vld [vmem:[#allocation8 + $0x718] sm:$0xff]   ;;  %v10914_v31 = vld [vmem:[#allocation8 + $0x7c8] sm:$0xff]  }
 0x426   : > { %v9832_v17 = vpop.f32.mrf.mxu0  ;;  %10326 = vmatpush3.bf16.msra.mxu0 %v10897_v10  ;;  %v9896_v62 = vpop.f32.mrf.mxu1  ;;  %10390 = vmatpush3.bf16.msra.mxu1 %v10899_v40 }
 0x427   : > { %v13661_v36 = vadd.f32 %v9894_v24, %v7389_v1  ;;  %v9833_v44 = vadd.f32 %v9832_v17, %v9831_v9  ;;  %10327 = vmatprep.subr.bf16.mxu0 %v10900_v34  ;;  %v9897_v35 = vadd.f32 %v9896_v62, %v9895_v61  ;;  %10391 = vmatprep.subr.bf16.mxu1 %v10902_v18  ;;  %v10913_v24 = vld [vmem:[#allocation8 + $0x708] sm:$0xff]   ;;  %v10916_v61 = vld [vmem:[#allocation8 + $0x740] sm:$0xff]  }
 0x428   : > { %v9834_v12 = vpop.f32.mrf.mxu0  ;;  %v9898_v63 = vpop.f32.mrf.mxu1  ;;  %v10915_v1 = vld [vmem:[#allocation8 + $0x788] sm:$0xff]  }
 0x429   : > { %v7394_v22 = vadd.f32 %v9833_v44, %v13584_v38  ;;  %v10918_v44 = vld [vmem:[#allocation8 + $0x7c0] sm:$0xff]  }
 0x42a   : > { %v9835_v47 = vpop.f32.mrf.mxu0  ;;  %10328 = vmatpush3.bf16.msra.mxu0 %v10901_v16  ;;  %v9899_v53 = vpop.f32.mrf.mxu1  ;;  %10392 = vmatpush3.bf16.msra.mxu1 %v10903_v21  ;;  %v14742_v16 = vld [vmem:[#allocation50_spill] sm:$0xff]  ;;  %v14743_v21 = vld [vmem:[#allocation51_spill] sm:$0xff] }
 0x42b   : > { %v13664_v32 = vadd.f32 %v9897_v35, %v7394_v22  ;;  %v9836_v27 = vadd.f32 %v9835_v47, %v9834_v12  ;;  %10329 = vmatprep.subr.bf16.mxu0 %v10904_v6  ;;  %v9900_v29 = vadd.f32 %v9899_v53, %v9898_v63  ;;  %10393 = vmatprep.subr.bf16.mxu1 %v10906_v39  ;;  %v14744_v6 = vld [vmem:[#allocation52_spill] sm:$0xff]  ;;  %v14745_v35 = vld [vmem:[#allocation53_spill] sm:$0xff] }
 0x42c   : > { %v9837_v7 = vpop.f32.mrf.mxu0  ;;  %7982 = vmatmul.mubr.bf16.gmra.mxu0 %v13121_v5  ;;  %v9901_v48 = vpop.f32.mrf.mxu1  ;;  %8079 = vmatmul.mubr.bf16.gmra.mxu1 %v14739_v45  ;;  %v10911_v5 = vld [vmem:[#allocation8 + $0x790] sm:$0xff]   ;;  %v10917_v39 = vld [vmem:[#allocation8 + $0x700] sm:$0xff]  }
 0x42d   : > { %v7397_v38 = vadd.f32 %v9836_v27, %v13591_v54  ;;  %7989 = vmatprep.mubr.bf16.mxu0 %v14740_v14  ;;  %8086 = vmatprep.mubr.bf16.mxu1 %v14741_v26  ;;  %v14746_v45 = vld [vmem:[#allocation54_spill] sm:$0xff] }
 0x42e   : > { %v9838_v28 = vpop.f32.mrf.mxu0  ;;  %10330 = vmatpush3.bf16.msra.mxu0 %v10905_v46  ;;  %v9902_v60 = vpop.f32.mrf.mxu1  ;;  %10394 = vmatpush3.bf16.msra.mxu1 %v10907_v55  ;;  %v10919_v46 = vld [vmem:[#allocation8 + $0x780] sm:$0xff]  }
 0x42f   : > { %v13671_v50 = vadd.f32 %v9900_v29, %v7397_v38  ;;  %v9839_v2 = vadd.f32 %v9838_v28, %v9837_v7  ;;  %10331 = vmatprep.subr.bf16.mxu0 %v10908_v19  ;;  %v9903_v10 = vadd.f32 %v9902_v60, %v9901_v48  ;;  %10395 = vmatprep.subr.bf16.mxu1 %v10910_v33  ;;  %v14747_v28 = vld [vmem:[#allocation55_spill] sm:$0xff] }
 0x430   : > { %v9840_v54 = vpop.f32.mrf.mxu0  ;;  %v9904_v40 = vpop.f32.mrf.mxu1 }
 0x431   : > { %v7402_v42 = vadd.f32 %v9839_v2, %v13594_v59 }
 0x432   : > { %v9841_v34 = vpop.f32.mrf.mxu0  ;;  %10332 = vmatpush3.bf16.msra.mxu0 %v10909_v52  ;;  %v9905_v18 = vpop.f32.mrf.mxu1  ;;  %10396 = vmatpush3.bf16.msra.mxu1 %v10911_v5  ;;  %v14748_v52 = vld [vmem:[#allocation56_spill] sm:$0xff] }
 0x433   : > { %v13674_v9 = vadd.f32 %v9903_v10, %v7402_v42  ;;  %v9842_v8 = vadd.f32 %v9841_v34, %v9840_v54  ;;  %10333 = vmatprep.subr.bf16.mxu0 %v10912_v41  ;;  %v9906_v3 = vadd.f32 %v9905_v18, %v9904_v40  ;;  %10397 = vmatprep.subr.bf16.mxu1 %v10914_v31 }
 0x434   : > { %v9843_v17 = vpop.f32.mrf.mxu0  ;;  %7990 = vmatmul.mubr.bf16.gmra.mxu0 %v14742_v16  ;;  %v9907_v62 = vpop.f32.mrf.mxu1  ;;  %8087 = vmatmul.mubr.bf16.gmra.mxu1 %v14743_v21 }
 0x435   : > { %v7405_v59 = vadd.f32 %v9842_v8, %v13601_v56  ;;  %7997 = vmatprep.mubr.bf16.mxu0 %v14744_v6  ;;  %8094 = vmatprep.mubr.bf16.mxu1 %v14745_v35 }
 0x436   : > { %v9844_v12 = vpop.f32.mrf.mxu0  ;;  %10334 = vmatpush3.bf16.msra.mxu0 %v10913_v24  ;;  %v9908_v47 = vpop.f32.mrf.mxu1  ;;  %10398 = vmatpush3.bf16.msra.mxu1 %v10915_v1  ;;  %v14750_v1 = vld [vmem:[#allocation58_spill] sm:$0xff] }
 0x437   : > { %v13681_v22 = vadd.f32 %v9906_v3, %v7405_v59  ;;  %v9845_v63 = vadd.f32 %v9844_v12, %v9843_v17  ;;  %10335 = vmatprep.subr.bf16.mxu0 %v10916_v61  ;;  %v9909_v27 = vadd.f32 %v9908_v47, %v9907_v62  ;;  %10399 = vmatprep.subr.bf16.mxu1 %v10918_v44  ;;  %v14751_v17 = vld [vmem:[#allocation59_spill] sm:$0xff] }
 0x438   : > { %v9846_v53 = vpop.f32.mrf.mxu0  ;;  %v9910_v55 = vpop.f32.mrf.mxu1 }
 0x439   : > { %v7410_v56 = vadd.f32 %v9845_v63, %v13604_v20  ;;  %v14749_v20 = vld [vmem:[#allocation57_spill] sm:$0xff] }
 0x43a   : > { %v9847_v19 = vpop.f32.mrf.mxu0  ;;  %10336 = vmatpush3.bf16.msra.mxu0 %v10917_v39  ;;  %v9911_v33 = vpop.f32.mrf.mxu1  ;;  %10400 = vmatpush3.bf16.msra.mxu1 %v10919_v46 }
 0x43b   : > { %v13684_v29 = vadd.f32 %v9909_v27, %v7410_v56  ;;  %v9848_v7 = vadd.f32 %v9847_v19, %v9846_v53  ;;  %v9912_v38 = vadd.f32 %v9911_v33, %v9910_v55  ;;  %v14753_v53 = vld [vmem:[#allocation63_spill] sm:$0xff]  ;;  %v14754_v56 = vld [vmem:[#allocation66_spill] sm:$0xff] }
 0x43c   : > { %v9849_v48 = vpop.f32.mrf.mxu0  ;;  %7998 = vmatmul.mubr.bf16.gmra.mxu0 %v14746_v45  ;;  %v9913_v26 = vpop.f32.mrf.mxu1  ;;  %8095 = vmatmul.mubr.bf16.gmra.mxu1 %v14747_v28  ;;  %v14755_v55 = vld [vmem:[#allocation67_spill] sm:$0xff] }
 0x43d   : > { %v7413_v14 = vadd.f32 %v9848_v7, %v13611_v23  ;;  %8005 = vmatprep.mubr.bf16.mxu0 %v14748_v52  ;;  %8102 = vmatprep.mubr.bf16.mxu1 %v14749_v20 }
 0x43e   : > { %v9850_v2 = vpop.f32.mrf.mxu0  ;;  %v9914_v41 = vpop.f32.mrf.mxu1 }
 0x43f   : > { %v13691_v60 = vadd.f32 %v9912_v38, %v7413_v14  ;;  %v9851_v5 = vadd.f32 %v9850_v2, %v9849_v48  ;;  %v9915_v10 = vadd.f32 %v9914_v41, %v9913_v26 }
 0x440   : > { %v9852_v54 = vpop.f32.mrf.mxu0  ;;  %v9916_v42 = vpop.f32.mrf.mxu1 }
 0x441   : > { %v7418_v31 = vadd.f32 %v9851_v5, %v13614_v43  ;;  %v14756_v5 = vld [vmem:[#allocation60_spill] sm:$0xff] }
 0x442   : > { %v9853_v40 = vpop.f32.mrf.mxu0  ;;  %v9917_v24 = vpop.f32.mrf.mxu1 }
 0x443   : > { %v13694_v34 = vadd.f32 %v9915_v10, %v7418_v31  ;;  %v9854_v23 = vadd.f32 %v9853_v40, %v9852_v54  ;;  %v9918_v8 = vadd.f32 %v9917_v24, %v9916_v42  ;;  %v14757_v54 = vld [vmem:[#allocation61_spill] sm:$0xff]  ;;  %v14758_v31 = vld [vmem:[#allocation70_spill] sm:$0xff]  ;;  %v14759_v42 = vld [vmem:[#allocation71_spill] sm:$0xff] }
 0x444   : > { %v9855_v18 = vpop.f32.mrf.mxu0  ;;  %8006 = vmatmul.mubr.bf16.gmra.mxu0 %v14750_v1  ;;  %v9919_v3 = vpop.f32.mrf.mxu1  ;;  %8103 = vmatmul.mubr.bf16.gmra.mxu1 %v14751_v17 }
 0x445   : > { %v7421_v61 = vadd.f32 %v9854_v23, %v13621_v30  ;;  %8013 = vmatprep.mubr.bf16.mxu0 %v13209_v25  ;;  %8110 = vmatprep.mubr.bf16.mxu1 %v13212_v11  ;;  %v14752_v25 = vld [vmem:[#allocation62_spill] sm:$0xff] }
 0x446   : > { %v9856_v43 = vpop.f32.mrf.mxu0  ;;  %v9920_v59 = vpop.f32.mrf.mxu1 }
 0x447   : > { %v13701_v16 = vadd.f32 %v9918_v8, %v7421_v61  ;;  %v9857_v44 = vadd.f32 %v9856_v43, %v9855_v18  ;;  %v9921_v62 = vadd.f32 %v9920_v59, %v9919_v3 }
 0x448   : > { %v9858_v21 = vpop.f32.mrf.mxu0  ;;  %v9922_v35 = vpop.f32.mrf.mxu1 }
 0x449   : > { %v7426_v6 = vadd.f32 %v9857_v44, %v13624_v57 }
 0x44a   : > { %v9859_v12 = vpop.f32.mrf.mxu0  ;;  %v9923_v63 = vpop.f32.mrf.mxu1 }
 0x44b   : > { %v13704_v39 = vadd.f32 %v9921_v62, %v7426_v6  ;;  %v9860_v30 = vadd.f32 %v9859_v12, %v9858_v21  ;;  %v9924_v47 = vadd.f32 %v9923_v63, %v9922_v35  ;;  %v14760_v62 = vld [vmem:[#allocation64_spill] sm:$0xff]  ;;  %v14761_v35 = vld [vmem:[#allocation65_spill] sm:$0xff]  ;;  %v14762_v12 = vld [vmem:[#allocation74_spill] sm:$0xff] }
 0x44c   : > { %v9861_v46 = vpop.f32.mrf.mxu0  ;;  %8014 = vmatmul.mubr.bf16.gmra.mxu0 %v14752_v25  ;;  %v9925_v27 = vpop.f32.mrf.mxu1  ;;  %8111 = vmatmul.mubr.bf16.gmra.mxu1 %v14753_v53 }
 0x44d   : > { %v7429_v11 = vadd.f32 %v9860_v30, %v13631_v4  ;;  %8021 = vmatprep.mubr.bf16.mxu0 %v14754_v56  ;;  %8118 = vmatprep.mubr.bf16.mxu1 %v14755_v55  ;;  %v14763_v30 = vld [vmem:[#allocation75_spill] sm:$0xff] }
 0x44e   : > { %v9862_v57 = vpop.f32.mrf.mxu0  ;;  %v9926_v33 = vpop.f32.mrf.mxu1 }
 0x44f   : > { %v13711_v19 = vadd.f32 %v9924_v47, %v7429_v11  ;;  %v9863_v7 = vadd.f32 %v9862_v57, %v9861_v46  ;;  %v9927_v38 = vadd.f32 %v9926_v33, %v9925_v27 }
 0x450   : > { %v9864_v48 = vpop.f32.mrf.mxu0  ;;  %v9928_v14 = vpop.f32.mrf.mxu1 }
 0x451   : > { %v7434_v45 = vadd.f32 %v9863_v7, %v13634_v13 }
 0x452   : > { %v9865_v26 = vpop.f32.mrf.mxu0  ;;  %v9929_v52 = vpop.f32.mrf.mxu1 }
 0x453   : > { %v13714_v28 = vadd.f32 %v9927_v38, %v7434_v45  ;;  %v9866_v4 = vadd.f32 %v9865_v26, %v9864_v48  ;;  %v9930_v20 = vadd.f32 %v9929_v52, %v9928_v14  ;;  %v14764_v38 = vld [vmem:[#allocation68_spill] sm:$0xff]  ;;  %v14765_v14 = vld [vmem:[#allocation69_spill] sm:$0xff] }
 0x454   : > { %v9867_v2 = vpop.f32.mrf.mxu0  ;;  %8022 = vmatmul.mubr.bf16.gmra.mxu0 %v14756_v5  ;;  %v9931_v10 = vpop.f32.mrf.mxu1  ;;  %8119 = vmatmul.mubr.bf16.gmra.mxu1 %v14757_v54 }
 0x455   : > { %v7437_v41 = vadd.f32 %v9866_v4, %v13641_v49  ;;  %8159 = vmatprep.mubr.bf16.mxu0 %v14758_v31  ;;  %8256 = vmatprep.mubr.bf16.mxu1 %v14759_v42 }
 0x456   : > { %v9868_v13 = vpop.f32.mrf.mxu0  ;;  %v9932_v24 = vpop.f32.mrf.mxu1 }
 0x457   : > { %v13721_v40 = vadd.f32 %v9930_v20, %v7437_v41  ;;  %v9869_v23 = vadd.f32 %v9868_v13, %v9867_v2  ;;  %v9933_v8 = vadd.f32 %v9932_v24, %v9931_v10  ;;  %v14767_v24 = vld [vmem:[#allocation73_spill] sm:$0xff] }
 0x458   : > { %v9870_v18 = vpop.f32.mrf.mxu0  ;;  %v9934_v61 = vpop.f32.mrf.mxu1 }
 0x459   : > { %v7442_v1 = vadd.f32 %v9869_v23, %v13644_v0 }
 0x45a   : > { %v9871_v3 = vpop.f32.mrf.mxu0  ;;  %v9935_v43 = vpop.f32.mrf.mxu1 }
 0x45b   : > { %v13724_v17 = vadd.f32 %v9933_v8, %v7442_v1  ;;  %v9872_v49 = vadd.f32 %v9871_v3, %v9870_v18  ;;  %v9936_v44 = vadd.f32 %v9935_v43, %v9934_v61  ;;  %v14768_v8 = vld [vmem:[#allocation76_spill] sm:$0xff]  ;;  %v14769_v18 = vld [vmem:[#allocation77_spill] sm:$0xff] }
 0x45c   : > { %v9953_v59 = vpop.f32.mrf.mxu0  ;;  %8160 = vmatmul.mubr.bf16.vlgmr.msra.gmra.mxu0 %v14760_v62  ;;  %v10017_v6 = vpop.f32.mrf.mxu1  ;;  %8257 = vmatmul.mubr.bf16.vlgmr.msra.gmra.mxu1 %v14761_v35 }
 0x45d   : > { %v7445_v21 = vadd.f32 %v9872_v49, %v13651_v15  ;;  %8167 = vmatprep.mubr.bf16.mxu0 %v14762_v12  ;;  %8264 = vmatprep.mubr.bf16.mxu1 %v14763_v30  ;;  %v14770_v30 = vld [vmem:[#allocation78_spill] sm:$0xff] }
 0x45e   : > { %v9954_v0 = vpop.f32.mrf.mxu0  ;;  %v10018_v46 = vpop.f32.mrf.mxu1 }
 0x45f   : > { %v13731_v63 = vadd.f32 %v9936_v44, %v7445_v21  ;;  %v9955_v47 = vadd.f32 %v9954_v0, %v9953_v59  ;;  %v10019_v25 = vadd.f32 %v10018_v46, %v10017_v6  ;;  %v14771_v46 = vld [vmem:[#allocation79_spill] sm:$0xff] }
 0x460   : > { %v9956_v11 = vpop.f32.mrf.mxu0  ;;  %v10020_v53 = vpop.f32.mrf.mxu1 }
 0x461   : > { %v7580_v27 = vadd.f32 %v9955_v47, %v13654_v37 }
 0x462   : > { %v9957_v56 = vpop.f32.mrf.mxu0  ;;  %v10021_v57 = vpop.f32.mrf.mxu1 }
 0x463   : > { %v13734_v55 = vadd.f32 %v10019_v25, %v7580_v27  ;;  %v9958_v15 = vadd.f32 %v9957_v56, %v9956_v11  ;;  %v10022_v7 = vadd.f32 %v10021_v57, %v10020_v53  ;;  %v14772_v25 = vld [vmem:[#allocation80_spill] sm:$0xff]  ;;  %v14773_v11 = vld [vmem:[#allocation81_spill] sm:$0xff] }
 0x464   : > { %v9959_v33 = vpop.f32.mrf.mxu0  ;;  %8168 = vmatmul.mubr.bf16.gmra.mxu0 %v14764_v38  ;;  %v10023_v45 = vpop.f32.mrf.mxu1  ;;  %8265 = vmatmul.mubr.bf16.gmra.mxu1 %v14765_v14 }
 0x465   : > { %v7583_v48 = vadd.f32 %v9958_v15, %v13661_v36  ;;  %8175 = vmatprep.mubr.bf16.mxu0 %v13305_v51  ;;  %8272 = vmatprep.mubr.bf16.mxu1 %v13308_v58  ;;  %v14766_v51 = vld [vmem:[#allocation72_spill] sm:$0xff] }
 0x466   : > { %v9960_v37 = vpop.f32.mrf.mxu0  ;;  %v10024_v52 = vpop.f32.mrf.mxu1 }
 0x467   : > { %v13741_v26 = vadd.f32 %v10022_v7, %v7583_v48  ;;  %v9961_v4 = vadd.f32 %v9960_v37, %v9959_v33  ;;  %v10025_v20 = vadd.f32 %v10024_v52, %v10023_v45 }
 0x468   : > { %v9962_v2 = vpop.f32.mrf.mxu0  ;;  %v10026_v41 = vpop.f32.mrf.mxu1 }
 0x469   : > { %v7588_v5 = vadd.f32 %v9961_v4, %v13664_v32  ;;  %v14774_v4 = vld [vmem:[#allocation82_spill] sm:$0xff] }
 0x46a   : > { %v9963_v10 = vpop.f32.mrf.mxu0  ;;  %v10027_v31 = vpop.f32.mrf.mxu1 }
 0x46b   : > { %v13744_v54 = vadd.f32 %v10025_v20, %v7588_v5  ;;  %v9964_v36 = vadd.f32 %v9963_v10, %v9962_v2  ;;  %v10028_v42 = vadd.f32 %v10027_v31, %v10026_v41  ;;  %v14775_v2 = vld [vmem:[#allocation83_spill] sm:$0xff]  ;;  %v14776_v5 = vld [vmem:[#allocation84_spill] sm:$0xff]  ;;  %v14777_v41 = vld [vmem:[#allocation85_spill] sm:$0xff] }
 0x46c   : > { %v9965_v13 = vpop.f32.mrf.mxu0  ;;  %8176 = vmatmul.mubr.bf16.gmra.mxu0 %v14766_v51  ;;  %v10029_v23 = vpop.f32.mrf.mxu1  ;;  %8273 = vmatmul.mubr.bf16.gmra.mxu1 %v14767_v24 }
 0x46d   : > { %v7591_v58 = vadd.f32 %v9964_v36, %v13671_v50  ;;  %8183 = vmatprep.mubr.bf16.mxu0 %v14768_v8  ;;  %8280 = vmatprep.mubr.bf16.mxu1 %v14769_v18 }
 0x46e   : > { %v9966_v32 = vpop.f32.mrf.mxu0  ;;  %v10030_v3 = vpop.f32.mrf.mxu1 }
 0x46f   : > { %v13751_v1 = vadd.f32 %v10028_v42, %v7591_v58  ;;  %v9967_v61 = vadd.f32 %v9966_v32, %v9965_v13  ;;  %v10031_v49 = vadd.f32 %v10030_v3, %v10029_v23  ;;  %v14778_v32 = vld [vmem:[#allocation86_spill] sm:$0xff] }
 0x470   : > { %v9968_v43 = vpop.f32.mrf.mxu0  ;;  %v10032_v59 = vpop.f32.mrf.mxu1 }
 0x471   : > { %v7596_v44 = vadd.f32 %v9967_v61, %v13674_v9 }
 0x472   : > { %v9969_v62 = vpop.f32.mrf.mxu0  ;;  %v10033_v6 = vpop.f32.mrf.mxu1 }
 0x473   : > { %v13754_v21 = vadd.f32 %v10031_v49, %v7596_v44  ;;  %v9970_v50 = vadd.f32 %v9969_v62, %v9968_v43  ;;  %v10034_v35 = vadd.f32 %v10033_v6, %v10032_v59  ;;  %v14779_v43 = vld [vmem:[#allocation87_spill] sm:$0xff]  ;;  %v14780_v44 = vld [vmem:[#allocation88_spill] sm:$0xff]  ;;  %v14781_v59 = vld [vmem:[#allocation89_spill] sm:$0xff] }
 0x474   : > { %v9971_v12 = vpop.f32.mrf.mxu0  ;;  %8184 = vmatmul.mubr.bf16.gmra.mxu0 %v14770_v30  ;;  %v10035_v47 = vpop.f32.mrf.mxu1  ;;  %8281 = vmatmul.mubr.bf16.gmra.mxu1 %v14771_v46 }
 0x475   : > { %v7599_v0 = vadd.f32 %v9970_v50, %v13681_v22  ;;  %8191 = vmatprep.mubr.bf16.mxu0 %v14772_v25  ;;  %8288 = vmatprep.mubr.bf16.mxu1 %v14773_v11 }
 0x476   : > { %v9972_v9 = vpop.f32.mrf.mxu0  ;;  %v10036_v56 = vpop.f32.mrf.mxu1 }
 0x477   : > { %v13761_v27 = vadd.f32 %v10034_v35, %v7599_v0  ;;  %v9973_v53 = vadd.f32 %v9972_v9, %v9971_v12  ;;  %v10037_v15 = vadd.f32 %v10036_v56, %v10035_v47  ;;  %v14782_v9 = vld [vmem:[#allocation90_spill] sm:$0xff] }
 0x478   : > { %v9974_v57 = vpop.f32.mrf.mxu0  ;;  %v10038_v33 = vpop.f32.mrf.mxu1 }
 0x479   : > { %v7604_v7 = vadd.f32 %v9973_v53, %v13684_v29 }
 0x47a   : > { %v9975_v38 = vpop.f32.mrf.mxu0  ;;  %v10039_v45 = vpop.f32.mrf.mxu1 }
 0x47b   : > { %v13764_v48 = vadd.f32 %v10037_v15, %v7604_v7  ;;  %v9976_v22 = vadd.f32 %v9975_v38, %v9974_v57  ;;  %v10040_v14 = vadd.f32 %v10039_v45, %v10038_v33  ;;  %v14783_v57 = vld [vmem:[#allocation91_spill] sm:$0xff]  ;;  %v14784_v7 = vld [vmem:[#allocation92_spill] sm:$0xff]  ;;  %v14785_v33 = vld [vmem:[#allocation93_spill] sm:$0xff] }
 0x47c   : > { %v9977_v37 = vpop.f32.mrf.mxu0  ;;  %8192 = vmatmul.mubr.bf16.gmra.mxu0 %v14774_v4  ;;  %v10041_v20 = vpop.f32.mrf.mxu1  ;;  %8289 = vmatmul.mubr.bf16.gmra.mxu1 %v14775_v2 }
 0x47d   : > { %v7607_v52 = vadd.f32 %v9976_v22, %v13691_v60  ;;  %8199 = vmatprep.mubr.bf16.mxu0 %v14776_v5  ;;  %8296 = vmatprep.mubr.bf16.mxu1 %v14777_v41 }
 0x47e   : > { %v9978_v29 = vpop.f32.mrf.mxu0  ;;  %v10042_v31 = vpop.f32.mrf.mxu1 }
 0x47f   : > { %v13771_v10 = vadd.f32 %v10040_v14, %v7607_v52  ;;  %v9979_v36 = vadd.f32 %v9978_v29, %v9977_v37  ;;  %v10043_v51 = vadd.f32 %v10042_v31, %v10041_v20 }
 0x480   : > { %v9980_v42 = vpop.f32.mrf.mxu0  ;;  %v10044_v58 = vpop.f32.mrf.mxu1 }
 0x481   : > { %v7612_v13 = vadd.f32 %v9979_v36, %v13694_v34  ;;  %v14786_v36 = vld [vmem:[#allocation94_spill] sm:$0xff] }
 0x482   : > { %v9981_v23 = vpop.f32.mrf.mxu0  ;;  %v10045_v8 = vpop.f32.mrf.mxu1 }
 0x483   : > { %v13774_v24 = vadd.f32 %v10043_v51, %v7612_v13  ;;  %v9982_v60 = vadd.f32 %v9981_v23, %v9980_v42  ;;  %v10046_v3 = vadd.f32 %v10045_v8, %v10044_v58  ;;  %v14787_v13 = vld [vmem:[#allocation95_spill] sm:$0xff] }
 0x484   : > { %v9983_v18 = vpop.f32.mrf.mxu0  ;;  %8200 = vmatmul.mubr.bf16.gmra.mxu0 %v14778_v32  ;;  %v10047_v49 = vpop.f32.mrf.mxu1  ;;  %8297 = vmatmul.mubr.bf16.gmra.mxu1 %v14779_v43 }
 0x485   : > { %v7615_v61 = vadd.f32 %v9982_v60, %v13701_v16  ;;  %8207 = vmatprep.mubr.bf16.mxu0 %v14780_v44  ;;  %8304 = vmatprep.mubr.bf16.mxu1 %v14781_v59 }
 0x486   : > { %v9984_v34 = vpop.f32.mrf.mxu0  ;;  %v10048_v6 = vpop.f32.mrf.mxu1 }
 0x487   : > { %v13781_v62 = vadd.f32 %v10046_v3, %v7615_v61  ;;  %v9985_v50 = vadd.f32 %v9984_v34, %v9983_v18  ;;  %v10049_v30 = vadd.f32 %v10048_v6, %v10047_v49 }
 0x488   : > { %v9986_v35 = vpop.f32.mrf.mxu0  ;;  %v10050_v0 = vpop.f32.mrf.mxu1 }
 0x489   : > { %v7620_v12 = vadd.f32 %v9985_v50, %v13704_v39 }
 0x48a   : > { %v9987_v47 = vpop.f32.mrf.mxu0  ;;  %v10051_v25 = vpop.f32.mrf.mxu1 }
 0x48b   : > { %v13784_v16 = vadd.f32 %v10049_v30, %v7620_v12  ;;  %v9988_v46 = vadd.f32 %v9987_v47, %v9986_v35  ;;  %v10052_v56 = vadd.f32 %v10051_v25, %v10050_v0 }
 0x48c   : > { %v9989_v11 = vpop.f32.mrf.mxu0  ;;  %8208 = vmatmul.mubr.bf16.gmra.mxu0 %v14782_v9  ;;  %v10053_v15 = vpop.f32.mrf.mxu1  ;;  %8305 = vmatmul.mubr.bf16.gmra.mxu1 %v14783_v57 }
 0x48d   : > { %v7623_v53 = vadd.f32 %v9988_v46, %v13711_v19  ;;  %8215 = vmatprep.mubr.bf16.mxu0 %v14784_v7  ;;  %8312 = vmatprep.mubr.bf16.mxu1 %v14785_v33 }
 0x48e   : > { %v9990_v39 = vpop.f32.mrf.mxu0  ;;  %v10054_v45 = vpop.f32.mrf.mxu1 }
 0x48f   : > { %v13791_v38 = vadd.f32 %v10052_v56, %v7623_v53  ;;  %v9991_v22 = vadd.f32 %v9990_v39, %v9989_v11  ;;  %v10055_v14 = vadd.f32 %v10054_v45, %v10053_v15 }
 0x490   : > { %v9992_v37 = vpop.f32.mrf.mxu0  ;;  %v10056_v52 = vpop.f32.mrf.mxu1 }
 0x491   : > { %v7628_v4 = vadd.f32 %v9991_v22, %v13714_v28 }
 0x492   : > { %v9993_v20 = vpop.f32.mrf.mxu0  ;;  %v10057_v5 = vpop.f32.mrf.mxu1 }
 0x493   : > { %v13794_v19 = vadd.f32 %v10055_v14, %v7628_v4  ;;  %v9994_v2 = vadd.f32 %v9993_v20, %v9992_v37  ;;  %v10058_v41 = vadd.f32 %v10057_v5, %v10056_v52 }
 0x494   : > { %v9995_v29 = vpop.f32.mrf.mxu0  ;;  %8216 = vmatmul.mubr.bf16.gmra.mxu0 %v14786_v36  ;;  %v10059_v42 = vpop.f32.mrf.mxu1  ;;  %8313 = vmatmul.mubr.bf16.gmra.mxu1 %v14787_v13 }
 0x495   : > { %v7631_v31 = vadd.f32 %v9994_v2, %v13721_v40 }
 0x496   : > { %v9996_v51 = vpop.f32.mrf.mxu0  ;;  %v10060_v28 = vpop.f32.mrf.mxu1 }
 0x497   : > { %v13799_v58 = vadd.f32 %v10058_v41, %v7631_v31  ;;  %v9997_v23 = vadd.f32 %v9996_v51, %v9995_v29  ;;  %v10061_v60 = vadd.f32 %v10060_v28, %v10059_v42 }
 0x498   : > { %v9998_v8 = vpop.f32.mrf.mxu0  ;;  %v10062_v32 = vpop.f32.mrf.mxu1 }
 0x499   : > { %v7636_v18 = vadd.f32 %v9997_v23, %v13724_v17 }
 0x49a   : > { %v9999_v61 = vpop.f32.mrf.mxu0  ;;  %v10063_v43 = vpop.f32.mrf.mxu1 }
 0x49b   : > { %v13802_v3 = vadd.f32 %v10061_v60, %v7636_v18  ;;  %v10000_v49 = vadd.f32 %v9999_v61, %v9998_v8  ;;  %v10064_v44 = vadd.f32 %v10063_v43, %v10062_v32 }
 0x49c   : > { %v10081_v40 = vpop.f32.mrf.mxu0  ;;  %v10145_v34 = vpop.f32.mrf.mxu1 }
 0x49d   : > { %v7639_v59 = vadd.f32 %v10000_v49, %v13731_v63 }
 0x49e   : > { %v10082_v50 = vpop.f32.mrf.mxu0  ;;  %v10146_v12 = vpop.f32.mrf.mxu1 }
 0x49f   : > { %v13805_v6 = vadd.f32 %v10064_v44, %v7639_v59  ;;  %v10083_v35 = vadd.f32 %v10082_v50, %v10081_v40  ;;  %v10147_v30 = vadd.f32 %v10146_v12, %v10145_v34 }
 0x4a0   : > { %v10084_v0 = vpop.f32.mrf.mxu0  ;;  %v10148_v47 = vpop.f32.mrf.mxu1 }
 0x4a1   : > { %v7774_v17 = vadd.f32 %v10083_v35, %v13734_v55 }
 0x4a2   : > { %v10085_v46 = vpop.f32.mrf.mxu0  ;;  %v10149_v9 = vpop.f32.mrf.mxu1 }
 0x4a3   : > { %v13808_v25 = vadd.f32 %v10147_v30, %v7774_v17  ;;  %v10086_v11 = vadd.f32 %v10085_v46, %v10084_v0  ;;  %v10150_v53 = vadd.f32 %v10149_v9, %v10148_v47 }
 0x4a4   : > { %v10087_v56 = vpop.f32.mrf.mxu0  ;;  %v10151_v15 = vpop.f32.mrf.mxu1 }
 0x4a5   : > { %v7777_v63 = vadd.f32 %v10086_v11, %v13741_v26 }
 0x4a6   : > { %v10088_v57 = vpop.f32.mrf.mxu0  ;;  %v10152_v39 = vpop.f32.mrf.mxu1 }
 0x4a7   : > { %v13811_v7 = vadd.f32 %v10150_v53, %v7777_v63  ;;  %v10089_v33 = vadd.f32 %v10088_v57, %v10087_v56  ;;  %v10153_v22 = vadd.f32 %v10152_v39, %v10151_v15 }
 0x4a8   : > { %v10090_v45 = vpop.f32.mrf.mxu0  ;;  %v10154_v14 = vpop.f32.mrf.mxu1 }
 0x4a9   : > { %v7782_v55 = vadd.f32 %v10089_v33, %v13744_v54 }
 0x4aa   : > { %v10091_v37 = vpop.f32.mrf.mxu0  ;;  %v10155_v20 = vpop.f32.mrf.mxu1 }
 0x4ab   : > { %v13814_v4 = vadd.f32 %v10153_v22, %v7782_v55  ;;  %v10092_v52 = vadd.f32 %v10091_v37, %v10090_v45  ;;  %v10156_v2 = vadd.f32 %v10155_v20, %v10154_v14 }
 0x4ac   : > { %v10093_v5 = vpop.f32.mrf.mxu0  ;;  %v10157_v41 = vpop.f32.mrf.mxu1 }
 0x4ad   : > { %v7785_v26 = vadd.f32 %v10092_v52, %v13751_v1 }
 0x4ae   : > { %v10094_v29 = vpop.f32.mrf.mxu0  ;;  %v10158_v42 = vpop.f32.mrf.mxu1 }
 0x4af   : > { %v13817_v36 = vadd.f32 %v10156_v2, %v7785_v26  ;;  %v10095_v31 = vadd.f32 %v10094_v29, %v10093_v5  ;;  %v10159_v13 = vadd.f32 %v10158_v42, %v10157_v41 }
 0x4b0   : > { %v10096_v51 = vpop.f32.mrf.mxu0  ;;  %v10160_v23 = vpop.f32.mrf.mxu1 }
 0x4b1   : > { %v7790_v54 = vadd.f32 %v10095_v31, %v13754_v21 }
 0x4b2   : > { %v10097_v28 = vpop.f32.mrf.mxu0  ;;  %v10161_v18 = vpop.f32.mrf.mxu1 }
 0x4b3   : > { %v13820_v60 = vadd.f32 %v10159_v13, %v7790_v54  ;;  %v10098_v8 = vadd.f32 %v10097_v28, %v10096_v51  ;;  %v10162_v32 = vadd.f32 %v10161_v18, %v10160_v23 }
 0x4b4   : > { %v10099_v61 = vpop.f32.mrf.mxu0  ;;  %v10163_v49 = vpop.f32.mrf.mxu1 }
 0x4b5   : > { %v7793_v1 = vadd.f32 %v10098_v8, %v13761_v27 }
 0x4b6   : > { %v10100_v43 = vpop.f32.mrf.mxu0  ;;  %v10164_v59 = vpop.f32.mrf.mxu1 }
 0x4b7   : > { %v13823_v44 = vadd.f32 %v10162_v32, %v7793_v1  ;;  %v10101_v40 = vadd.f32 %v10100_v43, %v10099_v61  ;;  %v10165_v34 = vadd.f32 %v10164_v59, %v10163_v49 }
 0x4b8   : > { %v10102_v50 = vpop.f32.mrf.mxu0  ;;  %v10166_v35 = vpop.f32.mrf.mxu1 }
 0x4b9   : > { %v7798_v21 = vadd.f32 %v10101_v40, %v13764_v48 }
 0x4ba   : > { %v10103_v12 = vpop.f32.mrf.mxu0  ;;  %v10167_v17 = vpop.f32.mrf.mxu1 }
 0x4bb   : > { %v13826_v30 = vadd.f32 %v10165_v34, %v7798_v21  ;;  %v10104_v0 = vadd.f32 %v10103_v12, %v10102_v50  ;;  %v10168_v47 = vadd.f32 %v10167_v17, %v10166_v35 }
 0x4bc   : > { %v10105_v46 = vpop.f32.mrf.mxu0  ;;  %v10169_v11 = vpop.f32.mrf.mxu1 }
 0x4bd   : > { %v7801_v27 = vadd.f32 %v10104_v0, %v13771_v10 }
 0x4be   : > { %v10106_v9 = vpop.f32.mrf.mxu0  ;;  %v10170_v63 = vpop.f32.mrf.mxu1 }
 0x4bf   : > { %v13829_v53 = vadd.f32 %v10168_v47, %v7801_v27  ;;  %v10107_v56 = vadd.f32 %v10106_v9, %v10105_v46  ;;  %v10171_v15 = vadd.f32 %v10170_v63, %v10169_v11 }
 0x4c0   : > { %v10108_v57 = vpop.f32.mrf.mxu0  ;;  %v10172_v33 = vpop.f32.mrf.mxu1 }
 0x4c1   : > { %v7806_v48 = vadd.f32 %v10107_v56, %v13774_v24 }
 0x4c2   : > { %v10109_v39 = vpop.f32.mrf.mxu0  ;;  %v10173_v55 = vpop.f32.mrf.mxu1 }
 0x4c3   : > { %v13832_v22 = vadd.f32 %v10171_v15, %v7806_v48  ;;  %v10110_v45 = vadd.f32 %v10109_v39, %v10108_v57  ;;  %v10174_v14 = vadd.f32 %v10173_v55, %v10172_v33 }
 0x4c4   : > { %v10111_v37 = vpop.f32.mrf.mxu0  ;;  %v10175_v52 = vpop.f32.mrf.mxu1 }
 0x4c5   : > { %v7809_v10 = vadd.f32 %v10110_v45, %v13781_v62 }
 0x4c6   : > { %v10112_v20 = vpop.f32.mrf.mxu0  ;;  %v10176_v26 = vpop.f32.mrf.mxu1 }
 0x4c7   : > { %v13835_v2 = vadd.f32 %v10174_v14, %v7809_v10  ;;  %v10113_v5 = vadd.f32 %v10112_v20, %v10111_v37  ;;  %v10177_v41 = vadd.f32 %v10176_v26, %v10175_v52 }
 0x4c8   : > { %v10114_v29 = vpop.f32.mrf.mxu0  ;;  %v10178_v31 = vpop.f32.mrf.mxu1 }
 0x4c9   : > { %v7814_v24 = vadd.f32 %v10113_v5, %v13784_v16 }
 0x4ca   : > { %v10115_v42 = vpop.f32.mrf.mxu0  ;;  %v10179_v54 = vpop.f32.mrf.mxu1 }
 0x4cb   : > { %v13838_v13 = vadd.f32 %v10177_v41, %v7814_v24  ;;  %v10116_v51 = vadd.f32 %v10115_v42, %v10114_v29  ;;  %v10180_v23 = vadd.f32 %v10179_v54, %v10178_v31 }
 0x4cc   : > { %v10117_v28 = vpop.f32.mrf.mxu0  ;;  %v10181_v8 = vpop.f32.mrf.mxu1 }
 0x4cd   : > { %v7817_v62 = vadd.f32 %v10116_v51, %v13791_v38 }
 0x4ce   : > { %v10118_v18 = vpop.f32.mrf.mxu0  ;;  %v10182_v1 = vpop.f32.mrf.mxu1 }
 0x4cf   : > { %v13841_v32 = vadd.f32 %v10180_v23, %v7817_v62  ;;  %v10119_v61 = vadd.f32 %v10118_v18, %v10117_v28  ;;  %v10183_v49 = vadd.f32 %v10182_v1, %v10181_v8 }
 0x4d0   : > { %v10120_v43 = vpop.f32.mrf.mxu0  ;;  %v10184_v40 = vpop.f32.mrf.mxu1 }
 0x4d1   : > { %v7822_v16 = vadd.f32 %v10119_v61, %v13794_v19 }
 0x4d2   : > { %v10121_v59 = vpop.f32.mrf.mxu0  ;;  %v10185_v21 = vpop.f32.mrf.mxu1 }
 0x4d3   : > { %v13844_v34 = vadd.f32 %v10183_v49, %v7822_v16  ;;  %v10122_v50 = vadd.f32 %v10121_v59, %v10120_v43  ;;  %v10186_v35 = vadd.f32 %v10185_v21, %v10184_v40 }
 0x4d4   : > { %v10123_v12 = vpop.f32.mrf.mxu0  ;;  %v10187_v0 = vpop.f32.mrf.mxu1 }
 0x4d5   : > { %v7825_v38 = vadd.f32 %v10122_v50, %v13799_v58 }
 0x4d6   : > { %v10124_v17 = vpop.f32.mrf.mxu0  ;;  %v10188_v27 = vpop.f32.mrf.mxu1 }
 0x4d7   : > { %v13847_v47 = vadd.f32 %v10186_v35, %v7825_v38  ;;  %v10125_v46 = vadd.f32 %v10124_v17, %v10123_v12  ;;  %v10189_v11 = vadd.f32 %v10188_v27, %v10187_v0 }
 0x4d8   : > { %v10126_v9 = vpop.f32.mrf.mxu0  ;;  %v10190_v56 = vpop.f32.mrf.mxu1 }
 0x4d9   : > { %v7830_v19 = vadd.f32 %v10125_v46, %v13802_v3 }
 0x4da   : > { %v10127_v63 = vpop.f32.mrf.mxu0  ;;  %v10191_v48 = vpop.f32.mrf.mxu1 }
 0x4db   : > { %v13850_v15 = vadd.f32 %v10189_v11, %v7830_v19  ;;  %v10128_v57 = vadd.f32 %v10127_v63, %v10126_v9  ;;  %v10192_v33 = vadd.f32 %v10191_v48, %v10190_v56 }
 0x4dc   : > { %v13852_v39 = vpop.f32.mrf.mxu0  ;;  %v13855_v45 = vpop.f32.mrf.mxu1 }
 0x4dd   : > { %14788 = vst [vmem:[#allocation98_spill] sm:$0xff] %v13850_v15  ;;  %v7833_v58 = vadd.f32 %v10128_v57, %v13805_v6 }
 0x4de   : > { %v13857_v55 = vpop.f32.mrf.mxu0  ;;  %v13861_v37 = vpop.f32.mrf.mxu1 }
 0x4df   : > { %v13859_v14 = vadd.f32 %v10192_v33, %v7833_v58 }
 0x4e0   : > { %v13863_v3 = vpop.f32.mrf.mxu0  ;;  %v13865_v10 = vpop.f32.mrf.mxu1 }
 0x4e1   : > { %14789 = vst [vmem:[#allocation99_spill] sm:$0xff] %v13859_v14 }
 0x4e2   : > { %v13867_v52 = vpop.f32.mrf.mxu0  ;;  %v13869_v20 = vpop.f32.mrf.mxu1 }
 0x4e4   : > { %v13871_v5 = vpop.f32.mrf.mxu0  ;;  %v13873_v26 = vpop.f32.mrf.mxu1 }
 0x4e6   : > { %v13875_v6 = vpop.f32.mrf.mxu0  ;;  %v13877_v41 = vpop.f32.mrf.mxu1 }
 0x4e8   : > { %v13879_v29 = vpop.f32.mrf.mxu0  ;;  %v13881_v24 = vpop.f32.mrf.mxu1 }
 0x4ea   : > { %v13883_v31 = vpop.f32.mrf.mxu0  ;;  %v13885_v42 = vpop.f32.mrf.mxu1 }
 0x4ec   : > { %v10221_v51 = vpop.f32.mrf.mxu0  ;;  %v10285_v54 = vpop.f32.mrf.mxu1 }
 0x4ee   : > { %v10222_v23 = vpop.f32.mrf.mxu0  ;;  %v10286_v62 = vpop.f32.mrf.mxu1 }
 0x4ef   : > { %v10223_v28 = vadd.f32 %v10222_v23, %v10221_v51  ;;  %v10287_v8 = vadd.f32 %v10286_v62, %v10285_v54 }
 0x4f0   : > { %v10224_v18 = vpop.f32.mrf.mxu0  ;;  %v10288_v1 = vpop.f32.mrf.mxu1 }
 0x4f1   : > { %v7984_v61 = vadd.f32 %v10223_v28, %v13820_v60 }
 0x4f2   : > { %v10225_v49 = vpop.f32.mrf.mxu0  ;;  %v10289_v40 = vpop.f32.mrf.mxu1 }
 0x4f3   : > { %v13888_v43 = vadd.f32 %v10287_v8, %v7984_v61  ;;  %v10226_v16 = vadd.f32 %v10225_v49, %v10224_v18  ;;  %v10290_v59 = vadd.f32 %v10289_v40, %v10288_v1 }
 0x4f4   : > { %v10227_v50 = vpop.f32.mrf.mxu0  ;;  %v10291_v35 = vpop.f32.mrf.mxu1 }
 0x4f5   : > { %v7987_v21 = vadd.f32 %v10226_v16, %v13823_v44 }
 0x4f6   : > { %v10228_v12 = vpop.f32.mrf.mxu0  ;;  %v10292_v17 = vpop.f32.mrf.mxu1 }
 0x4f7   : > { %v13891_v38 = vadd.f32 %v10290_v59, %v7987_v21  ;;  %v10229_v0 = vadd.f32 %v10228_v12, %v10227_v50  ;;  %v10293_v46 = vadd.f32 %v10292_v17, %v10291_v35 }
 0x4f8   : > { %v10230_v27 = vpop.f32.mrf.mxu0  ;;  %v10294_v11 = vpop.f32.mrf.mxu1 }
 0x4f9   : > { %v7992_v60 = vadd.f32 %v10229_v0, %v13826_v30 }
 0x4fa   : > { %v10231_v9 = vpop.f32.mrf.mxu0  ;;  %v10295_v63 = vpop.f32.mrf.mxu1 }
 0x4fb   : > { %v13894_v19 = vadd.f32 %v10293_v46, %v7992_v60  ;;  %v10232_v56 = vadd.f32 %v10231_v9, %v10230_v27  ;;  %v10296_v57 = vadd.f32 %v10295_v63, %v10294_v11  ;;  %v10211_v9 = vadd.f32 %v13857_v55, %v13852_v39 }
 0x4fc   : > { %v13896_v48 = vpop.f32.mrf.mxu0  ;;  %v13899_v33 = vpop.f32.mrf.mxu1 }
 0x4fd   : > { %v7995_v44 = vadd.f32 %v10232_v56, %v13829_v53  ;;  %v7968_v15 = vadd.f32 %v10211_v9, %v13808_v25 }
 0x4fe   : > { %v13901_v58 = vpop.f32.mrf.mxu0  ;;  %v13905_v54 = vpop.f32.mrf.mxu1 }
 0x4ff   : > { %v13903_v51 = vadd.f32 %v10296_v57, %v7995_v44  ;;  %v10214_v44 = vadd.f32 %v13867_v52, %v13863_v3  ;;  %v10278_v52 = vadd.f32 %v13869_v20, %v13865_v10 }
 0x500   : > { %v13907_v30 = vpop.f32.mrf.mxu0  ;;  %v13909_v23 = vpop.f32.mrf.mxu1 }
 0x501   : > { %v7971_v55 = vadd.f32 %v10214_v44, %v13811_v7  ;;  %v10220_v7 = vadd.f32 %v13883_v31, %v13879_v29 }
 0x502   : > { %v13911_v28 = vpop.f32.mrf.mxu0  ;;  %v13913_v62 = vpop.f32.mrf.mxu1 }
 0x504   : > { %v13915_v8 = vpop.f32.mrf.mxu0  ;;  %v13917_v18 = vpop.f32.mrf.mxu1 }
 0x506   : > { %v13919_v53 = vpop.f32.mrf.mxu0  ;;  %v13921_v61 = vpop.f32.mrf.mxu1 }
 0x508   : > { %v13923_v1 = vpop.f32.mrf.mxu0  ;;  %v13925_v49 = vpop.f32.mrf.mxu1 }
 0x50a   : > { %v13927_v16 = vpop.f32.mrf.mxu0  ;;  %v13929_v40 = vpop.f32.mrf.mxu1 }
 0x50c   : > { %v13931_v59 = vpop.f32.mrf.mxu0  ;;  %v13933_v50 = vpop.f32.mrf.mxu1 }
 0x50e   : > { %v13935_v21 = vpop.f32.mrf.mxu0  ;;  %v13937_v35 = vpop.f32.mrf.mxu1 }
 0x510   : > { %v13939_v12 = vpop.f32.mrf.mxu0  ;;  %v13941_v0 = vpop.f32.mrf.mxu1 }
 0x511   : > { %14790 = vst [vmem:[#allocation96_spill] sm:$0xff] %v13941_v0  ;;  %v10275_v0 = vadd.f32 %v13861_v37, %v13855_v45 }
 0x512   : > { %v13943_v17 = vpop.f32.mrf.mxu0  ;;  %v13945_v46 = vpop.f32.mrf.mxu1 }
 0x513   : > { %14791 = vst [vmem:[#allocation97_spill] sm:$0xff] %v13945_v46 }
 0x514   : > { %v13947_v27 = vpop.f32.mrf.mxu0  ;;  %v13949_v60 = vpop.f32.mrf.mxu1 }
 0x515   : > { %14792 = vst [vmem:[#allocation102_spill] sm:$0xff] %v13947_v27  ;;  %14793 = vst [vmem:[#allocation103_spill] sm:$0xff] %v13949_v60  ;;  %v8068_v27 = vadd.f32 %v10278_v52, %v7971_v55  ;;  %v10953_v55 = vld [vmem:[%s11394_s25 + $0x8] sm:$0xff] }
 0x516   : > { %v13951_v11 = vpop.f32.mrf.mxu0  ;;  %v13955_v56 = vpop.f32.mrf.mxu1 }
 0x517   : > { %14794 = vst [vmem:[#allocation100_spill] sm:$0xff] %v13951_v11  ;;  %14795 = vst [vmem:[#allocation101_spill] sm:$0xff] %v13955_v56 }
 0x518   : > { %v13957_v63 = vpop.f32.mrf.mxu0  ;;  %v13959_v57 = vpop.f32.mrf.mxu1 }
 0x519   : > { %14796 = vst [vmem:[#allocation106_spill] sm:$0xff] %v13957_v63  ;;  %14797 = vst [vmem:[#allocation107_spill] sm:$0xff] %v13959_v57  ;;  %v8065_v63 = vadd.f32 %v10275_v0, %v7968_v15  ;;  %v10217_v57 = vadd.f32 %v13875_v6, %v13871_v5 }
 0x51a   : > { %v13963_v14 = vpop.f32.mrf.mxu0  ;;  %v13966_v46 = vpop.f32.mrf.mxu1 }
 0x51b   : > { %14798 = vst [vmem:[#allocation104_spill] sm:$0xff] %v13963_v14  ;;  %14799 = vst [vmem:[#allocation105_spill] sm:$0xff] %v13966_v46  ;;  %v7976_v37 = vadd.f32 %v10217_v57, %v13814_v4  ;;  %v7979_v4 = vadd.f32 %v10220_v7, %v13817_v36 }
 0x51c   : > { %v10337_v60 = vpop.f32.mrf.mxu0  ;;  %v10401_v39 = vpop.f32.mrf.mxu1 }
 0x51e   : > { %v10338_v56 = vpop.f32.mrf.mxu0  ;;  %v10402_v3 = vpop.f32.mrf.mxu1 }
 0x51f   : > { %v10339_v11 = vadd.f32 %v10338_v56, %v10337_v60  ;;  %v10403_v46 = vadd.f32 %v10402_v3, %v10401_v39  ;;  %v10281_v60 = vadd.f32 %v13877_v41, %v13873_v26  ;;  %v10952_v56 = vld [vmem:[%s11394_s25] sm:$0xff]  ;;  %v10284_v26 = vadd.f32 %v13885_v42, %v13881_v24  ;;  %v10954_v24 = vld [vmem:[%s11394_s25 + $0x10] sm:$0xff] }
 0x520   : > { %v10340_v25 = vpop.f32.mrf.mxu0  ;;  %v10404_v14 = vpop.f32.mrf.mxu1 }
 0x521   : > { %v8162_v9 = vadd.f32 %v10339_v11, %v8065_v63  ;;  %v8073_v39 = vadd.f32 %v10281_v60, %v7976_v37 }
 0x522   : > { %v10341_v45 = vpop.f32.mrf.mxu0  ;;  %v10405_v5 = vpop.f32.mrf.mxu1 }
 0x523   : > { %v8259_v15 = vadd.f32 %v10403_v46, %v8162_v9  ;;  %v10342_v0 = vadd.f32 %v10341_v45, %v10340_v25  ;;  %v10406_v20 = vadd.f32 %v10405_v5, %v10404_v14  ;;  %v8076_v25 = vadd.f32 %v10284_v26, %v7979_v4 }
 0x524   : > { %v10343_v6 = vpop.f32.mrf.mxu0  ;;  %v10407_v11 = vpop.f32.mrf.mxu1 }
 0x525   : > { %v8165_v10 = vadd.f32 %v10342_v0, %v8068_v27  ;;  %v13981_v63 = vadd.f32 %v10952_v56, %v8259_v15 }
 0x526   : > { %v10344_v44 = vpop.f32.mrf.mxu0  ;;  %v10408_v31 = vpop.f32.mrf.mxu1 }
 0x527   : > { %v8262_v57 = vadd.f32 %v10406_v20, %v8165_v10  ;;  %v10345_v29 = vadd.f32 %v10344_v44, %v10343_v6  ;;  %8339 = vadd.xlane.f32.xlu0 %v13981_v63  ;;  %v10409_v41 = vadd.f32 %v10408_v31, %v10407_v11  ;;  %v10955_v11 = vld [vmem:[%s11394_s25 + $0x18] sm:$0xff]  ;;  %v10235_v31 = vadd.f32 %v13901_v58, %v13896_v48 }
 0x528   : > { %v10346_v46 = vpop.f32.mrf.mxu0  ;;  %v10410_v27 = vpop.f32.mrf.mxu1 }
 0x529   : > { %v8170_v14 = vadd.f32 %v10345_v29, %v8073_v39  ;;  %v13988_v3 = vadd.f32 %v10953_v55, %v8262_v57  ;;  %v8000_v55 = vadd.f32 %v10235_v31, %v13832_v22  ;;  %v10302_v22 = vadd.f32 %v13913_v62, %v13909_v23 }
 0x52a   : > { %v10347_v52 = vpop.f32.mrf.mxu0  ;;  %v10411_v45 = vpop.f32.mrf.mxu1 }
 0x52b   : > { %v8267_v9 = vadd.f32 %v10409_v41, %v8170_v14  ;;  %v10348_v36 = vadd.f32 %v10347_v52, %v10346_v46  ;;  %8341 = vadd.xlane.f32.xlu1 %v13988_v3  ;;  %v10412_v15 = vadd.f32 %v10411_v45, %v10410_v27  ;;  %v10238_v41 = vadd.f32 %v13911_v28, %v13907_v30 }
 0x52c   : > { %v10349_v37 = vpop.f32.mrf.mxu0  ;;  %v10413_v0 = vpop.f32.mrf.mxu1 }
 0x52d   : > { %v8173_v7 = vadd.f32 %v10348_v36, %v8076_v25  ;;  %v13992_v42 = vadd.f32 %v10954_v24, %v8267_v9  ;;  %v10299_v36 = vadd.f32 %v13905_v54, %v13899_v33  ;;  %v8003_v48 = vadd.f32 %v10238_v41, %v13835_v2 }
 0x52e   : > { %v10350_v5 = vpop.f32.mrf.mxu0  ;;  %v10414_v60 = vpop.f32.mrf.mxu1 }
 0x52f   : > { %v8270_v6 = vadd.f32 %v10412_v15, %v8173_v7  ;;  %8343 = vadd.xlane.f32.xlu0 %v13992_v42  ;;  %v10351_v25 = vadd.f32 %v10350_v5, %v10349_v37  ;;  %v8097_v7 = vadd.f32 %v10299_v36, %v8000_v55  ;;  %v10241_v15 = vadd.f32 %v13919_v53, %v13915_v8 }
 0x530   : > { %v10352_v10 = vpop.f32.mrf.mxu0  ;;  %v10416_v20 = vpop.f32.mrf.mxu1  ;;  %v8100_v54 = vadd.f32 %v10302_v22, %v8003_v48  ;;  %v10415_v2 = vadd.f32 %v10414_v60, %v10413_v0  ;;  %v10244_v8 = vadd.f32 %v13927_v16, %v13923_v1  ;;  %v10956_v60 = vld [vmem:[%s11394_s25 + $0x40] sm:$0xff]  ;;  %v10247_v1 = vadd.f32 %v13935_v21, %v13931_v59 }
 0x531   : > { %v13996_v56 = vadd.f32 %v10955_v11, %v8270_v6  ;;  %v8178_v28 = vadd.f32 %v10351_v25, %v13888_v43  ;;  %v8008_v41 = vadd.f32 %v10241_v15, %v13838_v13 }
 0x532   : > { %v10353_v44 = vpop.f32.mrf.mxu0  ;;  %v10417_v39 = vpop.f32.mrf.mxu1 }
 0x533   : > { %8345 = vadd.xlane.f32.xlu0 %v13996_v56  ;;  %v10354_v37 = vadd.f32 %v10353_v44, %v10352_v10  ;;  %v8275_v23 = vadd.f32 %v10415_v2, %v8178_v28  ;;  %v10305_v44 = vadd.f32 %v13921_v61, %v13917_v18  ;;  %v10418_v16 = vadd.f32 %v10417_v39, %v10416_v20  ;;  %v10960_v2 = vld [vmem:[%s11394_s25 + $0x50] sm:$0xff] }
 0x534   : > { %v10355_v4 = vpop.f32.mrf.mxu0  ;;  %v13999_v57 = vpop.f32.mrf.mxu1  ;;  %v10308_v18 = vadd.f32 %v13929_v40, %v13925_v49  ;;  %v8016_v28 = vadd.f32 %v10247_v1, %v13844_v34  ;;  %v10250_v49 = vadd.f32 %v13943_v17, %v13939_v12 }
 0x535   : > { %v8181_v43 = vadd.f32 %v10354_v37, %v13891_v38  ;;  %v8105_v48 = vadd.f32 %v10305_v44, %v8008_v41  ;;  %v8011_v38 = vadd.f32 %v10244_v8, %v13841_v32  ;;  %v10958_v32 = vld [vmem:[%s11394_s25 + $0x48] sm:$0xff] }
 0x536   : > { %v10356_v29 = vpop.f32.mrf.mxu0  ;;  %v14003_v46 = vpop.f32.mrf.mxu1  ;;  %v8019_v8 = vadd.f32 %v10250_v49, %v13847_v47  ;;  %v10961_v47 = vld [vmem:[%s11394_s25 + $0x30] sm:$0xff]  ;;  %v10963_v49 = vld [vmem:[%s11394_s25 + $0x60] sm:$0xff] }
 0x537   : > { %v10357_v62 = vadd.f32 %v10356_v29, %v10355_v4  ;;  %v8278_v61 = vadd.f32 %v10418_v16, %v8181_v43  ;;  %v8108_v37 = vadd.f32 %v10308_v18, %v8011_v38 }
 0x538   : > { %v10358_v26 = vpop.f32.mrf.mxu0  ;;  %v14005_v14 = vpop.f32.mrf.mxu1 }
 0x53a   : > { %v10359_v27 = vpop.f32.mrf.mxu0  ;;  %v14010_v52 = vpop.f32.mrf.mxu1 }
 0x53b   : > { %v10360_v21 = vadd.f32 %v10359_v27, %v10358_v26 }
 0x53c   : > { %v10361_v9 = vpop.f32.mrf.mxu0  ;;  %v10425_v45 = vpop.f32.mrf.mxu1 }
 0x53d   : > { %v8189_v17 = vadd.f32 %v10360_v21, %v13903_v51  ;;  %v14808_v21 = vld [vmem:[#allocation101_spill] sm:$0xff] }
 0x53e   : > { %v10362_v58 = vpop.f32.mrf.mxu0  ;;  %v10426_v30 = vpop.f32.mrf.mxu1 }
 0x53f   : > { %v10363_v24 = vadd.f32 %v10362_v58, %v10361_v9  ;;  %v10427_v11 = vadd.f32 %v10426_v30, %v10425_v45 }
 0x540   : > { %v10364_v5 = vpop.f32.mrf.mxu0  ;;  %v10428_v33 = vpop.f32.mrf.mxu1 }
 0x541   : > { %v8194_v6 = vadd.f32 %v10363_v24, %v8097_v7  ;;  %v8186_v7 = vadd.f32 %v10357_v62, %v13894_v19  ;;  %v10957_v24 = vld [vmem:[%s11394_s25 + $0x20] sm:$0xff]  ;;  %v10421_v19 = vadd.f32 %v14003_v46, %v13999_v57 }
 0x542   : > { %v10365_v31 = vpop.f32.mrf.mxu0  ;;  %v10429_v9 = vpop.f32.mrf.mxu1  ;;  %v14037_v59 = vadd.f32 %v10957_v24, %v8275_v23  ;;  %v14802_v62 = vld [vmem:[#allocation96_spill] sm:$0xff]  ;;  %v14807_v24 = vld [vmem:[#allocation103_spill] sm:$0xff] }
 0x543   : > { %v8291_v53 = vadd.f32 %v10427_v11, %v8194_v6  ;;  %v10366_v55 = vadd.f32 %v10365_v31, %v10364_v5  ;;  %v10430_v36 = vadd.f32 %v10429_v9, %v10428_v33  ;;  %v10311_v6 = vadd.f32 %v13937_v35, %v13933_v50  ;;  %v10959_v33 = vld [vmem:[%s11394_s25 + $0x28] sm:$0xff] }
 0x544   : > { %v10367_v10 = vpop.f32.mrf.mxu0  ;;  %v10431_v0 = vpop.f32.mrf.mxu1  ;;  %v8283_v34 = vadd.f32 %v10421_v19, %v8186_v7  ;;  %v14052_v12 = vadd.f32 %v10959_v33, %v8278_v61  ;;  %v10424_v9 = vadd.f32 %v14010_v52, %v14005_v14 }
 0x545   : > { %v8197_v25 = vadd.f32 %v10366_v55, %v8100_v54  ;;  %v14027_v13 = vadd.f32 %v10956_v60, %v8291_v53  ;;  %v8113_v41 = vadd.f32 %v10311_v6, %v8016_v28  ;;  %v14800_v53 = vld [vmem:[#allocation102_spill] sm:$0xff]  ;;  %v14801_v55 = vld [vmem:[#allocation100_spill] sm:$0xff] }
 0x546   : > { %v10368_v45 = vpop.f32.mrf.mxu0  ;;  %v10432_v58 = vpop.f32.mrf.mxu1  ;;  %v10253_v50 = vadd.f32 %v14801_v55, %v14800_v53  ;;  %v10965_v53 = vld [vmem:[%s11394_s25 + $0x68] sm:$0xff] }
 0x547   : > { %v8294_v4 = vadd.f32 %v10430_v36, %v8197_v25  ;;  %v10369_v29 = vadd.f32 %v10368_v45, %v10367_v10  ;;  %8355 = vadd.xlane.f32.xlu0 %v14027_v13  ;;  %v10433_v39 = vadd.f32 %v10432_v58, %v10431_v0  ;;  %v14803_v10 = vld [vmem:[#allocation97_spill] sm:$0xff]  ;;  %v14068_v36 = vadd.f32 %v10961_v47, %v8283_v34  ;;  %v10962_v45 = vld [vmem:[%s11394_s25 + $0x58] sm:$0xff]  ;;  %v14806_v58 = vld [vmem:[#allocation104_spill] sm:$0xff] }
 0x548   : > { %v10370_v15 = vpop.f32.mrf.mxu0  ;;  %v10434_v30 = vpop.f32.mrf.mxu1  ;;  %v10314_v44 = vadd.f32 %v14803_v10, %v14802_v62  ;;  %v8286_v0 = vadd.f32 %v10424_v9, %v8189_v17  ;;  %v10966_v10 = vld [vmem:[%s11394_s25 + $0x70] sm:$0xff]  ;;  %v10967_v47 = vld [vmem:[%s11394_s25 + $0x78] sm:$0xff] }
 0x549   : > { %v8202_v20 = vadd.f32 %v10369_v29, %v8105_v48  ;;  %v14040_v22 = vadd.f32 %v10958_v32, %v8294_v4  ;;  %v14804_v48 = vld [vmem:[#allocation98_spill] sm:$0xff] }
 0x54a   : > { %v10371_v40 = vpop.f32.mrf.mxu0  ;;  %v10435_v27 = vpop.f32.mrf.mxu1  ;;  %v8116_v52 = vadd.f32 %v10314_v44, %v8019_v8  ;;  %v8024_v38 = vadd.f32 %v10253_v50, %v14804_v48  ;;  %v14805_v29 = vld [vmem:[#allocation106_spill] sm:$0xff] }
 0x54b   : > { %v8299_v5 = vadd.f32 %v10433_v39, %v8202_v20  ;;  %v10372_v26 = vadd.f32 %v10371_v40, %v10370_v15  ;;  %8357 = vadd.xlane.f32.xlu1 %v14040_v22  ;;  %8347 = vadd.xlane.f32.xlu0 %v14037_v59  ;;  %v10436_v46 = vadd.f32 %v10435_v27, %v10434_v30  ;;  %v10964_v40 = vld [vmem:[%s11394_s25 + $0x38] sm:$0xff]  ;;  %s14285_s25 = scalar_lea.hbm %s14341_s9, %s9424_s1 }
 0x54c   : > { %v10373_v11 = vpop.f32.mrf.mxu0  ;;  %v10437_v54 = vpop.f32.mrf.mxu1  ;;  %v10256_v18 = vadd.f32 %v14806_v58, %v14805_v29  ;;  %v10317_v20 = vadd.f32 %v14808_v21, %v14807_v24  ;;  %v14809_v27 = vld [vmem:[#allocation99_spill] sm:$0xff] }
 0x54d   : > { %v8205_v57 = vadd.f32 %v10372_v26, %v8108_v37  ;;  %v14056_v31 = vadd.f32 %v10960_v2, %v8299_v5  ;;  %v14084_v37 = vadd.f32 %v10964_v40, %v8286_v0  ;;  %v8566_v40 = vld [vmem:[#allocation10 + $0x30] sm:$0xff] }
 0x54e   : > { %v10374_v35 = vpop.f32.mrf.mxu0  ;;  %v10438_v43 = vpop.f32.mrf.mxu1  ;;  %v8121_v5 = vadd.f32 %v10317_v20, %v8024_v38  ;;  %v8027_v6 = vadd.f32 %v10256_v18, %v14809_v27  ;;  %v8573_v20 = vld [vmem:[#allocation10 + $0x68] sm:$0xff] }
 0x54f   : > { %v8302_v23 = vadd.f32 %v10436_v46, %v8205_v57  ;;  %v10375_v51 = vadd.f32 %v10374_v35, %v10373_v11  ;;  %8359 = vadd.xlane.f32.xlu1 %v14056_v31  ;;  %8349 = vadd.xlane.f32.xlu0 %v14052_v12  ;;  %v10439_v1 = vadd.f32 %v10438_v43, %v10437_v54  ;;  %v14810_v57 = vld [vmem:[#allocation107_spill] sm:$0xff]  ;;  %v14811_v46 = vld [vmem:[#allocation105_spill] sm:$0xff] }
 0x550   : > { %v10376_v25 = vpop.f32.mrf.mxu0  ;;  %v10440_v16 = vpop.f32.mrf.mxu1  ;;  %v10320_v54 = vadd.f32 %v14811_v46, %v14810_v57  ;;  %v8563_v46 = vld [vmem:[#allocation10 + $0x18] sm:$0xff] }
 0x551   : > { %v8210_v60 = vadd.f32 %v10375_v51, %v8113_v41  ;;  %v14071_v14 = vadd.f32 %v10962_v45, %v8302_v23 }
 0x552   : > { %v10377_v4 = vpop.f32.mrf.mxu0  ;;  %v10441_v15 = vpop.f32.mrf.mxu1  ;;  %v8124_v35 = vadd.f32 %v10320_v54, %v8027_v6 }
 0x553   : > { %v8307_v61 = vadd.f32 %v10439_v1, %v8210_v60  ;;  %v10378_v7 = vadd.f32 %v10377_v4, %v10376_v25  ;;  %8361 = vadd.xlane.f32.xlu1 %v14071_v14  ;;  %8351 = vadd.xlane.f32.xlu0 %v14068_v36  ;;  %v10442_v32 = vadd.f32 %v10441_v15, %v10440_v16  ;;  %v8575_v60 = vld [vmem:[#allocation10 + $0x78] sm:$0xff]  ;;  %v8574_v1 = vld [vmem:[#allocation10 + $0x70] sm:$0xff] }
 0x554   : > { %v10379_v39 = vpop.f32.mrf.mxu0  ;;  %v10443_v28 = vpop.f32.mrf.mxu1  ;;  %10481 = vmatprep.subr.mxu0 %v8575_v60  ;;  %10537 = vmatprep.subr.mxu1 %v8575_v60 }
 0x555   : > { %v8213_v30 = vadd.f32 %v10378_v7, %v8116_v52  ;;  %v14081_v19 = vadd.f32 %v10963_v49, %v8307_v61  ;;  %10482 = vmatpush3.msra.mxu0 %v8575_v60  ;;  %10553 = vmatpush3.msra.mxu1 %v8575_v60 }
 0x556   : > { %v10380_v26 = vpop.f32.mrf.mxu0  ;;  %v10444_v33 = vpop.f32.mrf.mxu1  ;;  %10483 = vmatprep.subr.mxu0 %v8574_v1  ;;  %10538 = vmatprep.subr.mxu1 %v8574_v1 }
 0x557   : > { %v8310_v34 = vadd.f32 %v10442_v32, %v8213_v30  ;;  %v10381_v11 = vadd.f32 %v10380_v26, %v10379_v39  ;;  %8363 = vadd.xlane.f32.xlu1 %v14081_v19  ;;  %8353 = vadd.xlane.f32.xlu0 %v14084_v37  ;;  %v10445_v41 = vadd.f32 %v10444_v33, %v10443_v28  ;;  %v8572_v39 = vld [vmem:[#allocation10 + $0x60] sm:$0xff]  ;;  %v8569_v30 = vld [vmem:[#allocation10 + $0x48] sm:$0xff]  ;;  %v8567_v28 = vld [vmem:[#allocation10 + $0x38] sm:$0xff] }
 0x558   : > { %v10382_v17 = vpop.f32.mrf.mxu0  ;;  %v10446_v8 = vpop.f32.mrf.mxu1  ;;  %10484 = vmatpush3.msra.mxu0 %v8574_v1  ;;  %10554 = vmatpush3.msra.mxu1 %v8574_v1  ;;  %v8568_v32 = vld [vmem:[#allocation10 + $0x40] sm:$0xff]  ;;  %v8565_v26 = vld [vmem:[#allocation10 + $0x28] sm:$0xff] }
 0x559   : > { %v8218_v2 = vadd.f32 %v10381_v11, %v8121_v5  ;;  %v14092_v55 = vadd.f32 %v10965_v53, %v8310_v34  ;;  %10485 = vmatprep.subr.mxu0 %v8573_v20  ;;  %10539 = vmatprep.subr.mxu1 %v8573_v20  ;;  %v8564_v11 = vld [vmem:[#allocation10 + $0x20] sm:$0xff] }
 0x55a   : > { %v10383_v50 = vpop.f32.mrf.mxu0  ;;  %v10447_v51 = vpop.f32.mrf.mxu1  ;;  %10486 = vmatpush3.msra.mxu0 %v8573_v20  ;;  %10555 = vmatpush3.msra.mxu1 %v8573_v20 }
 0x55b   : > { %v8315_v9 = vadd.f32 %v10445_v41, %v8218_v2  ;;  %v10384_v23 = vadd.f32 %v10383_v50, %v10382_v17  ;;  %8365 = vadd.xlane.f32.xlu1 %v14092_v55  ;;  %v10448_v62 = vadd.f32 %v10447_v51, %v10446_v8  ;;  %10487 = vmatprep.subr.mxu0 %v8572_v39  ;;  %v8562_v8 = vld [vmem:[#allocation10 + $0x10] sm:$0xff]  ;;  %v8560_v51 = vld [vmem:[#allocation10] sm:$0xff] }
 0x55c   : > { %10488 = vmatpush3.msra.mxu0 %v8572_v39  ;;  %10540 = vmatprep.subr.mxu1 %v8572_v39 }
 0x55d   : > { %v8221_v43 = vadd.f32 %v10384_v23, %v8124_v35  ;;  %v14096_v44 = vadd.f32 %v10966_v10, %v8315_v9  ;;  %10556 = vmatpush3.msra.mxu1 %v8572_v39 }
 0x55f   : > { %v8318_v25 = vadd.f32 %v10448_v62, %v8221_v43  ;;  %8367 = vadd.xlane.f32.xlu1 %v14096_v44 }
 0x561   : > { %v14100_v0 = vadd.f32 %v10967_v47, %v8318_v25 }
 0x563   : > { %8369 = vadd.xlane.f32.xlu1 %v14100_v0 }
 0x5b0   : > { %v8340_v16 = vpop.xlane.xlu0 %8339 }
 0x5b1   : > { %v8372_v45 = vmul.f32 0.0078125, %v8340_v16 }
 0x5b3   : > { %v14104_v52 = vsub.f32 %v13981_v63, %v8372_v45 }
 0x5b4   : > { %v8342_v48 = vpop.xlane.xlu1 %8341 }
 0x5b5   : > { %v8373_v38 = vmul.f32 0.0078125, %v8342_v48  ;;  %v8404_v4 = vmul.f32 %v14104_v52, %v14104_v52 }
 0x5b7   : > { %v14109_v29 = vsub.f32 %v13988_v3, %v8373_v38  ;;  %8420 = vadd.xlane.f32.xlu0 %v8404_v4 }
 0x5b8   : > { %v8344_v58 = vpop.xlane.xlu0 %8343 }
 0x5b9   : > { %v8374_v18 = vmul.f32 0.0078125, %v8344_v58  ;;  %v8405_v61 = vmul.f32 %v14109_v29, %v14109_v29 }
 0x5bb   : > { %v14114_v7 = vsub.f32 %v13992_v42, %v8374_v18  ;;  %8422 = vadd.xlane.f32.xlu0 %v8405_v61  ;;  %v8571_v42 = vld [vmem:[#allocation10 + $0x58] sm:$0xff] }
 0x5bc   : > { %v8346_v63 = vpop.xlane.xlu0 %8345  ;;  %10489 = vmatprep.subr.mxu0 %v8571_v42  ;;  %10541 = vmatprep.subr.mxu1 %v8571_v42 }
 0x5bd   : > { %v8375_v15 = vmul.f32 0.0078125, %v8346_v63  ;;  %v8406_v24 = vmul.f32 %v14114_v7, %v14114_v7  ;;  %10490 = vmatpush3.msra.mxu0 %v8571_v42  ;;  %10557 = vmatpush3.msra.mxu1 %v8571_v42 }
 0x5bf   : > { %v14119_v21 = vsub.f32 %v13996_v56, %v8375_v15  ;;  %8424 = vadd.xlane.f32.xlu0 %v8406_v24  ;;  %v8570_v56 = vld [vmem:[#allocation10 + $0x50] sm:$0xff] }
 0x5c0   : > { %10491 = vmatprep.subr.mxu0 %v8570_v56  ;;  %10542 = vmatprep.subr.mxu1 %v8570_v56 }
 0x5c1   : > { %v8407_v3 = vmul.f32 %v14119_v21, %v14119_v21  ;;  %10492 = vmatpush3.msra.mxu0 %v8570_v56  ;;  %10558 = vmatpush3.msra.mxu1 %v8570_v56 }
 0x5c2   : > { %10493 = vmatprep.subr.mxu0 %v8569_v30  ;;  %10543 = vmatprep.subr.mxu1 %v8569_v30 }
 0x5c3   : > { %8426 = vadd.xlane.f32.xlu0 %v8407_v3  ;;  %10494 = vmatpush3.msra.mxu0 %v8569_v30 }
 0x5c4   : > { %10495 = vmatprep.subr.mxu0 %v8568_v32  ;;  %10559 = vmatpush3.msra.mxu1 %v8569_v30 }
 0x5c5   : > { %10496 = vmatpush3.msra.mxu0 %v8568_v32  ;;  %10544 = vmatprep.subr.mxu1 %v8568_v32 }
 0x5c6   : > { %10497 = vmatprep.subr.mxu0 %v8567_v28  ;;  %10560 = vmatpush3.msra.mxu1 %v8568_v32 }
 0x5c7   : > { %10498 = vmatpush3.msra.mxu0 %v8567_v28  ;;  %10545 = vmatprep.subr.mxu1 %v8567_v28 }
 0x5c8   : > { %10499 = vmatprep.subr.mxu0 %v8566_v40  ;;  %10561 = vmatpush3.msra.mxu1 %v8567_v28 }
 0x5c9   : > { %10500 = vmatpush3.msra.mxu0 %v8566_v40  ;;  %10546 = vmatprep.subr.mxu1 %v8566_v40 }
 0x5ca   : > { %10501 = vmatprep.subr.mxu0 %v8565_v26  ;;  %10562 = vmatpush3.msra.mxu1 %v8566_v40 }
 0x5cb   : > { %10502 = vmatpush3.msra.mxu0 %v8565_v26  ;;  %10547 = vmatprep.subr.mxu1 %v8565_v26 }
 0x5cc   : > { %10503 = vmatprep.subr.mxu0 %v8564_v11  ;;  %10563 = vmatpush3.msra.mxu1 %v8565_v26 }
 0x5cd   : > { %10504 = vmatpush3.msra.mxu0 %v8564_v11  ;;  %10548 = vmatprep.subr.mxu1 %v8564_v11 }
 0x5ce   : > { %10505 = vmatprep.subr.mxu0 %v8563_v46  ;;  %10564 = vmatpush3.msra.mxu1 %v8564_v11 }
 0x5cf   : > { %10506 = vmatpush3.msra.mxu0 %v8563_v46  ;;  %10549 = vmatprep.subr.mxu1 %v8563_v46 }
 0x5d0   : > { %v8356_v49 = vpop.xlane.xlu0 %8355  ;;  %10507 = vmatprep.subr.mxu0 %v8562_v8  ;;  %10565 = vmatpush3.msra.mxu1 %v8563_v46  ;;  %v14192_v46 = vld [vmem:[%s14338_s6] ss:$0 sm:$0xff] }
 0x5d1   : > { %v8380_v5 = vmul.f32 0.0078125, %v8356_v49  ;;  %10508 = vmatpush3.msra.mxu0 %v8562_v8  ;;  %10550 = vmatprep.subr.mxu1 %v8562_v8 }
 0x5d2   : > { %10566 = vmatpush3.msra.mxu1 %v8562_v8 }
 0x5d3   : > { %v14124_v27 = vsub.f32 %v14027_v13, %v8380_v5 }
 0x5d4   : > { %v8358_v6 = vpop.xlane.xlu1 %8357  ;;  %v8348_v34 = vpop.xlane.xlu0 %8347 }
 0x5d5   : > { %v8381_v33 = vmul.f32 0.0078125, %v8358_v6  ;;  %v8376_v17 = vmul.f32 0.0078125, %v8348_v34  ;;  %v8412_v57 = vmul.f32 %v14124_v27, %v14124_v27 }
 0x5d7   : > { %v14129_v13 = vsub.f32 %v14040_v22, %v8381_v33  ;;  %v14132_v54 = vsub.f32 %v14037_v59, %v8376_v17  ;;  %8436 = vadd.xlane.f32.xlu1 %v8412_v57  ;;  %v8561_v22 = vld [vmem:[#allocation10 + $0x8] sm:$0xff]  ;;  %v14186_v17 = vld [vmem:[%s14337_s5] ss:$0 sm:$0xff] }
 0x5d8   : > { %v8360_v2 = vpop.xlane.xlu1 %8359  ;;  %v8350_v41 = vpop.xlane.xlu0 %8349  ;;  %10509 = vmatprep.subr.mxu0 %v8561_v22  ;;  %10551 = vmatprep.subr.mxu1 %v8561_v22 }
 0x5d9   : > { %v8382_v53 = vmul.f32 0.0078125, %v8360_v2  ;;  %v8377_v50 = vmul.f32 0.0078125, %v8350_v41  ;;  %v8413_v35 = vmul.f32 %v14129_v13, %v14129_v13  ;;  %v8408_v9 = vmul.f32 %v14132_v54, %v14132_v54  ;;  %10510 = vmatpush3.msra.mxu0 %v8561_v22  ;;  %10567 = vmatpush3.msra.mxu1 %v8561_v22 }
 0x5da   : > { %10511 = vmatprep.subr.mxu0 %v8560_v51  ;;  %10552 = vmatprep.subr.mxu1 %v8560_v51 }
 0x5db   : > { %v14139_v59 = vsub.f32 %v14056_v31, %v8382_v53  ;;  %v14142_v23 = vsub.f32 %v14052_v12, %v8377_v50  ;;  %8438 = vadd.xlane.f32.xlu1 %v8413_v35  ;;  %8428 = vadd.xlane.f32.xlu0 %v8408_v9 }
 0x5dc   : > { %v8362_v43 = vpop.xlane.xlu1 %8361  ;;  %v8352_v62 = vpop.xlane.xlu0 %8351  ;;  %10512 = vmatpush3.msra.mxu0 %v8560_v51  ;;  %10568 = vmatpush3.msra.mxu1 %v8560_v51 }
 0x5dd   : > { %v8383_v10 = vmul.f32 0.0078125, %v8362_v43  ;;  %v8378_v25 = vmul.f32 0.0078125, %v8352_v62  ;;  %v8414_v47 = vmul.f32 %v14139_v59, %v14139_v59  ;;  %v8409_v60 = vmul.f32 %v14142_v23, %v14142_v23 }
 0x5df   : > { %v14149_v12 = vsub.f32 %v14071_v14, %v8383_v10  ;;  %v14152_v31 = vsub.f32 %v14068_v36, %v8378_v25  ;;  %8440 = vadd.xlane.f32.xlu1 %v8414_v47  ;;  %8430 = vadd.xlane.f32.xlu0 %v8409_v60 }
 0x5e0   : > { %v8364_v1 = vpop.xlane.xlu1 %8363  ;;  %v8354_v16 = vpop.xlane.xlu0 %8353 }
 0x5e1   : > { %v8384_v45 = vmul.f32 0.0078125, %v8364_v1  ;;  %v8379_v48 = vmul.f32 0.0078125, %v8354_v16  ;;  %v8415_v38 = vmul.f32 %v14149_v12, %v14149_v12  ;;  %v8410_v4 = vmul.f32 %v14152_v31, %v14152_v31 }
 0x5e3   : > { %v14159_v14 = vsub.f32 %v14081_v19, %v8384_v45  ;;  %v14162_v36 = vsub.f32 %v14084_v37, %v8379_v48  ;;  %8442 = vadd.xlane.f32.xlu1 %v8415_v38  ;;  %8432 = vadd.xlane.f32.xlu0 %v8410_v4 }
 0x5e4   : > { %v8366_v58 = vpop.xlane.xlu1 %8365 }
 0x5e5   : > { %v8385_v18 = vmul.f32 0.0078125, %v8366_v58  ;;  %v8416_v61 = vmul.f32 %v14159_v14, %v14159_v14  ;;  %v8411_v63 = vmul.f32 %v14162_v36, %v14162_v36 }
 0x5e7   : > { %v14169_v15 = vsub.f32 %v14092_v55, %v8385_v18  ;;  %8444 = vadd.xlane.f32.xlu1 %v8416_v61  ;;  %8434 = vadd.xlane.f32.xlu0 %v8411_v63 }
 0x5e8   : > { %v8368_v19 = vpop.xlane.xlu1 %8367 }
 0x5e9   : > { %v8386_v24 = vmul.f32 0.0078125, %v8368_v19  ;;  %v8417_v37 = vmul.f32 %v14169_v15, %v14169_v15 }
 0x5eb   : > { %v14174_v3 = vsub.f32 %v14096_v44, %v8386_v24  ;;  %8446 = vadd.xlane.f32.xlu1 %v8417_v37 }
 0x5ec   : > { %v8370_v20 = vpop.xlane.xlu1 %8369 }
 0x5ed   : > { %v8387_v39 = vmul.f32 0.0078125, %v8370_v20  ;;  %v8418_v42 = vmul.f32 %v14174_v3, %v14174_v3 }
 0x5ef   : > { %v14179_v56 = vsub.f32 %v14100_v0, %v8387_v39  ;;  %8448 = vadd.xlane.f32.xlu1 %v8418_v42 }
 0x5f1   : > { %v8419_v55 = vmul.f32 %v14179_v56, %v14179_v56 }
 0x5f3   : > { %8450 = vadd.xlane.f32.xlu1 %v8419_v55 }
 0x640   : > { %v8421_v30 = vpop.xlane.xlu0 %8420 }
 0x641   : > { %v8452_v32 = vmul.f32 0.0078125, %v8421_v30 }
 0x643   : > { %v8468_v28 = vadd.f32 1e-05, %v8452_v32 }
 0x644   : > { %v8423_v49 = vpop.xlane.xlu0 %8422 }
 0x645   : > { %10920 = vrsqrt.f32 %v8468_v28  ;;  %v8453_v44 = vmul.f32 0.0078125, %v8423_v49 }
 0x647   : > { %v8469_v40 = vadd.f32 1e-05, %v8453_v44 }
 0x648   : > { %v8425_v5 = vpop.xlane.xlu0 %8424 }
 0x649   : > { %10922 = vrsqrt.f32 %v8469_v40  ;;  %v8454_v26 = vmul.f32 0.0078125, %v8425_v5 }
 0x64b   : > { %v8470_v6 = vadd.f32 1e-05, %v8454_v26 }
 0x64c   : > { %v8427_v34 = vpop.xlane.xlu0 %8426 }
 0x64d   : > { %10924 = vrsqrt.f32 %v8470_v6  ;;  %v8455_v0 = vmul.f32 0.0078125, %v8427_v34 }
 0x64f   : > { %v8471_v11 = vadd.f32 1e-05, %v8455_v0 }
 0x651   : > { %10926 = vrsqrt.f32 %v8471_v11 }
 0x652   : > { %v10921_v33 = vpop.eup %10920 }
 0x653   : > { %v8500_v57 = vmul.f32 %v10921_v33, %v14104_v52 }
 0x655   : > { %v8522_v2 = vmul.f32 %v14186_v17, %v8500_v57 }
 0x656   : > { %v10923_v41 = vpop.eup %10922 }
 0x657   : > { %v8501_v8 = vmul.f32 %v10923_v41, %v14109_v29  ;;  %v8544_v53 = vadd.f32 %v14192_v46, %v8522_v2 }
 0x659   : > { %v8523_v50 = vmul.f32 %v14186_v17, %v8501_v8  ;;  %10513 = vmatprep.mubr.f32.mxu0 %v8544_v53 }
 0x65a   : > { %v10925_v35 = vpop.eup %10924 }
 0x65b   : > { %v8545_v9 = vadd.f32 %v14192_v46, %v8523_v50  ;;  %v8502_v52 = vmul.f32 %v10925_v35, %v14114_v7 }
 0x65d   : > { %10514 = vmatmul.mubr.f32.vlgmr.msra.gmra.mxu0 %v8545_v9  ;;  %v8524_v22 = vmul.f32 %v14186_v17, %v8502_v52 }
 0x65e   : > { %v10927_v51 = vpop.eup %10926 }
 0x65f   : > { %v8546_v43 = vadd.f32 %v14192_v46, %v8524_v22  ;;  %v8503_v62 = vmul.f32 %v10927_v51, %v14119_v21 }
 0x660   : > { %v8437_v10 = vpop.xlane.xlu1 %8436 }
 0x661   : > { %v8460_v29 = vmul.f32 0.0078125, %v8437_v10  ;;  %10516 = vmatprep.mubr.f32.mxu0 %v8546_v43  ;;  %v8525_v25 = vmul.f32 %v14186_v17, %v8503_v62 }
 0x663   : > { %v8476_v47 = vadd.f32 1e-05, %v8460_v29  ;;  %v8547_v60 = vadd.f32 %v14192_v46, %v8525_v25 }
 0x664   : > { %v8439_v1 = vpop.xlane.xlu1 %8438  ;;  %v8429_v16 = vpop.xlane.xlu0 %8428 }
 0x665   : > { %10928 = vrsqrt.f32 %v8476_v47  ;;  %v8461_v7 = vmul.f32 0.0078125, %v8439_v1  ;;  %v8456_v45 = vmul.f32 0.0078125, %v8429_v16  ;;  %10517 = vmatmul.mubr.f32.gmra.mxu0 %v8547_v60 }
 0x667   : > { %v8477_v48 = vadd.f32 1e-05, %v8461_v7  ;;  %v8472_v38 = vadd.f32 1e-05, %v8456_v45 }
 0x668   : > { %v8441_v4 = vpop.xlane.xlu1 %8440  ;;  %v8431_v58 = vpop.xlane.xlu0 %8430 }
 0x669   : > { %10930 = vrsqrt.f32 %v8477_v48  ;;  %v8462_v21 = vmul.f32 0.0078125, %v8441_v4  ;;  %v8457_v18 = vmul.f32 0.0078125, %v8431_v58 }
 0x66a   : > { %10932 = vrsqrt.f32 %v8472_v38 }
 0x66b   : > { %v8478_v61 = vadd.f32 1e-05, %v8462_v21  ;;  %v8473_v63 = vadd.f32 1e-05, %v8457_v18 }
 0x66c   : > { %v8443_v19 = vpop.xlane.xlu1 %8442  ;;  %v8433_v24 = vpop.xlane.xlu0 %8432 }
 0x66d   : > { %10934 = vrsqrt.f32 %v8478_v61  ;;  %v8463_v37 = vmul.f32 0.0078125, %v8443_v19  ;;  %v8458_v20 = vmul.f32 0.0078125, %v8433_v24 }
 0x66e   : > { %10936 = vrsqrt.f32 %v8473_v63 }
 0x66f   : > { %v8479_v39 = vadd.f32 1e-05, %v8463_v37  ;;  %v8474_v42 = vadd.f32 1e-05, %v8458_v20 }
 0x670   : > { %v8445_v55 = vpop.xlane.xlu1 %8444  ;;  %v8435_v30 = vpop.xlane.xlu0 %8434 }
 0x671   : > { %10938 = vrsqrt.f32 %v8479_v39  ;;  %v8464_v32 = vmul.f32 0.0078125, %v8445_v55  ;;  %v8459_v28 = vmul.f32 0.0078125, %v8435_v30 }
 0x672   : > { %v10929_v49 = vpop.eup %10928  ;;  %10940 = vrsqrt.f32 %v8474_v42 }
 0x673   : > { %v8480_v44 = vadd.f32 1e-05, %v8464_v32  ;;  %v8475_v40 = vadd.f32 1e-05, %v8459_v28  ;;  %v8508_v5 = vmul.f32 %v10929_v49, %v14124_v27  ;;  %v14244_v28 = vld [vmem:[%s14340_s8] ss:$0 sm:$0xff] }
 0x674   : > { %v8447_v26 = vpop.xlane.xlu1 %8446 }
 0x675   : > { %10942 = vrsqrt.f32 %v8480_v44  ;;  %v8465_v6 = vmul.f32 0.0078125, %v8447_v26  ;;  %v8530_v34 = vmul.f32 %v14186_v17, %v8508_v5 }
 0x676   : > { %v10931_v0 = vpop.eup %10930  ;;  %10944 = vrsqrt.f32 %v8475_v40 }
 0x677   : > { %v10933_v11 = vpop.eup %10932  ;;  %v8509_v33 = vmul.f32 %v10931_v0, %v14129_v13  ;;  %v8481_v57 = vadd.f32 1e-05, %v8465_v6  ;;  %v8552_v2 = vadd.f32 %v14192_v46, %v8530_v34 }
 0x678   : > { %v8449_v41 = vpop.xlane.xlu1 %8448  ;;  %v8504_v8 = vmul.f32 %v10933_v11, %v14132_v54 }
 0x679   : > { %v8531_v53 = vmul.f32 %v14186_v17, %v8509_v33  ;;  %10946 = vrsqrt.f32 %v8481_v57  ;;  %v8466_v27 = vmul.f32 0.0078125, %v8449_v41  ;;  %10525 = vmatprep.mubr.f32.mxu1 %v8552_v2 }
 0x67a   : > { %v10935_v50 = vpop.eup %10934  ;;  %v8526_v35 = vmul.f32 %v14186_v17, %v8504_v8 }
 0x67b   : > { %v10937_v9 = vpop.eup %10936  ;;  %v8482_v52 = vadd.f32 1e-05, %v8466_v27  ;;  %v8553_v22 = vadd.f32 %v14192_v46, %v8531_v53  ;;  %v8510_v13 = vmul.f32 %v10935_v50, %v14139_v59 }
 0x67c   : > { %v8451_v51 = vpop.xlane.xlu1 %8450  ;;  %v8548_v43 = vadd.f32 %v14192_v46, %v8526_v35  ;;  %v8505_v62 = vmul.f32 %v10937_v9, %v14142_v23 }
 0x67d   : > { %10948 = vrsqrt.f32 %v8482_v52  ;;  %v8467_v54 = vmul.f32 0.0078125, %v8451_v51  ;;  %10526 = vmatmul.mubr.f32.vlgmr.msra.gmra.mxu1 %v8553_v22  ;;  %v8532_v10 = vmul.f32 %v14186_v17, %v8510_v13 }
 0x67e   : > { %v10939_v29 = vpop.eup %10938  ;;  %10519 = vmatprep.mubr.f32.mxu0 %v8548_v43  ;;  %v8527_v25 = vmul.f32 %v14186_v17, %v8505_v62 }
 0x67f   : > { %v10941_v47 = vpop.eup %10940  ;;  %v8483_v60 = vadd.f32 1e-05, %v8467_v54  ;;  %v8554_v1 = vadd.f32 %v14192_v46, %v8532_v10  ;;  %v8511_v59 = vmul.f32 %v10939_v29, %v14149_v12 }
 0x680   : > { %v8549_v16 = vadd.f32 %v14192_v46, %v8527_v25  ;;  %v8506_v7 = vmul.f32 %v10941_v47, %v14152_v31 }
 0x681   : > { %10950 = vrsqrt.f32 %v8483_v60  ;;  %10528 = vmatprep.mubr.f32.mxu1 %v8554_v1  ;;  %v8533_v23 = vmul.f32 %v14186_v17, %v8511_v59 }
 0x682   : > { %v10943_v45 = vpop.eup %10942  ;;  %10520 = vmatmul.mubr.f32.gmra.mxu0 %v8549_v16  ;;  %v8528_v48 = vmul.f32 %v14186_v17, %v8506_v7 }
 0x683   : > { %v10945_v38 = vpop.eup %10944  ;;  %v8555_v4 = vadd.f32 %v14192_v46, %v8533_v23  ;;  %v8512_v58 = vmul.f32 %v10943_v45, %v14159_v14 }
 0x684   : > { %v8550_v21 = vadd.f32 %v14192_v46, %v8528_v48  ;;  %v8507_v12 = vmul.f32 %v10945_v38, %v14162_v36 }
 0x685   : > { %10529 = vmatmul.mubr.f32.gmra.mxu1 %v8555_v4  ;;  %v8534_v31 = vmul.f32 %v14186_v17, %v8512_v58 }
 0x686   : > { %v10947_v18 = vpop.eup %10946  ;;  %10522 = vmatprep.mubr.f32.mxu0 %v8550_v21  ;;  %v8529_v61 = vmul.f32 %v14186_v17, %v8507_v12 }
 0x687   : > { %v8556_v63 = vadd.f32 %v14192_v46, %v8534_v31  ;;  %v8513_v19 = vmul.f32 %v10947_v18, %v14169_v15 }
 0x688   : > { %v8551_v24 = vadd.f32 %v14192_v46, %v8529_v61 }
 0x689   : > { %10531 = vmatprep.mubr.f32.mxu1 %v8556_v63  ;;  %v8535_v14 = vmul.f32 %v14186_v17, %v8513_v19 }
 0x68a   : > { %v10949_v37 = vpop.eup %10948  ;;  %10523 = vmatmul.mubr.f32.gmra.mxu0 %v8551_v24 }
 0x68b   : > { %v8557_v36 = vadd.f32 %v14192_v46, %v8535_v14  ;;  %v8514_v20 = vmul.f32 %v10949_v37, %v14174_v3 }
 0x68d   : > { %10532 = vmatmul.mubr.f32.gmra.mxu1 %v8557_v36  ;;  %v8536_v39 = vmul.f32 %v14186_v17, %v8514_v20 }
 0x68e   : > { %v10951_v42 = vpop.eup %10950 }
 0x68f   : > { %v8558_v55 = vadd.f32 %v14192_v46, %v8536_v39  ;;  %v8515_v15 = vmul.f32 %v10951_v42, %v14179_v56 }
 0x691   : > { %10534 = vmatprep.mubr.f32.mxu1 %v8558_v55  ;;  %v8537_v30 = vmul.f32 %v14186_v17, %v8515_v15 }
 0x693   : > { %v8559_v32 = vadd.f32 %v14192_v46, %v8537_v30 }
 0x695   : > { %10535 = vmatmul.mubr.f32.gmra.mxu1 %v8559_v32 }
 0x71d   : > { %v10515_v3 = vpop.f32.mrf.mxu0 }
 0x71e   : > { %v8655_v49 = vadd.f32 %v10515_v3, %v14244_v28 }
 0x71f   : > { %v8649_v44 = vpop.f32.mrf.mxu0 }
 0x720   : > { %v8729_v40 = vmax.f32 %v8655_v49, 0.0  ;;  %v8650_v5 = vadd.f32 %v14244_v28, %v8649_v44 }
 0x722   : > { %8745 = vst [vmem:[%s14250_s28 + $0x8] sm:$0xff] %v8729_v40  ;;  %v8728_v56 = vmax.f32 %v8650_v5, 0.0 }
 0x724   : > { %8744 = vst [vmem:[%s14250_s28] sm:$0xff] %v8728_v56 }
 0x725   : > { %v10518_v17 = vpop.f32.mrf.mxu0 }
 0x726   : > { %v8665_v46 = vadd.f32 %v10518_v17, %v14244_v28 }
 0x727   : > { %v8659_v26 = vpop.f32.mrf.mxu0 }
 0x728   : > { %v8731_v6 = vmax.f32 %v8665_v46, 0.0  ;;  %v8660_v34 = vadd.f32 %v14244_v28, %v8659_v26 }
 0x72a   : > { %8747 = vst [vmem:[%s14250_s28 + $0x18] sm:$0xff] %v8731_v6  ;;  %v8730_v0 = vmax.f32 %v8660_v34, 0.0 }
 0x72c   : > { %8746 = vst [vmem:[%s14250_s28 + $0x10] sm:$0xff] %v8730_v0 }
 0x73d   : > { %v10527_v11 = vpop.f32.mrf.mxu1 }
 0x73e   : > { %v8695_v33 = vadd.f32 %v10527_v11, %v14244_v28 }
 0x73f   : > { %v8689_v57 = vpop.f32.mrf.mxu1 }
 0x740   : > { %v8737_v2 = vmax.f32 %v8695_v33, 0.0  ;;  %v8690_v41 = vadd.f32 %v14244_v28, %v8689_v57 }
 0x742   : > { %8753 = vst [vmem:[%s14250_s28 + $0x48] sm:$0xff] %v8737_v2  ;;  %v8736_v8 = vmax.f32 %v8690_v41, 0.0  ;;  %v10521_v53 = vpop.f32.mrf.mxu0 }
 0x743   : > { %v8675_v27 = vadd.f32 %v10521_v53, %v14244_v28 }
 0x744   : > { %8752 = vst [vmem:[%s14250_s28 + $0x40] sm:$0xff] %v8736_v8  ;;  %v8669_v50 = vpop.f32.mrf.mxu0 }
 0x745   : > { %v8733_v35 = vmax.f32 %v8675_v27, 0.0  ;;  %v8670_v9 = vadd.f32 %v14244_v28, %v8669_v50  ;;  %v10530_v52 = vpop.f32.mrf.mxu1 }
 0x746   : > { %v8705_v22 = vadd.f32 %v10530_v52, %v14244_v28 }
 0x747   : > { %8749 = vst [vmem:[%s14250_s28 + $0x28] sm:$0xff] %v8733_v35  ;;  %v8732_v13 = vmax.f32 %v8670_v9, 0.0  ;;  %v8699_v51 = vpop.f32.mrf.mxu1 }
 0x748   : > { %v8739_v43 = vmax.f32 %v8705_v22, 0.0  ;;  %v8700_v62 = vadd.f32 %v14244_v28, %v8699_v51 }
 0x749   : > { %8748 = vst [vmem:[%s14250_s28 + $0x20] sm:$0xff] %v8732_v13 }
 0x74a   : > { %8755 = vst [vmem:[%s14250_s28 + $0x58] sm:$0xff] %v8739_v43  ;;  %v8738_v54 = vmax.f32 %v8700_v62, 0.0  ;;  %v10524_v10 = vpop.f32.mrf.mxu0 }
 0x74b   : > { %v8685_v29 = vadd.f32 %v10524_v10, %v14244_v28 }
 0x74c   : > { %8754 = vst [vmem:[%s14250_s28 + $0x50] sm:$0xff] %v8738_v54  ;;  %v8679_v25 = vpop.f32.mrf.mxu0 }
 0x74d   : > { %v8735_v47 = vmax.f32 %v8685_v29, 0.0  ;;  %v8680_v60 = vadd.f32 %v14244_v28, %v8679_v25  ;;  %v10533_v1 = vpop.f32.mrf.mxu1 }
 0x74e   : > { %v8715_v59 = vadd.f32 %v10533_v1, %v14244_v28 }
 0x74f   : > { %8751 = vst [vmem:[%s14250_s28 + $0x38] sm:$0xff] %v8735_v47  ;;  %v8734_v16 = vmax.f32 %v8680_v60, 0.0  ;;  %v8709_v7 = vpop.f32.mrf.mxu1 }
 0x750   : > { %v8741_v23 = vmax.f32 %v8715_v59, 0.0  ;;  %v8710_v45 = vadd.f32 %v14244_v28, %v8709_v7 }
 0x751   : > { %8750 = vst [vmem:[%s14250_s28 + $0x30] sm:$0xff] %v8734_v16 }
 0x752   : > { %8757 = vst [vmem:[%s14250_s28 + $0x68] sm:$0xff] %v8741_v23  ;;  %v8740_v48 = vmax.f32 %v8710_v45, 0.0 }
 0x754   : > { %8756 = vst [vmem:[%s14250_s28 + $0x60] sm:$0xff] %v8740_v48 }
 0x755   : > { %v10536_v38 = vpop.f32.mrf.mxu1 }
 0x756   : > { %v8725_v4 = vadd.f32 %v10536_v38, %v14244_v28 }
 0x757   : > { %v8719_v58 = vpop.f32.mrf.mxu1 }
 0x758   : > { %v8743_v21 = vmax.f32 %v8725_v4, 0.0  ;;  %v8720_v12 = vadd.f32 %v14244_v28, %v8719_v58 }
 0x75a   : > { %8759 = vst [vmem:[%s14250_s28 + $0x78] sm:$0xff] %v8743_v21  ;;  %v8742_v31 = vmax.f32 %v8720_v12, 0.0 }
 0x75c   : > { %8758 = vst [vmem:[%s14250_s28 + $0x70] sm:$0xff] %v8742_v31 }
 0x75d   : > { %11113 = shalt.err (!%p11110_p10)
}
 0x75e   : > { %s11114_s23 = scalar_lea.hbm %s14285_s25, 2048  ;;  %s11118_s22 = scalar_lea.hbm %s14341_s9, 4096 }
 0x75f   : > { %p11115_p5 = scmp.ne.s32.totalorder %s14285_s25, %s11114_s23  ;;  %p11119_p3 = scmp.lt.s32.totalorder %s14285_s25, %s14341_s9 }
 0x760   : > { %p11120_p1 = scmp.lt.s32.totalorder %s11118_s22, %s11114_s23 }
 0x761   : > { %p11116_p13 = pnand %p11115_p5, %p14812_p6 }
 0x762   : > { %p11121_p2 = por %p11120_p1, %p11119_p3 }
 0x763   : > { %p11117_p11 = pneg %p11116_p13 }
 0x765   : > { %p11122_p4 = pnand %p11121_p2, %p11117_p11 }
 0x767   : > { %11125 = shalt.err (!%p11122_p4)
}
 0x768   : > { %s11186_s3 = smov 128   ;;  %s11187_s26 = smov 8  }
 0x769   : > { %10587 = dma.vmem_to_hbm [thread:$0]  (%p14812_p6), %s14287_s29, 2048, %s14285_s25, %s8761_s15, %s11186_s3, %s11186_s3, %s11187_s26  }
 0x76a PF: > { %s8789_s13 = sand.u32 1, %s11160_s30   ;;  %p14813_p8 = scmp.ne.s32.totalorder %s14354_s16, 0 }
 0x76b   : > { %p14814_p12 = scmp.ge.s32.totalorder %s11172_s12, 2  ;;  %s8790_s17 = scalar_lea.sflag [#allocation4], %s8789_s13 }
 0x76d   : > { %p10607_p7 = pnand %p14814_p12, %p14813_p8 }
 0x76f   : > { %p10608_p9 = pneg %p10607_p7 }
 0x771   : > { %11155 = dma.done.wait (%p10608_p9), %s8790_s17, 2048  }
 0x772   : > { %11157 = vsyncadd (%p10608_p9), %s8790_s17, 4294965248  ;;  %p24_p0 = scmp.ge.s32.totalorder %s11330_s19, 4   ;;  %s14815_s30 = smov %s11164_s10 }
 0x773   : > { %s14816_s10 = smov %s11168_s11  ;;  %s14817_s11 = smov %s11340_s24 }
 0x774   : > { %s14818_s12 = smov %s11330_s19  ;;  %26 = sbr.rel (!%p24_p0) target bundleno = 11 (0xb), region = 117 }
 0x779   :  { %8795 = vsyncpa [#allocation3], 1 }
 0x77a   :  { %8797 = vsyncpa [#allocation3 + $0x1], 1 }
 0x77b   :  { %8798 = vsyncpa [#allocation6], 1 }
 0x77c   :  { %8799 = vsyncpa [#allocation9], 1 }
 0x77d   :  { %8800 = vsyncpa [#allocation4], 1 }
 0x77e   :  { %8802 = vsyncpa [#allocation4 + $0x1], 1 }

</bundles_post_ra>
